<compile_context>
chip_gen: v7x
topology: tpu7x:2x2x1
jax: 0.10.0
libtpu: 0.0.40
codegen_flags: <defaults>
</compile_context>

<pallas_src>
import functools

import jax
import jax.numpy as jnp
from jax.experimental import pallas as pl
from jax.experimental.pallas import tpu as pltpu


# ----------------------------------------------------------------------------
# Fused Pallas kernel
# ----------------------------------------------------------------------------
def _fused_centerhead_kernel(x_ref, cmask_ref,
                             w_sh_ref, s_sh_ref, b_sh_ref,
                             w_hid_ref, s_hid_ref, b_hid_ref,
                             w_fin_ref, b_fin_ref,
                             o_ref,
                             pad1_ref, pad2_ref,
                             *, H, W, WP, exp_range, sig_range):
    """One batch element of: shared conv -> all branch hidden convs -> all
    branch final convs -> sigmoid(hm)/exp(dim) epilogue.

    Flat zero-padded layout: interior pixel (h, w) lives at flat row
    TOP + h*WP + w with TOP = WP + 8; rows [0, WP+8) and [TOP+NOUT, NPAD) are
    a zero halo; columns [W, WP) of every interior row are zeroed junk columns
    that double as the left/right halo of the neighbouring rows.  Conv output
    for flat row p reads src[TOP + p + (dy-1)*WP + (dx-1)].
    """
    NOUT = H * WP
    NWIN = NOUT + 16              # dy window (covers p + 7 + dx, dx<=2)
    TOP = WP + 8
    NPAD = (H + 2) * WP + 16
    HALO = WP + 8                 # zero rows at top and at bottom

    def conv3x3(src_ref, w_ref):
        """3x3 'same' conv on the flat layout.

        * three sublane-aligned bf16 window loads (one per dy, reused by all dx)
        * dy folded into the MXU contraction (K = 3*Cin) when 3*Cin <= 128
        * dx handled by +7/+8/+9 row shifts of the f32 results (unpacked,
          cheap XLU rotates -- never a misaligned packed-bf16 access)
        """
        k3, cout = w_ref.shape[1], w_ref.shape[2]
        cin = k3 // 3
        a = [src_ref[pl.ds(dy * WP, NWIN), :] for dy in range(3)]
        qs = []
        if k3 <= 128:
            lhs = jnp.concatenate(a, axis=-1)                  # (NWIN, 3*Cin)
            for dx in range(3):
                qs.append(jnp.dot(lhs, w_ref[dx],
                                  preferred_element_type=jnp.float32))
        else:
            for dx in range(3):
                q = None
                for dy in range(3):
                    d = jnp.dot(a[dy],
                                w_ref[dx, dy * cin:(dy + 1) * cin, :],
                                preferred_element_type=jnp.float32)
                    q = d if q is None else q + d
                qs.append(q)
        # out[p] = sum_dx Q_dx[p + 7 + dx]
        acc = qs[0][7:7 + NOUT]
        acc = acc + qs[1][8:8 + NOUT]
        acc = acc + qs[2][9:9 + NOUT]
        return acc

    cmask = cmask_ref[...]                                     # (NOUT, 1) f32

    # Zero ONLY the halo rows of the bf16 scratch buffers (interior rows are
    # fully overwritten below; junk columns are zeroed via cmask).
    for ref in (pad1_ref, pad2_ref):
        c = ref.shape[1]
        ref[0:HALO, :] = jnp.zeros((HALO, c), ref.dtype)
        ref[TOP + NOUT:, :] = jnp.zeros((NPAD - TOP - NOUT, c), ref.dtype)

    def store_interior(dst_ref, act_f32):
        # Single f32 -> bf16 cast per layer, sublane-aligned store.
        dst_ref[pl.ds(TOP, NOUT), :] = act_f32.astype(dst_ref.dtype)

    # ---- shared conv + folded BN + ReLU ------------------------------------
    a = conv3x3(x_ref, w_sh_ref)
    a = jnp.maximum(a * s_sh_ref[...] + b_sh_ref[...], 0.0) * cmask
    store_interior(pad1_ref, a)

    # ---- all branch hidden convs (Cout-concatenated) + BN + ReLU -----------
    a = conv3x3(pad1_ref, w_hid_ref)
    a = jnp.maximum(a * s_hid_ref[...] + b_hid_ref[...], 0.0) * cmask
    store_interior(pad2_ref, a)

    # ---- all branch final convs (block-diag packed, lane-dense Cout) -------
    y = conv3x3(pad2_ref, w_fin_ref) + b_fin_ref[...]
    o_ref[...] = y.astype(o_ref.dtype)

    # ---- fused generate_predicted_boxes epilogue on the duplicated groups --
    es, el = exp_range
    if el > 0:
        o_ref[:, es:es + el] = jnp.exp(y[:, es:es + el]).astype(o_ref.dtype)
    ss, sl = sig_range
    if sl > 0:
        ys = y[:, ss:ss + sl]
        z = jnp.exp(-jnp.abs(ys))                              # stable sigmoid
        sig = jnp.where(ys >= 0, 1.0 / (1.0 + z), z / (1.0 + z))
        o_ref[:, ss:ss + sl] = sig.astype(o_ref.dtype)


def _fused_centerhead_call(x_flat, cmask, packed, *, H, W, WP):
    """x_flat: (N, NPAD, Cin) bf16, flat zero-padded input."""
    N, NPAD, Cin = x_flat.shape
    NOUT = H * WP
    C_sh = packed["w_shared"].shape[-1]
    C_hid = packed["w_hidden"].shape[-1]
    C_pad = packed["w_final"].shape[-1]
    K_sh = packed["w_shared"].shape[1]
    K_hid = packed["w_hidden"].shape[1]
    K_fin = packed["w_final"].shape[1]

    kernel = functools.partial(
        _fused_centerhead_kernel, H=H, W=W, WP=WP,
        exp_range=packed["exp_range"], sig_range=packed["sig_range"])

    return pl.pallas_call(
        kernel,
        out_shape=jax.ShapeDtypeStruct((N, NOUT, C_pad), jnp.float32),
        grid=(N,),
        in_specs=[
            pl.BlockSpec((None, NPAD, Cin), lambda n: (n, 0, 0)),   # x (flat)
            pl.BlockSpec((NOUT, 1), lambda n: (0, 0)),              # col mask
            pl.BlockSpec((3, K_sh, C_sh), lambda n: (0, 0, 0)),     # shared w
            pl.BlockSpec((1, C_sh), lambda n: (0, 0)),              # shared scale
            pl.BlockSpec((1, C_sh), lambda n: (0, 0)),              # shared bias
            pl.BlockSpec((3, K_hid, C_hid), lambda n: (0, 0, 0)),   # hidden w
            pl.BlockSpec((1, C_hid), lambda n: (0, 0)),             # hidden scale
            pl.BlockSpec((1, C_hid), lambda n: (0, 0)),             # hidden bias
            pl.BlockSpec((3, K_fin, C_pad), lambda n: (0, 0, 0)),   # final w
            pl.BlockSpec((1, C_pad), lambda n: (0, 0)),             # final bias
        ],
        out_specs=pl.BlockSpec((None, NOUT, C_pad), lambda n: (n, 0, 0)),
        scratch_shapes=[
            pltpu.VMEM((NPAD, C_sh), jnp.bfloat16),    # padded shared activation
            pltpu.VMEM((NPAD, C_hid), jnp.bfloat16),   # padded hidden activations
        ],
        compiler_params=pltpu.CompilerParams(
            dimension_semantics=("parallel",),
            vmem_limit_bytes=48 * 1024 * 1024),
    )(x_flat, cmask,
      packed["w_shared"], packed["s_shared"], packed["b_shared"],
      packed["w_hidden"], packed["s_hidden"], packed["b_hidden"],
      packed["w_final"], packed["b_final"])


# ----------------------------------------------------------------------------
# Deterministic synthetic parameters (mirrors SeparateHead / CenterHead __init__)
# ----------------------------------------------------------------------------
_BN_EPS = 1e-5  # PyTorch BatchNorm2d default


def _kaiming_normal(key, cin, cout):
    fan_in = 3 * 3 * cin
    return (jax.random.normal(key, (3, 3, cin, cout), jnp.float32)
            * jnp.sqrt(2.0 / fan_in))


def _bn_identity_fold(c):
    # gamma=1, beta=0, running_mean=0, running_var=1 (fresh BatchNorm2d, eval).
    # Real checkpoints: scale = gamma/sqrt(var+eps), bias = beta - mean*scale.
    scale = jnp.full((c,), 1.0 / jnp.sqrt(1.0 + _BN_EPS), jnp.float32)
    bias = jnp.zeros((c,), jnp.float32)
    return scale, bias


def init_centerhead_params(key, input_channels, shared_ch, head_dict,
                           class_names_each_head, num_hm_conv,
                           init_bias=-2.19):
    params = {}

    # shared_conv: Conv3x3(no bias) + BN + ReLU
    key, k = jax.random.split(key)
    sc, sb = _bn_identity_fold(shared_ch)
    params["shared"] = dict(w=_kaiming_normal(k, input_channels, shared_ch),
                            scale=sc, bias=sb)

    heads = []
    for cls_names in class_names_each_head:
        cur_head_dict = dict(head_dict)
        cur_head_dict["hm"] = (len(cls_names), num_hm_conv)
        branches = {}
        for name, (out_ch, num_conv) in cur_head_dict.items():
            layers = []
            for _ in range(num_conv - 1):
                key, k = jax.random.split(key)
                sc, sb = _bn_identity_fold(shared_ch)
                layers.append(dict(w=_kaiming_normal(k, shared_ch, shared_ch),
                                   scale=sc, bias=sb))
            key, k = jax.random.split(key)
            final_bias = init_bias if name == "hm" else 0.0
            layers.append(dict(w=_kaiming_normal(k, shared_ch, out_ch),
                               bias=jnp.full((out_ch,), final_bias,
                                             jnp.float32)))
            branches[name] = layers
        heads.append(branches)
    params["heads"] = heads
    return params


def pack_centerhead_params(params):
    """Pack per-layer weights into the three fused matmuls used by the kernel."""
    shared = params["shared"]
    w_sh = shared["w"]                                    # (3,3,Cin,C_sh)
    c_sh = int(w_sh.shape[3])

    branch_list = []                                      # (name, layers)
    for branches in params["heads"]:
        for name, layers in branches.items():
            assert len(layers) == 2, "fused kernel expects num_conv == 2 branches"
            branch_list.append((name, layers))
    n_branch = len(branch_list)
    c_hid = n_branch * c_sh

    # Hidden layers: concatenate along Cout (one fat lane-dense matmul).
    w_hid = jnp.concatenate([l[0]["w"] for _, l in branch_list], axis=3)
    s_hid = jnp.concatenate([l[0]["scale"] for _, l in branch_list], axis=0)
    b_hid = jnp.concatenate([l[0]["bias"] for _, l in branch_list], axis=0)

    out_ch = [int(l[1]["w"].shape[3]) for _, l in branch_list]
    starts = [0]
    for oc in out_ch:
        starts.append(starts[-1] + oc)
    c_lin = starts[-1]

    # Duplicated activated columns grouped contiguously: all exp(dim) columns,
    # then all sigmoid(hm) columns; then zero-pad Cout to a multiple of 128 so
    # the output store is lane-dense (unmasked vst, contiguous HBM bursts).
    n_exp = sum(oc for (name, _), oc in zip(branch_list, out_ch) if name == "dim")
    n_sig = sum(oc for (name, _), oc in zip(branch_list, out_ch) if name == "hm")
    exp_start, sig_start = c_lin, c_lin + n_exp
    c_used = c_lin + n_exp + n_sig
    c_pad = ((c_used + 127) // 128) * 128

    meta, dup_copy = [], []
    bi, e_col, s_col = 0, exp_start, sig_start
    for branches in params["heads"]:
        g_raw, g_dup = {}, {}
        for name in branches:
            s, wd = starts[bi], out_ch[bi]
            g_raw[name] = (s, wd)
            if name == "dim":
                dup_copy.append((s, wd, e_col))
                g_dup["dim"] = (e_col, wd)
                e_col += wd
            elif name == "hm":
                dup_copy.append((s, wd, s_col))
                g_dup["hm"] = (s_col, wd)
                s_col += wd
            bi += 1
        meta.append(dict(raw=g_raw, dup=g_dup))

    # Final layers: block-diagonal packing over the concatenated hidden
    # channels + duplicated dim/hm columns + zero padding to c_pad.
    w_fin = jnp.zeros((3, 3, c_hid, c_pad), jnp.float32)
    b_fin = jnp.zeros((c_pad,), jnp.float32)
    for b, (_, layers) in enumerate(branch_list):
        s, wd = starts[b], out_ch[b]
        w_fin = w_fin.at[:, :, b * c_sh:(b + 1) * c_sh, s:s + wd].set(
            layers[1]["w"])
        b_fin = b_fin.at[s:s + wd].set(layers[1]["bias"])
    for s, wd, d in dup_copy:
        w_fin = w_fin.at[:, :, :, d:d + wd].set(w_fin[:, :, :, s:s + wd])
        b_fin = b_fin.at[d:d + wd].set(b_fin[s:s + wd])

    def pack_w(w):
        # (3,3,Ci,Co) -> (3, 3*Ci, Co) bf16: first axis = dx, K blocked by dy
        # (matches the kernel's dy lane-concat / dy K-block layout).
        ci, co = w.shape[2], w.shape[3]
        return (jnp.transpose(w, (1, 0, 2, 3))
                .reshape(3, 3 * ci, co).astype(jnp.bfloat16))

    return dict(
        w_shared=pack_w(w_sh),
        s_shared=shared["scale"].reshape(1, c_sh),
        b_shared=shared["bias"].reshape(1, c_sh),
        w_hidden=pack_w(w_hid),
        s_hidden=s_hid.reshape(1, c_hid),
        b_hidden=b_hid.reshape(1, c_hid),
        w_final=pack_w(w_fin),
        b_final=b_fin.reshape(1, c_pad),
        exp_range=(exp_start, n_exp),
        sig_range=(sig_start, n_sig),
        meta=meta,
    )


# ----------------------------------------------------------------------------
# CenterHead.forward (+ dense part of generate_predicted_boxes)
# ----------------------------------------------------------------------------
def centerhead_forward(packed, spatial_features_2d):
    """spatial_features_2d: (N, C, H, W) float32 (PyTorch NCHW)."""
    x = jnp.transpose(spatial_features_2d, (0, 2, 3, 1))          # NHWC
    n, h, w, cin = x.shape
    wp = -(-(w + 2) // 8) * 8         # padded width, multiple of 8 (alignment)
    nout = h * wp
    top = wp + 8
    npad = (h + 2) * wp + 16

    # One-time pad/flatten into the aligned flat-halo layout, cast to bf16.
    x_cols = jnp.pad(x, ((0, 0), (0, 0), (0, wp - w), (0, 0)))    # (N,H,WP,C)
    x_flat = x_cols.reshape(n, nout, cin)
    x_flat = jnp.pad(x_flat, ((0, 0), (top, npad - top - nout), (0, 0)))
    x_flat = x_flat.astype(jnp.bfloat16)
    cmask = (jnp.arange(nout) % wp < w).astype(jnp.float32).reshape(nout, 1)

    out_flat = _fused_centerhead_call(x_flat, cmask, packed, H=h, W=w, WP=wp)
    c_pad = out_flat.shape[-1]
    out = out_flat.reshape(n, h, wp, c_pad)[:, :, :w, :]          # drop junk cols
    out_nchw = jnp.transpose(out, (0, 3, 1, 2))                   # (N, Ctot, H, W)

    pred_dicts, decoded = [], []
    for g in packed["meta"]:
        raw = {name: out_nchw[:, s:s + c] for name, (s, c) in g["raw"].items()}
        pred_dicts.append(raw)
        ds_, dc_ = g["dup"]["dim"]
        hs_, hc_ = g["dup"]["hm"]
        decoded.append(dict(
            batch_hm=out_nchw[:, hs_:hs_ + hc_],          # sigmoid applied in-kernel
            batch_center=raw["center"],
            batch_center_z=raw["center_z"],
            batch_dim=out_nchw[:, ds_:ds_ + dc_],         # exp applied in-kernel
            batch_rot_cos=raw["rot"][:, 0:1],
            batch_rot_sin=raw["rot"][:, 1:2],
            batch_vel=raw["vel"] if "vel" in raw else None,
        ))
    return pred_dicts, decoded


# ----------------------------------------------------------------------------
# Example run
# ----------------------------------------------------------------------------
if __name__ == "__main__":
    N, C_IN, H, W = 2, 32, 16, 16
    SHARED_CONV_CHANNEL = 32
    NUM_HM_CONV = 2
    # (out_channels, num_conv) per branch -- standard CenterPoint HEAD_DICT
    HEAD_DICT = {"center": (2, 2), "center_z": (1, 2),
                 "dim": (3, 2), "rot": (2, 2)}
    CLASS_NAMES_EACH_HEAD = [["Car", "Pedestrian", "Cyclist"]]

    key = jax.random.PRNGKey(0)
    key, kx = jax.random.split(key)
    spatial_features_2d = jax.random.normal(kx, (N, C_IN, H, W), jnp.float32)

    params = init_centerhead_params(key, C_IN, SHARED_CONV_CHANNEL, HEAD_DICT,
                                    CLASS_NAMES_EACH_HEAD, NUM_HM_CONV)
    packed = pack_centerhead_params(params)

    forward = jax.jit(lambda feats: centerhead_forward(packed, feats))
    pred_dicts, decoded = forward(spatial_features_2d)
    jax.block_until_ready(pred_dicts)
    jax.block_until_ready(decoded)
    print("KERNEL_OK")
</pallas_src>

<mosaic_0001>
module attributes {stable_mosaic.version = 11 : i64} {
  func.func @_fused_centerhead_kernel(%arg0: i32, %arg1: memref<1x448x32xbf16, #tpu.memory_space<vmem>>, %arg2: memref<384x1xf32, #tpu.memory_space<vmem>>, %arg3: memref<3x96x32xbf16, #tpu.memory_space<vmem>>, %arg4: memref<1x32xf32, #tpu.memory_space<vmem>>, %arg5: memref<1x32xf32, #tpu.memory_space<vmem>>, %arg6: memref<3x96x160xbf16, #tpu.memory_space<vmem>>, %arg7: memref<1x160xf32, #tpu.memory_space<vmem>>, %arg8: memref<1x160xf32, #tpu.memory_space<vmem>>, %arg9: memref<3x480x128xbf16, #tpu.memory_space<vmem>>, %arg10: memref<1x128xf32, #tpu.memory_space<vmem>>, %arg11: memref<1x384x128xf32, #tpu.memory_space<vmem>>, %arg12: memref<448x32xbf16, #tpu.memory_space<vmem>>, %arg13: memref<448x160xbf16, #tpu.memory_space<vmem>>) attributes {dimension_semantics = [#tpu.dimension_semantics<parallel>], iteration_bounds = array<i64: 2>, scalar_prefetch = 0 : i64, scratch_operands = 2 : i64, tpu.core_type = #tpu.core_type<tc>, window_params = [{transform_indices = @transform_0, window_bounds = array<i64: 1, 448, 32>}, {pipeline_mode = #tpu.pipeline_mode<synchronous>, transform_indices = @transform_1, window_bounds = array<i64: 384, 1>}, {pipeline_mode = #tpu.pipeline_mode<synchronous>, transform_indices = @transform_2, window_bounds = array<i64: 3, 96, 32>}, {pipeline_mode = #tpu.pipeline_mode<synchronous>, transform_indices = @transform_3, window_bounds = array<i64: 1, 32>}, {pipeline_mode = #tpu.pipeline_mode<synchronous>, transform_indices = @transform_4, window_bounds = array<i64: 1, 32>}, {pipeline_mode = #tpu.pipeline_mode<synchronous>, transform_indices = @transform_5, window_bounds = array<i64: 3, 96, 160>}, {pipeline_mode = #tpu.pipeline_mode<synchronous>, transform_indices = @transform_6, window_bounds = array<i64: 1, 160>}, {pipeline_mode = #tpu.pipeline_mode<synchronous>, transform_indices = @transform_7, window_bounds = array<i64: 1, 160>}, {pipeline_mode = #tpu.pipeline_mode<synchronous>, transform_indices = @transform_8, window_bounds = array<i64: 3, 480, 128>}, {pipeline_mode = #tpu.pipeline_mode<synchronous>, transform_indices = @transform_9, window_bounds = array<i64: 1, 128>}, {transform_indices = @transform_10, window_bounds = array<i64: 1, 384, 128>}]} {
    %c0 = arith.constant 0 : index
    %c0_0 = arith.constant 0 : index
    %0 = vector.load %arg2[%c0, %c0_0] : memref<384x1xf32, #tpu.memory_space<vmem>>, vector<384x1xf32>
    %cst = arith.constant 0.000000e+00 : bf16
    %1 = vector.broadcast %cst : bf16 to vector<32x32xbf16>
    %c0_1 = arith.constant 0 : index
    %c0_2 = arith.constant 0 : index
    %2 = vector.load %arg12[%c0_1, %c0_2] : memref<448x32xbf16, #tpu.memory_space<vmem>>, vector<32x32xbf16>
    tpu.vector_store %arg12[%c0_1, %c0_2], %1 {strides = array<i32>} : memref<448x32xbf16, #tpu.memory_space<vmem>>, vector<32x32xbf16>,
    %cst_3 = arith.constant 0.000000e+00 : bf16
    %3 = vector.broadcast %cst_3 : bf16 to vector<32x32xbf16>
    %c416 = arith.constant 416 : index
    %c0_4 = arith.constant 0 : index
    %4 = vector.load %arg12[%c416, %c0_4] : memref<448x32xbf16, #tpu.memory_space<vmem>>, vector<32x32xbf16>
    tpu.vector_store %arg12[%c416, %c0_4], %3 {strides = array<i32>} : memref<448x32xbf16, #tpu.memory_space<vmem>>, vector<32x32xbf16>,
    %cst_5 = arith.constant 0.000000e+00 : bf16
    %5 = vector.broadcast %cst_5 : bf16 to vector<32x160xbf16>
    %c0_6 = arith.constant 0 : index
    %c0_7 = arith.constant 0 : index
    %6 = vector.load %arg13[%c0_6, %c0_7] : memref<448x160xbf16, #tpu.memory_space<vmem>>, vector<32x160xbf16>
    tpu.vector_store %arg13[%c0_6, %c0_7], %5 {strides = array<i32>} : memref<448x160xbf16, #tpu.memory_space<vmem>>, vector<32x160xbf16>,
    %cst_8 = arith.constant 0.000000e+00 : bf16
    %7 = vector.broadcast %cst_8 : bf16 to vector<32x160xbf16>
    %c416_9 = arith.constant 416 : index
    %c0_10 = arith.constant 0 : index
    %8 = vector.load %arg13[%c416_9, %c0_10] : memref<448x160xbf16, #tpu.memory_space<vmem>>, vector<32x160xbf16>
    tpu.vector_store %arg13[%c416_9, %c0_10], %7 {strides = array<i32>} : memref<448x160xbf16, #tpu.memory_space<vmem>>, vector<32x160xbf16>,
    %c0_11 = arith.constant 0 : index
    %c0_12 = arith.constant 0 : index
    %c0_13 = arith.constant 0 : index
    %9 = vector.load %arg1[%c0_11, %c0_12, %c0_13] : memref<1x448x32xbf16, #tpu.memory_space<vmem>>, vector<1x400x32xbf16>
    %10 = vector.shape_cast %9 : vector<1x400x32xbf16> to vector<400x32xbf16>
    %c0_14 = arith.constant 0 : index
    %c24 = arith.constant 24 : index
    %c0_15 = arith.constant 0 : index
    %11 = vector.load %arg1[%c0_14, %c24, %c0_15] : memref<1x448x32xbf16, #tpu.memory_space<vmem>>, vector<1x400x32xbf16>
    %12 = vector.shape_cast %11 : vector<1x400x32xbf16> to vector<400x32xbf16>
    %c0_16 = arith.constant 0 : index
    %c48 = arith.constant 48 : index
    %c0_17 = arith.constant 0 : index
    %13 = vector.load %arg1[%c0_16, %c48, %c0_17] : memref<1x448x32xbf16, #tpu.memory_space<vmem>>, vector<1x400x32xbf16>
    %14 = vector.shape_cast %13 : vector<1x400x32xbf16> to vector<400x32xbf16>
    %15 = tpu.concatenate %10, %12, %14 in 1 : vector<400x32xbf16>, vector<400x32xbf16>, vector<400x32xbf16> -> vector<400x96xbf16>
    %c0_18 = arith.constant 0 : index
    %c0_19 = arith.constant 0 : index
    %c0_20 = arith.constant 0 : index
    %16 = vector.load %arg3[%c0_18, %c0_19, %c0_20] : memref<3x96x32xbf16, #tpu.memory_space<vmem>>, vector<1x96x32xbf16>
    %17 = vector.shape_cast %16 : vector<1x96x32xbf16> to vector<96x32xbf16>
    %cst_21 = arith.constant dense<0.000000e+00> : vector<400x32xf32>
    %18 = tpu.matmul %15, %17, %cst_21 {dimension_numbers = #tpu.dot_dimension_numbers<[1], [0], [0], [1], [0, 0, 1, 1], [], []>} : vector<400x96xbf16>, vector<96x32xbf16>, vector<400x32xf32> -> vector<400x32xf32>
    %c1 = arith.constant 1 : index
    %c0_22 = arith.constant 0 : index
    %c0_23 = arith.constant 0 : index
    %19 = vector.load %arg3[%c1, %c0_22, %c0_23] : memref<3x96x32xbf16, #tpu.memory_space<vmem>>, vector<1x96x32xbf16>
    %20 = vector.shape_cast %19 : vector<1x96x32xbf16> to vector<96x32xbf16>
    %cst_24 = arith.constant dense<0.000000e+00> : vector<400x32xf32>
    %21 = tpu.matmul %15, %20, %cst_24 {dimension_numbers = #tpu.dot_dimension_numbers<[1], [0], [0], [1], [0, 0, 1, 1], [], []>} : vector<400x96xbf16>, vector<96x32xbf16>, vector<400x32xf32> -> vector<400x32xf32>
    %c2 = arith.constant 2 : index
    %c0_25 = arith.constant 0 : index
    %c0_26 = arith.constant 0 : index
    %22 = vector.load %arg3[%c2, %c0_25, %c0_26] : memref<3x96x32xbf16, #tpu.memory_space<vmem>>, vector<1x96x32xbf16>
    %23 = vector.shape_cast %22 : vector<1x96x32xbf16> to vector<96x32xbf16>
    %cst_27 = arith.constant dense<0.000000e+00> : vector<400x32xf32>
    %24 = tpu.matmul %15, %23, %cst_27 {dimension_numbers = #tpu.dot_dimension_numbers<[1], [0], [0], [1], [0, 0, 1, 1], [], []>} : vector<400x96xbf16>, vector<96x32xbf16>, vector<400x32xf32> -> vector<400x32xf32>
    %25 = vector.extract_strided_slice %18 {offsets = [7, 0], sizes = [384, 32], strides = [1, 1]} : vector<400x32xf32> to vector<384x32xf32>
    %26 = vector.extract_strided_slice %21 {offsets = [8, 0], sizes = [384, 32], strides = [1, 1]} : vector<400x32xf32> to vector<384x32xf32>
    %27 = arith.addf %25, %26 : vector<384x32xf32>
    %28 = vector.extract_strided_slice %24 {offsets = [9, 0], sizes = [384, 32], strides = [1, 1]} : vector<400x32xf32> to vector<384x32xf32>
    %29 = arith.addf %27, %28 : vector<384x32xf32>
    %c0_28 = arith.constant 0 : index
    %c0_29 = arith.constant 0 : index
    %30 = vector.load %arg4[%c0_28, %c0_29] : memref<1x32xf32, #tpu.memory_space<vmem>>, vector<1x32xf32>
    %31 = vector.broadcast %30 : vector<1x32xf32> to vector<384x32xf32>
    %32 = arith.mulf %29, %31 : vector<384x32xf32>
    %c0_30 = arith.constant 0 : index
    %c0_31 = arith.constant 0 : index
    %33 = vector.load %arg5[%c0_30, %c0_31] : memref<1x32xf32, #tpu.memory_space<vmem>>, vector<1x32xf32>
    %34 = vector.broadcast %33 : vector<1x32xf32> to vector<384x32xf32>
    %35 = arith.addf %32, %34 : vector<384x32xf32>
    %cst_32 = arith.constant 0.000000e+00 : f32
    %36 = vector.broadcast %cst_32 : f32 to vector<384x32xf32>
    %37 = arith.maximumf %35, %36 : vector<384x32xf32>
    %38 = vector.broadcast %0 : vector<384x1xf32> to vector<384x32xf32>
    %39 = arith.mulf %37, %38 : vector<384x32xf32>
    %40 = arith.truncf %39 : vector<384x32xf32> to vector<384x32xbf16>
    %c32 = arith.constant 32 : index
    %c0_33 = arith.constant 0 : index
    %41 = vector.load %arg12[%c32, %c0_33] : memref<448x32xbf16, #tpu.memory_space<vmem>>, vector<384x32xbf16>
    tpu.vector_store %arg12[%c32, %c0_33], %40 {strides = array<i32>} : memref<448x32xbf16, #tpu.memory_space<vmem>>, vector<384x32xbf16>,
    %c0_34 = arith.constant 0 : index
    %c0_35 = arith.constant 0 : index
    %42 = vector.load %arg12[%c0_34, %c0_35] : memref<448x32xbf16, #tpu.memory_space<vmem>>, vector<400x32xbf16>
    %c24_36 = arith.constant 24 : index
    %c0_37 = arith.constant 0 : index
    %43 = vector.load %arg12[%c24_36, %c0_37] : memref<448x32xbf16, #tpu.memory_space<vmem>>, vector<400x32xbf16>
    %c48_38 = arith.constant 48 : index
    %c0_39 = arith.constant 0 : index
    %44 = vector.load %arg12[%c48_38, %c0_39] : memref<448x32xbf16, #tpu.memory_space<vmem>>, vector<400x32xbf16>
    %45 = tpu.concatenate %42, %43, %44 in 1 : vector<400x32xbf16>, vector<400x32xbf16>, vector<400x32xbf16> -> vector<400x96xbf16>
    %c0_40 = arith.constant 0 : index
    %c0_41 = arith.constant 0 : index
    %c0_42 = arith.constant 0 : index
    %46 = vector.load %arg6[%c0_40, %c0_41, %c0_42] : memref<3x96x160xbf16, #tpu.memory_space<vmem>>, vector<1x96x160xbf16>
    %47 = vector.shape_cast %46 : vector<1x96x160xbf16> to vector<96x160xbf16>
    %cst_43 = arith.constant dense<0.000000e+00> : vector<400x160xf32>
    %48 = tpu.matmul %45, %47, %cst_43 {dimension_numbers = #tpu.dot_dimension_numbers<[1], [0], [0], [1], [0, 0, 1, 1], [], []>} : vector<400x96xbf16>, vector<96x160xbf16>, vector<400x160xf32> -> vector<400x160xf32>
    %c1_44 = arith.constant 1 : index
    %c0_45 = arith.constant 0 : index
    %c0_46 = arith.constant 0 : index
    %49 = vector.load %arg6[%c1_44, %c0_45, %c0_46] : memref<3x96x160xbf16, #tpu.memory_space<vmem>>, vector<1x96x160xbf16>
    %50 = vector.shape_cast %49 : vector<1x96x160xbf16> to vector<96x160xbf16>
    %cst_47 = arith.constant dense<0.000000e+00> : vector<400x160xf32>
    %51 = tpu.matmul %45, %50, %cst_47 {dimension_numbers = #tpu.dot_dimension_numbers<[1], [0], [0], [1], [0, 0, 1, 1], [], []>} : vector<400x96xbf16>, vector<96x160xbf16>, vector<400x160xf32> -> vector<400x160xf32>
    %c2_48 = arith.constant 2 : index
    %c0_49 = arith.constant 0 : index
    %c0_50 = arith.constant 0 : index
    %52 = vector.load %arg6[%c2_48, %c0_49, %c0_50] : memref<3x96x160xbf16, #tpu.memory_space<vmem>>, vector<1x96x160xbf16>
    %53 = vector.shape_cast %52 : vector<1x96x160xbf16> to vector<96x160xbf16>
    %cst_51 = arith.constant dense<0.000000e+00> : vector<400x160xf32>
    %54 = tpu.matmul %45, %53, %cst_51 {dimension_numbers = #tpu.dot_dimension_numbers<[1], [0], [0], [1], [0, 0, 1, 1], [], []>} : vector<400x96xbf16>, vector<96x160xbf16>, vector<400x160xf32> -> vector<400x160xf32>
    %55 = vector.extract_strided_slice %48 {offsets = [7, 0], sizes = [384, 160], strides = [1, 1]} : vector<400x160xf32> to vector<384x160xf32>
    %56 = vector.extract_strided_slice %51 {offsets = [8, 0], sizes = [384, 160], strides = [1, 1]} : vector<400x160xf32> to vector<384x160xf32>
    %57 = arith.addf %55, %56 : vector<384x160xf32>
    %58 = vector.extract_strided_slice %54 {offsets = [9, 0], sizes = [384, 160], strides = [1, 1]} : vector<400x160xf32> to vector<384x160xf32>
    %59 = arith.addf %57, %58 : vector<384x160xf32>
    %c0_52 = arith.constant 0 : index
    %c0_53 = arith.constant 0 : index
    %60 = vector.load %arg7[%c0_52, %c0_53] : memref<1x160xf32, #tpu.memory_space<vmem>>, vector<1x160xf32>
    %61 = vector.broadcast %60 : vector<1x160xf32> to vector<384x160xf32>
    %62 = arith.mulf %59, %61 : vector<384x160xf32>
    %c0_54 = arith.constant 0 : index
    %c0_55 = arith.constant 0 : index
    %63 = vector.load %arg8[%c0_54, %c0_55] : memref<1x160xf32, #tpu.memory_space<vmem>>, vector<1x160xf32>
    %64 = vector.broadcast %63 : vector<1x160xf32> to vector<384x160xf32>
    %65 = arith.addf %62, %64 : vector<384x160xf32>
    %cst_56 = arith.constant 0.000000e+00 : f32
    %66 = vector.broadcast %cst_56 : f32 to vector<384x160xf32>
    %67 = arith.maximumf %65, %66 : vector<384x160xf32>
    %68 = vector.broadcast %0 : vector<384x1xf32> to vector<384x160xf32>
    %69 = arith.mulf %67, %68 : vector<384x160xf32>
    %70 = arith.truncf %69 : vector<384x160xf32> to vector<384x160xbf16>
    %c32_57 = arith.constant 32 : index
    %c0_58 = arith.constant 0 : index
    %71 = vector.load %arg13[%c32_57, %c0_58] : memref<448x160xbf16, #tpu.memory_space<vmem>>, vector<384x160xbf16>
    tpu.vector_store %arg13[%c32_57, %c0_58], %70 {strides = array<i32>} : memref<448x160xbf16, #tpu.memory_space<vmem>>, vector<384x160xbf16>,
    %c0_59 = arith.constant 0 : index
    %c0_60 = arith.constant 0 : index
    %72 = vector.load %arg13[%c0_59, %c0_60] : memref<448x160xbf16, #tpu.memory_space<vmem>>, vector<400x160xbf16>
    %c24_61 = arith.constant 24 : index
    %c0_62 = arith.constant 0 : index
    %73 = vector.load %arg13[%c24_61, %c0_62] : memref<448x160xbf16, #tpu.memory_space<vmem>>, vector<400x160xbf16>
    %c48_63 = arith.constant 48 : index
    %c0_64 = arith.constant 0 : index
    %74 = vector.load %arg13[%c48_63, %c0_64] : memref<448x160xbf16, #tpu.memory_space<vmem>>, vector<400x160xbf16>
    %c0_65 = arith.constant 0 : index
    %c0_66 = arith.constant 0 : index
    %c0_67 = arith.constant 0 : index
    %75 = vector.load %arg9[%c0_65, %c0_66, %c0_67] : memref<3x480x128xbf16, #tpu.memory_space<vmem>>, vector<1x160x128xbf16>
    %76 = vector.shape_cast %75 : vector<1x160x128xbf16> to vector<160x128xbf16>
    %cst_68 = arith.constant dense<0.000000e+00> : vector<400x128xf32>
    %77 = tpu.matmul %72, %76, %cst_68 {dimension_numbers = #tpu.dot_dimension_numbers<[1], [0], [0], [1], [0, 0, 1, 1], [], []>} : vector<400x160xbf16>, vector<160x128xbf16>, vector<400x128xf32> -> vector<400x128xf32>
    %c0_69 = arith.constant 0 : index
    %c160 = arith.constant 160 : index
    %c0_70 = arith.constant 0 : index
    %78 = vector.load %arg9[%c0_69, %c160, %c0_70] : memref<3x480x128xbf16, #tpu.memory_space<vmem>>, vector<1x160x128xbf16>
    %79 = vector.shape_cast %78 : vector<1x160x128xbf16> to vector<160x128xbf16>
    %cst_71 = arith.constant dense<0.000000e+00> : vector<400x128xf32>
    %80 = tpu.matmul %73, %79, %cst_71 {dimension_numbers = #tpu.dot_dimension_numbers<[1], [0], [0], [1], [0, 0, 1, 1], [], []>} : vector<400x160xbf16>, vector<160x128xbf16>, vector<400x128xf32> -> vector<400x128xf32>
    %81 = arith.addf %77, %80 : vector<400x128xf32>
    %c0_72 = arith.constant 0 : index
    %c320 = arith.constant 320 : index
    %c0_73 = arith.constant 0 : index
    %82 = vector.load %arg9[%c0_72, %c320, %c0_73] : memref<3x480x128xbf16, #tpu.memory_space<vmem>>, vector<1x160x128xbf16>
    %83 = vector.shape_cast %82 : vector<1x160x128xbf16> to vector<160x128xbf16>
    %cst_74 = arith.constant dense<0.000000e+00> : vector<400x128xf32>
    %84 = tpu.matmul %74, %83, %cst_74 {dimension_numbers = #tpu.dot_dimension_numbers<[1], [0], [0], [1], [0, 0, 1, 1], [], []>} : vector<400x160xbf16>, vector<160x128xbf16>, vector<400x128xf32> -> vector<400x128xf32>
    %85 = arith.addf %81, %84 : vector<400x128xf32>
    %c1_75 = arith.constant 1 : index
    %c0_76 = arith.constant 0 : index
    %c0_77 = arith.constant 0 : index
    %86 = vector.load %arg9[%c1_75, %c0_76, %c0_77] : memref<3x480x128xbf16, #tpu.memory_space<vmem>>, vector<1x160x128xbf16>
    %87 = vector.shape_cast %86 : vector<1x160x128xbf16> to vector<160x128xbf16>
    %cst_78 = arith.constant dense<0.000000e+00> : vector<400x128xf32>
    %88 = tpu.matmul %72, %87, %cst_78 {dimension_numbers = #tpu.dot_dimension_numbers<[1], [0], [0], [1], [0, 0, 1, 1], [], []>} : vector<400x160xbf16>, vector<160x128xbf16>, vector<400x128xf32> -> vector<400x128xf32>
    %c1_79 = arith.constant 1 : index
    %c160_80 = arith.constant 160 : index
    %c0_81 = arith.constant 0 : index
    %89 = vector.load %arg9[%c1_79, %c160_80, %c0_81] : memref<3x480x128xbf16, #tpu.memory_space<vmem>>, vector<1x160x128xbf16>
    %90 = vector.shape_cast %89 : vector<1x160x128xbf16> to vector<160x128xbf16>
    %cst_82 = arith.constant dense<0.000000e+00> : vector<400x128xf32>
    %91 = tpu.matmul %73, %90, %cst_82 {dimension_numbers = #tpu.dot_dimension_numbers<[1], [0], [0], [1], [0, 0, 1, 1], [], []>} : vector<400x160xbf16>, vector<160x128xbf16>, vector<400x128xf32> -> vector<400x128xf32>
    %92 = arith.addf %88, %91 : vector<400x128xf32>
    %c1_83 = arith.constant 1 : index
    %c320_84 = arith.constant 320 : index
    %c0_85 = arith.constant 0 : index
    %93 = vector.load %arg9[%c1_83, %c320_84, %c0_85] : memref<3x480x128xbf16, #tpu.memory_space<vmem>>, vector<1x160x128xbf16>
    %94 = vector.shape_cast %93 : vector<1x160x128xbf16> to vector<160x128xbf16>
    %cst_86 = arith.constant dense<0.000000e+00> : vector<400x128xf32>
    %95 = tpu.matmul %74, %94, %cst_86 {dimension_numbers = #tpu.dot_dimension_numbers<[1], [0], [0], [1], [0, 0, 1, 1], [], []>} : vector<400x160xbf16>, vector<160x128xbf16>, vector<400x128xf32> -> vector<400x128xf32>
    %96 = arith.addf %92, %95 : vector<400x128xf32>
    %c2_87 = arith.constant 2 : index
    %c0_88 = arith.constant 0 : index
    %c0_89 = arith.constant 0 : index
    %97 = vector.load %arg9[%c2_87, %c0_88, %c0_89] : memref<3x480x128xbf16, #tpu.memory_space<vmem>>, vector<1x160x128xbf16>
    %98 = vector.shape_cast %97 : vector<1x160x128xbf16> to vector<160x128xbf16>
    %cst_90 = arith.constant dense<0.000000e+00> : vector<400x128xf32>
    %99 = tpu.matmul %72, %98, %cst_90 {dimension_numbers = #tpu.dot_dimension_numbers<[1], [0], [0], [1], [0, 0, 1, 1], [], []>} : vector<400x160xbf16>, vector<160x128xbf16>, vector<400x128xf32> -> vector<400x128xf32>
    %c2_91 = arith.constant 2 : index
    %c160_92 = arith.constant 160 : index
    %c0_93 = arith.constant 0 : index
    %100 = vector.load %arg9[%c2_91, %c160_92, %c0_93] : memref<3x480x128xbf16, #tpu.memory_space<vmem>>, vector<1x160x128xbf16>
    %101 = vector.shape_cast %100 : vector<1x160x128xbf16> to vector<160x128xbf16>
    %cst_94 = arith.constant dense<0.000000e+00> : vector<400x128xf32>
    %102 = tpu.matmul %73, %101, %cst_94 {dimension_numbers = #tpu.dot_dimension_numbers<[1], [0], [0], [1], [0, 0, 1, 1], [], []>} : vector<400x160xbf16>, vector<160x128xbf16>, vector<400x128xf32> -> vector<400x128xf32>
    %103 = arith.addf %99, %102 : vector<400x128xf32>
    %c2_95 = arith.constant 2 : index
    %c320_96 = arith.constant 320 : index
    %c0_97 = arith.constant 0 : index
    %104 = vector.load %arg9[%c2_95, %c320_96, %c0_97] : memref<3x480x128xbf16, #tpu.memory_space<vmem>>, vector<1x160x128xbf16>
    %105 = vector.shape_cast %104 : vector<1x160x128xbf16> to vector<160x128xbf16>
    %cst_98 = arith.constant dense<0.000000e+00> : vector<400x128xf32>
    %106 = tpu.matmul %74, %105, %cst_98 {dimension_numbers = #tpu.dot_dimension_numbers<[1], [0], [0], [1], [0, 0, 1, 1], [], []>} : vector<400x160xbf16>, vector<160x128xbf16>, vector<400x128xf32> -> vector<400x128xf32>
    %107 = arith.addf %103, %106 : vector<400x128xf32>
    %108 = vector.extract_strided_slice %85 {offsets = [7, 0], sizes = [384, 128], strides = [1, 1]} : vector<400x128xf32> to vector<384x128xf32>
    %109 = vector.extract_strided_slice %96 {offsets = [8, 0], sizes = [384, 128], strides = [1, 1]} : vector<400x128xf32> to vector<384x128xf32>
    %110 = arith.addf %108, %109 : vector<384x128xf32>
    %111 = vector.extract_strided_slice %107 {offsets = [9, 0], sizes = [384, 128], strides = [1, 1]} : vector<400x128xf32> to vector<384x128xf32>
    %112 = arith.addf %110, %111 : vector<384x128xf32>
    %c0_99 = arith.constant 0 : index
    %c0_100 = arith.constant 0 : index
    %113 = vector.load %arg10[%c0_99, %c0_100] : memref<1x128xf32, #tpu.memory_space<vmem>>, vector<1x128xf32>
    %114 = vector.broadcast %113 : vector<1x128xf32> to vector<384x128xf32>
    %115 = arith.addf %112, %114 : vector<384x128xf32>
    %c0_101 = arith.constant 0 : index
    %c0_102 = arith.constant 0 : index
    %c0_103 = arith.constant 0 : index
    %116 = vector.load %arg11[%c0_101, %c0_102, %c0_103] : memref<1x384x128xf32, #tpu.memory_space<vmem>>, vector<1x384x128xf32>
    %117 = vector.shape_cast %116 : vector<1x384x128xf32> to vector<384x128xf32>
    %118 = vector.shape_cast %115 : vector<384x128xf32> to vector<1x384x128xf32>
    tpu.vector_store %arg11[%c0_101, %c0_102, %c0_103], %118 {strides = array<i32>} : memref<1x384x128xf32, #tpu.memory_space<vmem>>, vector<1x384x128xf32>,
    %119 = vector.extract_strided_slice %115 {offsets = [0, 11], sizes = [384, 3], strides = [1, 1]} : vector<384x128xf32> to vector<384x3xf32>
    %120 = math.exp %119 : vector<384x3xf32>
    %c0_104 = arith.constant 0 : index
    %c0_105 = arith.constant 0 : index
    %c11 = arith.constant 11 : index
    %121 = vector.load %arg11[%c0_104, %c0_105, %c11] : memref<1x384x128xf32, #tpu.memory_space<vmem>>, vector<1x384x3xf32>
    %122 = vector.shape_cast %121 : vector<1x384x3xf32> to vector<384x3xf32>
    %123 = vector.shape_cast %120 : vector<384x3xf32> to vector<1x384x3xf32>
    tpu.vector_store %arg11[%c0_104, %c0_105, %c11], %123 {strides = array<i32>} : memref<1x384x128xf32, #tpu.memory_space<vmem>>, vector<1x384x3xf32>,
    %124 = vector.extract_strided_slice %115 {offsets = [0, 14], sizes = [384, 3], strides = [1, 1]} : vector<384x128xf32> to vector<384x3xf32>
    %125 = math.absf %124 : vector<384x3xf32>
    %cst_106 = arith.constant 0.000000e+00 : f32
    %126 = vector.broadcast %cst_106 : f32 to vector<384x3xf32>
    %127 = arith.subf %126, %125 : vector<384x3xf32>
    %128 = math.exp %127 : vector<384x3xf32>
    %cst_107 = arith.constant 0.000000e+00 : f32
    %129 = vector.broadcast %cst_107 : f32 to vector<384x3xf32>
    %130 = arith.cmpf oge, %124, %129 : vector<384x3xf32>
    %cst_108 = arith.constant 1.000000e+00 : f32
    %131 = vector.broadcast %cst_108 : f32 to vector<384x3xf32>
    %132 = arith.addf %131, %128 : vector<384x3xf32>
    %cst_109 = arith.constant 1.000000e+00 : f32
    %133 = vector.broadcast %cst_109 : f32 to vector<384x3xf32>
    %134 = arith.divf %133, %132 : vector<384x3xf32>
    %cst_110 = arith.constant 1.000000e+00 : f32
    %135 = vector.broadcast %cst_110 : f32 to vector<384x3xf32>
    %136 = arith.addf %135, %128 : vector<384x3xf32>
    %137 = arith.divf %128, %136 : vector<384x3xf32>
    %138 = arith.select %130, %134, %137 : vector<384x3xi1>, vector<384x3xf32>
    %c0_111 = arith.constant 0 : index
    %c0_112 = arith.constant 0 : index
    %c14 = arith.constant 14 : index
    %139 = vector.load %arg11[%c0_111, %c0_112, %c14] : memref<1x384x128xf32, #tpu.memory_space<vmem>>, vector<1x384x3xf32>
    %140 = vector.shape_cast %139 : vector<1x384x3xf32> to vector<384x3xf32>
    %141 = vector.shape_cast %138 : vector<384x3xf32> to vector<1x384x3xf32>
    tpu.vector_store %arg11[%c0_111, %c0_112, %c14], %141 {strides = array<i32>} : memref<1x384x128xf32, #tpu.memory_space<vmem>>, vector<1x384x3xf32>,
    return
  }
  func.func @transform_0(%arg0: i32) -> (i32, i32, i32) {
    %c0_i32 = arith.constant 0 : i32
    %c0_i32_0 = arith.constant 0 : i32
    %c0_i32_1 = arith.constant 0 : i32
    return %arg0, %c0_i32, %c0_i32_0 : i32, i32, i32
  }
  func.func @transform_1(%arg0: i32) -> (i32, i32) {
    %c0_i32 = arith.constant 0 : i32
    %c0_i32_0 = arith.constant 0 : i32
    %c0_i32_1 = arith.constant 0 : i32
    return %c0_i32, %c0_i32_0 : i32, i32
  }
  func.func @transform_2(%arg0: i32) -> (i32, i32, i32) {
    %c0_i32 = arith.constant 0 : i32
    %c0_i32_0 = arith.constant 0 : i32
    %c0_i32_1 = arith.constant 0 : i32
    %c0_i32_2 = arith.constant 0 : i32
    return %c0_i32, %c0_i32_0, %c0_i32_1 : i32, i32, i32
  }
  func.func @transform_3(%arg0: i32) -> (i32, i32) {
    %c0_i32 = arith.constant 0 : i32
    %c0_i32_0 = arith.constant 0 : i32
    %c0_i32_1 = arith.constant 0 : i32
    return %c0_i32, %c0_i32_0 : i32, i32
  }
  func.func @transform_4(%arg0: i32) -> (i32, i32) {
    %c0_i32 = arith.constant 0 : i32
    %c0_i32_0 = arith.constant 0 : i32
    %c0_i32_1 = arith.constant 0 : i32
    return %c0_i32, %c0_i32_0 : i32, i32
  }
  func.func @transform_5(%arg0: i32) -> (i32, i32, i32) {
    %c0_i32 = arith.constant 0 : i32
    %c0_i32_0 = arith.constant 0 : i32
    %c0_i32_1 = arith.constant 0 : i32
    %c0_i32_2 = arith.constant 0 : i32
    return %c0_i32, %c0_i32_0, %c0_i32_1 : i32, i32, i32
  }
  func.func @transform_6(%arg0: i32) -> (i32, i32) {
    %c0_i32 = arith.constant 0 : i32
    %c0_i32_0 = arith.constant 0 : i32
    %c0_i32_1 = arith.constant 0 : i32
    return %c0_i32, %c0_i32_0 : i32, i32
  }
  func.func @transform_7(%arg0: i32) -> (i32, i32) {
    %c0_i32 = arith.constant 0 : i32
    %c0_i32_0 = arith.constant 0 : i32
    %c0_i32_1 = arith.constant 0 : i32
    return %c0_i32, %c0_i32_0 : i32, i32
  }
  func.func @transform_8(%arg0: i32) -> (i32, i32, i32) {
    %c0_i32 = arith.constant 0 : i32
    %c0_i32_0 = arith.constant 0 : i32
    %c0_i32_1 = arith.constant 0 : i32
    %c0_i32_2 = arith.constant 0 : i32
    return %c0_i32, %c0_i32_0, %c0_i32_1 : i32, i32, i32
  }
  func.func @transform_9(%arg0: i32) -> (i32, i32) {
    %c0_i32 = arith.constant 0 : i32
    %c0_i32_0 = arith.constant 0 : i32
    %c0_i32_1 = arith.constant 0 : i32
    return %c0_i32, %c0_i32_0 : i32, i32
  }
  func.func @transform_10(%arg0: i32) -> (i32, i32, i32) {
    %c0_i32 = arith.constant 0 : i32
    %c0_i32_0 = arith.constant 0 : i32
    %c0_i32_1 = arith.constant 0 : i32
    return %arg0, %c0_i32, %c0_i32_0 : i32, i32, i32
  }
}

</mosaic_0001>

<bundles_post_ra>
// kernel: _lambda_.1
= control target key start
LH: loop header
LB: loop body
LE: loop exit
PB: predicated region body
PF: predicated region fallthrough
CT: control target
= control target key end

     0   :  { %15 = vsyncpa [#allocation5], 0  ;;  %s20227_s0 = inlined_call_operand.vmem [shape: bf16[2,448,32], index: 0, kind: input, shape index: {}]   ;;  %s20228_s1 = inlined_call_operand.vmem [shape: f32[384,1], index: 1, kind: input, shape index: {}]   ;;  %s20229_s2 = inlined_call_operand.hbm [shape: bf16[3,96,32], index: 2, kind: input, shape index: {}]   ;;  %s20230_s3 = inlined_call_operand.vmem [shape: f32[1,32], index: 3, kind: input, shape index: {}]   ;;  %s20231_s4 = inlined_call_operand.vmem [shape: f32[1,32], index: 4, kind: input, shape index: {}]   ;;  %s20232_s5 = inlined_call_operand.vmem [shape: bf16[3,96,160], index: 5, kind: input, shape index: {}]   ;;  %s20233_s6 = inlined_call_operand.vmem [shape: f32[1,160], index: 6, kind: input, shape index: {}]   ;;  %s20234_s7 = inlined_call_operand.vmem [shape: f32[1,160], index: 7, kind: input, shape index: {}]   ;;  %s20235_s8 = inlined_call_operand.hbm [shape: bf16[3,480,128], index: 8, kind: input, shape index: {}]   ;;  %s20236_s9 = inlined_call_operand.hbm [shape: f32[1,128], index: 9, kind: input, shape index: {}]   ;;  %s20237_s10 = inlined_call_operand.vmem [shape: f32[2,384,128], index: 10, kind: output, shape index: {}]  }
   0x1   :  { %16 = vsyncpa [#allocation7], 0  ;;  %s13569_s13 = smov 0  }
   0x2 LB: > { %s13575_s14 = sadd.s32 4294967295, %s13502_s13   ;;  %p11279_p0 = scmp.ge.s32.totalorder %s13502_s13, 1  ;;  %s13502_s13 = sphi %s13569_s13, %s22_s13  }
   0x3   : > { %p268_p1 = scmp.lt.s32.totalorder %s13502_s13, 3  ;;  %p20238_p2 = scmp.eq.s32.totalorder %s13575_s14, 0 }
   0x4   : > { %s13504_s16 = smov [#allocation6]   ;;  %s13505_s18 = smov [#allocation4]  }
   0x5   : > { %p13580_p3 = pnand %p11279_p0, %p268_p1  ;;  %s311_s17 = sshll.u32 %s13504_s16, 4  ;;  %s312_s17 = int_to_ptr.vmem [resolvable:$true] %s311_s17 }
   0x6   : > { %s283_s19 = sshll.u32 %s13505_s18, 4  ;;  %s13506_s21 = smov [#allocation8]   ;;  %s13592_s19 = int_to_ptr.vmem [resolvable:$true] %s283_s19 }
   0x7   : > { %s20473_s15 = scalar_select %p13580_p3, 1, 0 }
   0x8   : > { %p12746_p4 = pneg %p13580_p3  ;;  %s325_s22 = sshll.u32 %s13506_s21, 4  ;;  %s13594_s22 = int_to_ptr.vmem [resolvable:$true] %s325_s22 }
   0x9   : > { %s13404_s25 = scalar_lea.hbm %s20235_s8, 11520 }
   0xa   : > { %p13588_p5 = pnand %p20238_p2, %p12746_p4  ;;  %p13405_p6 = scmp.ne.s32.totalorder %s20235_s8, %s13404_s25 }
   0xb   : > { %p13411_p10 = scmp.lt.u32.totalorder %s13404_s25, %s20235_s8 }
   0xc   : > { %p13604_p7 = pneg %p13588_p5 }
   0xe   : > { %p13407_p8 = pnand %p13604_p7, %p13405_p6 }
  0x10   : > { %p13408_p9 = pneg %p13407_p8 }
  0x12   : > { %p13413_p11 = pnand %p13411_p10, %p13408_p9 }
  0x14   : > { %13416 = shalt.err (!%p13413_p11)
}
  0x15   : > { %s13417_s11 = scalar_lea.vmem %s312_s17, 11520  ;;  %p13425_p1 = scmp.lt.s32.totalorder %s312_s17, %s312_s17 }
  0x16   : > { %p13418_p12 = scmp.ne.s32.totalorder %s312_s17, %s13417_s11  ;;  %p13426_p4 = scmp.lt.s32.totalorder %s13417_s11, %s13417_s11 }
  0x18   : > { %p13420_p13 = pnand %p13418_p12, %p13604_p7  ;;  %p13427_p2 = por %p13426_p4, %p13425_p1 }
  0x1a   : > { %p13421_p0 = pneg %p13420_p13 }
  0x1c   : > { %p13428_p3 = pnand %p13427_p2, %p13421_p0 }
  0x1e   : > { %13431 = shalt.err (!%p13428_p3)
}
  0x1f   : > { %s13507_s12 = smov 64   ;;  %s13508_s16 = smov 4  }
  0x20   : > { %12752 = dma.hbm_to_vmem [thread:$0]  (!%p13588_p5), %s20235_s8, 11520, %s312_s17, [#allocation7], %s13507_s12, %s13507_s12, %s13508_s16  }
  0x21   : > { %s13432_s25 = scalar_lea.hbm %s20229_s2, 2304 }
  0x22   : > { %p13433_p6 = scmp.ne.s32.totalorder %s20229_s2, %s13432_s25  ;;  %p13439_p8 = scmp.lt.u32.totalorder %s13432_s25, %s20229_s2 }
  0x24   : > { %p13435_p2 = pnand %p13433_p6, %p13604_p7 }
  0x26   : > { %p13436_p3 = pneg %p13435_p2 }
  0x28   : > { %p13441_p9 = pnand %p13439_p8, %p13436_p3 }
  0x2a   : > { %13444 = shalt.err (!%p13441_p9)
}
  0x2b   : > { %s13445_s17 = scalar_lea.vmem %s13592_s19, 2304  ;;  %p13453_p13 = scmp.lt.s32.totalorder %s13592_s19, %s13592_s19 }
  0x2c   : > { %p13446_p10 = scmp.ne.s32.totalorder %s13592_s19, %s13445_s17  ;;  %p13454_p0 = scmp.lt.s32.totalorder %s13445_s17, %s13445_s17 }
  0x2e   : > { %p13448_p11 = pnand %p13446_p10, %p13604_p7  ;;  %p13455_p1 = por %p13454_p0, %p13453_p13 }
  0x30   : > { %p13449_p12 = pneg %p13448_p11 }
  0x32   : > { %p13456_p4 = pnand %p13455_p1, %p13449_p12 }
  0x34   : > { %13459 = shalt.err (!%p13456_p4)
}
  0x35   : > { %12749 = dma.hbm_to_vmem [thread:$0]  (!%p13588_p5), %s20229_s2, 2304, %s13592_s19, [#allocation5], %s13507_s12, %s13507_s12, %s13508_s16  }
  0x36   : > { %s13460_s24 = scalar_lea.hbm %s20236_s9, 16 }
  0x37   : > { %p13461_p6 = scmp.ne.s32.totalorder %s20236_s9, %s13460_s24  ;;  %p13467_p8 = scmp.lt.u32.totalorder %s13460_s24, %s20236_s9 }
  0x39   : > { %p13463_p2 = pnand %p13461_p6, %p13604_p7 }
  0x3b   : > { %p13464_p3 = pneg %p13463_p2 }
  0x3d   : > { %p13469_p9 = pnand %p13467_p8, %p13464_p3 }
  0x3f   : > { %13472 = shalt.err (!%p13469_p9)
}
  0x40   : > { %s13473_s19 = scalar_lea.vmem %s13594_s22, 16  ;;  %s13480_s12 = scalar_lea.vmem %s13594_s22, 32 }
  0x41   : > { %p13474_p10 = scmp.ne.s32.totalorder %s13594_s22, %s13473_s19  ;;  %p13481_p13 = scmp.lt.s32.totalorder %s13594_s22, %s13594_s22 }
  0x42   : > { %p13482_p0 = scmp.lt.s32.totalorder %s13480_s12, %s13473_s19 }
  0x43   : > { %p13476_p11 = pnand %p13474_p10, %p13604_p7 }
  0x44   : > { %p13483_p1 = por %p13482_p0, %p13481_p13 }
  0x45   : > { %p13477_p12 = pneg %p13476_p11 }
  0x47   : > { %p13484_p4 = pnand %p13483_p1, %p13477_p12 }
  0x49   : > { %13487 = shalt.err (!%p13484_p4)
}
  0x4a   : > { %12755 = dma.hbm_to_vmem [thread:$0]  (!%p13588_p5), %s20236_s9, 16, %s13594_s22, [#allocation7]  }
  0x4b   : > { %p20476_p6 = scmp.ne.s32.totalorder %s20473_s15, 0 }
  0x4d   : > { %346 = sbr.rel (%p20476_p6) target bundleno = 2582 (0xa16), region = 60 }
  0x54   : > { %p20477_p7 = scmp.eq.s32.totalorder %s13575_s14, 0 }
  0x56   : > { %13493 = dma.done.wait (%p20477_p7), [#allocation5], 2304   ;;  %p20478_p2 = pmov %p20477_p7 }
  0x58   : > { %13495 = vsyncadd (%p20478_p2), [#allocation5], 4294964992  ;;  %p20479_p3 = pmov %p20478_p2 }
  0x59   : > { %p20480_p8 = pmov %p20478_p2 }
  0x5a   : > { %13497 = dma.done.wait (%p20479_p3), [#allocation7], 11536  }
  0x5b   : > { %13499 = vsyncadd (%p20480_p8), [#allocation7], 4294955760  ;;  %p392_p9 = scmp.lt.s32.totalorder %s13575_s14, 1  ;;  %v13509_v0 = vmov 0.0   ;;  %vm13510_vm0 = vmmov 0   ;;  %s13511_s17 = smov 32  }
  0x5c   : > { %11984 = vmatprep.subr.bf16.mxu0 %v13509_v0  ;;  %12320 = vmatprep.subr.bf16.mxu1 %v13509_v0  ;;  %s13512_s11 = smov 64   ;;  %v12833_v37 = vld [vmem:[#allocation4] sm:$0xff]   ;;  %v12835_v40 = vld [vmem:[#allocation4 + $0x8] sm:$0xff]   ;;  %v12836_v45 = vld [vmem:[#allocation4 + $0x10] sm:$0xff]   ;;  %vm451_vm1 = vcmask 261120   ;;  %vm860_vm2 = vcmask 523264  }
  0x5d   : > { %s21105_s14 = smov (!%p392_p9, %s13575_s14), 1  ;;  %11996 = vmatprep.mubr.msk.bf16.mxu0 %vm13510_vm0, %v13509_v0  ;;  %12048 = vmatprep.mubr.msk.bf16.mxu1 %vm13510_vm0, %v13509_v0  ;;  %v12837_v50 = vld [vmem:[#allocation4 + $0x18] sm:$0xff]   ;;  %v12838_v55 = vld [vmem:[#allocation4 + $0x20] sm:$0xff]   ;;  %v12840_v59 = vld [vmem:[#allocation4 + $0x28] sm:$0xff]   ;;  %vm959_vm3 = vcmask 785408   ;;  %vm1851_vm4 = vcmask 1046528  }
  0x5e   : > { %s12732_s15 = smul.u32 224, %s21105_s14  ;;  %11985 = vmatpush3.bf16.msra.mxu0 %v12833_v37  ;;  %12326 = vmatpush3.bf16.msra.mxu1 %v12833_v37  ;;  %vm2094_vm5 = vcmask 1045504   ;;  %vm2861_vm6 = vsmask.f32 4352  ;;  %vm3190_vm7 = vcmask 1043456   ;;  %vm10597_vm8 = vcmask 113759  }
  0x5f   : > { %11986 = vmatprep.subr.bf16.mxu0 %v13509_v0  ;;  %12321 = vmatprep.subr.bf16.mxu1 %v13509_v0  ;;  %s12733_s27 = smul.u32 384, %s21105_s14  ;;  %vm10599_vm9 = vcmask 113752   ;;  %vm11139_vm10 = vcmask 138359   ;;  %vm11141_vm12 = vcmask 138352  }
  0x60   : > { %s13691_s28 = scalar_lea.vmem %s20227_s0, %s12732_s15 }
  0x61   : > { %v493_v1 = vld [vmem:[%s13691_s28 + $0x74] sm:$0xf]  ;;  %v494_v2 = vld [vmem:[%s13691_s28 + $0x78] sm:$0xf]  ;;  %v495_v3 = vld [vmem:[%s13691_s28 + $0x7c] sm:$0xf]  ;;  %s19306_s12 = scalar_lea.vmem %s20237_s10, %s12733_s27 }
  0x62   : > { %v13696_v4 = vcombine.low %v494_v2, %v495_v3  ;;  %v11328_v5 = vcombine.low %v493_v1, %v494_v2  ;;  %v13699_v6 = vld [vmem:[%s13691_s28 + $0x70] sm:$0xf]  ;;  %v13702_v7 = vld [vmem:[%s13691_s28 + $0xc] sm:$0xf]  ;;  %v13711_v10 = vld [vmem:[%s13691_s28 + $0x14] sm:$0xf]  ;;  %11987 = vmatpush3.bf16.msra.mxu0 %v12835_v40  ;;  %12327 = vmatpush3.bf16.msra.mxu1 %v12835_v40 }
  0x63   : > { %v13705_v8 = vld [vmem:[%s13691_s28 + $0x10] sm:$0xf]  ;;  %v13708_v9 = vcombine.low %v13699_v6, %v493_v1  ;;  %v13716_v12 = vld [vmem:[%s13691_s28 + $0x8] sm:$0xf]  ;;  %v496_v13 = vld [vmem:[%s13691_s28 + $0x80] sm:$0xf]  ;;  %11988 = vmatprep.subr.bf16.mxu0 %v13509_v0  ;;  %12322 = vmatprep.subr.bf16.mxu1 %v13509_v0 }
  0x64   : > { %v11315_v11 = vcombine.low %v13702_v7, %v13705_v8  ;;  %702 = vrot.lane.b32.xlu1 %v11328_v5, %s13511_s17  ;;  %v11292_v14 = vcombine.low %v13705_v8, %v13711_v10  ;;  %v11291_v15 = vcombine.low %v13716_v12, %v13702_v7  ;;  %v497_v16 = vld [vmem:[%s13691_s28 + $0x84] sm:$0xf]  ;;  %v470_v17 = vld [vmem:[%s13691_s28 + $0x18] sm:$0xf]  ;;  %v471_v18 = vld [vmem:[%s13691_s28 + $0x1c] sm:$0xf]  ;;  %v11329_v28 = vcombine.low %v495_v3, %v496_v13 }
  0x65   : > { %v13728_v19 = vcombine.low %v496_v13, %v497_v16  ;;  %v13730_v20 = vcombine.low %v470_v17, %v471_v18  ;;  %v472_v21 = vld [vmem:[%s13691_s28 + $0x20] sm:$0xf]  ;;  %v473_v22 = vld [vmem:[%s13691_s28 + $0x24] sm:$0xf]  ;;  %v11316_v24 = vcombine.low %v13711_v10, %v470_v17  ;;  %v498_v25 = vld [vmem:[%s13691_s28 + $0x88] sm:$0xf] }
  0x66   : > { %676 = vrot.lane.b32.xlu0 %v11315_v11, %s13511_s17  ;;  %v13736_v23 = vcombine.low %v472_v21, %v473_v22  ;;  %v499_v26 = vld [vmem:[%s13691_s28 + $0x8c] sm:$0xf]  ;;  %v474_v29 = vld [vmem:[%s13691_s28 + $0x28] sm:$0xf]  ;;  %v11317_v32 = vcombine.low %v471_v18, %v472_v21  ;;  %v500_v33 = vld [vmem:[%s13691_s28 + $0x90] sm:$0xf]  ;;  %v11330_v38 = vcombine.low %v497_v16, %v498_v25  ;;  %11989 = vmatpush3.bf16.msra.mxu0 %v12836_v45 }
  0x67   : > { %v13745_v27 = vcombine.low %v498_v25, %v499_v26  ;;  %v475_v30 = vld [vmem:[%s13691_s28 + $0x2c] sm:$0xf]  ;;  %v501_v34 = vld [vmem:[%s13691_s28 + $0x94] sm:$0xf]  ;;  %v476_v35 = vld [vmem:[%s13691_s28 + $0x30] sm:$0xf]  ;;  %v11318_v43 = vcombine.low %v473_v22, %v474_v29  ;;  %v11331_v48 = vcombine.low %v499_v26, %v500_v33  ;;  %12328 = vmatpush3.bf16.msra.mxu1 %v12836_v45  ;;  %11990 = vmatprep.subr.bf16.mxu0 %v13509_v0 }
  0x68   : > { %761 = vrot.lane.b32.xlu1 %v13728_v19, %s13512_s11  ;;  %v13752_v31 = vcombine.low %v474_v29, %v475_v30  ;;  %v13760_v36 = vcombine.low %v500_v33, %v501_v34  ;;  %v13764_v39 = vld [vmem:[%s13691_s28 + $0x34] sm:$0xf]  ;;  %v502_v42 = vld [vmem:[%s13691_s28 + $0x98] sm:$0xf]  ;;  %v503_v44 = vld [vmem:[%s13691_s28 + $0x9c] sm:$0xf]  ;;  %12323 = vmatprep.subr.bf16.mxu1 %v13509_v0  ;;  %v11319_v53 = vcombine.low %v475_v30, %v476_v35 }
  0x69   : > { %v13771_v41 = vcombine.low %v476_v35, %v13764_v39  ;;  %v13780_v46 = vcombine.low %v502_v42, %v503_v44  ;;  %v478_v47 = vld [vmem:[%s13691_s28 + $0x38] sm:$0xf]  ;;  %v479_v49 = vld [vmem:[%s13691_s28 + $0x3c] sm:$0xf]  ;;  %v504_v51 = vld [vmem:[%s13691_s28 + $0xa0] sm:$0xf]  ;;  %v11332_v60 = vcombine.low %v501_v34, %v502_v42 }
  0x6a   : > { %735 = vrot.lane.b32.xlu0 %v13730_v20, %s13512_s11  ;;  %v13790_v52 = vcombine.low %v478_v47, %v479_v49  ;;  %v505_v54 = vld [vmem:[%s13691_s28 + $0xa4] sm:$0xf]  ;;  %11991 = vmatpush3.bf16.msra.mxu0 %v12837_v50  ;;  %v480_v56 = vld [vmem:[%s13691_s28 + $0x40] sm:$0xf]  ;;  %v506_v61 = vld [vmem:[%s13691_s28 + $0xa8] sm:$0xf]  ;;  %v11320_v1 = vcombine.low %v13764_v39, %v478_v47  ;;  %v11333_v11 = vcombine.low %v503_v44, %v504_v51 }
  0x6b   : > { %12329 = vmatpush3.bf16.msra.mxu1 %v12837_v50  ;;  %v481_v57 = vld [vmem:[%s13691_s28 + $0x44] sm:$0xf]  ;;  %11992 = vmatprep.subr.bf16.mxu0 %v13509_v0  ;;  %v13800_v58 = vcombine.low %v504_v51, %v505_v54  ;;  %v507_v62 = vld [vmem:[%s13691_s28 + $0xac] sm:$0xf]  ;;  %v482_v2 = vld [vmem:[%s13691_s28 + $0x48] sm:$0xf]  ;;  %v11321_v16 = vcombine.low %v479_v49, %v480_v56  ;;  %v11334_v25 = vcombine.low %v505_v54, %v506_v61 }
  0x6c   : > { %737 = vrot.lane.b32.xlu1 %v13736_v23, %s13512_s11  ;;  %12324 = vmatprep.subr.bf16.mxu1 %v13509_v0  ;;  %v13809_v63 = vcombine.low %v480_v56, %v481_v57  ;;  %v483_v3 = vld [vmem:[%s13691_s28 + $0x4c] sm:$0xf]  ;;  %v13819_v5 = vcombine.low %v506_v61, %v507_v62  ;;  %v508_v17 = vld [vmem:[%s13691_s28 + $0xb0] sm:$0xf]  ;;  %v509_v18 = vld [vmem:[%s13691_s28 + $0xb4] sm:$0xf]  ;;  %v11322_v30 = vcombine.low %v481_v57, %v482_v2 }
  0x6d   : > { %v13824_v13 = vcombine.low %v482_v2, %v483_v3  ;;  %v484_v21 = vld [vmem:[%s13691_s28 + $0x50] sm:$0xf]  ;;  %v485_v22 = vld [vmem:[%s13691_s28 + $0x54] sm:$0xf]  ;;  %v510_v26 = vld [vmem:[%s13691_s28 + $0xb8] sm:$0xf]  ;;  %v11335_v35 = vcombine.low %v507_v62, %v508_v17 }
  0x6e   : > { %678 = vrot.lane.b32.xlu0 %v11316_v24, %s13511_s17  ;;  %11993 = vmatpush3.bf16.msra.mxu0 %v12838_v55  ;;  %v13833_v24 = vcombine.low %v508_v17, %v509_v18  ;;  %v13840_v29 = vcombine.low %v484_v21, %v485_v22  ;;  %v487_v33 = vld [vmem:[%s13691_s28 + $0x5c] sm:$0xf]  ;;  %v512_v37 = vld [vmem:[%s13691_s28 + $0xc0] sm:$0xf]  ;;  %v11323_v39 = vcombine.low %v483_v3, %v484_v21  ;;  %v513_v40 = vld [vmem:[%s13691_s28 + $0xc4] sm:$0xf] }
  0x6f   : > { %12330 = vmatpush3.bf16.msra.mxu1 %v12838_v55  ;;  %11994 = vmatprep.subr.bf16.mxu0 %v13509_v0  ;;  %v488_v42 = vld [vmem:[%s13691_s28 + $0x60] sm:$0xf]  ;;  %v489_v44 = vld [vmem:[%s13691_s28 + $0x64] sm:$0xf]  ;;  %v11336_v45 = vcombine.low %v509_v18, %v510_v26  ;;  %v514_v47 = vld [vmem:[%s13691_s28 + $0xc8] sm:$0xf] }
  0x70   : > { %763 = vrot.lane.b32.xlu1 %v13745_v27, %s13512_s11  ;;  %12325 = vmatprep.subr.bf16.mxu1 %v13509_v0  ;;  %v13868_v49 = vcombine.low %v488_v42, %v489_v44  ;;  %v490_v51 = vld [vmem:[%s13691_s28 + $0x68] sm:$0xf]  ;;  %v516_v56 = vld [vmem:[%s13691_s28 + $0xd0] sm:$0xf]  ;;  %v11338_v62 = vcombine.low %v513_v40, %v514_v47  ;;  %v12832_v2 = vld [vmem:[%s13691_s28 + $0xd8] sm:$0xff]  }
  0x71   : > { %v12839_v18 = vld [vmem:[%s13691_s28] sm:$0xff]  }
  0x72   : > { %704 = vrot.lane.b32.xlu0 %v11329_v28, %s13511_s17  ;;  %11995 = vmatpush3.bf16.msra.mxu0 %v12840_v59  ;;  %v511_v28 = vld [vmem:[%s13691_s28 + $0xbc] sm:$0xf] }
  0x73   : > { %12331 = vmatpush3.bf16.msra.mxu1 %v12840_v59  ;;  %12208 = vmatprep.subr.bf16.mxu0 %v13509_v0  ;;  %v13847_v34 = vcombine.low %v510_v26, %v511_v28  ;;  %v11337_v55 = vcombine.low %v511_v28, %v512_v37  ;;  %v11325_v59 = vcombine.low %v487_v33, %v488_v42  ;;  %v12841_v26 = vld [vmem:[#allocation4 + $0x60] sm:$0xff]  }
  0x74   : > { %739 = vrot.lane.b32.xlu1 %v13752_v31, %s13512_s11  ;;  %12096 = vmatprep.subr.bf16.mxu1 %v13509_v0  ;;  %v12846_v42 = vld [vmem:[#allocation4 + $0x40] sm:$0xff]  }
  0x76   : > { %680 = vrot.lane.b32.xlu0 %v11317_v32, %s13511_s17  ;;  %v486_v32 = vld [vmem:[%s13691_s28 + $0x58] sm:$0xf] }
  0x77   : > { %v11324_v50 = vcombine.low %v485_v22, %v486_v32  ;;  %v12842_v22 = vld [vmem:[#allocation4 + $0x30] sm:$0xff]  }
  0x78   : > { %765 = vrot.lane.b32.xlu1 %v13760_v36, %s13512_s11 }
  0x7a   : > { %706 = vrot.lane.b32.xlu0 %v11330_v38, %s13511_s17  ;;  %v13853_v38 = vcombine.low %v486_v32, %v487_v33  ;;  %v12844_v33 = vld [vmem:[#allocation4 + $0x38] sm:$0xff]  }
  0x7c   : > { %741 = vrot.lane.b32.xlu1 %v13771_v41, %s13512_s11 }
  0x7e   : > { %682 = vrot.lane.b32.xlu0 %v11318_v43, %s13511_s17  ;;  %v13860_v43 = vcombine.low %v512_v37, %v513_v40  ;;  %v12843_v37 = vld [vmem:[#allocation4 + $0x68] sm:$0xff]  }
  0x80   : > { %767 = vrot.lane.b32.xlu1 %v13780_v46, %s13512_s11 }
  0x82   : > { %708 = vrot.lane.b32.xlu0 %v11331_v48, %s13511_s17  ;;  %v515_v48 = vld [vmem:[%s13691_s28 + $0xcc] sm:$0xf] }
  0x83   : > { %v11340_v54 = vcombine.low %v514_v47, %v515_v48  ;;  %v11339_v3 = vcombine.low %v515_v48, %v516_v56  ;;  %v12845_v48 = vld [vmem:[#allocation4 + $0x70] sm:$0xff]  }
  0x84   : > { %743 = vrot.lane.b32.xlu1 %v13790_v52, %s13512_s11 }
  0x86   : > { %684 = vrot.lane.b32.xlu0 %v11319_v53, %s13511_s17  ;;  %v491_v53 = vld [vmem:[%s13691_s28 + $0x6c] sm:$0xf] }
  0x87   : > { %v11303_v57 = vcombine.low %v490_v51, %v491_v53 }
  0x88   : > { %769 = vrot.lane.b32.xlu1 %v13800_v58, %s13512_s11 }
  0x8a   : > { %710 = vrot.lane.b32.xlu0 %v11332_v60, %s13511_s17  ;;  %v517_v60 = vld [vmem:[%s13691_s28 + $0xd4] sm:$0xf] }
  0x8b   : > { %v11341_v61 = vcombine.low %v516_v56, %v517_v60 }
  0x8c   : > { %745 = vrot.lane.b32.xlu1 %v13809_v63, %s13512_s11 }
  0x8e   : > { %686 = vrot.lane.b32.xlu0 %v11320_v1, %s13511_s17  ;;  %v11326_v1 = vcombine.low %v489_v44, %v490_v51 }
  0x90   : > { %771 = vrot.lane.b32.xlu1 %v13819_v5, %s13512_s11 }
  0x92   : > { %712 = vrot.lane.b32.xlu0 %v11333_v11, %s13511_s17  ;;  %v11327_v11 = vcombine.low %v491_v53, %v13699_v6 }
  0x94   : > { %747 = vrot.lane.b32.xlu1 %v13824_v13, %s13512_s11 }
  0x96   : > { %688 = vrot.lane.b32.xlu0 %v11321_v16, %s13511_s17 }
  0x98   : > { %773 = vrot.lane.b32.xlu1 %v13833_v24, %s13512_s11 }
  0x9a   : > { %714 = vrot.lane.b32.xlu0 %v11334_v25, %s13511_s17 }
  0x9c   : > { %749 = vrot.lane.b32.xlu1 %v13840_v29, %s13512_s11 }
  0x9e   : > { %690 = vrot.lane.b32.xlu0 %v11322_v30, %s13511_s17 }
  0xa0   : > { %775 = vrot.lane.b32.xlu1 %v13847_v34, %s13512_s11 }
  0xa2   : > { %716 = vrot.lane.b32.xlu0 %v11335_v35, %s13511_s17 }
  0xa4   : > { %751 = vrot.lane.b32.xlu1 %v13853_v38, %s13512_s11 }
  0xa6   : > { %692 = vrot.lane.b32.xlu0 %v11323_v39, %s13511_s17 }
  0xa8   : > { %777 = vrot.lane.b32.xlu1 %v13860_v43, %s13512_s11 }
  0xaa   : > { %718 = vrot.lane.b32.xlu0 %v11336_v45, %s13511_s17 }
  0xac   : > { %753 = vrot.lane.b32.xlu1 %v13868_v49, %s13512_s11 }
  0xae   : > { %694 = vrot.lane.b32.xlu0 %v11324_v50, %s13511_s17 }
  0xb0   : > { %779 = vrot.lane.b32.xlu1 %v11340_v54, %s13512_s11  ;;  %v12849_v54 = vld [vmem:[#allocation4 + $0x50] sm:$0xff]  }
  0xb2   : > { %720 = vrot.lane.b32.xlu0 %v11337_v55, %s13511_s17 }
  0xb4   : > { %755 = vrot.lane.b32.xlu1 %v11303_v57, %s13512_s11 }
  0xb6   : > { %696 = vrot.lane.b32.xlu0 %v11325_v59, %s13511_s17  ;;  %v12850_v59 = vld [vmem:[#allocation4 + $0x80] sm:$0xff]  }
  0xb8   : > { %781 = vrot.lane.b32.xlu1 %v11341_v61, %s13512_s11 }
  0xba   : > { %722 = vrot.lane.b32.xlu0 %v11338_v62, %s13511_s17 }
  0xbc   : > { %757 = vrot.lane.b32.xlu1 %v13708_v9, %s13512_s11 }
  0xbe   : > { %698 = vrot.lane.b32.xlu0 %v11326_v1, %s13511_s17 }
  0xc0   : > { %783 = vrot.lane.b32.xlu1 %v12832_v2, %s13512_s11 }
  0xc2   : > { %724 = vrot.lane.b32.xlu0 %v11339_v3, %s13511_s17 }
  0xc4   : > { %759 = vrot.lane.b32.xlu1 %v13696_v4, %s13512_s11 }
  0xc6   : > { %700 = vrot.lane.b32.xlu0 %v11327_v11, %s13511_s17 }
  0xd6   : > { %v703_v16 = vpop.permute.xlu1 %702 }
  0xd7   : > { %v826_v21 = vsel %vm451_vm1, %v11303_v57, %v703_v16 }
  0xd8   : > { %v677_v17 = vpop.permute.xlu0 %676 }
  0xd9   : > { %v787_v28 = vsel %vm451_vm1, %v12839_v18, %v677_v17  ;;  %v13513_v18 = vmov 0  }
  0xda   : > { %v762_v25 = vpop.permute.xlu1 %761  ;;  %12780 = vset.pattern.permute.xlu0 %v13513_v18  ;;  %452 = vst.msk [vmem:[#allocation2] sm:$0xff] %vm451_vm1, %v13513_v18  ;;  %453 = vst.msk [vmem:[#allocation2 + $0x8] sm:$0xff] %vm451_vm1, %v13513_v18  ;;  %12781 = vset.pattern.permute.xlu1 %v13513_v18 }
  0xdb   : > { %v13898_v6 = vsel %vm860_vm2, %v826_v21, %v762_v25  ;;  %454 = vst.msk [vmem:[#allocation2 + $0xd0] sm:$0xff] %vm451_vm1, %v13513_v18  ;;  %455 = vst.msk [vmem:[#allocation2 + $0xd8] sm:$0xff] %vm451_vm1, %v13513_v18 }
  0xdc   : > { %v736_v30 = vpop.permute.xlu0 %735  ;;  %12049 = vmatmul.mubr.msk.bf16.vlgmr.msra.gmra.mrb[0].mxu1 %vm959_vm3, %v13898_v6  ;;  %456 = vst [vmem:[#allocation3] sm:$0xff] %v13513_v18  ;;  %457 = vst.msk [vmem:[#allocation3 + $0x8] sm:$0xff] %vm451_vm1, %v13513_v18 }
  0xdd   : > { %v13901_v32 = vsel %vm860_vm2, %v787_v28, %v736_v30  ;;  %12097 = vmatpush3.bf16.msra.mxu1 %v12842_v22  ;;  %12052 = vmatprep.mubr.msk.bf16.mxu1 %vm13510_vm0, %v13509_v0  ;;  %458 = vst [vmem:[#allocation3 + $0x10] sm:$0xff] %v13513_v18  ;;  %459 = vst.msk [vmem:[#allocation3 + $0x18] sm:$0xff] %vm451_vm1, %v13513_v18 }
  0xde   : > { %11997 = vmatmul.mubr.msk.bf16.vlgmr.msra.gmra.mrb[0].mxu0 %vm959_vm3, %v13901_v32  ;;  %v738_v35 = vpop.permute.xlu1 %737  ;;  %12098 = vmatprep.subr.bf16.mxu1 %v13509_v0  ;;  %460 = vst [vmem:[#allocation3 + $0x1a0] sm:$0xff] %v13513_v18  ;;  %461 = vst.msk [vmem:[#allocation3 + $0x1a8] sm:$0xff] %vm451_vm1, %v13513_v18 }
  0xdf   : > { %12209 = vmatpush3.bf16.msra.mxu0 %v12841_v26  ;;  %12000 = vmatprep.mubr.msk.bf16.mxu0 %vm13510_vm0, %v13509_v0  ;;  %463 = vst.msk [vmem:[#allocation3 + $0x1b8] sm:$0xff] %vm451_vm1, %v13513_v18 }
  0xe0   : > { %v679_v39 = vpop.permute.xlu0 %678  ;;  %12210 = vmatprep.subr.bf16.mxu0 %v13509_v0 }
  0xe1   : > { %v790_v40 = vsel %vm451_vm1, %v11291_v15, %v679_v39  ;;  %12099 = vmatpush3.bf16.msra.mxu1 %v12844_v33  ;;  %v12848_v15 = vld [vmem:[#allocation4 + $0x48] sm:$0xff]  }
  0xe2   : > { %v13918_v44 = vsel %vm860_vm2, %v790_v40, %v738_v35  ;;  %v764_v45 = vpop.permute.xlu1 %763  ;;  %12100 = vmatprep.subr.bf16.mxu1 %v13509_v0 }
  0xe3   : > { %12211 = vmatpush3.bf16.msra.mxu0 %v12843_v37  ;;  %v406_v37 = vld [vmem:[%s20228_s1 + $0x18] sm:$0xff] }
  0xe4   : > { %v705_v47 = vpop.permute.xlu0 %704  ;;  %12212 = vmatprep.subr.bf16.mxu0 %v13509_v0 }
  0xe5   : > { %v829_v7 = vsel %vm451_vm1, %v13708_v9, %v705_v47  ;;  %12101 = vmatpush3.bf16.msra.mxu1 %v12846_v42  ;;  %v12847_v9 = vld [vmem:[#allocation4 + $0x78] sm:$0xff]  }
  0xe6   : > { %v13925_v12 = vsel %vm860_vm2, %v829_v7, %v764_v45  ;;  %12001 = vmatmul.mubr.msk.bf16.gmra.mrb[4].mxu0 %vm959_vm3, %v13918_v44  ;;  %v740_v50 = vpop.permute.xlu1 %739  ;;  %12102 = vmatprep.subr.bf16.mxu1 %v13509_v0 }
  0xe7   : > { %12053 = vmatmul.mubr.msk.bf16.gmra.mrb[4].mxu1 %vm959_vm3, %v13925_v12  ;;  %12004 = vmatprep.mubr.msk.bf16.mxu0 %vm13510_vm0, %v13509_v0 }
  0xe8   : > { %v681_v51 = vpop.permute.xlu0 %680  ;;  %12056 = vmatprep.mubr.msk.bf16.mxu1 %vm13510_vm0, %v13509_v0  ;;  %12213 = vmatpush3.bf16.msra.mxu0 %v12845_v48  ;;  %v408_v48 = vld [vmem:[%s20228_s1 + $0x28] sm:$0xff] }
  0xe9   : > { %v793_v53 = vsel %vm451_vm1, %v11292_v14, %v681_v51  ;;  %12214 = vmatprep.subr.bf16.mxu0 %v13509_v0  ;;  %12103 = vmatpush3.bf16.msra.mxu1 %v12848_v15  ;;  %v12851_v14 = vld [vmem:[#allocation4 + $0x58] sm:$0xff]  }
  0xea   : > { %v13942_v55 = vsel %vm860_vm2, %v793_v53, %v740_v50  ;;  %v766_v56 = vpop.permute.xlu1 %765  ;;  %12104 = vmatprep.subr.bf16.mxu1 %v13509_v0  ;;  %v407_v50 = vld [vmem:[%s20228_s1 + $0x20] sm:$0xff]  ;;  %v410_v51 = vld [vmem:[%s20228_s1 + $0x38] sm:$0xff] }
  0xec   : > { %v707_v57 = vpop.permute.xlu0 %706  ;;  %12215 = vmatpush3.bf16.msra.mxu0 %v12847_v9 }
  0xed   : > { %v832_v8 = vsel %vm451_vm1, %v13696_v4, %v707_v57  ;;  %12216 = vmatprep.subr.bf16.mxu0 %v13509_v0  ;;  %12105 = vmatpush3.bf16.msra.mxu1 %v12849_v54  ;;  %v12852_v4 = vld [vmem:[#allocation4 + $0x88] sm:$0xff]   ;;  %v409_v57 = vld [vmem:[%s20228_s1 + $0x30] sm:$0xff] }
  0xee   : > { %v13949_v10 = vsel %vm860_vm2, %v832_v8, %v766_v56  ;;  %12005 = vmatmul.mubr.msk.bf16.gmra.mrb[8].mxu0 %vm959_vm3, %v13942_v55  ;;  %v742_v60 = vpop.permute.xlu1 %741  ;;  %12106 = vmatprep.subr.bf16.mxu1 %v13509_v0 }
  0xef   : > { %12057 = vmatmul.mubr.msk.bf16.gmra.mrb[8].mxu1 %vm959_vm3, %v13949_v10  ;;  %12008 = vmatprep.mubr.msk.bf16.mxu0 %vm13510_vm0, %v13509_v0 }
  0xf0   : > { %v683_v61 = vpop.permute.xlu0 %682  ;;  %12060 = vmatprep.mubr.msk.bf16.mxu1 %vm13510_vm0, %v13509_v0  ;;  %12217 = vmatpush3.bf16.msra.mxu0 %v12850_v59  ;;  %v412_v59 = vld [vmem:[%s20228_s1 + $0x48] sm:$0xff] }
  0xf1   : > { %v796_v62 = vsel %vm451_vm1, %v13730_v20, %v683_v61  ;;  %12218 = vmatprep.subr.bf16.mxu0 %v13509_v0  ;;  %12107 = vmatpush3.bf16.msra.mxu1 %v12851_v14  ;;  %v414_v61 = vld [vmem:[%s20228_s1 + $0x58] sm:$0xff] }
  0xf2   : > { %v13964_v1 = vsel %vm860_vm2, %v796_v62, %v742_v60  ;;  %v768_v2 = vpop.permute.xlu1 %767  ;;  %v411_v60 = vld [vmem:[%s20228_s1 + $0x40] sm:$0xff] }
  0xf4   : > { %v709_v3 = vpop.permute.xlu0 %708  ;;  %12219 = vmatpush3.bf16.msra.mxu0 %v12852_v4 }
  0xf5   : > { %v835_v11 = vsel %vm451_vm1, %v13728_v19, %v709_v3 }
  0xf6   : > { %v13969_v16 = vsel %vm860_vm2, %v835_v11, %v768_v2  ;;  %12009 = vmatmul.mubr.msk.bf16.gmra.mrb[12].mxu0 %vm959_vm3, %v13964_v1  ;;  %v744_v20 = vpop.permute.xlu1 %743  ;;  %v413_v11 = vld [vmem:[%s20228_s1 + $0x50] sm:$0xff] }
  0xf7   : > { %12061 = vmatmul.mubr.msk.bf16.gmra.mrb[12].mxu1 %vm959_vm3, %v13969_v16  ;;  %12012 = vmatprep.mubr.msk.bf16.mxu0 %vm13510_vm0, %v13509_v0 }
  0xf8   : > { %v685_v17 = vpop.permute.xlu0 %684  ;;  %12064 = vmatprep.mubr.msk.bf16.mxu1 %vm13510_vm0, %v13509_v0 }
  0xf9   : > { %v799_v19 = vsel %vm451_vm1, %v13736_v23, %v685_v17  ;;  %v403_v23 = vld [vmem:[%s20228_s1] sm:$0xff] }
  0xfa   : > { %v14003_v21 = vsel %vm860_vm2, %v799_v19, %v744_v20  ;;  %v770_v22 = vpop.permute.xlu1 %769  ;;  %2453 = vperm.xlu0 %12780, %v403_v23   ;;  %v416_v20 = vld [vmem:[%s20228_s1 + $0x68] sm:$0xff] }
  0xfc   : > { %v711_v25 = vpop.permute.xlu0 %710 }
  0xfd   : > { %v838_v26 = vsel %vm451_vm1, %v13745_v27, %v711_v25  ;;  %v404_v27 = vld [vmem:[%s20228_s1 + $0x8] sm:$0xff]  ;;  %v418_v25 = vld [vmem:[%s20228_s1 + $0x78] sm:$0xff] }
  0xfe   : > { %v14008_v28 = vsel %vm860_vm2, %v838_v26, %v770_v22  ;;  %12013 = vmatmul.mubr.msk.bf16.gmra.mrb[16].mxu0 %vm959_vm3, %v14003_v21  ;;  %v746_v30 = vpop.permute.xlu1 %745  ;;  %2457 = vperm.xlu1 %12781, %v404_v27   ;;  %v415_v22 = vld [vmem:[%s20228_s1 + $0x60] sm:$0xff] }
  0xff   : > { %12065 = vmatmul.mubr.msk.bf16.gmra.mrb[16].mxu1 %vm959_vm3, %v14008_v28  ;;  %12016 = vmatprep.mubr.msk.bf16.mxu0 %vm13510_vm0, %v13509_v0 }
 0x100   : > { %v687_v33 = vpop.permute.xlu0 %686  ;;  %12068 = vmatprep.mubr.msk.bf16.mxu1 %vm13510_vm0, %v13509_v0  ;;  %2465 = vperm.xlu0 %12780, %v406_v37  }
 0x101   : > { %v802_v35 = vsel %vm451_vm1, %v13752_v31, %v687_v33  ;;  %v405_v31 = vld [vmem:[%s20228_s1 + $0x10] sm:$0xff] }
 0x102   : > { %v14030_v39 = vsel %vm860_vm2, %v802_v35, %v746_v30  ;;  %v772_v40 = vpop.permute.xlu1 %771  ;;  %2461 = vperm.xlu1 %12781, %v405_v31   ;;  %v417_v33 = vld [vmem:[%s20228_s1 + $0x70] sm:$0xff]  ;;  %v420_v35 = vld [vmem:[%s20228_s1 + $0x88] sm:$0xff] }
 0x104   : > { %v713_v42 = vpop.permute.xlu0 %712  ;;  %2473 = vperm.xlu0 %12780, %v408_v48  }
 0x105   : > { %v841_v45 = vsel %vm451_vm1, %v13760_v36, %v713_v42  ;;  %v419_v42 = vld [vmem:[%s20228_s1 + $0x80] sm:$0xff] }
 0x106   : > { %v14035_v47 = vsel %vm860_vm2, %v841_v45, %v772_v40  ;;  %12017 = vmatmul.mubr.msk.bf16.gmra.mrb[20].mxu0 %vm959_vm3, %v14030_v39  ;;  %v748_v7 = vpop.permute.xlu1 %747  ;;  %2469 = vperm.xlu1 %12781, %v407_v50   ;;  %v422_v45 = vld [vmem:[%s20228_s1 + $0x98] sm:$0xff]  ;;  %v424_v50 = vld [vmem:[%s20228_s1 + $0xa8] sm:$0xff] }
 0x107   : > { %12069 = vmatmul.mubr.msk.bf16.gmra.mrb[20].mxu1 %vm959_vm3, %v14035_v47  ;;  %12020 = vmatprep.mubr.msk.bf16.mxu0 %vm13510_vm0, %v13509_v0 }
 0x108   : > { %v689_v36 = vpop.permute.xlu0 %688  ;;  %12072 = vmatprep.mubr.msk.bf16.mxu1 %vm13510_vm0, %v13509_v0  ;;  %2481 = vperm.xlu0 %12780, %v410_v51  }
 0x109   : > { %v805_v15 = vsel %vm451_vm1, %v13771_v41, %v689_v36 }
 0x10a   : > { %v14060_v9 = vsel %vm860_vm2, %v805_v15, %v748_v7  ;;  %v774_v53 = vpop.permute.xlu1 %773  ;;  %2477 = vperm.xlu1 %12781, %v409_v57   ;;  %v421_v15 = vld [vmem:[%s20228_s1 + $0x90] sm:$0xff] }
 0x10c   : > { %v715_v54 = vpop.permute.xlu0 %714  ;;  %2489 = vperm.xlu0 %12780, %v412_v59  }
 0x10d   : > { %v844_v56 = vsel %vm451_vm1, %v13780_v46, %v715_v54  ;;  %v423_v54 = vld [vmem:[%s20228_s1 + $0xa0] sm:$0xff] }
 0x10e   : > { %v14065_v41 = vsel %vm860_vm2, %v844_v56, %v774_v53  ;;  %12021 = vmatmul.mubr.msk.bf16.gmra.mrb[24].mxu0 %vm959_vm3, %v14060_v9  ;;  %v750_v8 = vpop.permute.xlu1 %749  ;;  %2485 = vperm.xlu1 %12781, %v411_v60   ;;  %v426_v56 = vld [vmem:[%s20228_s1 + $0xb8] sm:$0xff]  ;;  %v428_v60 = vld [vmem:[%s20228_s1 + $0xc8] sm:$0xff] }
 0x10f   : > { %12073 = vmatmul.mubr.msk.bf16.gmra.mrb[24].mxu1 %vm959_vm3, %v14065_v41  ;;  %12024 = vmatprep.mubr.msk.bf16.mxu0 %vm13510_vm0, %v13509_v0 }
 0x110   : > { %v691_v46 = vpop.permute.xlu0 %690  ;;  %12076 = vmatprep.mubr.msk.bf16.mxu1 %vm13510_vm0, %v13509_v0  ;;  %2497 = vperm.xlu0 %12780, %v414_v61  }
 0x111   : > { %v808_v14 = vsel %vm451_vm1, %v13790_v52, %v691_v46 }
 0x112   : > { %v14090_v4 = vsel %vm860_vm2, %v808_v14, %v750_v8  ;;  %v776_v62 = vpop.permute.xlu1 %775  ;;  %2493 = vperm.xlu1 %12781, %v413_v11   ;;  %v425_v14 = vld [vmem:[%s20228_s1 + $0xb0] sm:$0xff] }
 0x114   : > { %v717_v2 = vpop.permute.xlu0 %716  ;;  %2505 = vperm.xlu0 %12780, %v416_v20  }
 0x115   : > { %v847_v3 = vsel %vm451_vm1, %v13800_v58, %v717_v2  ;;  %v427_v2 = vld [vmem:[%s20228_s1 + $0xc0] sm:$0xff] }
 0x116   : > { %v14095_v52 = vsel %vm860_vm2, %v847_v3, %v776_v62  ;;  %12025 = vmatmul.mubr.msk.bf16.gmra.mrb[28].mxu0 %vm959_vm3, %v14090_v4  ;;  %v752_v17 = vpop.permute.xlu1 %751  ;;  %2501 = vperm.xlu1 %12781, %v415_v22   ;;  %v430_v3 = vld [vmem:[%s20228_s1 + $0xd8] sm:$0xff] }
 0x117   : > { %12077 = vmatmul.mubr.msk.bf16.gmra.mrb[28].mxu1 %vm959_vm3, %v14095_v52  ;;  %12028 = vmatprep.mubr.msk.bf16.mxu0 %vm13510_vm0, %v13509_v0 }
 0x118   : > { %v693_v58 = vpop.permute.xlu0 %692  ;;  %12080 = vmatprep.mubr.msk.bf16.mxu1 %vm13510_vm0, %v13509_v0  ;;  %2513 = vperm.xlu0 %12780, %v418_v25  }
 0x119   : > { %v811_v19 = vsel %vm451_vm1, %v13809_v63, %v693_v58 }
 0x11a   : > { %v14120_v26 = vsel %vm860_vm2, %v811_v19, %v752_v17  ;;  %v778_v23 = vpop.permute.xlu1 %777  ;;  %2509 = vperm.xlu1 %12781, %v417_v33  }
 0x11c   : > { %v719_v30 = vpop.permute.xlu0 %718  ;;  %2521 = vperm.xlu0 %12780, %v420_v35  }
 0x11d   : > { %v850_v27 = vsel %vm451_vm1, %v13819_v5, %v719_v30 }
 0x11e   : > { %v14125_v63 = vsel %vm860_vm2, %v850_v27, %v778_v23  ;;  %12029 = vmatmul.mubr.msk.bf16.gmra.mrb[32].mxu0 %vm959_vm3, %v14120_v26  ;;  %v754_v37 = vpop.permute.xlu1 %753  ;;  %2517 = vperm.xlu1 %12781, %v419_v42  }
 0x11f   : > { %12081 = vmatmul.mubr.msk.bf16.gmra.mrb[32].mxu1 %vm959_vm3, %v14125_v63  ;;  %12032 = vmatprep.mubr.msk.bf16.mxu0 %vm13510_vm0, %v13509_v0 }
 0x120   : > { %v695_v5 = vpop.permute.xlu0 %694  ;;  %12084 = vmatprep.mubr.msk.bf16.mxu1 %vm13510_vm0, %v13509_v0  ;;  %2529 = vperm.xlu0 %12780, %v422_v45  }
 0x121   : > { %v814_v40 = vsel %vm451_vm1, %v13824_v13, %v695_v5 }
 0x122   : > { %v14150_v31 = vsel %vm860_vm2, %v814_v40, %v754_v37  ;;  %v780_v48 = vpop.permute.xlu1 %779  ;;  %2525 = vperm.xlu1 %12781, %v421_v15  }
 0x124   : > { %v721_v7 = vpop.permute.xlu0 %720  ;;  %2537 = vperm.xlu0 %12780, %v424_v50  }
 0x125   : > { %v853_v36 = vsel %vm451_vm1, %v13833_v24, %v721_v7 }
 0x126   : > { %v14155_v13 = vsel %vm860_vm2, %v853_v36, %v780_v48  ;;  %12033 = vmatmul.mubr.msk.bf16.gmra.mrb[36].mxu0 %vm959_vm3, %v14150_v31  ;;  %v756_v51 = vpop.permute.xlu1 %755  ;;  %2533 = vperm.xlu1 %12781, %v423_v54   ;;  %v12855_v54 = vld [vmem:[%s20232_s5 + $0x4] ss:$8 sps:$4 sm:$0xff]  }
 0x127   : > { %12085 = vmatmul.mubr.msk.bf16.gmra.mrb[36].mxu1 %vm959_vm3, %v14155_v13  ;;  %12036 = vmatprep.mubr.msk.bf16.mxu0 %vm13510_vm0, %v13509_v0 }
 0x128   : > { %v697_v24 = vpop.permute.xlu0 %696  ;;  %12088 = vmatprep.mubr.msk.bf16.mxu1 %vm13510_vm0, %v13509_v0  ;;  %2545 = vperm.xlu0 %12780, %v426_v56  }
 0x129   : > { %v817_v53 = vsel %vm451_vm1, %v13840_v29, %v697_v24  ;;  %3591 = vmatprep.subr.bf16.mxu1 %v12855_v54 }
 0x12a   : > { %v14180_v57 = vsel %vm860_vm2, %v817_v53, %v756_v51  ;;  %v782_v59 = vpop.permute.xlu1 %781  ;;  %2541 = vperm.xlu1 %12781, %v425_v14   ;;  %v12853_v53 = vld [vmem:[%s20232_s5] ss:$8 sps:$4 sm:$0xff]  }
 0x12c   : > { %v723_v8 = vpop.permute.xlu0 %722  ;;  %2553 = vperm.xlu0 %12780, %v428_v60  }
 0x12d   : > { %v856_v46 = vsel %vm451_vm1, %v13847_v34, %v723_v8 }
 0x12e   : > { %v14185_v29 = vsel %vm860_vm2, %v856_v46, %v782_v59  ;;  %12037 = vmatmul.mubr.msk.bf16.gmra.mrb[40].mxu0 %vm959_vm3, %v14180_v57  ;;  %v758_v61 = vpop.permute.xlu1 %757  ;;  %2549 = vperm.xlu1 %12781, %v427_v2  }
 0x12f   : > { %12089 = vmatmul.mubr.msk.bf16.gmra.mrb[40].mxu1 %vm959_vm3, %v14185_v29  ;;  %12040 = vmatprep.mubr.msk.bf16.mxu0 %vm13510_vm0, %v13509_v0 }
 0x130   : > { %v699_v34 = vpop.permute.xlu0 %698  ;;  %12092 = vmatprep.mubr.msk.bf16.mxu1 %vm13510_vm0, %v13509_v0  ;;  %2561 = vperm.xlu0 %12780, %v430_v3  }
 0x131   : > { %v820_v62 = vsel %vm451_vm1, %v13853_v38, %v699_v34 }
 0x132   : > { %v14210_v11 = vsel %vm860_vm2, %v820_v62, %v758_v61  ;;  %v784_v20 = vpop.permute.xlu1 %783 }
 0x134   : > { %v725_v17 = vpop.permute.xlu0 %724 }
 0x135   : > { %v859_v58 = vsel %vm451_vm1, %v13860_v43, %v725_v17 }
 0x136   : > { %v14215_v38 = vsel %vm860_vm2, %v859_v58, %v784_v20  ;;  %12041 = vmatmul.mubr.msk.bf16.gmra.mrb[44].mxu0 %vm959_vm3, %v14210_v11  ;;  %v760_v22 = vpop.permute.xlu1 %759 }
 0x137   : > { %12093 = vmatmul.mubr.msk.bf16.gmra.mrb[44].mxu1 %vm959_vm3, %v14215_v38  ;;  %12044 = vmatprep.mubr.msk.bf16.mxu0 %vm13510_vm0, %v13509_v0 }
 0x138   : > { %v701_v19 = vpop.permute.xlu0 %700  ;;  %12108 = vmatprep.mubr.msk.bf16.mxu1 %vm13510_vm0, %v13509_v0 }
 0x139   : > { %v823_v43 = vsel %vm451_vm1, %v13868_v49, %v701_v19 }
 0x13a   : > { %v886_v25 = vsel %vm860_vm2, %v823_v43, %v760_v22 }
 0x13e   : > { %12045 = vmatmul.mubr.msk.bf16.gmra.mrb[48].mxu0 %vm959_vm3, %v886_v25 }
 0x13f   : > { %12109 = vmatmul.mubr.msk.bf16.vlgmr.msra.gmra.mrb[48].mxu1 %vm959_vm3, %v13901_v32  ;;  %12220 = vmatprep.mubr.msk.bf16.mxu0 %vm13510_vm0, %v13509_v0 }
 0x140   : > { %12112 = vmatprep.mubr.msk.bf16.mxu1 %vm13510_vm0, %v13509_v0  ;;  %3592 = vmatpush1.bf16.msra.mxu1 %v12853_v53 }
 0x146   : > { %12221 = vmatmul.mubr.msk.bf16.vlgmr.msra.gmra.mrb[52].mxu0 %vm959_vm3, %v13901_v32 }
 0x147   : > { %12113 = vmatmul.mubr.msk.bf16.gmra.mrb[52].mxu1 %vm959_vm3, %v13918_v44  ;;  %12224 = vmatprep.mubr.msk.bf16.mxu0 %vm13510_vm0, %v13509_v0 }
 0x148   : > { %12116 = vmatprep.mubr.msk.bf16.mxu1 %vm13510_vm0, %v13509_v0 }
 0x14e   : > { %12225 = vmatmul.mubr.msk.bf16.gmra.mrb[56].mxu0 %vm959_vm3, %v13918_v44 }
 0x14f   : > { %12117 = vmatmul.mubr.msk.bf16.gmra.mrb[56].mxu1 %vm959_vm3, %v13942_v55  ;;  %12228 = vmatprep.mubr.msk.bf16.mxu0 %vm13510_vm0, %v13509_v0 }
 0x150   : > { %12120 = vmatprep.mubr.msk.bf16.mxu1 %vm13510_vm0, %v13509_v0 }
 0x156   : > { %12229 = vmatmul.mubr.msk.bf16.gmra.mrb[60].mxu0 %vm959_vm3, %v13942_v55 }
 0x157   : > { %12121 = vmatmul.mubr.msk.bf16.gmra.mrb[60].mxu1 %vm959_vm3, %v13964_v1  ;;  %12232 = vmatprep.mubr.msk.bf16.mxu0 %vm13510_vm0, %v13509_v0 }
 0x158   : > { %12124 = vmatprep.mubr.msk.bf16.mxu1 %vm13510_vm0, %v13509_v0 }
 0x15e   : > { %12233 = vmatmul.mubr.msk.bf16.gmra.mrb[64].mxu0 %vm959_vm3, %v13964_v1 }
 0x15f   : > { %12125 = vmatmul.mubr.msk.bf16.gmra.mrb[64].mxu1 %vm959_vm3, %v14003_v21  ;;  %12236 = vmatprep.mubr.msk.bf16.mxu0 %vm13510_vm0, %v13509_v0 }
 0x160   : > { %12128 = vmatprep.mubr.msk.bf16.mxu1 %vm13510_vm0, %v13509_v0 }
 0x166   : > { %12237 = vmatmul.mubr.msk.bf16.gmra.mrb[68].mxu0 %vm959_vm3, %v14003_v21 }
 0x167   : > { %12129 = vmatmul.mubr.msk.bf16.gmra.mrb[68].mxu1 %vm959_vm3, %v14030_v39  ;;  %12240 = vmatprep.mubr.msk.bf16.mxu0 %vm13510_vm0, %v13509_v0 }
 0x168   : > { %12132 = vmatprep.mubr.msk.bf16.mxu1 %vm13510_vm0, %v13509_v0 }
 0x16e   : > { %12241 = vmatmul.mubr.msk.bf16.gmra.mrb[72].mxu0 %vm959_vm3, %v14030_v39 }
 0x16f   : > { %12133 = vmatmul.mubr.msk.bf16.gmra.mrb[72].mxu1 %vm959_vm3, %v14060_v9  ;;  %12244 = vmatprep.mubr.msk.bf16.mxu0 %vm13510_vm0, %v13509_v0 }
 0x170   : > { %12136 = vmatprep.mubr.msk.bf16.mxu1 %vm13510_vm0, %v13509_v0 }
 0x176   : > { %12245 = vmatmul.mubr.msk.bf16.gmra.mrb[76].mxu0 %vm959_vm3, %v14060_v9 }
 0x177   : > { %12137 = vmatmul.mubr.msk.bf16.gmra.mrb[76].mxu1 %vm959_vm3, %v14090_v4  ;;  %12248 = vmatprep.mubr.msk.bf16.mxu0 %vm13510_vm0, %v13509_v0 }
 0x178   : > { %12140 = vmatprep.mubr.msk.bf16.mxu1 %vm13510_vm0, %v13509_v0 }
 0x17e   : > { %12249 = vmatmul.mubr.msk.bf16.gmra.mrb[80].mxu0 %vm959_vm3, %v14090_v4 }
 0x17f   : > { %12141 = vmatmul.mubr.msk.bf16.gmra.mrb[80].mxu1 %vm959_vm3, %v14120_v26  ;;  %12252 = vmatprep.mubr.msk.bf16.mxu0 %vm13510_vm0, %v13509_v0 }
 0x180   : > { %12144 = vmatprep.mubr.msk.bf16.mxu1 %vm13510_vm0, %v13509_v0 }
 0x186   : > { %12253 = vmatmul.mubr.msk.bf16.gmra.mrb[84].mxu0 %vm959_vm3, %v14120_v26 }
 0x187   : > { %12145 = vmatmul.mubr.msk.bf16.gmra.mrb[84].mxu1 %vm959_vm3, %v14150_v31  ;;  %12256 = vmatprep.mubr.msk.bf16.mxu0 %vm13510_vm0, %v13509_v0 }
 0x188   : > { %12148 = vmatprep.mubr.msk.bf16.mxu1 %vm13510_vm0, %v13509_v0 }
 0x18e   : > { %12257 = vmatmul.mubr.msk.bf16.gmra.mrb[88].mxu0 %vm959_vm3, %v14150_v31 }
 0x18f   : > { %12149 = vmatmul.mubr.msk.bf16.gmra.mrb[88].mxu1 %vm959_vm3, %v14180_v57  ;;  %12260 = vmatprep.mubr.msk.bf16.mxu0 %vm13510_vm0, %v13509_v0 }
 0x190   : > { %12152 = vmatprep.mubr.msk.bf16.mxu1 %vm13510_vm0, %v13509_v0 }
 0x196   : > { %12261 = vmatmul.mubr.msk.bf16.gmra.mrb[92].mxu0 %vm959_vm3, %v14180_v57 }
 0x197   : > { %12153 = vmatmul.mubr.msk.bf16.gmra.mrb[92].mxu1 %vm959_vm3, %v14210_v11  ;;  %12264 = vmatprep.mubr.msk.bf16.mxu0 %vm13510_vm0, %v13509_v0 }
 0x198   : > { %12156 = vmatprep.mubr.msk.bf16.mxu1 %vm13510_vm0, %v13509_v0 }
 0x19e   : > { %12265 = vmatmul.mubr.msk.bf16.gmra.mrb[96].mxu0 %vm959_vm3, %v14210_v11 }
 0x19f   : > { %12157 = vmatmul.mubr.msk.bf16.gmra.mrb[96].mxu1 %vm959_vm3, %v886_v25  ;;  %12268 = vmatprep.mubr.msk.bf16.mxu0 %vm13510_vm0, %v13509_v0 }
 0x1a0   : > { %12160 = vmatprep.mubr.msk.bf16.mxu1 %vm13510_vm0, %v13509_v0 }
 0x1a6   : > { %12269 = vmatmul.mubr.msk.bf16.gmra.mrb[100].mxu0 %vm959_vm3, %v886_v25 }
 0x1a7   : > { %12161 = vmatmul.mubr.msk.bf16.gmra.mrb[100].mxu1 %vm959_vm3, %v13898_v6  ;;  %12272 = vmatprep.mubr.msk.bf16.mxu0 %vm13510_vm0, %v13509_v0 }
 0x1a8   : > { %12164 = vmatprep.mubr.msk.bf16.mxu1 %vm13510_vm0, %v13509_v0 }
 0x1ae   : > { %12273 = vmatmul.mubr.msk.bf16.gmra.mrb[104].mxu0 %vm959_vm3, %v13898_v6 }
 0x1af   : > { %12165 = vmatmul.mubr.msk.bf16.gmra.mrb[104].mxu1 %vm959_vm3, %v13925_v12  ;;  %12276 = vmatprep.mubr.msk.bf16.mxu0 %vm13510_vm0, %v13509_v0  ;;  %v14343_v49 = vpop.f32.mrb[0].mxu1 }
 0x1b0   : > { %12168 = vmatprep.mubr.msk.bf16.mxu1 %vm13510_vm0, %v13509_v0  ;;  %v12050_v44 = vpop.f32.mrb[1].mxu1 }
 0x1b1   : > { %v14347_v32 = vpop.f32.mrb[0].mxu0  ;;  %v14349_v1 = vpop.f32.mrb[2].mxu1 }
 0x1b2   : > { %v11998_v55 = vpop.f32.mrb[1].mxu0  ;;  %v12051_v6 = vpop.f32.mrb[3].mxu1 }
 0x1b3   : > { %v14351_v21 = vpop.f32.mrb[2].mxu0 }
 0x1b4   : > { %v11999_v39 = vpop.f32.mrb[3].mxu0 }
 0x1b6   : > { %12277 = vmatmul.mubr.msk.bf16.gmra.mrb[108].mxu0 %vm959_vm3, %v13925_v12 }
 0x1b7   : > { %12169 = vmatmul.mubr.msk.bf16.gmra.mrb[108].mxu1 %vm959_vm3, %v13949_v10  ;;  %12280 = vmatprep.mubr.msk.bf16.mxu0 %vm13510_vm0, %v13509_v0 }
 0x1b8   : > { %12172 = vmatprep.mubr.msk.bf16.mxu1 %vm13510_vm0, %v13509_v0 }
 0x1b9   : > { %v14361_v9 = vpop.f32.mrb[4].mxu0 }
 0x1ba   : > { %v12002_v4 = vpop.f32.mrb[5].mxu0  ;;  %v14363_v26 = vpop.f32.mrb[4].mxu1 }
 0x1bb   : > { %v14365_v23 = vpop.f32.mrb[6].mxu0  ;;  %v12054_v30 = vpop.f32.mrb[5].mxu1 }
 0x1bc   : > { %v12003_v27 = vpop.f32.mrb[7].mxu0  ;;  %v14367_v33 = vpop.f32.mrb[6].mxu1 }
 0x1bd   : > { %v12055_v12 = vpop.f32.mrb[7].mxu1 }
 0x1be   : > { %12281 = vmatmul.mubr.msk.bf16.gmra.mrb[112].mxu0 %vm959_vm3, %v13949_v10 }
 0x1bf   : > { %12173 = vmatmul.mubr.msk.bf16.gmra.mrb[112].mxu1 %vm959_vm3, %v13969_v16  ;;  %12284 = vmatprep.mubr.msk.bf16.mxu0 %vm13510_vm0, %v13509_v0 }
 0x1c0   : > { %12176 = vmatprep.mubr.msk.bf16.mxu1 %vm13510_vm0, %v13509_v0 }
 0x1c1   : > { %v14377_v35 = vpop.f32.mrb[8].mxu0 }
 0x1c2   : > { %v12006_v37 = vpop.f32.mrb[9].mxu0  ;;  %v14379_v5 = vpop.f32.mrb[8].mxu1 }
 0x1c3   : > { %v14381_v40 = vpop.f32.mrb[10].mxu0  ;;  %v12058_v42 = vpop.f32.mrb[9].mxu1  ;;  %v12856_v37 = vld [vmem:[%s20232_s5 + $0x10] ss:$8 sps:$4 sm:$0xff]  }
 0x1c4   : > { %v12007_v45 = vpop.f32.mrb[11].mxu0  ;;  %v14383_v31 = vpop.f32.mrb[10].mxu1  ;;  %v12858_v42 = vld [vmem:[%s20232_s5 + $0x14] ss:$8 sps:$4 sm:$0xff]  }
 0x1c5   : > { %v12059_v10 = vpop.f32.mrb[11].mxu1  ;;  %3593 = vmatprep.subr.bf16.mxu1 %v12858_v42 }
 0x1c6   : > { %12285 = vmatmul.mubr.msk.bf16.gmra.mrb[116].mxu0 %vm959_vm3, %v13969_v16  ;;  %3594 = vmatpush1.bf16.msra.mxu1 %v12856_v37 }
 0x1c7   : > { %12177 = vmatmul.mubr.msk.bf16.gmra.mrb[116].mxu1 %vm959_vm3, %v14008_v28  ;;  %12288 = vmatprep.mubr.msk.bf16.mxu0 %vm13510_vm0, %v13509_v0 }
 0x1c8   : > { %12180 = vmatprep.mubr.msk.bf16.mxu1 %vm13510_vm0, %v13509_v0 }
 0x1c9   : > { %v14393_v48 = vpop.f32.mrb[12].mxu0 }
 0x1ca   : > { %v12010_v7 = vpop.f32.mrb[13].mxu0  ;;  %v14395_v36 = vpop.f32.mrb[12].mxu1 }
 0x1cb   : > { %v14397_v15 = vpop.f32.mrb[14].mxu0  ;;  %v12062_v50 = vpop.f32.mrb[13].mxu1 }
 0x1cc   : > { %v12011_v51 = vpop.f32.mrb[15].mxu0  ;;  %v14399_v24 = vpop.f32.mrb[14].mxu1 }
 0x1cd   : > { %v12063_v16 = vpop.f32.mrb[15].mxu1 }
 0x1ce   : > { %12289 = vmatmul.mubr.msk.bf16.gmra.mrb[120].mxu0 %vm959_vm3, %v14008_v28 }
 0x1cf   : > { %12181 = vmatmul.mubr.msk.bf16.gmra.mrb[120].mxu1 %vm959_vm3, %v14035_v47  ;;  %12292 = vmatprep.mubr.msk.bf16.mxu0 %vm13510_vm0, %v13509_v0 }
 0x1d0   : > { %12184 = vmatprep.mubr.msk.bf16.mxu1 %vm13510_vm0, %v13509_v0 }
 0x1d1   : > { %v14415_v56 = vpop.f32.mrb[16].mxu0 }
 0x1d2   : > { %v12014_v28 = vpop.f32.mrb[17].mxu0  ;;  %v14417_v57 = vpop.f32.mrb[16].mxu1 }
 0x1d3   : > { %20481 = vst [vmem:[#allocation11_spill] sm:$0xff] %v14417_v57  ;;  %v14419_v59 = vpop.f32.mrb[18].mxu0  ;;  %v12066_v8 = vpop.f32.mrb[17].mxu1 }
 0x1d4   : > { %v12015_v46 = vpop.f32.mrb[19].mxu0  ;;  %v14421_v14 = vpop.f32.mrb[18].mxu1 }
 0x1d5   : > { %20482 = vst [vmem:[#allocation12_spill] sm:$0xff] %v14421_v14  ;;  %v12067_v60 = vpop.f32.mrb[19].mxu1 }
 0x1d6   : > { %12293 = vmatmul.mubr.msk.bf16.gmra.mrb[124].mxu0 %vm959_vm3, %v14035_v47 }
 0x1d7   : > { %12185 = vmatmul.mubr.msk.bf16.gmra.mrb[124].mxu1 %vm959_vm3, %v14065_v41  ;;  %12296 = vmatprep.mubr.msk.bf16.mxu0 %vm13510_vm0, %v13509_v0 }
 0x1d8   : > { %12188 = vmatprep.mubr.msk.bf16.mxu1 %vm13510_vm0, %v13509_v0 }
 0x1d9   : > { %v14431_v61 = vpop.f32.mrb[20].mxu0 }
 0x1da   : > { %v12018_v34 = vpop.f32.mrb[21].mxu0  ;;  %v14433_v62 = vpop.f32.mrb[20].mxu1 }
 0x1db   : > { %20483 = vst [vmem:[#allocation13_spill] sm:$0xff] %v14433_v62  ;;  %v14435_v2 = vpop.f32.mrb[22].mxu0  ;;  %v12070_v3 = vpop.f32.mrb[21].mxu1 }
 0x1dc   : > { %v12019_v11 = vpop.f32.mrb[23].mxu0  ;;  %v14437_v20 = vpop.f32.mrb[22].mxu1 }
 0x1dd   : > { %20484 = vst [vmem:[#allocation14_spill] sm:$0xff] %v14437_v20  ;;  %v12071_v47 = vpop.f32.mrb[23].mxu1 }
 0x1de   : > { %12297 = vmatmul.mubr.msk.bf16.gmra.mrb[128].mxu0 %vm959_vm3, %v14065_v41 }
 0x1df   : > { %12189 = vmatmul.mubr.msk.bf16.gmra.mrb[128].mxu1 %vm959_vm3, %v14095_v52  ;;  %12300 = vmatprep.mubr.msk.bf16.mxu0 %vm13510_vm0, %v13509_v0 }
 0x1e0   : > { %12192 = vmatprep.mubr.msk.bf16.mxu1 %vm13510_vm0, %v13509_v0 }
 0x1e1   : > { %v14447_v17 = vpop.f32.mrb[24].mxu0 }
 0x1e2   : > { %v12022_v58 = vpop.f32.mrb[25].mxu0  ;;  %v14449_v19 = vpop.f32.mrb[24].mxu1 }
 0x1e3   : > { %20485 = vst [vmem:[#allocation15_spill] sm:$0xff] %v14449_v19  ;;  %v14451_v22 = vpop.f32.mrb[26].mxu0  ;;  %v12074_v43 = vpop.f32.mrb[25].mxu1 }
 0x1e4   : > { %v12023_v25 = vpop.f32.mrb[27].mxu0  ;;  %v14453_v44 = vpop.f32.mrb[26].mxu1 }
 0x1e5   : > { %20486 = vst [vmem:[#allocation16_spill] sm:$0xff] %v14453_v44  ;;  %v12075_v41 = vpop.f32.mrb[27].mxu1 }
 0x1e6   : > { %12301 = vmatmul.mubr.msk.bf16.gmra.mrb[132].mxu0 %vm959_vm3, %v14095_v52 }
 0x1e7   : > { %12193 = vmatmul.mubr.msk.bf16.gmra.mrb[132].mxu1 %vm959_vm3, %v14125_v63  ;;  %12304 = vmatprep.mubr.msk.bf16.mxu0 %vm13510_vm0, %v13509_v0 }
 0x1e8   : > { %12196 = vmatprep.mubr.msk.bf16.mxu1 %vm13510_vm0, %v13509_v0 }
 0x1e9   : > { %v14463_v55 = vpop.f32.mrb[28].mxu0 }
 0x1ea   : > { %v12026_v6 = vpop.f32.mrb[29].mxu0  ;;  %v14465_v39 = vpop.f32.mrb[28].mxu1 }
 0x1eb   : > { %20487 = vst [vmem:[#allocation17_spill] sm:$0xff] %v14465_v39  ;;  %v14467_v4 = vpop.f32.mrb[30].mxu0  ;;  %v12078_v30 = vpop.f32.mrb[29].mxu1 }
 0x1ec   : > { %v12027_v27 = vpop.f32.mrb[31].mxu0  ;;  %v14469_v12 = vpop.f32.mrb[30].mxu1 }
 0x1ed   : > { %20488 = vst [vmem:[#allocation18_spill] sm:$0xff] %v14469_v12  ;;  %v12079_v52 = vpop.f32.mrb[31].mxu1 }
 0x1ee   : > { %12305 = vmatmul.mubr.msk.bf16.gmra.mrb[136].mxu0 %vm959_vm3, %v14125_v63 }
 0x1ef   : > { %12197 = vmatmul.mubr.msk.bf16.gmra.mrb[136].mxu1 %vm959_vm3, %v14155_v13  ;;  %12308 = vmatprep.mubr.msk.bf16.mxu0 %vm13510_vm0, %v13509_v0 }
 0x1f0   : > { %12200 = vmatprep.mubr.msk.bf16.mxu1 %vm13510_vm0, %v13509_v0 }
 0x1f1   : > { %v14485_v45 = vpop.f32.mrb[32].mxu0 }
 0x1f2   : > { %v12030_v63 = vpop.f32.mrb[33].mxu0  ;;  %v14487_v10 = vpop.f32.mrb[32].mxu1 }
 0x1f3   : > { %20489 = vst [vmem:[#allocation19_spill] sm:$0xff] %v14487_v10  ;;  %v14489_v7 = vpop.f32.mrb[34].mxu0  ;;  %v12082_v50 = vpop.f32.mrb[33].mxu1 }
 0x1f4   : > { %v12031_v51 = vpop.f32.mrb[35].mxu0  ;;  %v14491_v16 = vpop.f32.mrb[34].mxu1 }
 0x1f5   : > { %20490 = vst [vmem:[#allocation20_spill] sm:$0xff] %v14491_v16  ;;  %v12083_v53 = vpop.f32.mrb[35].mxu1 }
 0x1f6   : > { %12309 = vmatmul.mubr.msk.bf16.gmra.mrb[140].mxu0 %vm959_vm3, %v14155_v13  ;;  %v14535_v53 = vpop.permute.xlu1 %2457 }
 0x1f7   : > { %12201 = vmatmul.mubr.msk.bf16.gmra.mrb[140].mxu1 %vm959_vm3, %v14185_v29  ;;  %12312 = vmatprep.mubr.msk.bf16.mxu0 %vm13510_vm0, %v13509_v0  ;;  %v2644_v62 = vrot.slane %v14535_v53, 1 }
 0x1f8   : > { %12204 = vmatprep.mubr.msk.bf16.mxu1 %vm13510_vm0, %v13509_v0 }
 0x1f9   : > { %v14501_v54 = vpop.f32.mrb[36].mxu0 }
 0x1fa   : > { %v12034_v28 = vpop.f32.mrb[37].mxu0  ;;  %v14503_v8 = vpop.f32.mrb[36].mxu1 }
 0x1fb   : > { %20491 = vst [vmem:[#allocation21_spill] sm:$0xff] %v14503_v8  ;;  %v14505_v46 = vpop.f32.mrb[38].mxu0  ;;  %v12086_v60 = vpop.f32.mrb[37].mxu1 }
 0x1fc   : > { %v12035_v34 = vpop.f32.mrb[39].mxu0  ;;  %v14507_v3 = vpop.f32.mrb[38].mxu1 }
 0x1fd   : > { %20492 = vst [vmem:[#allocation22_spill] sm:$0xff] %v14507_v3  ;;  %v12087_v13 = vpop.f32.mrb[39].mxu1 }
 0x1fe   : > { %12313 = vmatmul.mubr.msk.bf16.gmra.mrb[144].mxu0 %vm959_vm3, %v14185_v29 }
 0x1ff   : > { %12205 = vmatmul.mubr.msk.bf16.gmra.mrb[144].mxu1 %vm959_vm3, %v14215_v38  ;;  %12316 = vmatprep.mubr.msk.bf16.mxu0 %vm13510_vm0, %v13509_v0  ;;  %v14527_v0 = vpop.permute.xlu0 %2453 }
 0x200   : > { %3623 = vmatprep.mubr.bf16.mxu1 %v13513_v18  ;;  %v14590_v53 = vrot.slane %v14527_v0, 1 }
 0x201   : > { %v14516_v11 = vpop.f32.mrb[40].mxu0 }
 0x202   : > { %v12038_v47 = vpop.f32.mrb[41].mxu0  ;;  %v14518_v58 = vpop.f32.mrb[40].mxu1  ;;  %20496 = vst [vmem:[#allocation26_spill] sm:$0xff] %v14590_v53 }
 0x203   : > { %20493 = vst [vmem:[#allocation23_spill] sm:$0xff] %v14518_v58  ;;  %v14520_v43 = vpop.f32.mrb[42].mxu0  ;;  %v12090_v25 = vpop.f32.mrb[41].mxu1 }
 0x204   : > { %v12039_v41 = vpop.f32.mrb[43].mxu0  ;;  %v14522_v6 = vpop.f32.mrb[42].mxu1 }
 0x205   : > { %20494 = vst [vmem:[#allocation24_spill] sm:$0xff] %v14522_v6  ;;  %v12091_v29 = vpop.f32.mrb[43].mxu1  ;;  %v14543_v28 = vpop.permute.xlu0 %2465 }
 0x206   : > { %12317 = vmatmul.mubr.msk.bf16.gmra.mrb[148].mxu0 %vm959_vm3, %v14215_v38  ;;  %v12859_v38 = vld [vmem:[%s20232_s5 + $0x20] ss:$8 sps:$4 sm:$0xff]  }
 0x207   : > { %3977 = vmatprep.mubr.bf16.mxu0 %v13513_v18  ;;  %v12861_v18 = vld [vmem:[%s20232_s5 + $0x24] ss:$8 sps:$4 sm:$0xff]  }
 0x208   : > { %3595 = vmatprep.subr.bf16.mxu1 %v12861_v18 }
 0x209   : > { %v14529_v30 = vpop.f32.mrb[44].mxu0  ;;  %3596 = vmatpush1.bf16.msra.mxu1 %v12859_v38 }
 0x20a   : > { %v12042_v27 = vpop.f32.mrb[45].mxu0  ;;  %v14531_v52 = vpop.f32.mrb[44].mxu1 }
 0x20b   : > { %20495 = vst [vmem:[#allocation25_spill] sm:$0xff] %v14531_v52  ;;  %v14533_v37 = vpop.f32.mrb[46].mxu0  ;;  %v12094_v42 = vpop.f32.mrb[45].mxu1 }
 0x20c   : > { %v12043_v63 = vpop.f32.mrb[47].mxu0  ;;  %v1239_v50 = vpop.f32.mrb[46].mxu1 }
 0x20d   : > { %v12095_v51 = vpop.f32.mrb[47].mxu1  ;;  %v14550_v50 = vpop.permute.xlu1 %2461 }
 0x20e   : > { %v14552_v51 = vpop.permute.xlu0 %2473 }
 0x20f   : > { %v2652_v0 = vrot.slane %v14552_v51, 1 }
 0x211   : > { %v14545_v60 = vpop.f32.mrb[48].mxu0 }
 0x212   : > { %v12046_v34 = vpop.f32.mrb[49].mxu0  ;;  %v1325_v13 = vpop.f32.mrb[48].mxu1 }
 0x213   : > { %v14547_v47 = vpop.f32.mrb[50].mxu0  ;;  %v12110_v25 = vpop.f32.mrb[49].mxu1 }
 0x214   : > { %v12047_v41 = vpop.f32.mrb[51].mxu0  ;;  %v1327_v29 = vpop.f32.mrb[50].mxu1 }
 0x215   : > { %v1852_v27 = vrot.slane %v1327_v29, 1  ;;  %v12111_v42 = vpop.f32.mrb[51].mxu1 }
 0x217   : > { %v1996_v63 = vadd.f32 %v1852_v27, %v14347_v32  ;;  %v14558_v32 = vld [vmem:[%s20230_s3] ss:$0 sm:$0xff] }
 0x219   : > { %v1605_v6 = vpop.f32.mrb[52].mxu0 }
 0x21a   : > { %v1332_v52 = vpop.f32.mrb[52].mxu1  ;;  %v12222_v34 = vpop.f32.mrb[53].mxu0 }
 0x21b   : > { %v1853_v13 = vrot.slane %v1332_v52, 1  ;;  %v12114_v18 = vpop.f32.mrb[53].mxu1  ;;  %v1607_v58 = vpop.f32.mrb[54].mxu0 }
 0x21c   : > { %v2095_v3 = vrot.slane %v1607_v58, 2  ;;  %v1335_v25 = vpop.f32.mrb[54].mxu1  ;;  %v12223_v38 = vpop.f32.mrb[55].mxu0 }
 0x21d   : > { %v1854_v41 = vsel %vm1851_vm4, %v1852_v27, %v1853_v13  ;;  %v1855_v29 = vrot.slane %v1335_v25, 1  ;;  %v12115_v42 = vpop.f32.mrb[55].mxu1  ;;  %v14562_v52 = vpop.permute.xlu1 %2469  ;;  %v14571_v27 = vld [vmem:[%s20231_s4] ss:$0 sm:$0xff] }
 0x21e   : > { %v1997_v6 = vadd.f32 %v1854_v41, %v14351_v21  ;;  %v2241_v8 = vadd.f32 %v2095_v3, %v1996_v63  ;;  %v14566_v38 = vpop.permute.xlu0 %2481 }
 0x21f   : > { %v1856_v34 = vsel %vm1851_vm4, %v1853_v13, %v1855_v29 }
 0x220   : > { %v2297_v58 = vmul.f32 %v14558_v32, %v2241_v8  ;;  %v1998_v18 = vadd.f32 %v1856_v34, %v14361_v9 }
 0x221   : > { %v1612_v25 = vpop.f32.mrb[56].mxu0 }
 0x222   : > { %v2096_v42 = vrot.slane %v1612_v25, 2  ;;  %v1340_v21 = vpop.f32.mrb[56].mxu1  ;;  %v12226_v63 = vpop.f32.mrb[57].mxu0  ;;  %v2353_v10 = vadd.f32 %v14571_v27, %v2297_v58  ;;  %v2648_v25 = vrot.slane %v14543_v28, 1  ;;  %v2646_v58 = vrot.slane %v14550_v50, 1 }
 0x223   : > { %v1857_v41 = vrot.slane %v1340_v21, 1  ;;  %v12118_v13 = vpop.f32.mrb[57].mxu1  ;;  %v1615_v16 = vpop.f32.mrb[58].mxu0 }
 0x224   : > { %v2097_v8 = vsel %vm2094_vm5, %v2095_v3, %v2096_v42  ;;  %v2098_v9 = vrot.slane %v1615_v16, 2  ;;  %v1343_v34 = vpop.f32.mrb[58].mxu1  ;;  %v12227_v12 = vpop.f32.mrb[59].mxu0 }
 0x225   : > { %v2242_v39 = vadd.f32 %v2097_v8, %v1997_v6  ;;  %v1858_v44 = vsel %vm1851_vm4, %v1855_v29, %v1857_v41  ;;  %v1859_v19 = vrot.slane %v1343_v34, 1  ;;  %v12119_v20 = vpop.f32.mrb[59].mxu1  ;;  %v12862_v29 = vld [vmem:[%s20232_s5 + $0x30] ss:$8 sps:$4 sm:$0xff]  }
 0x226   : > { %v1999_v21 = vadd.f32 %v1858_v44, %v14365_v23  ;;  %v2099_v63 = vsel %vm2094_vm5, %v2096_v42, %v2098_v9  ;;  %v12864_v20 = vld [vmem:[%s20232_s5 + $0x34] ss:$8 sps:$4 sm:$0xff]   ;;  %v14592_v23 = vpop.permute.xlu1 %2477  ;;  %v2402_v44 = vmax.f32 %v2353_v10, 0.0  ;;  %v14601_v42 = vsel %vm1851_vm4, %v14590_v53, %v2644_v62 }
 0x227   : > { %v2298_v3 = vmul.f32 %v14558_v32, %v2242_v39  ;;  %v2243_v16 = vadd.f32 %v2099_v63, %v1998_v18  ;;  %v1860_v12 = vsel %vm1851_vm4, %v1857_v41, %v1859_v19  ;;  %v14595_v39 = vpop.permute.xlu0 %2489  ;;  %3597 = vmatprep.subr.bf16.mxu1 %v12864_v20  ;;  %20497 = vst [vmem:[#allocation27_spill] sm:$0xff] %v14601_v42 }
 0x228   : > { %v2000_v28 = vadd.f32 %v1860_v12, %v14377_v35  ;;  %3598 = vmatpush1.bf16.msra.mxu1 %v12862_v29  ;;  %v14605_v35 = vsel %vm1851_vm4, %v2644_v62, %v2646_v58  ;;  %v14608_v10 = vsel %vm1851_vm4, %v2646_v58, %v2648_v25  ;;  %v2650_v12 = vrot.slane %v14562_v52, 1  ;;  %v12867_v62 = vld [vmem:[%s20232_s5 + $0x64] ss:$8 sps:$4 sm:$0xff]   ;;  %v12865_v52 = vld [vmem:[%s20232_s5 + $0x60] ss:$8 sps:$4 sm:$0xff]  }
 0x229   : > { %v2354_v50 = vadd.f32 %v14571_v27, %v2298_v3  ;;  %v2299_v6 = vmul.f32 %v14558_v32, %v2243_v16  ;;  %v1620_v18 = vpop.f32.mrb[60].mxu0  ;;  %20498 = vst [vmem:[#allocation28_spill] sm:$0xff] %v14605_v35  ;;  %20499 = vst [vmem:[#allocation29_spill] sm:$0xff] %v14608_v10  ;;  %v2787_v20 = vmul.f32 %v14590_v53, %v2402_v44  ;;  %3945 = vmatprep.subr.bf16.mxu0 %v12867_v62 }
 0x22a   : > { %v2100_v41 = vrot.slane %v1620_v18, 2  ;;  %v1348_v13 = vpop.f32.mrb[60].mxu1  ;;  %v12230_v8 = vpop.f32.mrb[61].mxu0  ;;  %3946 = vmatpush1.bf16.msra.mxu0 %v12865_v52 }
 0x22b   : > { %v2403_v34 = vmax.f32 %v2354_v50, 0.0  ;;  %v1861_v63 = vrot.slane %v1348_v13, 1  ;;  %v12122_v3 = vpop.f32.mrb[61].mxu1  ;;  %v1623_v16 = vpop.f32.mrb[62].mxu0  ;;  %v2355_v29 = vadd.f32 %v14571_v27, %v2299_v6 }
 0x22c   : > { %v2101_v51 = vsel %vm2094_vm5, %v2098_v9, %v2100_v41  ;;  %v2102_v18 = vrot.slane %v1623_v16, 2  ;;  %v1351_v14 = vpop.f32.mrb[62].mxu1  ;;  %v12231_v8 = vpop.f32.mrb[63].mxu0  ;;  %v2654_v9 = vrot.slane %v14592_v23, 1 }
 0x22d   : > { %v2788_v58 = vmul.f32 %v14601_v42, %v2403_v34  ;;  %v2244_v50 = vadd.f32 %v2101_v51, %v1999_v21  ;;  %v1862_v13 = vsel %vm1851_vm4, %v1859_v19, %v1861_v63  ;;  %v12123_v3 = vpop.f32.mrb[63].mxu1  ;;  %v1863_v8 = vrot.slane %v1351_v14, 1 }
 0x22e   : > { %v2001_v44 = vadd.f32 %v1862_v13, %v14381_v40  ;;  %v2103_v16 = vsel %vm2094_vm5, %v2100_v41, %v2102_v18  ;;  %v2656_v34 = vrot.slane %v14566_v38, 1  ;;  %v14628_v19 = vsel %vm1851_vm4, %v2648_v25, %v2650_v12  ;;  %v14634_v40 = vpop.permute.xlu1 %2485  ;;  %v12870_v38 = vld [vmem:[%s20232_s5 + $0x74] ss:$8 sps:$4 sm:$0xff]   ;;  %v14640_v41 = vpop.permute.xlu0 %2497 }
 0x22f   : > { %v2836_v42 = vpack.c.bf16 %v2788_v58, %v2787_v20  ;;  %v2300_v21 = vmul.f32 %v14558_v32, %v2244_v50  ;;  %v2245_v6 = vadd.f32 %v2103_v16, %v2000_v28  ;;  %20500 = vst [vmem:[#allocation30_spill] sm:$0xff] %v14628_v19  ;;  %v14631_v51 = vsel %vm1851_vm4, %v2650_v12, %v2652_v0  ;;  %v12868_v58 = vld [vmem:[%s20232_s5 + $0x70] ss:$8 sps:$4 sm:$0xff]  }
 0x230   : > { %20501 = vst [vmem:[#allocation31_spill] sm:$0xff] %v14631_v51  ;;  %v1864_v14 = vsel %vm1851_vm4, %v1861_v63, %v1863_v8  ;;  %v2404_v20 = vmax.f32 %v2355_v29, 0.0  ;;  %v14648_v50 = vsel %vm1851_vm4, %v2652_v0, %v2654_v9  ;;  %3947 = vmatprep.subr.bf16.mxu0 %v12870_v38  ;;  %v14652_v29 = vsel %vm1851_vm4, %v2654_v9, %v2656_v34  ;;  %v12873_v9 = vld [vmem:[%s20232_s5 + $0x84] ss:$8 sps:$4 sm:$0xff]  }
 0x231   : > { %v2863_v28 = vshrl.u32 %v2836_v42, 16  ;;  %v2356_v25 = vadd.f32 %v14571_v27, %v2300_v21  ;;  %v2301_v62 = vmul.f32 %v14558_v32, %v2245_v6  ;;  %v1628_v12 = vpop.f32.mrb[64].mxu0  ;;  %20502 = vst [vmem:[#allocation32_spill] sm:$0xff] %v14648_v50  ;;  %v2866_v63 = vshll.u32 %v2836_v42, 16  ;;  %20503 = vst [vmem:[#allocation33_spill] sm:$0xff] %v14652_v29  ;;  %3948 = vmatpush1.bf16.msra.mxu0 %v12868_v58 }
 0x232   : > { %v2002_v13 = vadd.f32 %v1864_v14, %v14393_v48  ;;  %v2104_v3 = vrot.slane %v1628_v12, 2  ;;  %v1356_v52 = vpop.f32.mrb[64].mxu1  ;;  %v12234_v16 = vpop.f32.mrb[65].mxu0  ;;  %v20244_v21 = vrot.slane %v14634_v40, 1  ;;  %v2789_v6 = vmul.f32 %v14605_v35, %v2404_v20  ;;  %3949 = vmatprep.subr.bf16.mxu0 %v12873_v9 }
 0x233   : > { %v2405_v23 = vmax.f32 %v2356_v25, 0.0  ;;  %v12126_v53 = vpop.f32.mrb[65].mxu1  ;;  %v1631_v57 = vpop.f32.mrb[66].mxu0  ;;  %v2357_v0 = vadd.f32 %v14571_v27, %v2301_v62  ;;  %v1865_v48 = vrot.slane %v1356_v52, 1  ;;  %v14661_v38 = vrot.slane %v2863_v28, 3 }
 0x234   : > { %v2105_v42 = vsel %vm2094_vm5, %v2102_v18, %v2104_v3  ;;  %v2106_v14 = vrot.slane %v1631_v57, 2  ;;  %v1359_v12 = vpop.f32.mrb[66].mxu1  ;;  %v12235_v16 = vpop.f32.mrb[67].mxu0  ;;  %v12871_v18 = vld [vmem:[%s20232_s5 + $0x80] ss:$8 sps:$4 sm:$0xff]   ;;  %v2868_v62 = vrot.slane %v2866_v63, 4  ;;  %v14673_v28 = vsel %vm1851_vm4, %v2656_v34, %v20244_v21 }
 0x235   : > { %v2790_v53 = vmul.f32 %v14608_v10, %v2405_v23  ;;  %v2246_v25 = vadd.f32 %v2105_v42, %v2001_v44  ;;  %v12127_v58 = vpop.f32.mrb[67].mxu1  ;;  %v1866_v57 = vsel %vm1851_vm4, %v1863_v8, %v1865_v48  ;;  %v1867_v16 = vrot.slane %v1359_v12, 1  ;;  %20504 = vst [vmem:[#allocation34_spill] sm:$0xff] %v14673_v28  ;;  %v14675_v20 = vpop.permute.xlu1 %2493  ;;  %3950 = vmatpush1.bf16.msra.mxu0 %v12871_v18  ;;  %v12876_v12 = vld [vmem:[%s20232_s5 + $0x94] ss:$8 sps:$4 sm:$0xff]  }
 0x236   : > { %v2107_v52 = vsel %vm2094_vm5, %v2104_v3, %v2106_v14  ;;  %v2003_v42 = vadd.f32 %v1866_v57, %v14397_v15  ;;  %v2406_v8 = vmax.f32 %v2357_v0, 0.0  ;;  %v12874_v15 = vld [vmem:[%s20232_s5 + $0x90] ss:$8 sps:$4 sm:$0xff]   ;;  %v2869_v0 = vor.u32 %v2868_v62, %v14661_v38  ;;  %3951 = vmatprep.subr.bf16.mxu0 %v12876_v12 }
 0x237   : > { %v2837_v44 = vpack.c.bf16 %v2790_v53, %v2789_v6  ;;  %v2302_v23 = vmul.f32 %v14558_v32, %v2246_v25  ;;  %v2247_v58 = vadd.f32 %v2107_v52, %v2002_v13  ;;  %v1868_v3 = vsel %vm1851_vm4, %v1865_v48, %v1867_v16 }
 0x238   : > { %v2004_v6 = vadd.f32 %v1868_v3, %v14415_v56  ;;  %v2791_v3 = vmul.f32 %v14628_v19, %v2406_v8 }
 0x239   : > { %v2871_v34 = vshrl.u32 %v2837_v44, 16  ;;  %v2874_v9 = vshll.u32 %v2837_v44, 16  ;;  %v2358_v21 = vadd.f32 %v14571_v27, %v2302_v23  ;;  %v1636_v53 = vpop.f32.mrb[68].mxu0  ;;  %v2303_v13 = vmul.f32 %v14558_v32, %v2247_v58  ;;  %3952 = vmatpush1.bf16.msra.mxu0 %v12874_v15  ;;  %v12880_v15 = vld [vmem:[%s20232_s5 + $0xa0] ss:$8 sps:$4 sm:$0xff]  }
 0x23a   : > { %v2108_v48 = vrot.slane %v1636_v53, 2  ;;  %v1364_v25 = vpop.f32.mrb[68].mxu1  ;;  %v12238_v18 = vpop.f32.mrb[69].mxu0 }
 0x23b   : > { %v2873_v57 = vrot.slane %v2871_v34, 3  ;;  %v2876_v52 = vrot.slane %v2874_v9, 4  ;;  %v2407_v44 = vmax.f32 %v2358_v21, 0.0  ;;  %v1869_v23 = vrot.slane %v1364_v25, 1  ;;  %v12130_v63 = vpop.f32.mrb[69].mxu1  ;;  %v14691_v56 = vpop.f32.mrb[70].mxu0 }
 0x23c   : > { %v14695_v10 = vadd.f32 %v14571_v27, %v2303_v13  ;;  %v2109_v38 = vsel %vm2094_vm5, %v2106_v14, %v2108_v48  ;;  %v2110_v62 = vrot.slane %v14691_v56, 2  ;;  %v14699_v58 = vpop.f32.mrb[70].mxu1  ;;  %v12239_v12 = vpop.f32.mrb[71].mxu0  ;;  %v12879_v21 = vld [vmem:[%s20232_s5 + $0x44] ss:$8 sps:$4 sm:$0xff]   ;;  %v20505_v13 = vrot.slane %v14595_v39, 1 }
 0x23d   : > { %v14704_v63 = vor.u32 %v2876_v52, %v2873_v57  ;;  %v2792_v34 = vmul.f32 %v14631_v51, %v2407_v44  ;;  %v2248_v9 = vadd.f32 %v2109_v38, %v2003_v42  ;;  %v1870_v8 = vsel %vm1851_vm4, %v1867_v16, %v1869_v23  ;;  %v12131_v53 = vpop.f32.mrb[71].mxu1  ;;  %v12877_v14 = vld [vmem:[%s20232_s5 + $0x40] ss:$8 sps:$4 sm:$0xff]   ;;  %3599 = vmatprep.subr.bf16.mxu1 %v12879_v21  ;;  %v12882_v52 = vld [vmem:[%s20232_s5 + $0xa4] ss:$8 sps:$4 sm:$0xff]   ;;  %v14727_v44 = vpop.permute.xlu0 %2505 }
 0x23e   : > { %v20506_v25 = vrot.slane %v14634_v40, 1  ;;  %v2005_v42 = vadd.f32 %v1870_v8, %v14419_v59  ;;  %v2111_v16 = vsel %vm2094_vm5, %v2108_v48, %v2110_v62  ;;  %v1871_v57 = vrot.slane %v14699_v58, 1  ;;  %v14732_v53 = vld [vmem:[#allocation2 + $0x8] sm:$0xf0]  ;;  %3600 = vmatpush1.bf16.msra.mxu1 %v12877_v14  ;;  %3953 = vmatprep.subr.bf16.mxu0 %v12882_v52  ;;  %v12888_v39 = vld [vmem:[%s20232_s5 + $0xb4] ss:$8 sps:$4 sm:$0xff]  }
 0x23f   : > { %v2878_v56 = vsel %vm2861_vm6, %v2869_v0, %v14704_v63  ;;  %v2838_v40 = vpack.c.bf16 %v2792_v34, %v2791_v3  ;;  %v2304_v38 = vmul.f32 %v14558_v32, %v2248_v9  ;;  %v2249_v12 = vadd.f32 %v2111_v16, %v2004_v6  ;;  %v12885_v6 = vld [vmem:[%s20232_s5 + $0x54] ss:$8 sps:$4 sm:$0xff]   ;;  %v14751_v34 = vpop.permute.xlu1 %2501  ;;  %3954 = vmatpush1.bf16.msra.mxu0 %v12880_v15  ;;  %v12886_v15 = vld [vmem:[%s20232_s5 + $0xb0] ss:$8 sps:$4 sm:$0xff]  }
 0x240   : > { %v14719_v18 = vsel %vm1851_vm4, %v20506_v25, %v20505_v13  ;;  %v20508_v59 = vrot.slane %v14675_v20, 1  ;;  %v20509_v48 = vmov %v20505_v13  ;;  %3110 = vst.msk [vmem:[#allocation2 + $0x10] sm:$0xff] %vm451_vm1, %v2878_v56  ;;  %v2408_v0 = vmax.f32 %v14695_v10, 0.0  ;;  %3601 = vmatprep.subr.bf16.mxu1 %v12885_v6  ;;  %3955 = vmatprep.subr.bf16.mxu0 %v12888_v39 }
 0x241   : > { %20507 = vst [vmem:[#allocation35_spill] sm:$0xff] %v14719_v18  ;;  %v1872_v3 = vsel %vm1851_vm4, %v1869_v23, %v1871_v57  ;;  %v2880_v9 = vshrl.u32 %v2838_v40, 16  ;;  %v2883_v8 = vshll.u32 %v2838_v40, 16  ;;  %v2360_v14 = vadd.f32 %v14571_v27, %v2304_v38  ;;  %v1644_v10 = vpop.f32.mrb[72].mxu0  ;;  %v12883_v23 = vld [vmem:[%s20232_s5 + $0x50] ss:$8 sps:$4 sm:$0xff]  }
 0x242   : > { %v14739_v58 = vsel %vm1851_vm4, %v20509_v48, %v20508_v59  ;;  %v2305_v13 = vmul.f32 %v14558_v32, %v2249_v12  ;;  %v20511_v25 = vrot.slane %v14640_v41, 1  ;;  %v20512_v16 = vmov %v20508_v59  ;;  %v1372_v59 = vpop.f32.mrb[72].mxu1  ;;  %v12242_v12 = vpop.f32.mrb[73].mxu0  ;;  %3602 = vmatpush1.bf16.msra.mxu1 %v12883_v23 }
 0x243   : > { %20510 = vst [vmem:[#allocation36_spill] sm:$0xff] %v14739_v58  ;;  %v2006_v40 = vadd.f32 %v1872_v3, %v14431_v61  ;;  %v2112_v38 = vrot.slane %v1644_v10, 2  ;;  %v2882_v48 = vrot.slane %v2880_v9, 3  ;;  %v2885_v21 = vrot.slane %v2883_v8, 4  ;;  %3956 = vmatpush1.bf16.msra.mxu0 %v12886_v15 }
 0x244   : > { %v14763_v52 = vsel %vm1851_vm4, %v20512_v16, %v20511_v25  ;;  %v2409_v51 = vmax.f32 %v2360_v14, 0.0  ;;  %v2361_v20 = vadd.f32 %v14571_v27, %v2305_v13  ;;  %v12134_v25 = vpop.f32.mrb[73].mxu1  ;;  %v1647_v16 = vpop.f32.mrb[74].mxu0  ;;  %v1873_v61 = vrot.slane %v1372_v59, 1 }
 0x245   : > { %20513 = vst [vmem:[#allocation37_spill] sm:$0xff] %v14763_v52  ;;  %v2113_v56 = vsel %vm2094_vm5, %v2110_v62, %v2112_v38  ;;  %v2114_v3 = vrot.slane %v1647_v16, 2  ;;  %v1375_v10 = vpop.f32.mrb[74].mxu1  ;;  %v12243_v12 = vpop.f32.mrb[75].mxu0  ;;  %v3191_v6 = vrot.slane %v14732_v53, 4  ;;  %v2886_v19 = vor.u32 %v2885_v21, %v2882_v48  ;;  %v13291_v62 = vld [vmem:[#allocation3] sm:$0xff] }
 0x246   : > { %v2793_v35 = vmul.f32 %v14648_v50, %v2408_v0  ;;  %v2794_v39 = vmul.f32 %v14652_v29, %v2409_v51  ;;  %v2250_v9 = vadd.f32 %v2113_v56, %v2005_v42  ;;  %v12135_v8 = vpop.f32.mrb[75].mxu1  ;;  %v1874_v14 = vsel %vm1851_vm4, %v1871_v57, %v1873_v61  ;;  %6972 = vmatprep.subr.bf16.mxu0 %v13291_v62 }
 0x247   : > { %v2115_v13 = vsel %vm2094_vm5, %v2112_v38, %v2114_v3  ;;  %v1875_v23 = vrot.slane %v1375_v10, 1  ;;  %v2887_v59 = vsel %vm2861_vm6, %v14704_v63, %v2886_v19  ;;  %v2410_v21 = vmax.f32 %v2361_v20, 0.0  ;;  %v14780_v48 = vld [vmem:[#allocation2 + $0x10] sm:$0xff]  ;;  %v14786_v38 = vpop.permute.xlu0 %2513 }
 0x248   : > { %v2839_v53 = vpack.c.bf16 %v2794_v39, %v2793_v35  ;;  %v2306_v0 = vmul.f32 %v14558_v32, %v2250_v9  ;;  %3111 = vst.msk [vmem:[#allocation2 + $0x18] sm:$0xff] %vm451_vm1, %v2887_v59  ;;  %v2007_v51 = vadd.f32 %v1874_v14, %v14435_v2  ;;  %v2251_v42 = vadd.f32 %v2115_v13, %v2006_v40 }
 0x249   : > { %v1876_v57 = vsel %vm1851_vm4, %v1873_v61, %v1875_v23  ;;  %v3192_v56 = vrot.slane %v14780_v48, 4  ;;  %v1652_v20 = vpop.f32.mrb[76].mxu0  ;;  %v2672_v16 = vrot.slane %v14786_v38, 1 }
 0x24a   : > { %v2889_v15 = vshrl.u32 %v2839_v53, 16  ;;  %v2892_v25 = vshll.u32 %v2839_v53, 16  ;;  %v2362_v35 = vadd.f32 %v14571_v27, %v2306_v0  ;;  %v2008_v63 = vadd.f32 %v1876_v57, %v14447_v17  ;;  %v1380_v2 = vpop.f32.mrb[76].mxu1  ;;  %v12246_v40 = vpop.f32.mrb[77].mxu0 }
 0x24b   : > { %v2307_v10 = vmul.f32 %v14558_v32, %v2251_v42  ;;  %v2116_v12 = vrot.slane %v1652_v20, 2  ;;  %v3193_v61 = vsel %vm3190_vm7, %v3191_v6, %v3192_v56  ;;  %v1877_v14 = vrot.slane %v1380_v2, 1  ;;  %v12138_v13 = vpop.f32.mrb[77].mxu1  ;;  %v1655_v62 = vpop.f32.mrb[78].mxu0  ;;  %v429_v6 = vld [vmem:[%s20228_s1 + $0xd0] sm:$0xff] }
 0x24c   : > { %v2891_v39 = vrot.slane %v2889_v15, 3  ;;  %v2894_v9 = vrot.slane %v2892_v25, 4  ;;  %v2411_v8 = vmax.f32 %v2362_v35, 0.0  ;;  %3242 = vrot.lane.b32.xlu1 %v3193_v61, %s13511_s17  ;;  %v2795_v17 = vmul.f32 %v14673_v28, %v2410_v21  ;;  %v1383_v48 = vpop.f32.mrb[78].mxu1  ;;  %v12247_v42 = vpop.f32.mrb[79].mxu0 }
 0x24d   : > { %v2363_v59 = vadd.f32 %v14571_v27, %v2307_v10  ;;  %v2117_v53 = vsel %vm2094_vm5, %v2114_v3, %v2116_v12  ;;  %v2118_v0 = vrot.slane %v1655_v62, 2  ;;  %v1878_v35 = vsel %vm1851_vm4, %v1875_v23, %v1877_v14  ;;  %v12139_v20 = vpop.f32.mrb[79].mxu1 }
 0x24e   : > { %v2895_v57 = vor.u32 %v2894_v9, %v2891_v39  ;;  %v2796_v15 = vmul.f32 %v14719_v18, %v2411_v8  ;;  %v2252_v25 = vadd.f32 %v2117_v53, %v2007_v51  ;;  %v20514_v21 = vrot.slane %v14751_v34, 1 }
 0x24f   : > { %v20515_v10 = vrot.slane %v14640_v41, 1  ;;  %v2009_v2 = vadd.f32 %v1878_v35, %v14451_v22  ;;  %v2119_v40 = vsel %vm2094_vm5, %v2116_v12, %v2118_v0  ;;  %v1879_v61 = vrot.slane %v1383_v48, 1  ;;  %v14813_v23 = vld [vmem:[#allocation2 + $0x18] sm:$0xff]  ;;  %v14822_v22 = vpop.permute.xlu1 %2509 }
 0x250   : > { %v2896_v39 = vsel %vm2861_vm6, %v2886_v19, %v2895_v57  ;;  %v2840_v9 = vpack.c.bf16 %v2796_v15, %v2795_v17  ;;  %v2308_v51 = vmul.f32 %v14558_v32, %v2252_v25  ;;  %v2253_v8 = vadd.f32 %v2119_v40, %v2008_v63  ;;  %2557 = vperm.xlu1 %12781, %v429_v6   ;;  %v14829_v17 = vpop.permute.xlu0 %2521 }
 0x251   : > { %v14807_v3 = vsel %vm1851_vm4, %v20515_v10, %v20514_v21  ;;  %v20517_v13 = vrot.slane %v14727_v44, 1  ;;  %v20518_v41 = vmov %v20514_v21  ;;  %3112 = vst.msk [vmem:[#allocation2 + $0x20] sm:$0xff] %vm451_vm1, %v2896_v39  ;;  %v2412_v12 = vmax.f32 %v2363_v59, 0.0  ;;  %3294 = vrot.lane.b32.xlu0 %v14813_v23, %s13512_s11  ;;  %v1660_v6 = vpop.f32.mrb[80].mxu0  ;;  %v432_v59 = vld [vmem:[%s20228_s1 + $0xe8] sm:$0xff] }
 0x252   : > { %20516 = vst [vmem:[#allocation38_spill] sm:$0xff] %v14807_v3  ;;  %v1880_v19 = vsel %vm1851_vm4, %v1877_v14, %v1879_v61  ;;  %v3194_v63 = vrot.slane %v14813_v23, 4  ;;  %v2898_v53 = vshrl.u32 %v2840_v9, 16  ;;  %v2901_v48 = vshll.u32 %v2840_v9, 16  ;;  %v1388_v35 = vpop.f32.mrb[80].mxu1  ;;  %v12250_v20 = vpop.f32.mrb[81].mxu0 }
 0x253   : > { %v14820_v62 = vsel %vm1851_vm4, %v20518_v41, %v20517_v13  ;;  %v2364_v34 = vadd.f32 %v14571_v27, %v2308_v51  ;;  %v2309_v42 = vmul.f32 %v14558_v32, %v2253_v8  ;;  %v2670_v14 = vrot.slane %v14822_v22, 1  ;;  %v12142_v51 = vpop.f32.mrb[81].mxu1  ;;  %v1663_v8 = vpop.f32.mrb[82].mxu0  ;;  %v433_v23 = vld [vmem:[%s20228_s1 + $0xf0] sm:$0xff] }
 0x254   : > { %20519 = vst [vmem:[#allocation39_spill] sm:$0xff] %v14820_v62  ;;  %v2010_v15 = vadd.f32 %v1880_v19, %v14463_v55  ;;  %v2120_v25 = vrot.slane %v1660_v6, 2  ;;  %v3195_v21 = vsel %vm3190_vm7, %v3192_v56, %v3194_v63  ;;  %v2900_v10 = vrot.slane %v2898_v53, 3  ;;  %v1391_v19 = vpop.f32.mrb[82].mxu1  ;;  %v12251_v6 = vpop.f32.mrb[83].mxu0  ;;  %v431_v56 = vld [vmem:[%s20228_s1 + $0xe0] sm:$0xff] }
 0x255   : > { %v2903_v40 = vrot.slane %v2901_v48, 4  ;;  %v2413_v39 = vmax.f32 %v2364_v34, 0.0  ;;  %v2365_v9 = vadd.f32 %v14571_v27, %v2309_v42  ;;  %3244 = vrot.lane.b32.xlu1 %v3195_v21, %s13511_s17  ;;  %v1881_v41 = vrot.slane %v1388_v35, 1  ;;  %2569 = vperm.xlu0 %12780, %v432_v59   ;;  %v12143_v20 = vpop.f32.mrb[83].mxu1 }
 0x256   : > { %v2121_v55 = vsel %vm2094_vm5, %v2118_v0, %v2120_v25  ;;  %v2122_v22 = vrot.slane %v1663_v8, 2  ;;  %v2797_v48 = vmul.f32 %v14739_v58, %v2412_v12  ;;  %v20520_v21 = vmov %v20517_v13 }
 0x257   : > { %v2904_v53 = vor.u32 %v2903_v40, %v2900_v10  ;;  %v2798_v34 = vmul.f32 %v14763_v52, %v2413_v39  ;;  %v2254_v42 = vadd.f32 %v2121_v55, %v2009_v2  ;;  %v14853_v0 = vsel %vm1851_vm4, %v20520_v21, %v2670_v14  ;;  %v14861_v2 = vpop.permute.xlu1 %2517 }
 0x258   : > { %20521 = vst [vmem:[#allocation40_spill] sm:$0xff] %v14853_v0  ;;  %v1882_v35 = vsel %vm1851_vm4, %v1879_v61, %v1881_v41  ;;  %v2123_v59 = vsel %vm2094_vm5, %v2120_v25, %v2122_v22  ;;  %v1883_v51 = vrot.slane %v1391_v19, 1  ;;  %v2414_v10 = vmax.f32 %v2365_v9, 0.0  ;;  %v14859_v40 = vld [vmem:[#allocation2 + $0x20] sm:$0xff]  ;;  %v14869_v25 = vpop.permute.xlu0 %2529 }
 0x259   : > { %v2905_v8 = vsel %vm2861_vm6, %v2895_v57, %v2904_v53  ;;  %v2841_v6 = vpack.c.bf16 %v2798_v34, %v2797_v48  ;;  %v2310_v12 = vmul.f32 %v14558_v32, %v2254_v42  ;;  %2565 = vperm.xlu1 %12781, %v431_v56   ;;  %v2011_v44 = vadd.f32 %v1882_v35, %v14467_v4  ;;  %v1668_v48 = vpop.f32.mrb[84].mxu0  ;;  %v434_v4 = vld [vmem:[%s20228_s1 + $0xf8] sm:$0xff] }
 0x25a   : > { %3113 = vst.msk [vmem:[#allocation2 + $0x28] sm:$0xff] %vm451_vm1, %v2905_v8  ;;  %v2255_v39 = vadd.f32 %v2123_v59, %v2010_v15  ;;  %v1884_v61 = vsel %vm1851_vm4, %v1881_v41, %v1883_v51  ;;  %3296 = vrot.lane.b32.xlu0 %v14859_v40, %s13512_s11  ;;  %v3196_v57 = vrot.slane %v14859_v40, 4  ;;  %v14879_v15 = vsel %vm1851_vm4, %v2670_v14, %v2672_v16  ;;  %v1396_v42 = vpop.f32.mrb[84].mxu1  ;;  %v12254_v20 = vpop.f32.mrb[85].mxu0  ;;  %v435_v40 = vld [vmem:[%s20228_s1 + $0x100] sm:$0xff] }
 0x25b   : > { %v2907_v9 = vshrl.u32 %v2841_v6, 16  ;;  %v2910_v55 = vshll.u32 %v2841_v6, 16  ;;  %v2366_v19 = vadd.f32 %v14571_v27, %v2310_v12  ;;  %v2012_v56 = vadd.f32 %v1884_v61, %v14485_v45  ;;  %20522 = vst [vmem:[#allocation41_spill] sm:$0xff] %v14879_v15  ;;  %v12146_v6 = vpop.f32.mrb[85].mxu1  ;;  %v1671_v12 = vpop.f32.mrb[86].mxu0 }
 0x25c   : > { %v2311_v41 = vmul.f32 %v14558_v32, %v2255_v39  ;;  %v2124_v34 = vrot.slane %v1668_v48, 2  ;;  %v3197_v45 = vsel %vm3190_vm7, %v3194_v63, %v3196_v57  ;;  %v1885_v8 = vrot.slane %v1396_v42, 1  ;;  %v1399_v20 = vpop.f32.mrb[86].mxu1  ;;  %v12255_v13 = vpop.f32.mrb[87].mxu0 }
 0x25d   : > { %v2909_v21 = vrot.slane %v2907_v9, 3  ;;  %v2912_v35 = vrot.slane %v2910_v55, 4  ;;  %v2415_v59 = vmax.f32 %v2366_v19, 0.0  ;;  %3246 = vrot.lane.b32.xlu1 %v3197_v45, %s13511_s17  ;;  %v2799_v14 = vmul.f32 %v14807_v3, %v2414_v10  ;;  %v12147_v42 = vpop.f32.mrb[87].mxu1 }
 0x25e   : > { %v2367_v39 = vadd.f32 %v14571_v27, %v2311_v41  ;;  %v2125_v61 = vsel %vm2094_vm5, %v2122_v22, %v2124_v34  ;;  %v2126_v48 = vrot.slane %v1671_v12, 2  ;;  %2577 = vperm.xlu0 %12780, %v434_v4   ;;  %v1886_v19 = vsel %vm1851_vm4, %v1883_v51, %v1885_v8  ;;  %v14904_v51 = vpop.permute.xlu1 %2525 }
 0x25f   : > { %v2913_v63 = vor.u32 %v2912_v35, %v2909_v21  ;;  %v2800_v9 = vmul.f32 %v14820_v62, %v2415_v59  ;;  %v2256_v55 = vadd.f32 %v2125_v61, %v2011_v44  ;;  %v2674_v10 = vrot.slane %v14861_v2, 1 }
 0x260   : > { %v2013_v41 = vadd.f32 %v1886_v19, %v14489_v7  ;;  %v2127_v22 = vsel %vm2094_vm5, %v2124_v34, %v2126_v48  ;;  %v1887_v45 = vrot.slane %v1399_v20, 1  ;;  %v2416_v35 = vmax.f32 %v2367_v39, 0.0  ;;  %v14911_v34 = vpop.permute.xlu0 %2537  ;;  %v436_v39 = vld [vmem:[%s20228_s1 + $0x108] sm:$0xff] }
 0x261   : > { %v2914_v13 = vsel %vm2861_vm6, %v2904_v53, %v2913_v63  ;;  %v2842_v4 = vpack.c.bf16 %v2800_v9, %v2799_v14  ;;  %v2312_v6 = vmul.f32 %v14558_v32, %v2256_v55  ;;  %v2257_v12 = vadd.f32 %v2127_v22, %v2012_v56  ;;  %2573 = vperm.xlu1 %12781, %v433_v23   ;;  %v14901_v21 = vld [vmem:[#allocation2 + $0x28] sm:$0xff]  ;;  %v1676_v20 = vpop.f32.mrb[88].mxu0 }
 0x262   : > { %3114 = vst.msk [vmem:[#allocation2 + $0x30] sm:$0xff] %vm451_vm1, %v2914_v13  ;;  %v1888_v7 = vsel %vm1851_vm4, %v1885_v8, %v1887_v45  ;;  %3298 = vrot.lane.b32.xlu0 %v14901_v21, %s13512_s11  ;;  %v3198_v53 = vrot.slane %v14901_v21, 4  ;;  %v2128_v9 = vrot.slane %v1676_v20, 2  ;;  %v1404_v55 = vpop.f32.mrb[88].mxu1  ;;  %v12258_v19 = vpop.f32.mrb[89].mxu0  ;;  %v2684_v44 = vrot.slane %v14911_v34, 1 }
 0x263   : > { %v2916_v56 = vshrl.u32 %v2842_v4, 16  ;;  %v2919_v59 = vshll.u32 %v2842_v4, 16  ;;  %v2368_v14 = vadd.f32 %v14571_v27, %v2312_v6  ;;  %v2313_v61 = vmul.f32 %v14558_v32, %v2257_v12  ;;  %v12150_v12 = vpop.f32.mrb[89].mxu1  ;;  %v1679_v21 = vpop.f32.mrb[90].mxu0 }
 0x264   : > { %v2014_v23 = vadd.f32 %v1888_v7, %v14501_v54  ;;  %v3199_v42 = vsel %vm3190_vm7, %v3196_v57, %v3198_v53  ;;  %v2129_v54 = vsel %vm2094_vm5, %v2126_v48, %v2128_v9  ;;  %v1889_v7 = vrot.slane %v1404_v55, 1  ;;  %v1407_v19 = vpop.f32.mrb[90].mxu1  ;;  %v12259_v8 = vpop.f32.mrb[91].mxu0 }
 0x265   : > { %v2918_v22 = vrot.slane %v2916_v56, 3  ;;  %v2921_v13 = vrot.slane %v2919_v59, 4  ;;  %v2417_v4 = vmax.f32 %v2368_v14, 0.0  ;;  %v2369_v6 = vadd.f32 %v14571_v27, %v2313_v61  ;;  %3248 = vrot.lane.b32.xlu1 %v3199_v42, %s13511_s17  ;;  %v12151_v61 = vpop.f32.mrb[91].mxu1 }
 0x266   : > { %v2130_v20 = vrot.slane %v1679_v21, 2  ;;  %2585 = vperm.xlu0 %12780, %v436_v39   ;;  %v2801_v56 = vmul.f32 %v14853_v0, %v2416_v35  ;;  %v2258_v14 = vadd.f32 %v2129_v54, %v2013_v41  ;;  %v14937_v48 = vsel %vm1851_vm4, %v2672_v16, %v2674_v10  ;;  %v438_v54 = vld [vmem:[%s20228_s1 + $0x118] sm:$0xff] }
 0x267   : > { %v2922_v57 = vor.u32 %v2921_v13, %v2918_v22  ;;  %v2802_v59 = vmul.f32 %v14879_v15, %v2417_v4  ;;  %20523 = vst [vmem:[#allocation42_spill] sm:$0xff] %v14937_v48  ;;  %v1890_v39 = vsel %vm1851_vm4, %v1887_v45, %v1889_v7  ;;  %v1891_v55 = vrot.slane %v1407_v19, 1 }
 0x268   : > { %v2131_v8 = vsel %vm2094_vm5, %v2128_v9, %v2130_v20  ;;  %v2418_v35 = vmax.f32 %v2369_v6, 0.0  ;;  %v2314_v13 = vmul.f32 %v14558_v32, %v2258_v14  ;;  %v2015_v38 = vadd.f32 %v1890_v39, %v14505_v46 }
 0x269   : > { %v2923_v42 = vsel %vm2861_vm6, %v2913_v63, %v2922_v57  ;;  %v2843_v22 = vpack.c.bf16 %v2802_v59, %v2801_v56  ;;  %2581 = vperm.xlu1 %12781, %v435_v40   ;;  %v14943_v41 = vld [vmem:[#allocation2 + $0x30] sm:$0xff]  ;;  %v2259_v16 = vadd.f32 %v2131_v8, %v2014_v23  ;;  %v1892_v4 = vsel %vm1851_vm4, %v1889_v7, %v1891_v55  ;;  %v1684_v21 = vpop.f32.mrb[92].mxu0 }
 0x26a   : > { %3115 = vst.msk [vmem:[#allocation2 + $0x38] sm:$0xff] %vm451_vm1, %v2923_v42  ;;  %3300 = vrot.lane.b32.xlu0 %v14943_v41, %s13512_s11  ;;  %v3200_v45 = vrot.slane %v14943_v41, 4  ;;  %v2370_v6 = vadd.f32 %v14571_v27, %v2314_v13  ;;  %v2016_v12 = vadd.f32 %v1892_v4, %v14516_v11  ;;  %v20524_v46 = vrot.slane %v14829_v17, 1  ;;  %v1412_v40 = vpop.f32.mrb[92].mxu1  ;;  %v12262_v56 = vpop.f32.mrb[93].mxu0 }
 0x26b   : > { %v2925_v63 = vshrl.u32 %v2843_v22, 16  ;;  %v2928_v9 = vshll.u32 %v2843_v22, 16  ;;  %v2315_v7 = vmul.f32 %v14558_v32, %v2259_v16  ;;  %v2132_v19 = vrot.slane %v1684_v21, 2  ;;  %v12154_v8 = vpop.f32.mrb[93].mxu1  ;;  %v1687_v42 = vpop.f32.mrb[94].mxu0 }
 0x26c   : > { %v14961_v23 = vsel %vm1851_vm4, %v2674_v10, %v20524_v46  ;;  %v3201_v11 = vsel %vm3190_vm7, %v3198_v53, %v3200_v45  ;;  %v2419_v61 = vmax.f32 %v2370_v6, 0.0  ;;  %v1893_v39 = vrot.slane %v1412_v40, 1  ;;  %v1415_v16 = vpop.f32.mrb[94].mxu1  ;;  %v12263_v4 = vpop.f32.mrb[95].mxu0  ;;  %v437_v53 = vld [vmem:[%s20228_s1 + $0x110] sm:$0xff] }
 0x26d   : > { %20525 = vst [vmem:[#allocation43_spill] sm:$0xff] %v14961_v23  ;;  %v2927_v59 = vrot.slane %v2925_v63, 3  ;;  %v2930_v14 = vrot.slane %v2928_v9, 4  ;;  %3250 = vrot.lane.b32.xlu1 %v3201_v11, %s13511_s17  ;;  %v2803_v2 = vmul.f32 %v14937_v48, %v2418_v35  ;;  %v2371_v10 = vadd.f32 %v14571_v27, %v2315_v7  ;;  %v14974_v63 = vpop.permute.xlu1 %2533  ;;  %v12155_v46 = vpop.f32.mrb[95].mxu1 }
 0x26e   : > { %v2133_v22 = vsel %vm2094_vm5, %v2130_v20, %v2132_v19  ;;  %v2134_v13 = vrot.slane %v1687_v42, 2  ;;  %2593 = vperm.xlu0 %12780, %v438_v54   ;;  %v2804_v6 = vmul.f32 %v14961_v23, %v2419_v61  ;;  %v1894_v35 = vsel %vm1851_vm4, %v1891_v55, %v1893_v39  ;;  %v14981_v56 = vpop.permute.xlu0 %2545 }
 0x26f   : > { %v2931_v9 = vor.u32 %v2930_v14, %v2927_v59  ;;  %v2260_v21 = vadd.f32 %v2133_v22, %v2015_v38  ;;  %v2682_v7 = vrot.slane %v14974_v63, 1  ;;  %v2017_v20 = vadd.f32 %v1894_v35, %v14520_v43 }
 0x270   : > { %v2135_v40 = vsel %vm2094_vm5, %v2132_v19, %v2134_v13  ;;  %v1895_v54 = vrot.slane %v1415_v16, 1  ;;  %v2844_v8 = vpack.c.bf16 %v2804_v6, %v2803_v2  ;;  %v2688_v55 = vrot.slane %v14981_v56, 1  ;;  %v440_v16 = vld [vmem:[%s20228_s1 + $0x128] sm:$0xff] }
 0x271   : > { %v2932_v11 = vsel %vm2861_vm6, %v2922_v57, %v2931_v9  ;;  %v2316_v59 = vmul.f32 %v14558_v32, %v2260_v21  ;;  %v2261_v14 = vadd.f32 %v2135_v40, %v2016_v12  ;;  %2589 = vperm.xlu1 %12781, %v437_v53   ;;  %v14985_v38 = vld [vmem:[#allocation2 + $0x38] sm:$0xff]  ;;  %v2420_v61 = vmax.f32 %v2371_v10, 0.0  ;;  %v1692_v22 = vpop.f32.mrb[96].mxu0 }
 0x272   : > { %3116 = vst.msk [vmem:[#allocation2 + $0x40] sm:$0xff] %vm451_vm1, %v2932_v11  ;;  %v1896_v43 = vsel %vm1851_vm4, %v1893_v39, %v1895_v54  ;;  %3302 = vrot.lane.b32.xlu0 %v14985_v38, %s13512_s11  ;;  %v3202_v19 = vrot.slane %v14985_v38, 4  ;;  %v2934_v57 = vshrl.u32 %v2844_v8, 16  ;;  %v2937_v42 = vshll.u32 %v2844_v8, 16  ;;  %v1420_v21 = vpop.f32.mrb[96].mxu1  ;;  %v12266_v35 = vpop.f32.mrb[97].mxu0 }
 0x273   : > { %v2372_v2 = vadd.f32 %v14571_v27, %v2316_v59  ;;  %v2317_v12 = vmul.f32 %v14558_v32, %v2261_v14  ;;  %v20526_v10 = vrot.slane %v14904_v51, 1  ;;  %v20527_v39 = vrot.slane %v14829_v17, 1  ;;  %v12158_v17 = vpop.f32.mrb[97].mxu1  ;;  %v1695_v59 = vpop.f32.mrb[98].mxu0  ;;  %v441_v38 = vld [vmem:[%s20228_s1 + $0x130] sm:$0xff] }
 0x274   : > { %v2018_v53 = vadd.f32 %v1896_v43, %v14529_v30  ;;  %v2136_v6 = vrot.slane %v1692_v22, 2  ;;  %v3203_v32 = vsel %vm3190_vm7, %v3200_v45, %v3202_v19  ;;  %v2936_v46 = vrot.slane %v2934_v57, 3  ;;  %v1423_v57 = vpop.f32.mrb[98].mxu1 }
 0x275   : > { %v15003_v4 = vsel %vm1851_vm4, %v20527_v39, %v20526_v10  ;;  %v2939_v40 = vrot.slane %v2937_v42, 4  ;;  %v2421_v11 = vmax.f32 %v2372_v2, 0.0  ;;  %v2373_v8 = vadd.f32 %v14571_v27, %v2317_v12  ;;  %3252 = vrot.lane.b32.xlu1 %v3203_v32, %s13511_s17  ;;  %v12267_v42 = vpop.f32.mrb[99].mxu0  ;;  %v439_v27 = vld [vmem:[%s20228_s1 + $0x120] sm:$0xff]  ;;  %v12159_v39 = vpop.f32.mrb[99].mxu1 }
 0x276   : > { %20528 = vst [vmem:[#allocation44_spill] sm:$0xff] %v15003_v4  ;;  %v20529_v30 = vrot.slane %v14869_v25, 1  ;;  %v20530_v14 = vmov %v20526_v10  ;;  %v2137_v41 = vsel %vm2094_vm5, %v2134_v13, %v2136_v6  ;;  %v1897_v22 = vrot.slane %v1420_v21, 1  ;;  %2601 = vperm.xlu0 %12780, %v440_v16  }
 0x277   : > { %v2138_v45 = vrot.slane %v1695_v59, 2  ;;  %v2940_v2 = vor.u32 %v2939_v40, %v2936_v46  ;;  %v2805_v12 = vmul.f32 %v15003_v4, %v2420_v61  ;;  %v2262_v51 = vadd.f32 %v2137_v41, %v2017_v20  ;;  %v15039_v20 = vld [vmem:[%s20230_s3] ss:$0 sm:$0xff] }
 0x278   : > { %v15018_v43 = vsel %vm1851_vm4, %v20530_v14, %v20529_v30  ;;  %v20532_v13 = vmov %v20529_v30  ;;  %v1898_v16 = vsel %vm1851_vm4, %v1895_v54, %v1897_v22  ;;  %v1899_v32 = vrot.slane %v1423_v57, 1  ;;  %v15055_v14 = vld [vmem:[%s20231_s4] ss:$0 sm:$0xff] }
 0x279   : > { %20531 = vst [vmem:[#allocation45_spill] sm:$0xff] %v15018_v43  ;;  %v2806_v10 = vmul.f32 %v15018_v43, %v2421_v11  ;;  %v15031_v21 = vsel %vm1851_vm4, %v20532_v13, %v2682_v7  ;;  %v2139_v35 = vsel %vm2094_vm5, %v2136_v6, %v2138_v45  ;;  %v2941_v46 = vsel %vm2861_vm6, %v2931_v9, %v2940_v2  ;;  %v15042_v25 = vld [vmem:[#allocation2 + $0x40] sm:$0xff] }
 0x27a   : > { %20533 = vst [vmem:[#allocation46_spill] sm:$0xff] %v15031_v21  ;;  %v2422_v61 = vmax.f32 %v2373_v8, 0.0  ;;  %v2318_v11 = vmul.f32 %v15039_v20, %v2262_v51  ;;  %2597 = vperm.xlu1 %12781, %v439_v27   ;;  %3117 = vst.msk [vmem:[#allocation2 + $0x48] sm:$0xff] %vm451_vm1, %v2941_v46  ;;  %v2019_v54 = vadd.f32 %v1898_v16, %v14533_v37  ;;  %3304 = vrot.lane.b32.xlu0 %v15042_v25, %s13512_s11  ;;  %v15050_v8 = vpop.permute.xlu1 %2541 }
 0x27b   : > { %v2845_v40 = vpack.c.bf16 %v2806_v10, %v2805_v12  ;;  %v2263_v6 = vadd.f32 %v2139_v35, %v2018_v53  ;;  %v1900_v17 = vsel %vm1851_vm4, %v1897_v22, %v1899_v32  ;;  %v3204_v9 = vrot.slane %v15042_v25, 4  ;;  %v1700_v53 = vpop.f32.mrb[100].mxu0  ;;  %v442_v22 = vld [vmem:[%s20228_s1 + $0x138] sm:$0xff]  ;;  %v1428_v12 = vpop.f32.mrb[100].mxu1 }
 0x27c   : > { %v2374_v41 = vadd.f32 %v15055_v14, %v2318_v11  ;;  %v2020_v37 = vadd.f32 %v1900_v17, %v14545_v60  ;;  %v15067_v57 = vsel %vm1851_vm4, %v2682_v7, %v2684_v44  ;;  %v2140_v27 = vrot.slane %v1700_v53, 2  ;;  %v12270_v10 = vpop.f32.mrb[101].mxu0  ;;  %v12162_v35 = vpop.f32.mrb[101].mxu1 }
 0x27d   : > { %v2943_v59 = vshrl.u32 %v2845_v40, 16  ;;  %v2946_v30 = vshll.u32 %v2845_v40, 16  ;;  %20534 = vst [vmem:[#allocation47_spill] sm:$0xff] %v15067_v57  ;;  %v2319_v42 = vmul.f32 %v15039_v20, %v2263_v6  ;;  %v3205_v60 = vsel %vm3190_vm7, %v3202_v19, %v3204_v9  ;;  %v1703_v63 = vpop.f32.mrb[102].mxu0  ;;  %v1431_v6 = vpop.f32.mrb[102].mxu1 }
 0x27e   : > { %v2423_v13 = vmax.f32 %v2374_v41, 0.0  ;;  %v1901_v16 = vrot.slane %v1428_v12, 1  ;;  %3254 = vrot.lane.b32.xlu1 %v3205_v60, %s13511_s17  ;;  %v2807_v7 = vmul.f32 %v15031_v21, %v2422_v61  ;;  %v2141_v40 = vsel %vm2094_vm5, %v2138_v45, %v2140_v27  ;;  %v12271_v17 = vpop.f32.mrb[103].mxu0  ;;  %2609 = vperm.xlu0 %12780, %v442_v22   ;;  %v12163_v53 = vpop.f32.mrb[103].mxu1 }
 0x27f   : > { %v2945_v51 = vrot.slane %v2943_v59, 3  ;;  %v2948_v39 = vrot.slane %v2946_v30, 4  ;;  %v2375_v46 = vadd.f32 %v15055_v14, %v2319_v42  ;;  %v2142_v11 = vrot.slane %v1703_v63, 2  ;;  %v15087_v10 = vpop.permute.xlu0 %2553 }
 0x280   : > { %v2808_v59 = vmul.f32 %v15067_v57, %v2423_v13  ;;  %v2264_v30 = vadd.f32 %v2141_v40, %v2019_v54  ;;  %v1902_v41 = vsel %vm1851_vm4, %v1899_v32, %v1901_v16  ;;  %v2686_v61 = vrot.slane %v15050_v8, 1 }
 0x281   : > { %v2949_v19 = vor.u32 %v2948_v39, %v2945_v51  ;;  %v2021_v42 = vadd.f32 %v1902_v41, %v14547_v47  ;;  %v2143_v45 = vsel %vm2094_vm5, %v2140_v27, %v2142_v11  ;;  %v1903_v12 = vrot.slane %v1431_v6, 1  ;;  %v15091_v54 = vld [vmem:[#allocation2 + $0x48] sm:$0xff] }
 0x282   : > { %v2846_v60 = vpack.c.bf16 %v2808_v59, %v2807_v7  ;;  %v2320_v51 = vmul.f32 %v15039_v20, %v2264_v30  ;;  %v2265_v39 = vadd.f32 %v2143_v45, %v2020_v37  ;;  %2605 = vperm.xlu1 %12781, %v441_v38   ;;  %v20254_v32 = vrot.slane %v15087_v10, 1  ;;  %3306 = vrot.lane.b32.xlu0 %v15091_v54, %s13512_s11  ;;  %v1708_v7 = vpop.f32.mrb[104].mxu0  ;;  %v1436_v17 = vpop.f32.mrb[104].mxu1 }
 0x283   : > { %v2950_v22 = vsel %vm2861_vm6, %v2940_v2, %v2949_v19  ;;  %v2424_v8 = vmax.f32 %v2375_v46, 0.0  ;;  %v1904_v47 = vsel %vm1851_vm4, %v1901_v16, %v1903_v12  ;;  %v3206_v27 = vrot.slane %v15091_v54, 4  ;;  %v15099_v2 = vpop.permute.xlu1 %2549  ;;  %v444_v46 = vld [vmem:[%s20228_s1 + $0x148] sm:$0xff]  ;;  %v12274_v38 = vpop.f32.mrb[105].mxu0 }
 0x284   : > { %3118 = vst.msk [vmem:[#allocation2 + $0x50] sm:$0xff] %vm451_vm1, %v2950_v22  ;;  %v2952_v13 = vshrl.u32 %v2846_v60, 16  ;;  %v2955_v35 = vshll.u32 %v2846_v60, 16  ;;  %v2376_v37 = vadd.f32 %v15055_v14, %v2320_v51  ;;  %v2321_v63 = vmul.f32 %v15039_v20, %v2265_v39  ;;  %v12166_v22 = vpop.f32.mrb[105].mxu1  ;;  %v1711_v60 = vpop.f32.mrb[106].mxu0  ;;  %v443_v39 = vld [vmem:[%s20228_s1 + $0x140] sm:$0xff] }
 0x285   : > { %v15109_v16 = vsel %vm1851_vm4, %v2684_v44, %v2686_v61  ;;  %v2022_v40 = vadd.f32 %v1904_v47, %v14343_v49  ;;  %v2144_v6 = vrot.slane %v1708_v7, 2  ;;  %v3207_v59 = vsel %vm3190_vm7, %v3204_v9, %v3206_v27  ;;  %v1439_v51 = vpop.f32.mrb[106].mxu1  ;;  %v12275_v9 = vpop.f32.mrb[107].mxu0  ;;  %v446_v22 = vld [vmem:[%s20228_s1 + $0x158] sm:$0xff] }
 0x286   : > { %20535 = vst [vmem:[#allocation48_spill] sm:$0xff] %v15109_v16  ;;  %v2954_v30 = vrot.slane %v2952_v13, 3  ;;  %v2957_v41 = vrot.slane %v2955_v35, 4  ;;  %v2425_v53 = vmax.f32 %v2376_v37, 0.0  ;;  %v2377_v45 = vadd.f32 %v15055_v14, %v2321_v63  ;;  %3256 = vrot.lane.b32.xlu1 %v3207_v59, %s13511_s17  ;;  %2617 = vperm.xlu0 %12780, %v444_v46   ;;  %v12167_v37 = vpop.f32.mrb[107].mxu1 }
 0x287   : > { %v15120_v49 = vsel %vm1851_vm4, %v2686_v61, %v2688_v55  ;;  %v2145_v44 = vsel %vm2094_vm5, %v2142_v11, %v2144_v6  ;;  %v1905_v34 = vrot.slane %v1436_v17, 1  ;;  %v2146_v25 = vrot.slane %v1711_v60, 2 }
 0x288   : > { %20536 = vst [vmem:[#allocation49_spill] sm:$0xff] %v15120_v49  ;;  %v2958_v54 = vor.u32 %v2957_v41, %v2954_v30  ;;  %v2809_v47 = vmul.f32 %v15109_v16, %v2424_v8  ;;  %v2810_v13 = vmul.f32 %v15120_v49, %v2425_v53  ;;  %v2266_v35 = vadd.f32 %v2145_v44, %v2021_v42 }
 0x289   : > { %v2690_v61 = vrot.slane %v15099_v2, 1  ;;  %v1906_v11 = vsel %vm1851_vm4, %v1903_v12, %v1905_v34  ;;  %v2147_v63 = vsel %vm2094_vm5, %v2144_v6, %v2146_v25  ;;  %v1907_v7 = vrot.slane %v1439_v51, 1 }
 0x28a   : > { %v2959_v46 = vsel %vm2861_vm6, %v2949_v19, %v2958_v54  ;;  %v2847_v17 = vpack.c.bf16 %v2810_v13, %v2809_v47  ;;  %v2426_v38 = vmax.f32 %v2377_v45, 0.0  ;;  %v2322_v59 = vmul.f32 %v15039_v20, %v2266_v35  ;;  %2613 = vperm.xlu1 %12781, %v443_v39   ;;  %v1716_v45 = vpop.f32.mrb[108].mxu0  ;;  %v1444_v60 = vpop.f32.mrb[108].mxu1 }
 0x28b   : > { %v3144_v30 = vld [vmem:[#allocation2 + $0x50] sm:$0xff]  ;;  %3119 = vst.msk [vmem:[#allocation2 + $0x58] sm:$0xff] %vm451_vm1, %v2959_v46  ;;  %v2023_v42 = vadd.f32 %v1906_v11, %v14349_v1  ;;  %v15135_v8 = vadd.f32 %v2147_v63, %v2022_v40  ;;  %v1908_v2 = vsel %vm1851_vm4, %v1905_v34, %v1907_v7  ;;  %v15147_v1 = vsel %vm1851_vm4, %v2688_v55, %v2690_v61  ;;  %v12278_v44 = vpop.f32.mrb[109].mxu0 }
 0x28c   : > { %3308 = vrot.lane.b32.xlu0 %v3144_v30, %s13512_s11  ;;  %v3208_v12 = vrot.slane %v3144_v30, 4  ;;  %v2961_v6 = vshrl.u32 %v2847_v17, 16  ;;  %v2964_v41 = vshll.u32 %v2847_v17, 16  ;;  %v2378_v19 = vadd.f32 %v15055_v14, %v2322_v59  ;;  %20537 = vst [vmem:[#allocation50_spill] sm:$0xff] %v15147_v1  ;;  %v1719_v13 = vpop.f32.mrb[110].mxu0  ;;  %v445_v63 = vld [vmem:[%s20228_s1 + $0x150] sm:$0xff] }
 0x28d   : > { %v2024_v53 = vadd.f32 %v1908_v2, %v14363_v26  ;;  %v2148_v40 = vrot.slane %v1716_v45, 2  ;;  %v1909_v47 = vrot.slane %v1444_v60, 1  ;;  %v12170_v26 = vpop.f32.mrb[109].mxu1  ;;  %v15154_v56 = vsel %vm1851_vm4, %v2690_v61, %v20254_v32 }
 0x28e   : > { %v3209_v34 = vsel %vm3190_vm7, %v3206_v27, %v3208_v12  ;;  %v2963_v51 = vrot.slane %v2961_v6, 3  ;;  %v2966_v9 = vrot.slane %v2964_v41, 4  ;;  %v2427_v39 = vmax.f32 %v2378_v19, 0.0  ;;  %20538 = vst [vmem:[#allocation51_spill] sm:$0xff] %v15154_v56  ;;  %v1447_v11 = vpop.f32.mrb[110].mxu1  ;;  %v12279_v27 = vpop.f32.mrb[111].mxu0 }
 0x28f   : > { %3258 = vrot.lane.b32.xlu1 %v3209_v34, %s13511_s17  ;;  %v2811_v55 = vmul.f32 %v15147_v1, %v2426_v38  ;;  %v2149_v35 = vsel %vm2094_vm5, %v2146_v25, %v2148_v40  ;;  %v2150_v37 = vrot.slane %v1719_v13, 2  ;;  %v1910_v61 = vsel %vm1851_vm4, %v1907_v7, %v1909_v47  ;;  %v12171_v30 = vpop.f32.mrb[111].mxu1  ;;  %v12891_v6 = vld [vmem:[%s20232_s5 + $0xc4] ss:$8 sps:$4 sm:$0xff]  }
 0x290   : > { %2625 = vperm.xlu0 %12780, %v446_v22   ;;  %v2967_v46 = vor.u32 %v2966_v9, %v2963_v51  ;;  %v2812_v17 = vmul.f32 %v15154_v56, %v2427_v39  ;;  %v15162_v59 = vadd.f32 %v2149_v35, %v2023_v42  ;;  %v2025_v38 = vadd.f32 %v1910_v61, %v14367_v33 }
 0x291   : > { %v2151_v25 = vsel %vm2094_vm5, %v2148_v40, %v2150_v37  ;;  %v1911_v2 = vrot.slane %v1447_v11, 1  ;;  %4297 = vmatprep.subr.bf16.mxu1 %v12891_v6  ;;  %v1724_v44 = vpop.f32.mrb[112].mxu0 }
 0x292   : > { %v2968_v41 = vsel %vm2861_vm6, %v2958_v54, %v2967_v46  ;;  %v2848_v19 = vpack.c.bf16 %v2812_v17, %v2811_v55  ;;  %v15171_v45 = vadd.f32 %v2151_v25, %v2024_v53  ;;  %v3145_v42 = vld [vmem:[#allocation2 + $0x58] sm:$0xff]  ;;  %v448_v54 = vld [vmem:[%s20228_s1 + $0x168] sm:$0xff]  ;;  %v2152_v53 = vrot.slane %v1724_v44, 2  ;;  %v1452_v34 = vpop.f32.mrb[112].mxu1  ;;  %v12282_v51 = vpop.f32.mrb[113].mxu0 }
 0x293   : > { %2621 = vperm.xlu1 %12781, %v445_v63   ;;  %3120 = vst.msk [vmem:[#allocation2 + $0x60] sm:$0xff] %vm451_vm1, %v2968_v41  ;;  %v1912_v7 = vsel %vm1851_vm4, %v1909_v47, %v1911_v2  ;;  %v3210_v33 = vrot.slane %v3145_v42, 4  ;;  %v1913_v26 = vrot.slane %v1452_v34, 1  ;;  %v12174_v13 = vpop.f32.mrb[113].mxu1  ;;  %v1727_v55 = vpop.f32.mrb[114].mxu0  ;;  %v447_v63 = vld [vmem:[%s20228_s1 + $0x160] sm:$0xff] }
 0x294   : > { %3310 = vrot.lane.b32.xlu0 %v3145_v42, %s13512_s11  ;;  %v2970_v22 = vshrl.u32 %v2848_v19, 16  ;;  %v2973_v40 = vshll.u32 %v2848_v19, 16  ;;  %v2026_v60 = vadd.f32 %v1912_v7, %v14379_v5  ;;  %v2153_v35 = vsel %vm2094_vm5, %v2150_v37, %v2152_v53  ;;  %v1455_v11 = vpop.f32.mrb[114].mxu1  ;;  %v12283_v27 = vpop.f32.mrb[115].mxu0 }
 0x295   : > { %v3211_v9 = vsel %vm3190_vm7, %v3208_v12, %v3210_v33  ;;  %v2154_v5 = vrot.slane %v1727_v55, 2  ;;  %v15188_v12 = vadd.f32 %v2153_v35, %v2025_v38  ;;  %v1914_v61 = vsel %vm1851_vm4, %v1911_v2, %v1913_v26  ;;  %v12175_v25 = vpop.f32.mrb[115].mxu1 }
 0x296   : > { %v2972_v39 = vrot.slane %v2970_v22, 3  ;;  %v2975_v47 = vrot.slane %v2973_v40, 4  ;;  %v1915_v30 = vrot.slane %v1455_v11, 1  ;;  %v2027_v6 = vadd.f32 %v1914_v61, %v14383_v31 }
 0x297   : > { %3260 = vrot.lane.b32.xlu1 %v3211_v9, %s13511_s17  ;;  %v2155_v37 = vsel %vm2094_vm5, %v2152_v53, %v2154_v5 }
 0x298   : > { %2633 = vperm.xlu0 %12780, %v448_v54   ;;  %v15186_v17 = vor.u32 %v2975_v47, %v2972_v39  ;;  %v15195_v19 = vadd.f32 %v2155_v37, %v2026_v60  ;;  %v1916_v42 = vsel %vm1851_vm4, %v1913_v26, %v1915_v30 }
 0x299   : > { %v2028_v38 = vadd.f32 %v1916_v42, %v14395_v36  ;;  %v1732_v22 = vpop.f32.mrb[116].mxu0  ;;  %v449_v36 = vld [vmem:[%s20228_s1 + $0x170] sm:$0xff] }
 0x29a   : > { %v2977_v41 = vsel %vm2861_vm6, %v2967_v46, %v15186_v17  ;;  %v3146_v7 = vld [vmem:[#allocation2 + $0x60] sm:$0xff]  ;;  %v2156_v31 = vrot.slane %v1732_v22, 2  ;;  %v1460_v40 = vpop.f32.mrb[116].mxu1  ;;  %v12286_v44 = vpop.f32.mrb[117].mxu0 }
 0x29b   : > { %2629 = vperm.xlu1 %12781, %v447_v63   ;;  %3121 = vst.msk [vmem:[#allocation2 + $0x68] sm:$0xff] %vm451_vm1, %v2977_v41  ;;  %v3212_v2 = vrot.slane %v3146_v7, 4  ;;  %v1917_v46 = vrot.slane %v1460_v40, 1  ;;  %v12178_v60 = vpop.f32.mrb[117].mxu1  ;;  %v1735_v53 = vpop.f32.mrb[118].mxu0  ;;  %v20539_v63 = vld [vmem:[#allocation11_spill] sm:$0xff] }
 0x29c   : > { %3312 = vrot.lane.b32.xlu0 %v3146_v7, %s13512_s11  ;;  %v2157_v34 = vsel %vm2094_vm5, %v2154_v5, %v2156_v31  ;;  %v2158_v51 = vrot.slane %v1735_v53, 2  ;;  %v1463_v9 = vpop.f32.mrb[118].mxu1  ;;  %v12287_v39 = vpop.f32.mrb[119].mxu0 }
 0x29d   : > { %v3213_v54 = vsel %vm3190_vm7, %v3210_v33, %v3212_v2  ;;  %v15207_v47 = vadd.f32 %v2157_v34, %v2027_v6  ;;  %v1918_v26 = vsel %vm1851_vm4, %v1915_v30, %v1917_v46  ;;  %v1919_v13 = vrot.slane %v1463_v9, 1  ;;  %v12179_v33 = vpop.f32.mrb[119].mxu1  ;;  %v20540_v9 = vld [vmem:[#allocation12_spill] sm:$0xff] }
 0x29e   : > { %v2029_v55 = vadd.f32 %v1918_v26, %v14399_v24  ;;  %v2159_v35 = vsel %vm2094_vm5, %v2156_v31, %v2158_v51  ;;  %v450_v24 = vld [vmem:[%s20228_s1 + $0x178] sm:$0xff] }
 0x29f   : > { %3262 = vrot.lane.b32.xlu1 %v3213_v54, %s13511_s17  ;;  %v15212_v11 = vadd.f32 %v2159_v35, %v2028_v38  ;;  %v1920_v5 = vsel %vm1851_vm4, %v1917_v46, %v1919_v13  ;;  %v20541_v33 = vld [vmem:[#allocation13_spill] sm:$0xff] }
 0x2a0   : > { %v2030_v61 = vadd.f32 %v1920_v5, %v20539_v63 }
 0x2a1   : > { %v1740_v25 = vpop.f32.mrb[120].mxu0 }
 0x2a2   : > { %v15215_v27 = vld [vmem:[#allocation2 + $0x68] sm:$0xff]  ;;  %v2160_v6 = vrot.slane %v1740_v25, 2  ;;  %v1468_v37 = vpop.f32.mrb[120].mxu1  ;;  %v12290_v41 = vpop.f32.mrb[121].mxu0 }
 0x2a3   : > { %2637 = vperm.xlu1 %12781, %v449_v36   ;;  %3314 = vrot.lane.b32.xlu0 %v15215_v27, %s13512_s11  ;;  %v20253_v30 = vrot.slane %v15215_v27, 4  ;;  %v1921_v7 = vrot.slane %v1468_v37, 1  ;;  %v12182_v38 = vpop.f32.mrb[121].mxu1  ;;  %v1743_v22 = vpop.f32.mrb[122].mxu0 }
 0x2a4   : > { %v2161_v31 = vsel %vm2094_vm5, %v2158_v51, %v2160_v6  ;;  %v2162_v40 = vrot.slane %v1743_v22, 2  ;;  %v1471_v44 = vpop.f32.mrb[122].mxu1  ;;  %v12291_v54 = vpop.f32.mrb[123].mxu0 }
 0x2a5   : > { %v3215_v42 = vsel %vm3190_vm7, %v3212_v2, %v20253_v30  ;;  %v15229_v46 = vadd.f32 %v2161_v31, %v2029_v55  ;;  %v1922_v60 = vsel %vm1851_vm4, %v1919_v13, %v1921_v7  ;;  %v1923_v53 = vrot.slane %v1471_v44, 1  ;;  %v12183_v34 = vpop.f32.mrb[123].mxu1  ;;  %v20542_v31 = vld [vmem:[#allocation14_spill] sm:$0xff] }
 0x2a6   : > { %v2031_v39 = vadd.f32 %v1922_v60, %v20540_v9  ;;  %v2163_v2 = vsel %vm2094_vm5, %v2160_v6, %v2162_v40  ;;  %v20543_v9 = vld [vmem:[#allocation15_spill] sm:$0xff] }
 0x2a7   : > { %3264 = vrot.lane.b32.xlu1 %v3215_v42, %s13511_s17  ;;  %2641 = vperm.xlu0 %12780, %v450_v24   ;;  %v15234_v36 = vadd.f32 %v2163_v2, %v2030_v61  ;;  %v1924_v26 = vsel %vm1851_vm4, %v1921_v7, %v1923_v53 }
 0x2a8   : > { %v2032_v51 = vadd.f32 %v1924_v26, %v20541_v33 }
 0x2a9   : > { %v1748_v35 = vpop.f32.mrb[124].mxu0 }
 0x2aa   : > { %v2164_v5 = vrot.slane %v1748_v35, 2  ;;  %v1476_v63 = vpop.f32.mrb[124].mxu1  ;;  %v12294_v25 = vpop.f32.mrb[125].mxu0 }
 0x2ab   : > { %v1925_v55 = vrot.slane %v1476_v63, 1  ;;  %v12186_v24 = vpop.f32.mrb[125].mxu1  ;;  %v1751_v37 = vpop.f32.mrb[126].mxu0 }
 0x2ac   : > { %v2165_v13 = vsel %vm2094_vm5, %v2162_v40, %v2164_v5  ;;  %v2166_v41 = vrot.slane %v1751_v37, 2  ;;  %v1479_v42 = vpop.f32.mrb[126].mxu1  ;;  %v12295_v38 = vpop.f32.mrb[127].mxu0 }
 0x2ad   : > { %v15239_v22 = vadd.f32 %v2165_v13, %v2031_v39  ;;  %v1926_v61 = vsel %vm1851_vm4, %v1923_v53, %v1925_v55  ;;  %v1927_v6 = vrot.slane %v1479_v42, 1  ;;  %v12187_v7 = vpop.f32.mrb[127].mxu1  ;;  %v20544_v38 = vld [vmem:[#allocation16_spill] sm:$0xff] }
 0x2ae   : > { %v2033_v44 = vadd.f32 %v1926_v61, %v20542_v31  ;;  %v2167_v54 = vsel %vm2094_vm5, %v2164_v5, %v2166_v41 }
 0x2af   : > { %v15244_v60 = vadd.f32 %v2167_v54, %v2032_v51  ;;  %v1928_v34 = vsel %vm1851_vm4, %v1925_v55, %v1927_v6 }
 0x2b0   : > { %v2034_v2 = vadd.f32 %v1928_v34, %v20543_v9  ;;  %v20545_v34 = vld [vmem:[#allocation17_spill] sm:$0xff] }
 0x2b1   : > { %v1756_v40 = vpop.f32.mrb[128].mxu0 }
 0x2b2   : > { %v2168_v26 = vrot.slane %v1756_v40, 2  ;;  %v1484_v33 = vpop.f32.mrb[128].mxu1  ;;  %v12298_v35 = vpop.f32.mrb[129].mxu0 }
 0x2b3   : > { %v1929_v39 = vrot.slane %v1484_v33, 1  ;;  %v12190_v63 = vpop.f32.mrb[129].mxu1  ;;  %v1759_v25 = vpop.f32.mrb[130].mxu0 }
 0x2b4   : > { %v2169_v53 = vsel %vm2094_vm5, %v2166_v41, %v2168_v26  ;;  %v2170_v24 = vrot.slane %v1759_v25, 2  ;;  %v1487_v37 = vpop.f32.mrb[130].mxu1  ;;  %v12299_v13 = vpop.f32.mrb[131].mxu0 }
 0x2b5   : > { %v15249_v42 = vadd.f32 %v2169_v53, %v2033_v44  ;;  %v1930_v51 = vsel %vm1851_vm4, %v1927_v6, %v1929_v39  ;;  %v1931_v5 = vrot.slane %v1487_v37, 1  ;;  %v12191_v55 = vpop.f32.mrb[131].mxu1 }
 0x2b6   : > { %v2035_v61 = vadd.f32 %v1930_v51, %v20544_v38  ;;  %v2171_v7 = vsel %vm2094_vm5, %v2168_v26, %v2170_v24  ;;  %v20546_v55 = vld [vmem:[#allocation18_spill] sm:$0xff] }
 0x2b7   : > { %v15254_v31 = vadd.f32 %v2171_v7, %v2034_v2  ;;  %v1932_v54 = vsel %vm1851_vm4, %v1929_v39, %v1931_v5 }
 0x2b8   : > { %v2036_v9 = vadd.f32 %v1932_v54, %v20545_v34  ;;  %v15264_v54 = vpop.permute.xlu0 %2561 }
 0x2b9   : > { %v1764_v41 = vpop.f32.mrb[132].mxu0 }
 0x2ba   : > { %v2172_v40 = vrot.slane %v1764_v41, 2  ;;  %v1492_v33 = vpop.f32.mrb[132].mxu1  ;;  %v12302_v35 = vpop.f32.mrb[133].mxu0 }
 0x2bb   : > { %v1933_v44 = vrot.slane %v1492_v33, 1  ;;  %v12194_v63 = vpop.f32.mrb[133].mxu1  ;;  %v1767_v25 = vpop.f32.mrb[134].mxu0  ;;  %v3134_v35 = vld [vmem:[#allocation2] sm:$0xff] }
 0x2bc   : > { %v2173_v6 = vsel %vm2094_vm5, %v2170_v24, %v2172_v40  ;;  %v2174_v53 = vrot.slane %v1767_v25, 2  ;;  %v1495_v37 = vpop.f32.mrb[134].mxu1  ;;  %v12303_v13 = vpop.f32.mrb[135].mxu0  ;;  %v20547_v24 = vld [vmem:[#allocation19_spill] sm:$0xff] }
 0x2bd   : > { %v15259_v51 = vadd.f32 %v2173_v6, %v2035_v61  ;;  %v1934_v2 = vsel %vm1851_vm4, %v1931_v5, %v1933_v44  ;;  %v1935_v26 = vrot.slane %v1495_v37, 1  ;;  %v12195_v39 = vpop.f32.mrb[135].mxu1 }
 0x2be   : > { %v2037_v38 = vadd.f32 %v1934_v2, %v20546_v55  ;;  %v2175_v7 = vsel %vm2094_vm5, %v2172_v40, %v2174_v53  ;;  %v3243_v63 = vpop.permute.xlu1 %3242 }
 0x2bf   : > { %v15266_v34 = vadd.f32 %v2175_v7, %v2036_v9  ;;  %v1936_v41 = vsel %vm1851_vm4, %v1933_v44, %v1935_v26  ;;  %v3346_v37 = vsel %vm451_vm1, %v3134_v35, %v3243_v63  ;;  %v12889_v9 = vld [vmem:[%s20232_s5 + $0xc0] ss:$8 sps:$4 sm:$0xff]  }
 0x2c0   : > { %v2038_v33 = vadd.f32 %v1936_v41, %v20547_v24  ;;  %v12894_v41 = vld [vmem:[%s20232_s5 + $0xd4] ss:$8 sps:$4 sm:$0xff]  }
 0x2c1   : > { %v1772_v61 = vpop.f32.mrb[136].mxu0 }
 0x2c2   : > { %v2176_v25 = vrot.slane %v1772_v61, 2  ;;  %v1500_v6 = vpop.f32.mrb[136].mxu1  ;;  %v12306_v5 = vpop.f32.mrb[137].mxu0 }
 0x2c3   : > { %v1937_v13 = vrot.slane %v1500_v6, 1  ;;  %v3295_v2 = vpop.permute.xlu0 %3294  ;;  %v12198_v39 = vpop.f32.mrb[137].mxu1  ;;  %v20548_v5 = vld [vmem:[#allocation20_spill] sm:$0xff] }
 0x2c4   : > { %v2177_v40 = vsel %vm2094_vm5, %v2174_v53, %v2176_v25  ;;  %v15276_v44 = vsel %vm860_vm2, %v3346_v37, %v3295_v2  ;;  %v1775_v55 = vpop.f32.mrb[138].mxu0  ;;  %v1503_v7 = vpop.f32.mrb[138].mxu1  ;;  %v15289_v2 = vld [vmem:[#allocation3] sm:$0xff] }
 0x2c5   : > { %v15281_v24 = vadd.f32 %v2177_v40, %v2037_v38  ;;  %v1938_v35 = vsel %vm1851_vm4, %v1935_v26, %v1937_v13  ;;  %v2178_v63 = vrot.slane %v1775_v55, 2  ;;  %v1939_v61 = vrot.slane %v1503_v7, 1  ;;  %v12307_v6 = vpop.f32.mrb[139].mxu0  ;;  %11450 = vmatmul.mubr.msk.bf16.vlgmr.msra.gmra.mrb[148].mxu1 %vm959_vm3, %v15276_v44  ;;  %11499 = vmatmul.mubr.msk.bf16.vlgmr.msra.gmra.mrb[152].mxu0 %vm959_vm3, %v15276_v44  ;;  %v12199_v53 = vpop.f32.mrb[139].mxu1  ;;  %v12892_v40 = vld [vmem:[%s20232_s5 + $0xd0] ss:$8 sps:$4 sm:$0xff]  }
 0x2c6   : > { %v2039_v37 = vadd.f32 %v1938_v35, %v20548_v5  ;;  %3633 = vmatprep.mubr.bf16.mxu1 %v15289_v2  ;;  %3985 = vmatprep.mubr.bf16.mxu0 %v15289_v2  ;;  %v2323_v26 = vmul.f32 %v15039_v20, %v15135_v8  ;;  %v2324_v55 = vmul.f32 %v15039_v20, %v15162_v59  ;;  %v20549_v35 = vld [vmem:[#allocation21_spill] sm:$0xff]  ;;  %v12897_v8 = vld [vmem:[%s20232_s5 + $0xe4] ss:$8 sps:$4 sm:$0xff]   ;;  %v12895_v59 = vld [vmem:[%s20232_s5 + $0xe0] ss:$8 sps:$4 sm:$0xff]  }
 0x2c7   : > { %v2179_v38 = vsel %vm2094_vm5, %v2176_v25, %v2178_v63  ;;  %v1940_v39 = vsel %vm1851_vm4, %v1937_v13, %v1939_v61  ;;  %4298 = vmatpush1.bf16.msra.mxu1 %v12889_v9 }
 0x2c8   : > { %v15302_v7 = vadd.f32 %v2179_v38, %v2038_v33  ;;  %v2040_v6 = vadd.f32 %v1940_v39, %v20549_v35  ;;  %4299 = vmatprep.subr.bf16.mxu1 %v12894_v41  ;;  %v2379_v56 = vadd.f32 %v15055_v14, %v2323_v26  ;;  %v2380_v35 = vadd.f32 %v15055_v14, %v2324_v55 }
 0x2c9   : > { %v1780_v25 = vpop.f32.mrb[140].mxu0  ;;  %v2696_v26 = vrot.slane %v15264_v54, 1 }
 0x2ca   : > { %v2180_v53 = vrot.slane %v1780_v25, 2  ;;  %v1508_v13 = vpop.f32.mrb[140].mxu1  ;;  %v12310_v9 = vpop.f32.mrb[141].mxu0 }
 0x2cb   : > { %v1941_v5 = vrot.slane %v1508_v13, 1  ;;  %v12202_v30 = vpop.f32.mrb[141].mxu1  ;;  %v1783_v32 = vpop.f32.mrb[142].mxu0  ;;  %4300 = vmatpush1.bf16.msra.mxu1 %v12892_v40  ;;  %v20550_v40 = vld [vmem:[#allocation22_spill] sm:$0xff] }
 0x2cc   : > { %v2181_v33 = vsel %vm2094_vm5, %v2178_v63, %v2180_v53  ;;  %v2182_v41 = vrot.slane %v1783_v32, 2  ;;  %v1511_v38 = vpop.f32.mrb[142].mxu1  ;;  %v12311_v39 = vpop.f32.mrb[143].mxu0  ;;  %4301 = vmatprep.subr.bf16.mxu1 %v12897_v8  ;;  %v20551_v8 = vld [vmem:[#allocation23_spill] sm:$0xff] }
 0x2cd   : > { %v15314_v25 = vadd.f32 %v2181_v33, %v2039_v37  ;;  %v1942_v30 = vsel %vm1851_vm4, %v1939_v61, %v1941_v5  ;;  %v1943_v13 = vrot.slane %v1511_v38, 1  ;;  %v12203_v9 = vpop.f32.mrb[143].mxu1  ;;  %v2428_v39 = vmax.f32 %v2379_v56, 0.0 }
 0x2ce   : > { %v2041_v1 = vadd.f32 %v1942_v30, %v20550_v40  ;;  %v2183_v49 = vsel %vm2094_vm5, %v2180_v53, %v2182_v41  ;;  %v2325_v37 = vmul.f32 %v15039_v20, %v15171_v45  ;;  %v2326_v61 = vmul.f32 %v15039_v20, %v15188_v12  ;;  %v3135_v40 = vld [vmem:[#allocation2 + $0x8] sm:$0xff] }
 0x2cf   : > { %v2558_v16 = vpop.permute.xlu1 %2557  ;;  %v15320_v63 = vadd.f32 %v2183_v49, %v2040_v6  ;;  %v1944_v32 = vsel %vm1851_vm4, %v1941_v5, %v1943_v13  ;;  %4302 = vmatpush1.bf16.msra.mxu1 %v12895_v59  ;;  %v2429_v33 = vmax.f32 %v2380_v35, 0.0  ;;  %v20552_v38 = vrot.slane %v15087_v10, 1 }
 0x2d0   : > { %v2694_v55 = vrot.slane %v2558_v16, 1  ;;  %v2042_v54 = vadd.f32 %v1944_v32, %v20551_v8 }
 0x2d1   : > { %v1788_v56 = vpop.f32.mrb[144].mxu0 }
 0x2d2   : > { %v15331_v53 = vsel %vm1851_vm4, %v20552_v38, %v2694_v55  ;;  %v15334_v49 = vsel %vm1851_vm4, %v2694_v55, %v2696_v26  ;;  %v2184_v45 = vrot.slane %v1788_v56, 2  ;;  %v1516_v5 = vpop.f32.mrb[144].mxu1  ;;  %v12314_v59 = vpop.f32.mrb[145].mxu0  ;;  %v2381_v55 = vadd.f32 %v15055_v14, %v2325_v37  ;;  %v20555_v56 = vld [vmem:[#allocation25_spill] sm:$0xff] }
 0x2d3   : > { %20553 = vst [vmem:[#allocation11_spill] sm:$0xff] %v15331_v53  ;;  %20554 = vst [vmem:[#allocation12_spill] sm:$0xff] %v15334_v49  ;;  %v2813_v16 = vmul.f32 %v15331_v53, %v2428_v39  ;;  %v2814_v6 = vmul.f32 %v15334_v49, %v2429_v33  ;;  %v1945_v12 = vrot.slane %v1516_v5, 1  ;;  %v3245_v30 = vpop.permute.xlu1 %3244  ;;  %v12206_v9 = vpop.f32.mrb[145].mxu1  ;;  %v2382_v38 = vadd.f32 %v15055_v14, %v2326_v61  ;;  %v20556_v53 = vld [vmem:[#allocation24_spill] sm:$0xff] }
 0x2d4   : > { %v2185_v10 = vsel %vm2094_vm5, %v2182_v41, %v2184_v45  ;;  %v1791_v32 = vpop.f32.mrb[146].mxu0  ;;  %v15339_v8 = vpop.permute.xlu0 %2569  ;;  %v2327_v41 = vmul.f32 %v15039_v20, %v15195_v19  ;;  %v2328_v37 = vmul.f32 %v15039_v20, %v15207_v47 }
 0x2d5   : > { %v2849_v35 = vpack.c.bf16 %v2814_v6, %v2813_v16  ;;  %v15343_v39 = vadd.f32 %v2185_v10, %v2041_v1  ;;  %v1946_v33 = vsel %vm1851_vm4, %v1943_v13, %v1945_v12  ;;  %v2044_v59 = vadd.f32 %v1945_v12, %v20555_v56  ;;  %v1519_v49 = vpop.f32.mrb[146].mxu1  ;;  %v12315_v9 = vpop.f32.mrb[147].mxu0 }
 0x2d6   : > { %v2186_v5 = vrot.slane %v1791_v32, 2  ;;  %v2043_v57 = vadd.f32 %v1946_v33, %v20556_v53  ;;  %v12207_v21 = vpop.f32.mrb[147].mxu1  ;;  %v3349_v1 = vsel %vm451_vm1, %v3135_v40, %v3245_v30  ;;  %v2700_v61 = vrot.slane %v15339_v8, 1 }
 0x2d7   : > { %v2979_v16 = vshrl.u32 %v2849_v35, 16  ;;  %v2982_v6 = vshll.u32 %v2849_v35, 16  ;;  %v2430_v35 = vmax.f32 %v2381_v55, 0.0  ;;  %v2431_v9 = vmax.f32 %v2382_v38, 0.0 }
 0x2d8   : > { %v2187_v13 = vsel %vm2094_vm5, %v2184_v45, %v2186_v5  ;;  %v2566_v12 = vpop.permute.xlu1 %2565  ;;  %v3297_v56 = vpop.permute.xlu0 %3296  ;;  %v2383_v40 = vadd.f32 %v15055_v14, %v2327_v41  ;;  %v2384_v41 = vadd.f32 %v15055_v14, %v2328_v37 }
 0x2d9   : > { %v2981_v49 = vrot.slane %v2979_v16, 3  ;;  %v2984_v10 = vrot.slane %v2982_v6, 4  ;;  %v15355_v32 = vadd.f32 %v2187_v13, %v2042_v54  ;;  %v2698_v19 = vrot.slane %v2566_v12, 1  ;;  %v1796_v53 = vpop.f32.mrb[148].mxu0 }
 0x2da   : > { %v15358_v21 = vsel %vm860_vm2, %v3349_v1, %v3297_v56  ;;  %v12318_v54 = vpop.f32.mrb[149].mxu0  ;;  %v2188_v38 = vrot.slane %v1796_v53, 2  ;;  %v2432_v56 = vmax.f32 %v2383_v40, 0.0 }
 0x2db   : > { %v2985_v47 = vor.u32 %v2984_v10, %v2981_v49  ;;  %v15361_v30 = vsel %vm1851_vm4, %v2696_v26, %v2698_v19  ;;  %v15364_v45 = vsel %vm1851_vm4, %v2698_v19, %v2700_v61  ;;  %11451 = vmatmul.mubr.msk.bf16.gmra.mrb[152].mxu1 %vm959_vm3, %v15358_v21  ;;  %11500 = vmatmul.mubr.msk.bf16.gmra.mrb[156].mxu0 %vm959_vm3, %v15358_v21  ;;  %v1799_v26 = vpop.f32.mrb[150].mxu0  ;;  %v13295_v54 = vld [vmem:[#allocation2 + $0x10] sm:$0xff] }
 0x2dc   : > { %20557 = vst [vmem:[#allocation13_spill] sm:$0xff] %v15361_v30  ;;  %20558 = vst [vmem:[#allocation14_spill] sm:$0xff] %v15364_v45  ;;  %v2815_v8 = vmul.f32 %v15361_v30, %v2430_v35  ;;  %v2816_v55 = vmul.f32 %v15364_v45, %v2431_v9  ;;  %v3247_v33 = vpop.permute.xlu1 %3246  ;;  %3643 = vmatprep.mubr.bf16.mxu1 %v15289_v2  ;;  %v2190_v6 = vrot.slane %v1799_v26, 2  ;;  %v12319_v13 = vpop.f32.mrb[151].mxu0  ;;  %3995 = vmatprep.mubr.bf16.mxu0 %v15289_v2 }
 0x2dd   : > { %v2986_v16 = vsel %vm2861_vm6, %v15186_v17, %v2985_v47  ;;  %v15376_v1 = vpop.permute.xlu0 %2577  ;;  %v2189_v49 = vsel %vm2094_vm5, %v2186_v5, %v2188_v38  ;;  %v2329_v17 = vmul.f32 %v15039_v20, %v15212_v11  ;;  %v3352_v26 = vsel %vm451_vm1, %v13295_v54, %v3247_v33 }
 0x2de   : > { %3122 = vst.msk [vmem:[#allocation2 + $0x70] sm:$0xff] %vm451_vm1, %v2986_v16  ;;  %v2850_v12 = vpack.c.bf16 %v2816_v55, %v2815_v8  ;;  %v15382_v10 = vadd.f32 %v2189_v49, %v2043_v57  ;;  %v2191_v19 = vsel %vm2094_vm5, %v2188_v38, %v2190_v6  ;;  %v2704_v8 = vrot.slane %v15376_v1, 1 }
 0x2df   : > { %v15387_v53 = vadd.f32 %v2191_v19, %v2044_v59  ;;  %v2433_v55 = vmax.f32 %v2384_v41, 0.0  ;;  %v2330_v38 = vmul.f32 %v15039_v20, %v15229_v46 }
 0x2e0   : > { %v2988_v35 = vshrl.u32 %v2850_v12, 16  ;;  %v2991_v9 = vshll.u32 %v2850_v12, 16  ;;  %v2574_v37 = vpop.permute.xlu1 %2573  ;;  %v2385_v12 = vadd.f32 %v15055_v14, %v2329_v17 }
 0x2e1   : > { %v2702_v5 = vrot.slane %v2574_v37, 1  ;;  %v3299_v57 = vpop.permute.xlu0 %3298  ;;  %v2332_v37 = vmul.f32 %v15039_v20, %v15239_v22 }
 0x2e2   : > { %v2990_v40 = vrot.slane %v2988_v35, 3  ;;  %v2993_v16 = vrot.slane %v2991_v9, 4  ;;  %v15394_v11 = vsel %vm860_vm2, %v3352_v26, %v3299_v57  ;;  %v2386_v35 = vadd.f32 %v15055_v14, %v2330_v38 }
 0x2e3   : > { %v15397_v59 = vsel %vm1851_vm4, %v2700_v61, %v2702_v5  ;;  %v15400_v6 = vsel %vm1851_vm4, %v2702_v5, %v2704_v8  ;;  %11452 = vmatmul.mubr.msk.bf16.gmra.mrb[156].mxu1 %vm959_vm3, %v15394_v11  ;;  %11501 = vmatmul.mubr.msk.bf16.gmra.mrb[160].mxu0 %vm959_vm3, %v15394_v11  ;;  %v2331_v9 = vmul.f32 %v15039_v20, %v15234_v36  ;;  %v13296_v5 = vld [vmem:[#allocation2 + $0x18] sm:$0xff] }
 0x2e4   : > { %20559 = vst [vmem:[#allocation15_spill] sm:$0xff] %v15397_v59  ;;  %20560 = vst [vmem:[#allocation16_spill] sm:$0xff] %v15400_v6  ;;  %v2994_v33 = vor.u32 %v2993_v16, %v2990_v40  ;;  %v2817_v1 = vmul.f32 %v15397_v59, %v2432_v56  ;;  %v2818_v13 = vmul.f32 %v15400_v6, %v2433_v55  ;;  %v3249_v46 = vpop.permute.xlu1 %3248  ;;  %3653 = vmatprep.mubr.bf16.mxu1 %v15289_v2 }
 0x2e5   : > { %v15409_v41 = vpop.permute.xlu0 %2585  ;;  %v15411_v61 = vld [vmem:[#allocation2 + $0x70] sm:$0xff]  ;;  %4005 = vmatprep.mubr.bf16.mxu0 %v15289_v2  ;;  %v3355_v57 = vsel %vm451_vm1, %v13296_v5, %v3249_v46  ;;  %v2434_v40 = vmax.f32 %v2385_v12, 0.0  ;;  %v2387_v46 = vadd.f32 %v15055_v14, %v2331_v9 }
 0x2e6   : > { %v2995_v49 = vsel %vm2861_vm6, %v2985_v47, %v2994_v33  ;;  %v2851_v19 = vpack.c.bf16 %v2818_v13, %v2817_v1  ;;  %3316 = vrot.lane.b32.xlu0 %v15411_v61, %s13512_s11  ;;  %v3216_v56 = vrot.slane %v15411_v61, 4  ;;  %v20561_v47 = vrot.slane %v15215_v27, 4  ;;  %v12898_v12 = vld [vmem:[%s20232_s5 + $0xf0] ss:$8 sps:$4 sm:$0xff]  }
 0x2e7   : > { %3123 = vst.msk [vmem:[#allocation2 + $0x78] sm:$0xff] %vm451_vm1, %v2995_v49  ;;  %v2708_v38 = vrot.slane %v15409_v41, 1  ;;  %v2435_v13 = vmax.f32 %v2386_v35, 0.0  ;;  %v2388_v41 = vadd.f32 %v15055_v14, %v2332_v37  ;;  %v12900_v35 = vld [vmem:[%s20232_s5 + $0xf4] ss:$8 sps:$4 sm:$0xff]  }
 0x2e8   : > { %v2997_v17 = vshrl.u32 %v2851_v19, 16  ;;  %v3000_v54 = vshll.u32 %v2851_v19, 16  ;;  %v2582_v26 = vpop.permute.xlu1 %2581  ;;  %v3217_v55 = vsel %vm3190_vm7, %v20561_v47, %v3216_v56  ;;  %4303 = vmatprep.subr.bf16.mxu1 %v12900_v35 }
 0x2e9   : > { %v2706_v16 = vrot.slane %v2582_v26, 1  ;;  %v3301_v36 = vpop.permute.xlu0 %3300  ;;  %3266 = vrot.lane.b32.xlu1 %v3217_v55, %s13511_s17  ;;  %4304 = vmatpush1.bf16.msra.mxu1 %v12898_v12  ;;  %v2333_v55 = vmul.f32 %v15039_v20, %v15244_v60  ;;  %v15473_v60 = vld [vmem:[%s20230_s3] ss:$0 sm:$0xff] }
 0x2ea   : > { %v2999_v22 = vrot.slane %v2997_v17, 3  ;;  %v3002_v1 = vrot.slane %v3000_v54, 4  ;;  %v15432_v49 = vsel %vm860_vm2, %v3355_v57, %v3301_v36  ;;  %v2437_v36 = vmax.f32 %v2388_v41, 0.0 }
 0x2eb   : > { %v15435_v27 = vsel %vm1851_vm4, %v2704_v8, %v2706_v16  ;;  %v15438_v19 = vsel %vm1851_vm4, %v2706_v16, %v2708_v38  ;;  %11453 = vmatmul.mubr.msk.bf16.gmra.mrb[160].mxu1 %vm959_vm3, %v15432_v49  ;;  %11502 = vmatmul.mubr.msk.bf16.gmra.mrb[164].mxu0 %vm959_vm3, %v15432_v49  ;;  %v2436_v16 = vmax.f32 %v2387_v46, 0.0 }
 0x2ec   : > { %20562 = vst [vmem:[#allocation17_spill] sm:$0xff] %v15435_v27  ;;  %20563 = vst [vmem:[#allocation18_spill] sm:$0xff] %v15438_v19  ;;  %v3003_v8 = vor.u32 %v3002_v1, %v2999_v22  ;;  %v2819_v17 = vmul.f32 %v15435_v27, %v2434_v40  ;;  %v2820_v54 = vmul.f32 %v15438_v19, %v2435_v13  ;;  %v3251_v26 = vpop.permute.xlu1 %3250  ;;  %3663 = vmatprep.mubr.bf16.mxu1 %v15289_v2 }
 0x2ed   : > { %v15455_v14 = vpop.permute.xlu0 %2593  ;;  %4015 = vmatprep.mubr.bf16.mxu0 %v15289_v2 }
 0x2ee   : > { %v3004_v9 = vsel %vm2861_vm6, %v2994_v33, %v3003_v8  ;;  %v2852_v37 = vpack.c.bf16 %v2820_v54, %v2819_v17  ;;  %v15459_v47 = vld [vmem:[#allocation2 + $0x78] sm:$0xff]  ;;  %v13297_v33 = vld [vmem:[#allocation2 + $0x20] sm:$0xff]  ;;  %v2712_v13 = vrot.slane %v15455_v14, 1  ;;  %v2334_v17 = vmul.f32 %v15473_v60, %v15249_v42 }
 0x2ef   : > { %3124 = vst.msk [vmem:[#allocation2 + $0x80] sm:$0xff] %vm451_vm1, %v3004_v9  ;;  %3318 = vrot.lane.b32.xlu0 %v15459_v47, %s13512_s11  ;;  %v3218_v5 = vrot.slane %v15459_v47, 4  ;;  %v3358_v1 = vsel %vm451_vm1, %v13297_v33, %v3251_v26  ;;  %v15492_v42 = vld [vmem:[%s20231_s4] ss:$0 sm:$0xff] }
 0x2f0   : > { %v3006_v57 = vshrl.u32 %v2852_v37, 16  ;;  %v3009_v40 = vshll.u32 %v2852_v37, 16  ;;  %v2590_v22 = vpop.permute.xlu1 %2589  ;;  %v2389_v14 = vadd.f32 %v15492_v42, %v2333_v55  ;;  %v2390_v55 = vadd.f32 %v15492_v42, %v2334_v17 }
 0x2f1   : > { %v2710_v12 = vrot.slane %v2590_v22, 1  ;;  %v3303_v35 = vpop.permute.xlu0 %3302  ;;  %v3219_v20 = vsel %vm3190_vm7, %v3216_v56, %v3218_v5 }
 0x2f2   : > { %v3008_v46 = vrot.slane %v3006_v57, 3  ;;  %v3011_v41 = vrot.slane %v3009_v40, 4  ;;  %v15478_v54 = vsel %vm860_vm2, %v3358_v1, %v3303_v35  ;;  %3268 = vrot.lane.b32.xlu1 %v3219_v20, %s13511_s17  ;;  %v2438_v20 = vmax.f32 %v2389_v14, 0.0 }
 0x2f3   : > { %v15482_v26 = vsel %vm1851_vm4, %v2708_v38, %v2710_v12  ;;  %v15485_v56 = vsel %vm1851_vm4, %v2710_v12, %v2712_v13  ;;  %11454 = vmatmul.mubr.msk.bf16.gmra.mrb[164].mxu1 %vm959_vm3, %v15478_v54  ;;  %11503 = vmatmul.mubr.msk.bf16.gmra.mrb[168].mxu0 %vm959_vm3, %v15478_v54 }
 0x2f4   : > { %20564 = vst [vmem:[#allocation19_spill] sm:$0xff] %v15482_v26  ;;  %20565 = vst [vmem:[#allocation20_spill] sm:$0xff] %v15485_v56  ;;  %v3012_v9 = vor.u32 %v3011_v41, %v3008_v46  ;;  %v2821_v37 = vmul.f32 %v15482_v26, %v2436_v16  ;;  %v2822_v57 = vmul.f32 %v15485_v56, %v2437_v36  ;;  %v3253_v38 = vpop.permute.xlu1 %3252  ;;  %3673 = vmatprep.mubr.bf16.mxu1 %v15289_v2  ;;  %v13300_v41 = vld [vmem:[#allocation2 + $0x28] sm:$0xff] }
 0x2f5   : > { %v15500_v40 = vpop.permute.xlu0 %2601  ;;  %4025 = vmatprep.mubr.bf16.mxu0 %v15289_v2  ;;  %v2335_v16 = vmul.f32 %v15473_v60, %v15254_v31  ;;  %v2336_v36 = vmul.f32 %v15473_v60, %v15259_v51  ;;  %v3361_v17 = vsel %vm451_vm1, %v13300_v41, %v3253_v38  ;;  %v2439_v26 = vmax.f32 %v2390_v55, 0.0 }
 0x2f6   : > { %v3013_v22 = vsel %vm2861_vm6, %v3003_v8, %v3012_v9  ;;  %v2853_v33 = vpack.c.bf16 %v2822_v57, %v2821_v37  ;;  %v15504_v1 = vld [vmem:[#allocation2 + $0x80] sm:$0xff]  ;;  %v2716_v37 = vrot.slane %v15500_v40, 1 }
 0x2f7   : > { %3125 = vst.msk [vmem:[#allocation2 + $0x88] sm:$0xff] %vm451_vm1, %v3013_v22  ;;  %3320 = vrot.lane.b32.xlu0 %v15504_v1, %s13512_s11  ;;  %v3220_v12 = vrot.slane %v15504_v1, 4  ;;  %v2391_v38 = vadd.f32 %v15492_v42, %v2335_v16 }
 0x2f8   : > { %v3015_v35 = vshrl.u32 %v2853_v33, 16  ;;  %v3018_v8 = vshll.u32 %v2853_v33, 16 }
 0x2f9   : > { %v2598_v46 = vpop.permute.xlu1 %2597  ;;  %v3305_v57 = vpop.permute.xlu0 %3304  ;;  %v3221_v51 = vsel %vm3190_vm7, %v3218_v5, %v3220_v12  ;;  %v2392_v5 = vadd.f32 %v15492_v42, %v2336_v36 }
 0x2fa   : > { %v2714_v31 = vrot.slane %v2598_v46, 1  ;;  %v3017_v56 = vrot.slane %v3015_v35, 3  ;;  %v3020_v22 = vrot.slane %v3018_v8, 4  ;;  %v15519_v19 = vsel %vm860_vm2, %v3361_v17, %v3305_v57  ;;  %3270 = vrot.lane.b32.xlu1 %v3221_v51, %s13511_s17  ;;  %v13301_v51 = vld [vmem:[#allocation2 + $0x30] sm:$0xff] }
 0x2fb   : > { %11455 = vmatmul.mubr.msk.bf16.gmra.mrb[168].mxu1 %vm959_vm3, %v15519_v19  ;;  %11504 = vmatmul.mubr.msk.bf16.gmra.mrb[172].mxu0 %vm959_vm3, %v15519_v19  ;;  %v2440_v17 = vmax.f32 %v2391_v38, 0.0 }
 0x2fc   : > { %v15523_v14 = vsel %vm1851_vm4, %v2712_v13, %v2714_v31  ;;  %v15526_v33 = vsel %vm1851_vm4, %v2714_v31, %v2716_v37  ;;  %v3021_v40 = vor.u32 %v3020_v22, %v3017_v56  ;;  %3683 = vmatprep.mubr.bf16.mxu1 %v15289_v2  ;;  %4035 = vmatprep.mubr.bf16.mxu0 %v15289_v2  ;;  %v2441_v31 = vmax.f32 %v2392_v5, 0.0 }
 0x2fd   : > { %20566 = vst [vmem:[#allocation21_spill] sm:$0xff] %v15523_v14  ;;  %20567 = vst [vmem:[#allocation22_spill] sm:$0xff] %v15526_v33  ;;  %v2823_v55 = vmul.f32 %v15523_v14, %v2438_v20  ;;  %v2824_v35 = vmul.f32 %v15526_v33, %v2439_v26  ;;  %v3255_v13 = vpop.permute.xlu1 %3254  ;;  %v15537_v8 = vpop.permute.xlu0 %2609  ;;  %v2337_v56 = vmul.f32 %v15473_v60, %v15266_v34 }
 0x2fe   : > { %v3022_v46 = vsel %vm2861_vm6, %v3012_v9, %v3021_v40  ;;  %v15541_v41 = vld [vmem:[#allocation2 + $0x88] sm:$0xff]  ;;  %v3364_v9 = vsel %vm451_vm1, %v13301_v51, %v3255_v13  ;;  %v2720_v22 = vrot.slane %v15537_v8, 1 }
 0x2ff   : > { %v2854_v16 = vpack.c.bf16 %v2824_v35, %v2823_v55  ;;  %3126 = vst.msk [vmem:[#allocation2 + $0x90] sm:$0xff] %vm451_vm1, %v3022_v46  ;;  %3322 = vrot.lane.b32.xlu0 %v15541_v41, %s13512_s11  ;;  %v3222_v26 = vrot.slane %v15541_v41, 4  ;;  %v2338_v46 = vmul.f32 %v15473_v60, %v15281_v24 }
 0x301   : > { %v3024_v36 = vshrl.u32 %v2854_v16, 16  ;;  %v3027_v20 = vshll.u32 %v2854_v16, 16  ;;  %v2606_v57 = vpop.permute.xlu1 %2605  ;;  %v3307_v35 = vpop.permute.xlu0 %3306  ;;  %v3223_v34 = vsel %vm3190_vm7, %v3220_v12, %v3222_v26  ;;  %v2393_v12 = vadd.f32 %v15492_v42, %v2337_v56 }
 0x302   : > { %v2718_v55 = vrot.slane %v2606_v57, 1  ;;  %v15555_v27 = vsel %vm860_vm2, %v3364_v9, %v3307_v35  ;;  %3272 = vrot.lane.b32.xlu1 %v3223_v34, %s13511_s17  ;;  %v2340_v56 = vmul.f32 %v15473_v60, %v15314_v25 }
 0x303   : > { %v3026_v33 = vrot.slane %v3024_v36, 3  ;;  %v3029_v14 = vrot.slane %v3027_v20, 4  ;;  %11456 = vmatmul.mubr.msk.bf16.gmra.mrb[172].mxu1 %vm959_vm3, %v15555_v27  ;;  %11505 = vmatmul.mubr.msk.bf16.gmra.mrb[176].mxu0 %vm959_vm3, %v15555_v27  ;;  %v2442_v51 = vmax.f32 %v2393_v12, 0.0 }
 0x304   : > { %v15559_v38 = vsel %vm1851_vm4, %v2716_v37, %v2718_v55  ;;  %v15562_v5 = vsel %vm1851_vm4, %v2718_v55, %v2720_v22  ;;  %3693 = vmatprep.mubr.bf16.mxu1 %v15289_v2  ;;  %4045 = vmatprep.mubr.bf16.mxu0 %v15289_v2  ;;  %v13302_v55 = vld [vmem:[#allocation2 + $0x38] sm:$0xff] }
 0x305   : > { %20568 = vst [vmem:[#allocation23_spill] sm:$0xff] %v15559_v38  ;;  %20569 = vst [vmem:[#allocation25_spill] sm:$0xff] %v15562_v5  ;;  %v3030_v13 = vor.u32 %v3029_v14, %v3026_v33  ;;  %v2825_v24 = vmul.f32 %v15559_v38, %v2440_v17  ;;  %v2826_v8 = vmul.f32 %v15562_v5, %v2441_v31  ;;  %v3257_v16 = vpop.permute.xlu1 %3256  ;;  %v15572_v37 = vpop.permute.xlu0 %2617 }
 0x306   : > { %v15576_v57 = vld [vmem:[#allocation2 + $0x90] sm:$0xff]  ;;  %v2394_v14 = vadd.f32 %v15492_v42, %v2338_v46  ;;  %v2339_v33 = vmul.f32 %v15473_v60, %v15302_v7  ;;  %v3367_v35 = vsel %vm451_vm1, %v13302_v55, %v3257_v16  ;;  %v2724_v34 = vrot.slane %v15572_v37, 1 }
 0x307   : > { %v3031_v36 = vsel %vm2861_vm6, %v3021_v40, %v3030_v13  ;;  %v2855_v20 = vpack.c.bf16 %v2826_v8, %v2825_v24  ;;  %3324 = vrot.lane.b32.xlu0 %v15576_v57, %s13512_s11  ;;  %v3224_v17 = vrot.slane %v15576_v57, 4 }
 0x308   : > { %3127 = vst.msk [vmem:[#allocation2 + $0x98] sm:$0xff] %vm451_vm1, %v3031_v36  ;;  %v2443_v36 = vmax.f32 %v2394_v14, 0.0  ;;  %v2395_v16 = vadd.f32 %v15492_v42, %v2339_v33  ;;  %v12901_v33 = vld [vmem:[%s20232_s5 + $0x100] ss:$8 sps:$4 sm:$0xff]  }
 0x309   : > { %v3033_v31 = vshrl.u32 %v2855_v20, 16  ;;  %v3036_v40 = vshll.u32 %v2855_v20, 16  ;;  %v2614_v9 = vpop.permute.xlu1 %2613  ;;  %v3309_v46 = vpop.permute.xlu0 %3308  ;;  %v3225_v25 = vsel %vm3190_vm7, %v3222_v26, %v3224_v17  ;;  %v2396_v26 = vadd.f32 %v15492_v42, %v2340_v56  ;;  %v12903_v56 = vld [vmem:[%s20232_s5 + $0x104] ss:$8 sps:$4 sm:$0xff]  }
 0x30a   : > { %v2722_v7 = vrot.slane %v2614_v9, 1  ;;  %v15591_v5 = vsel %vm860_vm2, %v3367_v35, %v3309_v46  ;;  %3274 = vrot.lane.b32.xlu1 %v3225_v25, %s13511_s17  ;;  %v2341_v35 = vmul.f32 %v15473_v60, %v15320_v63  ;;  %4305 = vmatprep.subr.bf16.mxu1 %v12903_v56 }
 0x30b   : > { %v3035_v24 = vrot.slane %v3033_v31, 3  ;;  %v3038_v8 = vrot.slane %v3036_v40, 4  ;;  %11457 = vmatmul.mubr.msk.bf16.gmra.mrb[176].mxu1 %vm959_vm3, %v15591_v5  ;;  %11506 = vmatmul.mubr.msk.bf16.gmra.mrb[180].mxu0 %vm959_vm3, %v15591_v5 }
 0x30c   : > { %v15595_v12 = vsel %vm1851_vm4, %v2720_v22, %v2722_v7  ;;  %v15598_v20 = vsel %vm1851_vm4, %v2722_v7, %v2724_v34  ;;  %3703 = vmatprep.mubr.bf16.mxu1 %v15289_v2  ;;  %4055 = vmatprep.mubr.bf16.mxu0 %v15289_v2 }
 0x30d   : > { %20570 = vst [vmem:[#allocation24_spill] sm:$0xff] %v15595_v12  ;;  %20571 = vst [vmem:[#allocation52_spill] sm:$0xff] %v15598_v20  ;;  %v3039_v37 = vor.u32 %v3038_v8, %v3035_v24  ;;  %v2827_v14 = vmul.f32 %v15595_v12, %v2442_v51  ;;  %v2828_v31 = vmul.f32 %v15598_v20, %v2443_v36  ;;  %v3259_v22 = vpop.permute.xlu1 %3258  ;;  %v2444_v24 = vmax.f32 %v2395_v16, 0.0 }
 0x30e   : > { %v2445_v8 = vmax.f32 %v2396_v26, 0.0  ;;  %4306 = vmatpush1.bf16.msra.mxu1 %v12901_v33  ;;  %v2342_v12 = vmul.f32 %v15473_v60, %v15343_v39 }
 0x30f   : > { %v15609_v40 = vpop.permute.xlu0 %2625  ;;  %v3040_v51 = vsel %vm2861_vm6, %v3030_v13, %v3039_v37  ;;  %v2856_v9 = vpack.c.bf16 %v2828_v31, %v2827_v14  ;;  %v15619_v55 = vld [vmem:[#allocation2 + $0x98] sm:$0xff]  ;;  %v13303_v13 = vld [vmem:[#allocation2 + $0x40] sm:$0xff] }
 0x310   : > { %3128 = vst.msk [vmem:[#allocation2 + $0xa0] sm:$0xff] %vm451_vm1, %v3040_v51  ;;  %3326 = vrot.lane.b32.xlu0 %v15619_v55, %s13512_s11  ;;  %v3226_v7 = vrot.slane %v15619_v55, 4  ;;  %v3370_v14 = vsel %vm451_vm1, %v13303_v13, %v3259_v22  ;;  %v2728_v31 = vrot.slane %v15609_v40, 1 }
 0x311   : > { %v3042_v46 = vshrl.u32 %v2856_v9, 16  ;;  %v3045_v25 = vshll.u32 %v2856_v9, 16 }
 0x312   : > { %v2622_v36 = vpop.permute.xlu1 %2621  ;;  %v3227_v51 = vsel %vm3190_vm7, %v3224_v17, %v3226_v7  ;;  %v2397_v17 = vadd.f32 %v15492_v42, %v2341_v35 }
 0x313   : > { %v2726_v63 = vrot.slane %v2622_v36, 1  ;;  %v3311_v20 = vpop.permute.xlu0 %3310  ;;  %v3044_v38 = vrot.slane %v3042_v46, 3  ;;  %v3047_v56 = vrot.slane %v3045_v25, 4  ;;  %3276 = vrot.lane.b32.xlu1 %v3227_v51, %s13511_s17 }
 0x314   : > { %v15633_v9 = vsel %vm860_vm2, %v3370_v14, %v3311_v20  ;;  %v2446_v36 = vmax.f32 %v2397_v17, 0.0  ;;  %v13304_v14 = vld [vmem:[#allocation2 + $0x48] sm:$0xff] }
 0x315   : > { %v15637_v16 = vsel %vm1851_vm4, %v2724_v34, %v2726_v63  ;;  %v15640_v26 = vsel %vm1851_vm4, %v2726_v63, %v2728_v31  ;;  %11458 = vmatmul.mubr.msk.bf16.gmra.mrb[180].mxu1 %vm959_vm3, %v15633_v9  ;;  %v3048_v22 = vor.u32 %v3047_v56, %v3044_v38  ;;  %11507 = vmatmul.mubr.msk.bf16.gmra.mrb[184].mxu0 %vm959_vm3, %v15633_v9 }
 0x316   : > { %20572 = vst [vmem:[#allocation53_spill] sm:$0xff] %v15637_v16  ;;  %20573 = vst [vmem:[#allocation54_spill] sm:$0xff] %v15640_v26  ;;  %v2829_v39 = vmul.f32 %v15637_v16, %v2444_v24  ;;  %v2830_v40 = vmul.f32 %v15640_v26, %v2445_v8  ;;  %v3261_v20 = vpop.permute.xlu1 %3260  ;;  %3713 = vmatprep.mubr.bf16.mxu1 %v15289_v2  ;;  %4065 = vmatprep.mubr.bf16.mxu0 %v15289_v2 }
 0x317   : > { %v15650_v34 = vpop.permute.xlu0 %2633  ;;  %v3049_v33 = vsel %vm2861_vm6, %v3039_v37, %v3048_v22  ;;  %v15654_v25 = vld [vmem:[#allocation2 + $0xa0] sm:$0xff]  ;;  %v2398_v38 = vadd.f32 %v15492_v42, %v2342_v12  ;;  %v3373_v63 = vsel %vm451_vm1, %v13304_v14, %v3261_v20 }
 0x318   : > { %v2857_v46 = vpack.c.bf16 %v2830_v40, %v2829_v39  ;;  %3129 = vst.msk [vmem:[#allocation2 + $0xa8] sm:$0xff] %vm451_vm1, %v3049_v33  ;;  %3328 = vrot.lane.b32.xlu0 %v15654_v25, %s13512_s11  ;;  %v3228_v35 = vrot.slane %v15654_v25, 4  ;;  %v2732_v37 = vrot.slane %v15650_v34, 1 }
 0x319   : > { %v2447_v33 = vmax.f32 %v2398_v38, 0.0 }
 0x31a   : > { %v3051_v24 = vshrl.u32 %v2857_v46, 16  ;;  %v3054_v8 = vshll.u32 %v2857_v46, 16  ;;  %v2630_v13 = vpop.permute.xlu1 %2629  ;;  %v3229_v12 = vsel %vm3190_vm7, %v3226_v7, %v3228_v35 }
 0x31b   : > { %v2730_v51 = vrot.slane %v2630_v13, 1  ;;  %v3313_v56 = vpop.permute.xlu0 %3312  ;;  %3278 = vrot.lane.b32.xlu1 %v3229_v12, %s13511_s17 }
 0x31c   : > { %v3053_v39 = vrot.slane %v3051_v24, 3  ;;  %v3056_v40 = vrot.slane %v3054_v8, 4  ;;  %v15665_v26 = vsel %vm860_vm2, %v3373_v63, %v3313_v56  ;;  %v2345_v24 = vmul.f32 %v15473_v60, %v15387_v53  ;;  %v13305_v63 = vld [vmem:[#allocation2 + $0x50] sm:$0xff] }
 0x31d   : > { %v15669_v17 = vsel %vm1851_vm4, %v2728_v31, %v2730_v51  ;;  %v15672_v46 = vsel %vm1851_vm4, %v2730_v51, %v2732_v37  ;;  %11459 = vmatmul.mubr.msk.bf16.gmra.mrb[184].mxu1 %vm959_vm3, %v15665_v26  ;;  %11508 = vmatmul.mubr.msk.bf16.gmra.mrb[188].mxu0 %vm959_vm3, %v15665_v26  ;;  %v2343_v31 = vmul.f32 %v15473_v60, %v15355_v32 }
 0x31e   : > { %20574 = vst [vmem:[#allocation55_spill] sm:$0xff] %v15669_v17  ;;  %20575 = vst [vmem:[#allocation56_spill] sm:$0xff] %v15672_v46  ;;  %v3057_v20 = vor.u32 %v3056_v40, %v3053_v39  ;;  %v2831_v7 = vmul.f32 %v15669_v17, %v2446_v36  ;;  %v2832_v34 = vmul.f32 %v15672_v46, %v2447_v33  ;;  %v3263_v38 = vpop.permute.xlu1 %3262  ;;  %3723 = vmatprep.mubr.bf16.mxu1 %v15289_v2 }
 0x31f   : > { %4075 = vmatprep.mubr.bf16.mxu0 %v15289_v2  ;;  %v2344_v8 = vmul.f32 %v15473_v60, %v15382_v10  ;;  %v15689_v14 = vld [vmem:[#allocation2 + $0xa8] sm:$0xff]  ;;  %v3376_v51 = vsel %vm451_vm1, %v13305_v63, %v3263_v38  ;;  %v3315_v56 = vpop.permute.xlu0 %3314  ;;  %v2399_v10 = vadd.f32 %v15492_v42, %v2343_v31  ;;  %v2401_v40 = vadd.f32 %v15492_v42, %v2345_v24 }
 0x320   : > { %v3058_v36 = vsel %vm2861_vm6, %v3048_v22, %v3057_v20  ;;  %v2858_v13 = vpack.c.bf16 %v2832_v34, %v2831_v7  ;;  %3330 = vrot.lane.b32.xlu0 %v15689_v14, %s13512_s11  ;;  %v3230_v32 = vrot.slane %v15689_v14, 4  ;;  %v15701_v38 = vsel %vm860_vm2, %v3376_v51, %v3315_v56 }
 0x321   : > { %3130 = vst.msk [vmem:[#allocation2 + $0xb0] sm:$0xff] %vm451_vm1, %v3058_v36  ;;  %v2400_v33 = vadd.f32 %v15492_v42, %v2344_v8  ;;  %v2450_v42 = vmax.f32 %v2401_v40, 0.0 }
 0x322   : > { %v3060_v53 = vshrl.u32 %v2858_v13, 16  ;;  %v3063_v12 = vshll.u32 %v2858_v13, 16  ;;  %v2638_v39 = vpop.permute.xlu1 %2637  ;;  %v3231_v22 = vsel %vm3190_vm7, %v3228_v35, %v3230_v32  ;;  %v2448_v13 = vmax.f32 %v2399_v10, 0.0 }
 0x323   : > { %v2734_v60 = vrot.slane %v2638_v39, 1  ;;  %3280 = vrot.lane.b32.xlu1 %v3231_v22, %s13511_s17  ;;  %v2449_v63 = vmax.f32 %v2400_v33, 0.0 }
 0x324   : > { %v3062_v7 = vrot.slane %v3060_v53, 3  ;;  %v3065_v34 = vrot.slane %v3063_v12, 4 }
 0x325   : > { %11460 = vmatmul.mubr.msk.bf16.gmra.mrb[188].mxu1 %vm959_vm3, %v15701_v38  ;;  %11509 = vmatmul.mubr.msk.bf16.gmra.mrb[192].mxu0 %vm959_vm3, %v15701_v38  ;;  %v15710_v35 = vsel %vm1851_vm4, %v2732_v37, %v2734_v60 }
 0x326   : > { %v3066_v36 = vor.u32 %v3065_v34, %v3062_v7  ;;  %v2642_v31 = vpop.permute.xlu0 %2641  ;;  %3733 = vmatprep.mubr.bf16.mxu1 %v15289_v2  ;;  %20576 = vst [vmem:[#allocation57_spill] sm:$0xff] %v15710_v35  ;;  %4085 = vmatprep.mubr.bf16.mxu0 %v15289_v2  ;;  %v2833_v12 = vmul.f32 %v15710_v35, %v2448_v13 }
 0x327   : > { %v15712_v24 = vrot.slane %v2642_v31, 1 }
 0x328   : > { %v3067_v8 = vsel %vm2861_vm6, %v3057_v20, %v3066_v36  ;;  %v15716_v51 = vld [vmem:[#allocation2 + $0xb0] sm:$0xff] }
 0x329   : > { %20577 = vst [vmem:[#allocation58_spill] sm:$0xff] %v15712_v24  ;;  %3131 = vst.msk [vmem:[#allocation2 + $0xb8] sm:$0xff] %vm451_vm1, %v3067_v8  ;;  %v15721_v56 = vsel %vm1851_vm4, %v2734_v60, %v15712_v24  ;;  %v2835_v37 = vmul.f32 %v15712_v24, %v2450_v42  ;;  %3332 = vrot.lane.b32.xlu0 %v15716_v51, %s13512_s11  ;;  %v3232_v53 = vrot.slane %v15716_v51, 4 }
 0x32a   : > { %20578 = vst [vmem:[#allocation59_spill] sm:$0xff] %v15721_v56  ;;  %v2834_v20 = vmul.f32 %v15721_v56, %v2449_v63 }
 0x32b   : > { %v2860_v39 = vpack.c.bf16 %v2835_v37, %v2835_v37  ;;  %v3233_v10 = vsel %vm3190_vm7, %v3230_v32, %v3232_v53 }
 0x32c   : > { %v2859_v22 = vpack.c.bf16 %v2834_v20, %v2833_v12  ;;  %3282 = vrot.lane.b32.xlu1 %v3233_v10, %s13511_s17  ;;  %v12904_v20 = vld [vmem:[%s20232_s5 + $0x110] ss:$8 sps:$4 sm:$0xff]  }
 0x32d   : > { %v3078_v40 = vshrl.u32 %v2860_v39, 16  ;;  %v3081_v60 = vshll.u32 %v2860_v39, 16  ;;  %v12906_v39 = vld [vmem:[%s20232_s5 + $0x114] ss:$8 sps:$4 sm:$0xff]  }
 0x32e   : > { %v3069_v33 = vshrl.u32 %v2859_v22, 16  ;;  %v3072_v7 = vshll.u32 %v2859_v22, 16  ;;  %4307 = vmatprep.subr.bf16.mxu1 %v12906_v39 }
 0x32f   : > { %v3080_v34 = vrot.slane %v3078_v40, 3  ;;  %v3083_v31 = vrot.slane %v3081_v60, 4  ;;  %4308 = vmatpush1.bf16.msra.mxu1 %v12904_v20  ;;  %v3161_v40 = vld [vmem:[#allocation2 + $0xd0] sm:$0xf] }
 0x330   : > { %v3071_v42 = vrot.slane %v3069_v33, 3  ;;  %v3074_v8 = vrot.slane %v3072_v7, 4  ;;  %v15731_v24 = vld [vmem:[#allocation2 + $0xb8] sm:$0xff]  ;;  %7339 = vmatprep.subr.bf16.mxu1 %v15289_v2  ;;  %v3162_v60 = vld [vmem:[#allocation2 + $0xd0] sm:$0xff]  ;;  %v3240_v7 = vrot.slane %v3161_v40, 4 }
 0x331   : > { %v3084_v46 = vor.u32 %v3083_v31, %v3080_v34  ;;  %3334 = vrot.lane.b32.xlu0 %v15731_v24, %s13512_s11  ;;  %v3234_v13 = vrot.slane %v15731_v24, 4  ;;  %v3163_v34 = vld [vmem:[#allocation2 + $0xd8] sm:$0xff] }
 0x332   : > { %v3075_v32 = vor.u32 %v3074_v8, %v3071_v42  ;;  %v3265_v42 = vpop.permute.xlu1 %3264  ;;  %v13306_v8 = vld [vmem:[#allocation2 + $0x58] sm:$0xff] }
 0x333   : > { %v3235_v63 = vsel %vm3190_vm7, %v3232_v53, %v3234_v13 }
 0x334   : > { %v3076_v37 = vsel %vm2861_vm6, %v3066_v36, %v3075_v32  ;;  %v3085_v12 = vsel %vm2861_vm6, %v3075_v32, %v3084_v46  ;;  %3284 = vrot.lane.b32.xlu1 %v3235_v63, %s13511_s17 }
 0x335   : > { %3132 = vst.msk [vmem:[#allocation2 + $0xc0] sm:$0xff] %vm451_vm1, %v3076_v37  ;;  %3133 = vst.msk [vmem:[#allocation2 + $0xc8] sm:$0xff] %vm451_vm1, %v3085_v12  ;;  %v13307_v12 = vld [vmem:[#allocation2 + $0x60] sm:$0xff] }
 0x33c   : > { %v15749_v36 = vld [vmem:[#allocation2 + $0xc0] sm:$0xff]  ;;  %v3160_v46 = vld [vmem:[#allocation2 + $0xc8] sm:$0xff] }
 0x33d   : > { %3336 = vrot.lane.b32.xlu0 %v15749_v36, %s13512_s11  ;;  %v3236_v53 = vrot.slane %v15749_v36, 4  ;;  %v3238_v22 = vrot.slane %v3160_v46, 4 }
 0x33f   : > { %v3237_v10 = vsel %vm3190_vm7, %v3234_v13, %v3236_v53  ;;  %v3239_v33 = vsel %vm3190_vm7, %v3236_v53, %v3238_v22  ;;  %v3241_v31 = vsel %vm3190_vm7, %v3238_v22, %v3240_v7  ;;  %v3379_v13 = vsel %vm451_vm1, %v13306_v8, %v3265_v42 }
 0x340   : > { %3286 = vrot.lane.b32.xlu1 %v3237_v10, %s13511_s17  ;;  %v13308_v10 = vld [vmem:[#allocation2 + $0x68] sm:$0xff] }
 0x341   : > { %3338 = vrot.lane.b32.xlu0 %v3160_v46, %s13512_s11 }
 0x344   : > { %3288 = vrot.lane.b32.xlu1 %v3239_v33, %s13511_s17 }
 0x345   : > { %3340 = vrot.lane.b32.xlu0 %v3162_v60, %s13512_s11 }
 0x348   : > { %3290 = vrot.lane.b32.xlu1 %v3241_v31, %s13511_s17 }
 0x349   : > { %3342 = vrot.lane.b32.xlu0 %v3163_v34, %s13512_s11 }
 0x358   : > { %v3317_v32 = vpop.permute.xlu0 %3316 }
 0x359   : > { %v15765_v63 = vsel %vm860_vm2, %v3379_v13, %v3317_v32  ;;  %v15813_v32 = vld [vmem:[#allocation3] sm:$0xff] }
 0x35a   : > { %11461 = vmatmul.mubr.msk.bf16.gmra.mrb[192].mxu1 %vm959_vm3, %v15765_v63  ;;  %11510 = vmatmul.mubr.msk.bf16.gmra.mrb[196].mxu0 %vm959_vm3, %v15765_v63 }
 0x35b   : > { %3743 = vmatprep.mubr.bf16.mxu1 %v15289_v2  ;;  %4095 = vmatprep.mubr.bf16.mxu0 %v15289_v2  ;;  %v3267_v37 = vpop.permute.xlu1 %3266 }
 0x35c   : > { %v3382_v20 = vsel %vm451_vm1, %v13307_v12, %v3267_v37 }
 0x361   : > { %v3319_v39 = vpop.permute.xlu0 %3318 }
 0x362   : > { %v15775_v46 = vsel %vm860_vm2, %v3382_v20, %v3319_v39  ;;  %v12907_v39 = vld [vmem:[#allocation6 + $0x50] sm:$0xff]  }
 0x363   : > { %11462 = vmatmul.mubr.msk.bf16.gmra.mrb[196].mxu1 %vm959_vm3, %v15775_v46  ;;  %11511 = vmatmul.mubr.msk.bf16.gmra.mrb[200].mxu0 %vm959_vm3, %v15775_v46 }
 0x364   : > { %3753 = vmatprep.mubr.bf16.mxu1 %v15289_v2  ;;  %4105 = vmatprep.mubr.bf16.mxu0 %v15289_v2  ;;  %v3269_v53 = vpop.permute.xlu1 %3268 }
 0x365   : > { %v3385_v22 = vsel %vm451_vm1, %v13308_v10, %v3269_v53  ;;  %6973 = vmatpush1.bf16.msra.mxu0 %v12907_v39 }
 0x366   : > { %6974 = vmatprep.subr.bf16.mxu0 %v15813_v32 }
 0x369   : > { %v3321_v40 = vpop.permute.xlu0 %3320 }
 0x36a   : > { %v15785_v60 = vsel %vm860_vm2, %v3385_v22, %v3321_v40 }
 0x36b   : > { %11463 = vmatmul.mubr.msk.bf16.gmra.mrb[200].mxu1 %vm959_vm3, %v15785_v60  ;;  %11512 = vmatmul.mubr.msk.bf16.gmra.mrb[204].mxu0 %vm959_vm3, %v15785_v60 }
 0x36c   : > { %3763 = vmatprep.mubr.bf16.mxu1 %v15289_v2  ;;  %4115 = vmatprep.mubr.bf16.mxu0 %v15289_v2  ;;  %v3271_v33 = vpop.permute.xlu1 %3270 }
 0x36d   : > { %v3388_v7 = vsel %vm451_vm1, %v15411_v61, %v3271_v33 }
 0x371   : > { %v3323_v34 = vpop.permute.xlu0 %3322 }
 0x372   : > { %v15796_v31 = vsel %vm860_vm2, %v3388_v7, %v3323_v34 }
 0x373   : > { %11464 = vmatmul.mubr.msk.bf16.gmra.mrb[204].mxu1 %vm959_vm3, %v15796_v31  ;;  %11513 = vmatmul.mubr.msk.bf16.gmra.mrb[208].mxu0 %vm959_vm3, %v15796_v31 }
 0x374   : > { %3773 = vmatprep.mubr.bf16.mxu1 %v15289_v2  ;;  %4125 = vmatprep.mubr.bf16.mxu0 %v15289_v2  ;;  %v3273_v42 = vpop.permute.xlu1 %3272 }
 0x375   : > { %v3391_v8 = vsel %vm451_vm1, %v15459_v47, %v3273_v42 }
 0x379   : > { %v3325_v13 = vpop.permute.xlu0 %3324 }
 0x37a   : > { %v15807_v61 = vsel %vm860_vm2, %v3391_v8, %v3325_v13 }
 0x37b   : > { %11465 = vmatmul.mubr.msk.bf16.gmra.mrb[208].mxu1 %vm959_vm3, %v15807_v61  ;;  %11514 = vmatmul.mubr.msk.bf16.gmra.mrb[212].mxu0 %vm959_vm3, %v15807_v61 }
 0x37c   : > { %3783 = vmatprep.mubr.bf16.mxu1 %v15813_v32  ;;  %4135 = vmatprep.mubr.bf16.mxu0 %v15813_v32  ;;  %v3275_v2 = vpop.permute.xlu1 %3274 }
 0x37d   : > { %v3394_v47 = vsel %vm451_vm1, %v15504_v1, %v3275_v2 }
 0x382   : > { %v3327_v37 = vpop.permute.xlu0 %3326 }
 0x383   : > { %v15820_v12 = vsel %vm860_vm2, %v3394_v47, %v3327_v37 }
 0x384   : > { %11466 = vmatmul.mubr.msk.bf16.gmra.mrb[212].mxu1 %vm959_vm3, %v15820_v12  ;;  %11515 = vmatmul.mubr.msk.bf16.gmra.mrb[216].mxu0 %vm959_vm3, %v15820_v12 }
 0x385   : > { %3793 = vmatprep.mubr.bf16.mxu1 %v15813_v32  ;;  %4145 = vmatprep.mubr.bf16.mxu0 %v15813_v32  ;;  %v3277_v20 = vpop.permute.xlu1 %3276 }
 0x386   : > { %v3397_v53 = vsel %vm451_vm1, %v15541_v41, %v3277_v20 }
 0x38a   : > { %v3329_v1 = vpop.permute.xlu0 %3328 }
 0x38b   : > { %v15831_v10 = vsel %vm860_vm2, %v3397_v53, %v3329_v1 }
 0x38c   : > { %11467 = vmatmul.mubr.msk.bf16.gmra.mrb[216].mxu1 %vm959_vm3, %v15831_v10  ;;  %11516 = vmatmul.mubr.msk.bf16.gmra.mrb[220].mxu0 %vm959_vm3, %v15831_v10 }
 0x38d   : > { %3803 = vmatprep.mubr.bf16.mxu1 %v15813_v32  ;;  %4155 = vmatprep.mubr.bf16.mxu0 %v15813_v32  ;;  %v3279_v22 = vpop.permute.xlu1 %3278 }
 0x38e   : > { %v3400_v41 = vsel %vm451_vm1, %v15576_v57, %v3279_v22 }
 0x392   : > { %v3331_v40 = vpop.permute.xlu0 %3330 }
 0x393   : > { %v15843_v33 = vsel %vm860_vm2, %v3400_v41, %v3331_v40  ;;  %v12908_v40 = vld [vmem:[#allocation6 + $0x58] sm:$0xff]  }
 0x394   : > { %11468 = vmatmul.mubr.msk.bf16.gmra.mrb[220].mxu1 %vm959_vm3, %v15843_v33  ;;  %11517 = vmatmul.mubr.msk.bf16.gmra.mrb[224].mxu0 %vm959_vm3, %v15843_v33 }
 0x395   : > { %3813 = vmatprep.mubr.bf16.mxu1 %v15813_v32  ;;  %4165 = vmatprep.mubr.bf16.mxu0 %v15813_v32  ;;  %v3281_v7 = vpop.permute.xlu1 %3280 }
 0x396   : > { %v3403_v57 = vsel %vm451_vm1, %v15619_v55, %v3281_v7  ;;  %6975 = vmatpush1.bf16.msra.mxu0 %v12908_v40 }
 0x397   : > { %6976 = vmatprep.subr.bf16.mxu0 %v15813_v32 }
 0x398   : > { %v3625_v34 = vpop.f32.mrb[148].mxu1  ;;  %v3979_v42 = vpop.f32.mrb[152].mxu0 }
 0x399   : > { %v3627_v13 = vpop.f32.mrb[149].mxu1  ;;  %v3980_v47 = vpop.f32.mrb[153].mxu0 }
 0x39a   : > { %v3629_v37 = vpop.f32.mrb[150].mxu1  ;;  %v3981_v20 = vpop.f32.mrb[154].mxu0 }
 0x39b   : > { %v3333_v8 = vpop.permute.xlu0 %3332  ;;  %v3631_v39 = vpop.f32.mrb[151].mxu1  ;;  %v4674_v53 = vrot.slane %v3981_v20, 1 }
 0x39c   : > { %v15854_v2 = vsel %vm860_vm2, %v3403_v57, %v3333_v8  ;;  %v3983_v1 = vpop.f32.mrb[155].mxu0 }
 0x39d   : > { %11469 = vmatmul.mubr.msk.bf16.gmra.mrb[224].mxu1 %vm959_vm3, %v15854_v2  ;;  %11518 = vmatmul.mubr.msk.bf16.gmra.mrb[228].mxu0 %vm959_vm3, %v15854_v2  ;;  %v4675_v55 = vrot.slane %v3983_v1, 1  ;;  %v15862_v41 = vadd.f32 %v4674_v53, %v3625_v34 }
 0x39e   : > { %3823 = vmatprep.mubr.bf16.mxu1 %v15813_v32  ;;  %4175 = vmatprep.mubr.bf16.mxu0 %v15813_v32  ;;  %v3283_v22 = vpop.permute.xlu1 %3282 }
 0x39f   : > { %v15864_v7 = vadd.f32 %v4675_v55, %v3627_v13  ;;  %v3406_v42 = vsel %vm451_vm1, %v15654_v25, %v3283_v22 }
 0x3a3   : > { %v3335_v57 = vpop.permute.xlu0 %3334 }
 0x3a4   : > { %v15869_v8 = vsel %vm860_vm2, %v3406_v42, %v3335_v57 }
 0x3a5   : > { %11470 = vmatmul.mubr.msk.bf16.gmra.mrb[228].mxu1 %vm959_vm3, %v15869_v8  ;;  %11519 = vmatmul.mubr.msk.bf16.gmra.mrb[232].mxu0 %vm959_vm3, %v15869_v8 }
 0x3a6   : > { %3833 = vmatprep.mubr.bf16.mxu1 %v15813_v32  ;;  %4185 = vmatprep.mubr.bf16.mxu0 %v15813_v32  ;;  %v3285_v34 = vpop.permute.xlu1 %3284 }
 0x3a7   : > { %v3409_v25 = vsel %vm451_vm1, %v15689_v14, %v3285_v34 }
 0x3ae   : > { %v3635_v47 = vpop.f32.mrb[152].mxu1  ;;  %v3987_v1 = vpop.f32.mrb[156].mxu0 }
 0x3af   : > { %v3337_v13 = vpop.permute.xlu0 %3336  ;;  %v3637_v22 = vpop.f32.mrb[153].mxu1  ;;  %v4676_v40 = vrot.slane %v3987_v1, 1 }
 0x3b0   : > { %v15881_v20 = vsel %vm860_vm2, %v3409_v25, %v3337_v13  ;;  %v3989_v42 = vpop.f32.mrb[157].mxu0  ;;  %v3639_v57 = vpop.f32.mrb[154].mxu1 }
 0x3b1   : > { %11471 = vmatmul.mubr.msk.bf16.gmra.mrb[232].mxu1 %vm959_vm3, %v15881_v20  ;;  %11520 = vmatmul.mubr.msk.bf16.gmra.mrb[236].mxu0 %vm959_vm3, %v15881_v20  ;;  %v4678_v14 = vrot.slane %v3989_v42, 1  ;;  %v3991_v34 = vpop.f32.mrb[158].mxu0  ;;  %v3641_v56 = vpop.f32.mrb[155].mxu1  ;;  %v4677_v25 = vsel %vm1851_vm4, %v4674_v53, %v4676_v40 }
 0x3b2   : > { %3843 = vmatprep.mubr.bf16.mxu1 %v15813_v32  ;;  %4195 = vmatprep.mubr.bf16.mxu0 %v15813_v32  ;;  %v4680_v13 = vrot.slane %v3991_v34, 1  ;;  %v3993_v35 = vpop.f32.mrb[159].mxu0  ;;  %v3287_v17 = vpop.permute.xlu1 %3286  ;;  %v15890_v16 = vadd.f32 %v4677_v25, %v3629_v37 }
 0x3b3   : > { %v4679_v6 = vsel %vm1851_vm4, %v4675_v55, %v4678_v14  ;;  %v4682_v59 = vrot.slane %v3993_v35, 1  ;;  %v3412_v1 = vsel %vm451_vm1, %v15716_v51, %v3287_v17  ;;  %v3339_v45 = vpop.permute.xlu0 %3338 }
 0x3b4   : > { %v15895_v30 = vadd.f32 %v4679_v6, %v3631_v39  ;;  %v4681_v42 = vsel %vm1851_vm4, %v4676_v40, %v4680_v13  ;;  %v15904_v37 = vsel %vm860_vm2, %v3412_v1, %v3339_v45  ;;  %v12909_v39 = vld [vmem:[#allocation6 + $0x60] sm:$0xff]  }
 0x3b5   : > { %v15898_v43 = vadd.f32 %v4681_v42, %v3635_v47  ;;  %v4683_v53 = vsel %vm1851_vm4, %v4678_v14, %v4682_v59  ;;  %6977 = vmatpush1.bf16.msra.mxu0 %v12909_v39 }
 0x3b6   : > { %v15901_v34 = vadd.f32 %v4683_v53, %v3637_v22  ;;  %v3645_v25 = vpop.f32.mrb[156].mxu1  ;;  %v3289_v55 = vpop.permute.xlu1 %3288  ;;  %6978 = vmatprep.subr.bf16.mxu0 %v15813_v32 }
 0x3b7   : > { %v3997_v35 = vpop.f32.mrb[160].mxu0  ;;  %v3647_v17 = vpop.f32.mrb[157].mxu1  ;;  %v3415_v53 = vsel %vm451_vm1, %v15731_v24, %v3289_v55 }
 0x3b8   : > { %v4684_v6 = vrot.slane %v3997_v35, 1  ;;  %v3999_v51 = vpop.f32.mrb[161].mxu0  ;;  %v3649_v45 = vpop.f32.mrb[158].mxu1 }
 0x3b9   : > { %11472 = vmatmul.mubr.msk.bf16.gmra.mrb[236].mxu1 %vm959_vm3, %v15904_v37  ;;  %11521 = vmatmul.mubr.msk.bf16.gmra.mrb[240].mxu0 %vm959_vm3, %v15904_v37  ;;  %v4686_v47 = vrot.slane %v3999_v51, 1  ;;  %v4001_v22 = vpop.f32.mrb[162].mxu0  ;;  %v3651_v1 = vpop.f32.mrb[159].mxu1 }
 0x3ba   : > { %3853 = vmatprep.mubr.bf16.mxu1 %v15813_v32  ;;  %4205 = vmatprep.mubr.bf16.mxu0 %v15813_v32  ;;  %v4685_v40 = vsel %vm1851_vm4, %v4680_v13, %v4684_v6  ;;  %v4688_v14 = vrot.slane %v4001_v22, 1  ;;  %v4003_v42 = vpop.f32.mrb[163].mxu0  ;;  %v3341_v4 = vpop.permute.xlu0 %3340 }
 0x3bb   : > { %v15915_v35 = vadd.f32 %v4685_v40, %v3639_v57  ;;  %v4687_v23 = vsel %vm1851_vm4, %v4682_v59, %v4686_v47  ;;  %v4690_v48 = vrot.slane %v4003_v42, 1  ;;  %v15926_v39 = vsel %vm860_vm2, %v3415_v53, %v3341_v4  ;;  %v3291_v57 = vpop.permute.xlu1 %3290 }
 0x3bc   : > { %v15919_v51 = vadd.f32 %v4687_v23, %v3641_v56  ;;  %v4689_v15 = vsel %vm1851_vm4, %v4684_v6, %v4688_v14  ;;  %v3418_v53 = vsel %vm451_vm1, %v15749_v36, %v3291_v57 }
 0x3bd   : > { %v15922_v13 = vadd.f32 %v4689_v15, %v3645_v25  ;;  %v4691_v22 = vsel %vm1851_vm4, %v4686_v47, %v4690_v48 }
 0x3be   : > { %v15928_v24 = vadd.f32 %v4691_v22, %v3647_v17  ;;  %v3655_v55 = vpop.f32.mrb[160].mxu1  ;;  %v4007_v40 = vpop.f32.mrb[164].mxu0 }
 0x3bf   : > { %v3657_v59 = vpop.f32.mrb[161].mxu1  ;;  %v4692_v23 = vrot.slane %v4007_v40, 1  ;;  %v4009_v15 = vpop.f32.mrb[165].mxu0 }
 0x3c0   : > { %v3659_v56 = vpop.f32.mrb[162].mxu1  ;;  %v4694_v4 = vrot.slane %v4009_v15, 1  ;;  %v4011_v25 = vpop.f32.mrb[166].mxu0 }
 0x3c1   : > { %11473 = vmatmul.mubr.msk.bf16.gmra.mrb[240].mxu1 %vm959_vm3, %v15926_v39  ;;  %11522 = vmatmul.mubr.msk.bf16.gmra.mrb[244].mxu0 %vm959_vm3, %v15926_v39  ;;  %v3661_v6 = vpop.f32.mrb[163].mxu1  ;;  %v4693_v17 = vsel %vm1851_vm4, %v4688_v14, %v4692_v23  ;;  %v4696_v47 = vrot.slane %v4011_v25, 1  ;;  %v4013_v42 = vpop.f32.mrb[167].mxu0 }
 0x3c2   : > { %3863 = vmatprep.mubr.bf16.mxu1 %v15813_v32  ;;  %4215 = vmatprep.mubr.bf16.mxu0 %v15813_v32  ;;  %v3343_v22 = vpop.permute.xlu0 %3342  ;;  %v15939_v0 = vadd.f32 %v4693_v17, %v3649_v45  ;;  %v4695_v40 = vsel %vm1851_vm4, %v4690_v48, %v4694_v4  ;;  %v4698_v62 = vrot.slane %v4013_v42, 1  ;;  %v12910_v42 = vld [vmem:[#allocation6 + $0x68] sm:$0xff]  }
 0x3c3   : > { %v15942_v3 = vadd.f32 %v4695_v40, %v3651_v1  ;;  %v4697_v52 = vsel %vm1851_vm4, %v4692_v23, %v4696_v47  ;;  %v15949_v14 = vsel %vm860_vm2, %v3418_v53, %v3343_v22  ;;  %6979 = vmatpush1.bf16.msra.mxu0 %v12910_v42 }
 0x3c4   : > { %v15945_v15 = vadd.f32 %v4697_v52, %v3655_v55  ;;  %v4699_v58 = vsel %vm1851_vm4, %v4694_v4, %v4698_v62  ;;  %6980 = vmatprep.subr.bf16.mxu0 %v15813_v32 }
 0x3c5   : > { %v15951_v25 = vadd.f32 %v4699_v58, %v3657_v59 }
 0x3c6   : > { %v3665_v36 = vpop.f32.mrb[164].mxu1  ;;  %v4017_v57 = vpop.f32.mrb[168].mxu0 }
 0x3c7   : > { %v3667_v45 = vpop.f32.mrb[165].mxu1  ;;  %v4700_v48 = vrot.slane %v4017_v57, 1  ;;  %v4019_v1 = vpop.f32.mrb[169].mxu0 }
 0x3c8   : > { %v3669_v52 = vpop.f32.mrb[166].mxu1  ;;  %v4702_v55 = vrot.slane %v4019_v1, 1  ;;  %v4021_v23 = vpop.f32.mrb[170].mxu0 }
 0x3c9   : > { %11474 = vmatmul.mubr.msk.bf16.gmra.mrb[244].mxu1 %vm959_vm3, %v15949_v14  ;;  %11523 = vmatmul.mubr.msk.bf16.gmra.mrb[248].mxu0 %vm959_vm3, %v15949_v14  ;;  %v3671_v4 = vpop.f32.mrb[167].mxu1  ;;  %v4701_v58 = vsel %vm1851_vm4, %v4696_v47, %v4700_v48  ;;  %v4704_v59 = vrot.slane %v4021_v23, 1  ;;  %v4023_v17 = vpop.f32.mrb[171].mxu0 }
 0x3ca   : > { %4329 = vmatprep.mubr.bf16.mxu1 %v15813_v32  ;;  %v15959_v53 = vadd.f32 %v4701_v58, %v3659_v56  ;;  %v4703_v22 = vsel %vm1851_vm4, %v4698_v62, %v4702_v55  ;;  %v4706_v40 = vrot.slane %v4023_v17, 1 }
 0x3cb   : > { %v15962_v18 = vadd.f32 %v4703_v22, %v3661_v6  ;;  %v4705_v57 = vsel %vm1851_vm4, %v4700_v48, %v4704_v59 }
 0x3cc   : > { %v15965_v28 = vadd.f32 %v4705_v57, %v3665_v36  ;;  %v4707_v1 = vsel %vm1851_vm4, %v4702_v55, %v4706_v40 }
 0x3cd   : > { %20579 = vst [vmem:[#allocation60_spill] sm:$0xff] %v15962_v18  ;;  %v15969_v47 = vadd.f32 %v4707_v1, %v3667_v45 }
 0x3ce   : > { %20580 = vst [vmem:[#allocation61_spill] sm:$0xff] %v15965_v28  ;;  %v3675_v23 = vpop.f32.mrb[168].mxu1  ;;  %v4027_v29 = vpop.f32.mrb[172].mxu0 }
 0x3cf   : > { %20581 = vst [vmem:[#allocation62_spill] sm:$0xff] %v15969_v47  ;;  %v3677_v56 = vpop.f32.mrb[169].mxu1  ;;  %v4708_v62 = vrot.slane %v4027_v29, 1  ;;  %v4029_v6 = vpop.f32.mrb[173].mxu0 }
 0x3d0   : > { %v3679_v58 = vpop.f32.mrb[170].mxu1  ;;  %v4710_v48 = vrot.slane %v4029_v6, 1  ;;  %v4031_v36 = vpop.f32.mrb[174].mxu0 }
 0x3d1   : > { %11548 = vmatmul.mubr.msk.bf16.vlgmr.msra.gmra.mrb[248].mxu1 %vm959_vm3, %v15276_v44  ;;  %v3681_v17 = vpop.f32.mrb[171].mxu1  ;;  %v4709_v55 = vsel %vm1851_vm4, %v4704_v59, %v4708_v62  ;;  %v4712_v42 = vrot.slane %v4031_v36, 1  ;;  %v4033_v22 = vpop.f32.mrb[175].mxu0 }
 0x3d2   : > { %4337 = vmatprep.mubr.bf16.mxu1 %v15813_v32  ;;  %v15975_v45 = vadd.f32 %v4709_v55, %v3669_v52  ;;  %v4711_v57 = vsel %vm1851_vm4, %v4706_v40, %v4710_v48  ;;  %v4714_v1 = vrot.slane %v4033_v22, 1 }
 0x3d3   : > { %v15978_v47 = vadd.f32 %v4711_v57, %v3671_v4  ;;  %v4713_v29 = vsel %vm1851_vm4, %v4708_v62, %v4712_v42 }
 0x3d4   : > { %v15981_v44 = vadd.f32 %v4713_v29, %v3675_v23  ;;  %v4715_v28 = vsel %vm1851_vm4, %v4710_v48, %v4714_v1 }
 0x3d5   : > { %20582 = vst [vmem:[#allocation63_spill] sm:$0xff] %v15978_v47  ;;  %v15984_v6 = vadd.f32 %v4715_v28, %v3677_v56 }
 0x3d6   : > { %20583 = vst [vmem:[#allocation64_spill] sm:$0xff] %v15981_v44  ;;  %v3685_v50 = vpop.f32.mrb[172].mxu1  ;;  %v4037_v18 = vpop.f32.mrb[176].mxu0 }
 0x3d7   : > { %20584 = vst [vmem:[#allocation65_spill] sm:$0xff] %v15984_v6  ;;  %v3687_v59 = vpop.f32.mrb[173].mxu1  ;;  %v4716_v52 = vrot.slane %v4037_v18, 1  ;;  %v4039_v36 = vpop.f32.mrb[177].mxu0 }
 0x3d8   : > { %v3689_v40 = vpop.f32.mrb[174].mxu1  ;;  %v4718_v4 = vrot.slane %v4039_v36, 1  ;;  %v4041_v55 = vpop.f32.mrb[178].mxu0 }
 0x3d9   : > { %11549 = vmatmul.mubr.msk.bf16.gmra.mrb[252].mxu1 %vm959_vm3, %v15358_v21  ;;  %v3691_v62 = vpop.f32.mrb[175].mxu1  ;;  %v4717_v23 = vsel %vm1851_vm4, %v4712_v42, %v4716_v52  ;;  %v4720_v22 = vrot.slane %v4041_v55, 1  ;;  %v4043_v48 = vpop.f32.mrb[179].mxu0 }
 0x3da   : > { %4347 = vmatprep.mubr.bf16.mxu1 %v15813_v32  ;;  %v15990_v28 = vadd.f32 %v4717_v23, %v3679_v58  ;;  %v4719_v56 = vsel %vm1851_vm4, %v4714_v1, %v4718_v4  ;;  %v4722_v57 = vrot.slane %v4043_v48, 1 }
 0x3db   : > { %v15993_v29 = vadd.f32 %v4719_v56, %v3681_v17  ;;  %v4721_v18 = vsel %vm1851_vm4, %v4716_v52, %v4720_v22  ;;  %v12911_v17 = vld [vmem:[#allocation6 + $0x70] sm:$0xff]  }
 0x3dc   : > { %v15996_v21 = vadd.f32 %v4721_v18, %v3685_v50  ;;  %v4723_v6 = vsel %vm1851_vm4, %v4718_v4, %v4722_v57  ;;  %6981 = vmatpush1.bf16.msra.mxu0 %v12911_v17 }
 0x3dd   : > { %v15999_v36 = vadd.f32 %v4723_v6, %v3687_v59  ;;  %6982 = vmatprep.subr.bf16.mxu0 %v15813_v32 }
 0x3de   : > { %20585 = vst [vmem:[#allocation66_spill] sm:$0xff] %v15996_v21  ;;  %v3695_v44 = vpop.f32.mrb[176].mxu1  ;;  %v4047_v47 = vpop.f32.mrb[180].mxu0 }
 0x3df   : > { %20586 = vst [vmem:[#allocation67_spill] sm:$0xff] %v15999_v36  ;;  %v3697_v42 = vpop.f32.mrb[177].mxu1  ;;  %v4724_v58 = vrot.slane %v4047_v47, 1  ;;  %v4049_v55 = vpop.f32.mrb[181].mxu0 }
 0x3e0   : > { %v3699_v1 = vpop.f32.mrb[178].mxu1  ;;  %v4726_v23 = vrot.slane %v4049_v55, 1  ;;  %v4051_v52 = vpop.f32.mrb[182].mxu0 }
 0x3e1   : > { %11550 = vmatmul.mubr.msk.bf16.gmra.mrb[0].mxu1 %vm959_vm3, %v15394_v11  ;;  %v3701_v50 = vpop.f32.mrb[179].mxu1  ;;  %v4725_v48 = vsel %vm1851_vm4, %v4720_v22, %v4724_v58  ;;  %v4728_v4 = vrot.slane %v4051_v52, 1  ;;  %v4053_v6 = vpop.f32.mrb[183].mxu0 }
 0x3e2   : > { %4357 = vmatprep.mubr.bf16.mxu1 %v15813_v32  ;;  %v16005_v59 = vadd.f32 %v4725_v48, %v3689_v40  ;;  %v4727_v56 = vsel %vm1851_vm4, %v4722_v57, %v4726_v23  ;;  %v4730_v18 = vrot.slane %v4053_v6, 1 }
 0x3e3   : > { %v16009_v11 = vadd.f32 %v4727_v56, %v3691_v62  ;;  %v4729_v47 = vsel %vm1851_vm4, %v4724_v58, %v4728_v4 }
 0x3e4   : > { %20587 = vst [vmem:[#allocation68_spill] sm:$0xff] %v16005_v59  ;;  %v16012_v36 = vadd.f32 %v4729_v47, %v3695_v44  ;;  %v4731_v55 = vsel %vm1851_vm4, %v4726_v23, %v4730_v18 }
 0x3e5   : > { %20588 = vst [vmem:[#allocation69_spill] sm:$0xff] %v16009_v11  ;;  %v16015_v21 = vadd.f32 %v4731_v55, %v3697_v42 }
 0x3e6   : > { %20589 = vst [vmem:[#allocation70_spill] sm:$0xff] %v16012_v36 }
 0x3e7   : > { %20590 = vst [vmem:[#allocation71_spill] sm:$0xff] %v16015_v21 }
 0x3e8   : > { %v3705_v22 = vpop.f32.mrb[180].mxu1  ;;  %v4057_v52 = vpop.f32.mrb[184].mxu0 }
 0x3e9   : > { %v3707_v17 = vpop.f32.mrb[181].mxu1  ;;  %11551 = vmatmul.mubr.msk.bf16.gmra.mrb[4].mxu1 %vm959_vm3, %v15432_v49  ;;  %v4732_v40 = vrot.slane %v4057_v52, 1  ;;  %v4059_v57 = vpop.f32.mrb[185].mxu0 }
 0x3ea   : > { %v3709_v48 = vpop.f32.mrb[182].mxu1  ;;  %4367 = vmatprep.mubr.bf16.mxu1 %v15813_v32  ;;  %v4734_v62 = vrot.slane %v4059_v57, 1  ;;  %v4061_v6 = vpop.f32.mrb[186].mxu0 }
 0x3eb   : > { %v3711_v58 = vpop.f32.mrb[183].mxu1  ;;  %v4733_v44 = vsel %vm1851_vm4, %v4728_v4, %v4732_v40  ;;  %v4736_v56 = vrot.slane %v4061_v6, 1  ;;  %v4063_v23 = vpop.f32.mrb[187].mxu0 }
 0x3ec   : > { %v16021_v42 = vadd.f32 %v4733_v44, %v3699_v1  ;;  %v4735_v47 = vsel %vm1851_vm4, %v4730_v18, %v4734_v62  ;;  %v4738_v55 = vrot.slane %v4063_v23, 1 }
 0x3ed   : > { %v16024_v21 = vadd.f32 %v4735_v47, %v3701_v50  ;;  %v4737_v49 = vsel %vm1851_vm4, %v4732_v40, %v4736_v56 }
 0x3ee   : > { %v16027_v52 = vadd.f32 %v4737_v49, %v3705_v22  ;;  %v4739_v36 = vsel %vm1851_vm4, %v4734_v62, %v4738_v55  ;;  %v12912_v49 = vld [vmem:[#allocation6 + $0x78] sm:$0xff]  }
 0x3ef   : > { %v16030_v57 = vadd.f32 %v4739_v36, %v3707_v17  ;;  %6983 = vmatpush1.bf16.msra.mxu0 %v12912_v49 }
 0x3f0   : > { %20591 = vst [vmem:[#allocation72_spill] sm:$0xff] %v16027_v52  ;;  %v3715_v11 = vpop.f32.mrb[184].mxu1  ;;  %v4067_v59 = vpop.f32.mrb[188].mxu0  ;;  %6984 = vmatprep.subr.bf16.mxu0 %v15813_v32 }
 0x3f1   : > { %20592 = vst [vmem:[#allocation73_spill] sm:$0xff] %v16030_v57  ;;  %v3717_v4 = vpop.f32.mrb[185].mxu1  ;;  %11552 = vmatmul.mubr.msk.bf16.gmra.mrb[8].mxu1 %vm959_vm3, %v15478_v54  ;;  %v4740_v1 = vrot.slane %v4067_v59, 1  ;;  %v4069_v6 = vpop.f32.mrb[189].mxu0 }
 0x3f2   : > { %v3719_v18 = vpop.f32.mrb[186].mxu1  ;;  %4377 = vmatprep.mubr.bf16.mxu1 %v15813_v32  ;;  %v4742_v50 = vrot.slane %v4069_v6, 1  ;;  %v4071_v44 = vpop.f32.mrb[190].mxu0 }
 0x3f3   : > { %v3721_v40 = vpop.f32.mrb[187].mxu1  ;;  %v4741_v22 = vsel %vm1851_vm4, %v4736_v56, %v4740_v1  ;;  %v4744_v23 = vrot.slane %v4071_v44, 1  ;;  %v4073_v62 = vpop.f32.mrb[191].mxu0 }
 0x3f4   : > { %v16036_v36 = vadd.f32 %v4741_v22, %v3709_v48  ;;  %v4743_v17 = vsel %vm1851_vm4, %v4738_v55, %v4742_v50  ;;  %v4746_v47 = vrot.slane %v4073_v62, 1 }
 0x3f5   : > { %v16039_v57 = vadd.f32 %v4743_v17, %v3711_v58  ;;  %v4745_v54 = vsel %vm1851_vm4, %v4740_v1, %v4744_v23 }
 0x3f6   : > { %v16042_v59 = vadd.f32 %v4745_v54, %v3715_v11  ;;  %v4747_v6 = vsel %vm1851_vm4, %v4742_v50, %v4746_v47 }
 0x3f7   : > { %v16045_v52 = vadd.f32 %v4747_v6, %v3717_v4 }
 0x3f8   : > { %20593 = vst [vmem:[#allocation74_spill] sm:$0xff] %v16042_v59  ;;  %v3725_v56 = vpop.f32.mrb[188].mxu1  ;;  %v4077_v48 = vpop.f32.mrb[192].mxu0 }
 0x3f9   : > { %20594 = vst [vmem:[#allocation75_spill] sm:$0xff] %v16045_v52  ;;  %v3727_v44 = vpop.f32.mrb[189].mxu1  ;;  %11553 = vmatmul.mubr.msk.bf16.gmra.mrb[12].mxu1 %vm959_vm3, %v15519_v19  ;;  %v4748_v55 = vrot.slane %v4077_v48, 1  ;;  %v4079_v58 = vpop.f32.mrb[193].mxu0 }
 0x3fa   : > { %v16050_v22 = vpop.f32.mrb[190].mxu1  ;;  %4387 = vmatprep.mubr.bf16.mxu1 %v15813_v32  ;;  %v4750_v11 = vrot.slane %v4079_v58, 1  ;;  %v4081_v1 = vpop.f32.mrb[194].mxu0 }
 0x3fb   : > { %v16053_v50 = vpop.f32.mrb[191].mxu1  ;;  %v4749_v4 = vsel %vm1851_vm4, %v4744_v23, %v4748_v55  ;;  %v4752_v62 = vrot.slane %v4081_v1, 1  ;;  %v4083_v17 = vpop.f32.mrb[195].mxu0 }
 0x3fc   : > { %v16056_v49 = vadd.f32 %v4749_v4, %v3719_v18  ;;  %v4751_v54 = vsel %vm1851_vm4, %v4746_v47, %v4750_v11  ;;  %v4754_v6 = vrot.slane %v4083_v17, 1  ;;  %v12913_v18 = vld [vmem:[#allocation6 + $0x80] sm:$0xff]  }
 0x3fd   : > { %v16059_v19 = vadd.f32 %v4751_v54, %v3721_v40  ;;  %v4753_v48 = vsel %vm1851_vm4, %v4748_v55, %v4752_v62  ;;  %6985 = vmatpush1.bf16.msra.mxu0 %v12913_v18  ;;  %v12915_v40 = vld [vmem:[#allocation6] sm:$0xff]   ;;  %v12921_v18 = vld [vmem:[#allocation6 + $0x28] sm:$0xff]  }
 0x3fe   : > { %v16062_v52 = vadd.f32 %v4753_v48, %v3725_v56  ;;  %v4755_v58 = vsel %vm1851_vm4, %v4750_v11, %v4754_v6  ;;  %6986 = vmatprep.subr.bf16.mxu0 %v15813_v32  ;;  %7340 = vmatpush1.bf16.msra.mxu1 %v12915_v40  ;;  %v12919_v47 = vld [vmem:[#allocation6 + $0x20] sm:$0xff]  }
 0x3ff   : > { %v16065_v59 = vadd.f32 %v4755_v58, %v3727_v44  ;;  %7341 = vmatprep.subr.bf16.mxu1 %v15813_v32 }
 0x401   : > { %11554 = vmatmul.mubr.msk.bf16.gmra.mrb[16].mxu1 %vm959_vm3, %v15555_v27  ;;  %v12914_v27 = vld [vmem:[#allocation6 + $0x88] sm:$0xff]  }
 0x402   : > { %4397 = vmatprep.mubr.bf16.mxu1 %v15813_v32  ;;  %6987 = vmatpush1.bf16.msra.mxu0 %v12914_v27 }
 0x403   : > { %6988 = vmatprep.subr.bf16.mxu0 %v15813_v32 }
 0x409   : > { %11555 = vmatmul.mubr.msk.bf16.gmra.mrb[20].mxu1 %vm959_vm3, %v15591_v5  ;;  %v12916_v5 = vld [vmem:[#allocation6 + $0x8] sm:$0xff]  }
 0x40a   : > { %4407 = vmatprep.mubr.bf16.mxu1 %v15813_v32  ;;  %7342 = vmatpush1.bf16.msra.mxu1 %v12916_v5 }
 0x40b   : > { %7343 = vmatprep.subr.bf16.mxu1 %v15813_v32 }
 0x411   : > { %11556 = vmatmul.mubr.msk.bf16.gmra.mrb[24].mxu1 %vm959_vm3, %v15633_v9  ;;  %v12917_v9 = vld [vmem:[#allocation6 + $0x10] sm:$0xff]  }
 0x412   : > { %4417 = vmatprep.mubr.bf16.mxu1 %v15813_v32  ;;  %7344 = vmatpush1.bf16.msra.mxu1 %v12917_v9 }
 0x413   : > { %7345 = vmatprep.subr.bf16.mxu1 %v15813_v32 }
 0x419   : > { %11557 = vmatmul.mubr.msk.bf16.gmra.mrb[28].mxu1 %vm959_vm3, %v15665_v26  ;;  %v12918_v26 = vld [vmem:[#allocation6 + $0x18] sm:$0xff]  }
 0x41a   : > { %4427 = vmatprep.mubr.bf16.mxu1 %v15813_v32  ;;  %7346 = vmatpush1.bf16.msra.mxu1 %v12918_v26 }
 0x41b   : > { %7347 = vmatprep.subr.bf16.mxu1 %v15813_v32 }
 0x41e   : > { %7348 = vmatpush1.bf16.msra.mxu1 %v12919_v47 }
 0x41f   : > { %7349 = vmatprep.subr.bf16.mxu1 %v15813_v32 }
 0x421   : > { %11558 = vmatmul.mubr.msk.bf16.gmra.mrb[32].mxu1 %vm959_vm3, %v15701_v38 }
 0x422   : > { %4437 = vmatprep.mubr.bf16.mxu1 %v15813_v32  ;;  %7350 = vmatpush1.bf16.msra.mxu1 %v12921_v18 }
 0x423   : > { %7351 = vmatprep.subr.bf16.mxu1 %v15813_v32 }
 0x429   : > { %11559 = vmatmul.mubr.msk.bf16.gmra.mrb[36].mxu1 %vm959_vm3, %v15765_v63 }
 0x42a   : > { %4447 = vmatprep.mubr.bf16.mxu1 %v15813_v32 }
 0x42d   : > { %v3735_v23 = vpop.f32.mrb[192].mxu1  ;;  %v4087_v38 = vpop.f32.mrb[196].mxu0 }
 0x42e   : > { %v4756_v56 = vrot.slane %v4087_v38, 1  ;;  %v3737_v44 = vpop.f32.mrb[193].mxu1  ;;  %v4089_v55 = vpop.f32.mrb[197].mxu0  ;;  %v12922_v38 = vld [vmem:[#allocation6 + $0x30] sm:$0xff]  }
 0x42f   : > { %v4758_v11 = vrot.slane %v4089_v55, 1  ;;  %v3739_v1 = vpop.f32.mrb[194].mxu1  ;;  %v4091_v4 = vpop.f32.mrb[198].mxu0  ;;  %7352 = vmatpush1.bf16.msra.mxu1 %v12922_v38 }
 0x430   : > { %v4760_v63 = vrot.slane %v4091_v4, 1  ;;  %v3741_v17 = vpop.f32.mrb[195].mxu1  ;;  %v4093_v54 = vpop.f32.mrb[199].mxu0  ;;  %v4757_v48 = vsel %vm1851_vm4, %v4752_v62, %v4756_v56  ;;  %7353 = vmatprep.subr.bf16.mxu1 %v15813_v32 }
 0x431   : > { %11560 = vmatmul.mubr.msk.bf16.gmra.mrb[40].mxu1 %vm959_vm3, %v15775_v46  ;;  %v4762_v58 = vrot.slane %v4093_v54, 1  ;;  %v16097_v27 = vadd.f32 %v4757_v48, %v16050_v22  ;;  %v4759_v40 = vsel %vm1851_vm4, %v4754_v6, %v4758_v11 }
 0x432   : > { %4457 = vmatprep.mubr.bf16.mxu1 %v15813_v32  ;;  %v16101_v5 = vadd.f32 %v4759_v40, %v16053_v50  ;;  %v4761_v46 = vsel %vm1851_vm4, %v4756_v56, %v4760_v63  ;;  %v12923_v40 = vld [vmem:[#allocation6 + $0x38] sm:$0xff]  }
 0x433   : > { %v16104_v9 = vadd.f32 %v4761_v46, %v3735_v23  ;;  %v4763_v26 = vsel %vm1851_vm4, %v4758_v11, %v4762_v58  ;;  %7354 = vmatpush1.bf16.msra.mxu1 %v12923_v40 }
 0x434   : > { %v16107_v62 = vadd.f32 %v4763_v26, %v3737_v44  ;;  %7355 = vmatprep.subr.bf16.mxu1 %v15813_v32 }
 0x435   : > { %20595 = vst [vmem:[#allocation76_spill] sm:$0xff] %v16104_v9 }
 0x436   : > { %20596 = vst [vmem:[#allocation77_spill] sm:$0xff] %v16107_v62  ;;  %v3745_v47 = vpop.f32.mrb[196].mxu1  ;;  %v4097_v22 = vpop.f32.mrb[200].mxu0  ;;  %v12924_v62 = vld [vmem:[#allocation6 + $0x40] sm:$0xff]  }
 0x437   : > { %v4764_v55 = vrot.slane %v4097_v22, 1  ;;  %v3747_v4 = vpop.f32.mrb[197].mxu1  ;;  %v4099_v6 = vpop.f32.mrb[201].mxu0  ;;  %7356 = vmatpush1.bf16.msra.mxu1 %v12924_v62 }
 0x438   : > { %v4766_v50 = vrot.slane %v4099_v6, 1  ;;  %v3749_v56 = vpop.f32.mrb[198].mxu1  ;;  %v4101_v23 = vpop.f32.mrb[202].mxu0  ;;  %7357 = vmatprep.subr.bf16.mxu1 %v15813_v32 }
 0x439   : > { %11561 = vmatmul.mubr.msk.bf16.gmra.mrb[44].mxu1 %vm959_vm3, %v15785_v60  ;;  %v4768_v11 = vrot.slane %v4101_v23, 1  ;;  %v3751_v44 = vpop.f32.mrb[199].mxu1  ;;  %v4103_v54 = vpop.f32.mrb[203].mxu0  ;;  %v4765_v48 = vsel %vm1851_vm4, %v4760_v63, %v4764_v55 }
 0x43a   : > { %4467 = vmatprep.mubr.bf16.mxu1 %v15813_v32  ;;  %v4770_v18 = vrot.slane %v4103_v54, 1  ;;  %v16115_v46 = vadd.f32 %v4765_v48, %v3739_v1  ;;  %v4767_v26 = vsel %vm1851_vm4, %v4762_v58, %v4766_v50 }
 0x43b   : > { %v16118_v60 = vadd.f32 %v4767_v26, %v3741_v17  ;;  %v4769_v22 = vsel %vm1851_vm4, %v4764_v55, %v4768_v11  ;;  %v12920_v17 = vld [vmem:[#allocation6 + $0x90] sm:$0xff]  }
 0x43c   : > { %20597 = vst [vmem:[#allocation78_spill] sm:$0xff] %v16115_v46  ;;  %v16121_v6 = vadd.f32 %v4769_v22, %v3745_v47  ;;  %v4771_v38 = vsel %vm1851_vm4, %v4766_v50, %v4770_v18  ;;  %6989 = vmatpush1.bf16.msra.mxu0 %v12920_v17 }
 0x43d   : > { %20598 = vst [vmem:[#allocation79_spill] sm:$0xff] %v16118_v60  ;;  %v16125_v23 = vadd.f32 %v4771_v38, %v3747_v4  ;;  %6990 = vmatprep.subr.bf16.mxu0 %v15813_v32 }
 0x43e   : > { %20599 = vst [vmem:[#allocation80_spill] sm:$0xff] %v16121_v6  ;;  %v3755_v63 = vpop.f32.mrb[200].mxu1  ;;  %v4107_v54 = vpop.f32.mrb[204].mxu0 }
 0x43f   : > { %20600 = vst [vmem:[#allocation81_spill] sm:$0xff] %v16125_v23  ;;  %v4772_v1 = vrot.slane %v4107_v54, 1  ;;  %v3757_v48 = vpop.f32.mrb[201].mxu1  ;;  %v4109_v46 = vpop.f32.mrb[205].mxu0 }
 0x440   : > { %v4774_v58 = vrot.slane %v4109_v46, 1  ;;  %v3759_v55 = vpop.f32.mrb[202].mxu1  ;;  %v4111_v47 = vpop.f32.mrb[206].mxu0 }
 0x441   : > { %11562 = vmatmul.mubr.msk.bf16.gmra.mrb[48].mxu1 %vm959_vm3, %v15796_v31  ;;  %v4776_v50 = vrot.slane %v4111_v47, 1  ;;  %v3761_v40 = vpop.f32.mrb[203].mxu1  ;;  %v4113_v4 = vpop.f32.mrb[207].mxu0  ;;  %v4773_v26 = vsel %vm1851_vm4, %v4768_v11, %v4772_v1  ;;  %v12925_v11 = vld [vmem:[#allocation6 + $0x48] sm:$0xff]  }
 0x442   : > { %4477 = vmatprep.mubr.bf16.mxu1 %v15813_v32  ;;  %v4778_v22 = vrot.slane %v4113_v4, 1  ;;  %v16133_v38 = vadd.f32 %v4773_v26, %v3749_v56  ;;  %v4775_v31 = vsel %vm1851_vm4, %v4770_v18, %v4774_v58  ;;  %7358 = vmatpush1.bf16.msra.mxu1 %v12925_v11 }
 0x443   : > { %v16136_v46 = vadd.f32 %v4775_v31, %v3751_v44  ;;  %v4777_v54 = vsel %vm1851_vm4, %v4772_v1, %v4776_v50  ;;  %8042 = vmatprep.subr.bf16.mxu1 %v15813_v32 }
 0x444   : > { %v16139_v62 = vadd.f32 %v4777_v54, %v3755_v63  ;;  %v4779_v47 = vsel %vm1851_vm4, %v4774_v58, %v4778_v22 }
 0x445   : > { %20601 = vst [vmem:[#allocation82_spill] sm:$0xff] %v16136_v46  ;;  %v16142_v17 = vadd.f32 %v4779_v47, %v3757_v48 }
 0x446   : > { %20602 = vst [vmem:[#allocation83_spill] sm:$0xff] %v16139_v62  ;;  %v3765_v23 = vpop.f32.mrb[204].mxu1  ;;  %v4117_v6 = vpop.f32.mrb[208].mxu0 }
 0x447   : > { %20603 = vst [vmem:[#allocation84_spill] sm:$0xff] %v16142_v17  ;;  %v4780_v4 = vrot.slane %v4117_v6, 1  ;;  %v3767_v60 = vpop.f32.mrb[205].mxu1  ;;  %v4119_v9 = vpop.f32.mrb[209].mxu0 }
 0x448   : > { %v4782_v56 = vrot.slane %v4119_v9, 1  ;;  %v3769_v44 = vpop.f32.mrb[206].mxu1  ;;  %v4121_v18 = vpop.f32.mrb[210].mxu0 }
 0x449   : > { %11563 = vmatmul.mubr.msk.bf16.gmra.mrb[52].mxu1 %vm959_vm3, %v15807_v61  ;;  %v4784_v63 = vrot.slane %v4121_v18, 1  ;;  %v3771_v1 = vpop.f32.mrb[207].mxu1  ;;  %v4123_v58 = vpop.f32.mrb[211].mxu0  ;;  %v4781_v48 = vsel %vm1851_vm4, %v4776_v50, %v4780_v4 }
 0x44a   : > { %4487 = vmatprep.mubr.bf16.mxu1 %v15813_v32  ;;  %v4786_v26 = vrot.slane %v4123_v58, 1  ;;  %v16149_v6 = vadd.f32 %v4781_v48, %v3759_v55  ;;  %v4783_v31 = vsel %vm1851_vm4, %v4778_v22, %v4782_v56 }
 0x44b   : > { %v16152_v54 = vadd.f32 %v4783_v31, %v3761_v40  ;;  %v4785_v61 = vsel %vm1851_vm4, %v4780_v4, %v4784_v63 }
 0x44c   : > { %v16155_v9 = vadd.f32 %v4785_v61, %v3765_v23  ;;  %v4787_v47 = vsel %vm1851_vm4, %v4782_v56, %v4786_v26 }
 0x44d   : > { %20604 = vst [vmem:[#allocation85_spill] sm:$0xff] %v16152_v54  ;;  %v16158_v11 = vadd.f32 %v4787_v47, %v3767_v60 }
 0x44e   : > { %20605 = vst [vmem:[#allocation86_spill] sm:$0xff] %v16155_v9  ;;  %v3775_v18 = vpop.f32.mrb[208].mxu1  ;;  %v4127_v17 = vpop.f32.mrb[212].mxu0 }
 0x44f   : > { %20606 = vst [vmem:[#allocation87_spill] sm:$0xff] %v16158_v11  ;;  %v4788_v50 = vrot.slane %v4127_v17, 1  ;;  %v3777_v62 = vpop.f32.mrb[209].mxu1  ;;  %v4129_v46 = vpop.f32.mrb[213].mxu0 }
 0x450   : > { %v4790_v55 = vrot.slane %v4129_v46, 1  ;;  %v3779_v22 = vpop.f32.mrb[210].mxu1  ;;  %v4131_v40 = vpop.f32.mrb[214].mxu0 }
 0x451   : > { %11564 = vmatmul.mubr.msk.bf16.gmra.mrb[56].mxu1 %vm959_vm3, %v15820_v12  ;;  %v4792_v4 = vrot.slane %v4131_v40, 1  ;;  %v3781_v23 = vpop.f32.mrb[211].mxu1  ;;  %v4133_v58 = vpop.f32.mrb[215].mxu0  ;;  %v4789_v56 = vsel %vm1851_vm4, %v4784_v63, %v4788_v50 }
 0x452   : > { %4497 = vmatprep.mubr.bf16.mxu1 %v15813_v32  ;;  %v4794_v60 = vrot.slane %v4133_v58, 1  ;;  %v16164_v48 = vadd.f32 %v4789_v56, %v3769_v44  ;;  %v4791_v17 = vsel %vm1851_vm4, %v4786_v26, %v4790_v55  ;;  %v12926_v56 = vld [vmem:[#allocation6 + $0x98] sm:$0xff]  }
 0x453   : > { %v16167_v31 = vadd.f32 %v4791_v17, %v3771_v1  ;;  %v4793_v61 = vsel %vm1851_vm4, %v4788_v50, %v4792_v4  ;;  %6991 = vmatpush1.bf16.msra.mxu0 %v12926_v56 }
 0x454   : > { %v16170_v12 = vadd.f32 %v4793_v61, %v3775_v18  ;;  %v4795_v46 = vsel %vm1851_vm4, %v4790_v55, %v4794_v60  ;;  %7660 = vmatprep.subr.bf16.mxu0 %v15813_v32 }
 0x455   : > { %v16173_v47 = vadd.f32 %v4795_v46, %v3777_v62 }
 0x456   : > { %20607 = vst [vmem:[#allocation88_spill] sm:$0xff] %v16170_v12  ;;  %v12929_v12 = vld [vmem:[#allocation6 + $0xb0] sm:$0xff]  }
 0x457   : > { %20608 = vst [vmem:[#allocation89_spill] sm:$0xff] %v16173_v47  ;;  %v3785_v40 = vpop.f32.mrb[212].mxu1  ;;  %v4137_v11 = vpop.f32.mrb[216].mxu0 }
 0x458   : > { %v4796_v9 = vrot.slane %v4137_v11, 1  ;;  %v3787_v54 = vpop.f32.mrb[213].mxu1  ;;  %v4139_v63 = vpop.f32.mrb[217].mxu0 }
 0x459   : > { %11565 = vmatmul.mubr.msk.bf16.gmra.mrb[60].mxu1 %vm959_vm3, %v15831_v10  ;;  %v4798_v44 = vrot.slane %v4139_v63, 1  ;;  %v3789_v26 = vpop.f32.mrb[214].mxu1  ;;  %v4141_v1 = vpop.f32.mrb[218].mxu0 }
 0x45a   : > { %4507 = vmatprep.mubr.bf16.mxu1 %v15813_v32  ;;  %v4800_v50 = vrot.slane %v4141_v1, 1  ;;  %v3791_v18 = vpop.f32.mrb[215].mxu1  ;;  %v4143_v58 = vpop.f32.mrb[219].mxu0  ;;  %v4797_v62 = vsel %vm1851_vm4, %v4792_v4, %v4796_v9 }
 0x45b   : > { %v4802_v55 = vrot.slane %v4143_v58, 1  ;;  %v16179_v17 = vadd.f32 %v4797_v62, %v3779_v22  ;;  %v4799_v11 = vsel %vm1851_vm4, %v4794_v60, %v4798_v44 }
 0x45c   : > { %v16182_v61 = vadd.f32 %v4799_v11, %v3781_v23  ;;  %v4801_v10 = vsel %vm1851_vm4, %v4796_v9, %v4800_v50 }
 0x45d   : > { %20609 = vst [vmem:[#allocation90_spill] sm:$0xff] %v16179_v17  ;;  %v16186_v46 = vadd.f32 %v4801_v10, %v3785_v40  ;;  %v4803_v63 = vsel %vm1851_vm4, %v4798_v44, %v4802_v55 }
 0x45e   : > { %20610 = vst [vmem:[#allocation91_spill] sm:$0xff] %v16182_v61  ;;  %v16189_v1 = vadd.f32 %v4803_v63, %v3787_v54 }
 0x45f   : > { %20611 = vst [vmem:[#allocation92_spill] sm:$0xff] %v16186_v46  ;;  %v3795_v47 = vpop.f32.mrb[216].mxu1  ;;  %v4147_v4 = vpop.f32.mrb[220].mxu0 }
 0x460   : > { %20612 = vst [vmem:[#allocation93_spill] sm:$0xff] %v16189_v1  ;;  %v4804_v58 = vrot.slane %v4147_v4, 1  ;;  %v3797_v22 = vpop.f32.mrb[217].mxu1  ;;  %v4149_v62 = vpop.f32.mrb[221].mxu0 }
 0x461   : > { %11566 = vmatmul.mubr.msk.bf16.gmra.mrb[64].mxu1 %vm959_vm3, %v15843_v33  ;;  %v4806_v23 = vrot.slane %v4149_v62, 1  ;;  %v3799_v60 = vpop.f32.mrb[218].mxu1  ;;  %v4151_v56 = vpop.f32.mrb[222].mxu0 }
 0x462   : > { %4517 = vmatprep.mubr.bf16.mxu1 %v15813_v32  ;;  %v4808_v9 = vrot.slane %v4151_v56, 1  ;;  %v3801_v40 = vpop.f32.mrb[219].mxu1  ;;  %v4153_v11 = vpop.f32.mrb[223].mxu0  ;;  %v4805_v44 = vsel %vm1851_vm4, %v4800_v50, %v4804_v58 }
 0x463   : > { %v4810_v54 = vrot.slane %v4153_v11, 1  ;;  %v16195_v10 = vadd.f32 %v4805_v44, %v3789_v26  ;;  %v4807_v63 = vsel %vm1851_vm4, %v4802_v55, %v4806_v23  ;;  %v16208_v11 = vld [vmem:[#allocation3] sm:$0xff] }
 0x464   : > { %v16198_v4 = vadd.f32 %v4807_v63, %v3791_v18  ;;  %v4809_v1 = vsel %vm1851_vm4, %v4804_v58, %v4808_v9 }
 0x465   : > { %20613 = vst [vmem:[#allocation94_spill] sm:$0xff] %v16195_v10  ;;  %v16201_v33 = vadd.f32 %v4809_v1, %v3795_v47  ;;  %v4811_v62 = vsel %vm1851_vm4, %v4806_v23, %v4810_v54 }
 0x466   : > { %20614 = vst [vmem:[#allocation95_spill] sm:$0xff] %v16198_v4  ;;  %v16204_v46 = vadd.f32 %v4811_v62, %v3797_v22 }
 0x467   : > { %20615 = vst [vmem:[#allocation96_spill] sm:$0xff] %v16201_v33  ;;  %v3805_v32 = vpop.f32.mrb[220].mxu1  ;;  %v4157_v56 = vpop.f32.mrb[224].mxu0 }
 0x468   : > { %20616 = vst [vmem:[#allocation97_spill] sm:$0xff] %v16204_v46  ;;  %v4812_v61 = vrot.slane %v4157_v56, 1  ;;  %v3807_v17 = vpop.f32.mrb[221].mxu1  ;;  %v4159_v50 = vpop.f32.mrb[225].mxu0 }
 0x469   : > { %11567 = vmatmul.mubr.msk.bf16.gmra.mrb[68].mxu1 %vm959_vm3, %v15854_v2  ;;  %v4814_v26 = vrot.slane %v4159_v50, 1  ;;  %v3809_v55 = vpop.f32.mrb[222].mxu1  ;;  %v4161_v18 = vpop.f32.mrb[226].mxu0 }
 0x46a   : > { %4527 = vmatprep.mubr.bf16.mxu1 %v16208_v11  ;;  %v4816_v47 = vrot.slane %v4161_v18, 1  ;;  %v3811_v1 = vpop.f32.mrb[223].mxu1  ;;  %v4163_v58 = vpop.f32.mrb[227].mxu0  ;;  %v4813_v22 = vsel %vm1851_vm4, %v4808_v9, %v4812_v61 }
 0x46b   : > { %v4818_v23 = vrot.slane %v4163_v58, 1  ;;  %v16212_v44 = vadd.f32 %v4813_v22, %v3799_v60  ;;  %v4815_v63 = vsel %vm1851_vm4, %v4810_v54, %v4814_v26 }
 0x46c   : > { %v16215_v62 = vadd.f32 %v4815_v63, %v3801_v40  ;;  %v4817_v2 = vsel %vm1851_vm4, %v4812_v61, %v4816_v47 }
 0x46d   : > { %20617 = vst [vmem:[#allocation98_spill] sm:$0xff] %v16212_v44  ;;  %v16218_v56 = vadd.f32 %v4817_v2, %v3805_v32  ;;  %v4819_v50 = vsel %vm1851_vm4, %v4814_v26, %v4818_v23 }
 0x46e   : > { %20618 = vst [vmem:[#allocation99_spill] sm:$0xff] %v16215_v62  ;;  %v16221_v46 = vadd.f32 %v4819_v50, %v3807_v17 }
 0x46f   : > { %20619 = vst [vmem:[#allocation100_spill] sm:$0xff] %v16218_v56 }
 0x470   : > { %20620 = vst [vmem:[#allocation101_spill] sm:$0xff] %v16221_v46  ;;  %v3815_v18 = vpop.f32.mrb[224].mxu1  ;;  %v4167_v33 = vpop.f32.mrb[228].mxu0 }
 0x471   : > { %11568 = vmatmul.mubr.msk.bf16.gmra.mrb[72].mxu1 %vm959_vm3, %v15869_v8  ;;  %v4820_v9 = vrot.slane %v4167_v33, 1  ;;  %v3817_v60 = vpop.f32.mrb[225].mxu1  ;;  %v4169_v58 = vpop.f32.mrb[229].mxu0 }
 0x472   : > { %4537 = vmatprep.mubr.bf16.mxu1 %v16208_v11  ;;  %v4822_v40 = vrot.slane %v4169_v58, 1  ;;  %v3819_v54 = vpop.f32.mrb[226].mxu1  ;;  %v4171_v22 = vpop.f32.mrb[230].mxu0 }
 0x473   : > { %v4824_v61 = vrot.slane %v4171_v22, 1  ;;  %v3821_v32 = vpop.f32.mrb[227].mxu1  ;;  %v4173_v63 = vpop.f32.mrb[231].mxu0  ;;  %v4821_v26 = vsel %vm1851_vm4, %v4816_v47, %v4820_v9 }
 0x474   : > { %v4826_v17 = vrot.slane %v4173_v63, 1  ;;  %v16227_v2 = vadd.f32 %v4821_v26, %v3809_v55  ;;  %v4823_v50 = vsel %vm1851_vm4, %v4818_v23, %v4822_v40 }
 0x475   : > { %v16230_v46 = vadd.f32 %v4823_v50, %v3811_v1  ;;  %v4825_v8 = vsel %vm1851_vm4, %v4820_v9, %v4824_v61 }
 0x476   : > { %20621 = vst [vmem:[#allocation102_spill] sm:$0xff] %v16227_v2  ;;  %v16233_v33 = vadd.f32 %v4825_v8, %v3815_v18  ;;  %v4827_v58 = vsel %vm1851_vm4, %v4822_v40, %v4826_v17 }
 0x477   : > { %20622 = vst [vmem:[#allocation103_spill] sm:$0xff] %v16230_v46  ;;  %v16236_v56 = vadd.f32 %v4827_v58, %v3817_v60 }
 0x478   : > { %20623 = vst [vmem:[#allocation104_spill] sm:$0xff] %v16233_v33  ;;  %v3825_v22 = vpop.f32.mrb[228].mxu1  ;;  %v4177_v62 = vpop.f32.mrb[232].mxu0 }
 0x479   : > { %20624 = vst [vmem:[#allocation105_spill] sm:$0xff] %v16236_v56  ;;  %11569 = vmatmul.mubr.msk.bf16.gmra.mrb[76].mxu1 %vm959_vm3, %v15881_v20  ;;  %v4828_v47 = vrot.slane %v4177_v62, 1  ;;  %v3827_v55 = vpop.f32.mrb[229].mxu1  ;;  %v4179_v63 = vpop.f32.mrb[233].mxu0 }
 0x47a   : > { %4547 = vmatprep.mubr.bf16.mxu1 %v16208_v11  ;;  %v4830_v1 = vrot.slane %v4179_v63, 1  ;;  %v3829_v23 = vpop.f32.mrb[230].mxu1  ;;  %v4181_v26 = vpop.f32.mrb[234].mxu0 }
 0x47b   : > { %v4832_v9 = vrot.slane %v4181_v26, 1  ;;  %v3831_v18 = vpop.f32.mrb[231].mxu1  ;;  %v4183_v50 = vpop.f32.mrb[235].mxu0  ;;  %v4829_v40 = vsel %vm1851_vm4, %v4824_v61, %v4828_v47 }
 0x47c   : > { %v4834_v60 = vrot.slane %v4183_v50, 1  ;;  %v16242_v8 = vadd.f32 %v4829_v40, %v3819_v54  ;;  %v4831_v58 = vsel %vm1851_vm4, %v4826_v17, %v4830_v1 }
 0x47d   : > { %v16245_v56 = vadd.f32 %v4831_v58, %v3821_v32  ;;  %v4833_v20 = vsel %vm1851_vm4, %v4828_v47, %v4832_v9 }
 0x47e   : > { %20625 = vst [vmem:[#allocation106_spill] sm:$0xff] %v16242_v8  ;;  %v16248_v62 = vadd.f32 %v4833_v20, %v3825_v22  ;;  %v4835_v63 = vsel %vm1851_vm4, %v4830_v1, %v4834_v60 }
 0x47f   : > { %20626 = vst [vmem:[#allocation107_spill] sm:$0xff] %v16245_v56  ;;  %v16251_v33 = vadd.f32 %v4835_v63, %v3827_v55 }
 0x480   : > { %20627 = vst [vmem:[#allocation108_spill] sm:$0xff] %v16248_v62 }
 0x481   : > { %20628 = vst [vmem:[#allocation109_spill] sm:$0xff] %v16251_v33  ;;  %11570 = vmatmul.mubr.msk.bf16.gmra.mrb[80].mxu1 %vm959_vm3, %v15904_v37 }
 0x482   : > { %4557 = vmatprep.mubr.bf16.mxu1 %v16208_v11 }
 0x484   : > { %v3835_v61 = vpop.f32.mrb[232].mxu1  ;;  %v4187_v54 = vpop.f32.mrb[236].mxu0 }
 0x485   : > { %v4836_v26 = vrot.slane %v4187_v54, 1  ;;  %v3837_v50 = vpop.f32.mrb[233].mxu1  ;;  %v4189_v17 = vpop.f32.mrb[237].mxu0 }
 0x486   : > { %v4838_v32 = vrot.slane %v4189_v17, 1  ;;  %v3839_v40 = vpop.f32.mrb[234].mxu1  ;;  %v4191_v58 = vpop.f32.mrb[238].mxu0 }
 0x487   : > { %v4840_v47 = vrot.slane %v4191_v58, 1  ;;  %v3841_v22 = vpop.f32.mrb[235].mxu1  ;;  %v4193_v20 = vpop.f32.mrb[239].mxu0  ;;  %v4837_v1 = vsel %vm1851_vm4, %v4832_v9, %v4836_v26 }
 0x488   : > { %v4842_v55 = vrot.slane %v4193_v20, 1  ;;  %v16257_v63 = vadd.f32 %v4837_v1, %v3829_v23  ;;  %v4839_v37 = vsel %vm1851_vm4, %v4834_v60, %v4838_v32 }
 0x489   : > { %11571 = vmatmul.mubr.msk.bf16.gmra.mrb[84].mxu1 %vm959_vm3, %v15926_v39  ;;  %v16262_v33 = vadd.f32 %v4839_v37, %v3831_v18  ;;  %v4841_v54 = vsel %vm1851_vm4, %v4836_v26, %v4840_v47  ;;  %v6559_v26 = vld [vmem:[#allocation3 + $0x8] sm:$0xff] }
 0x48a   : > { %20629 = vst [vmem:[#allocation110_spill] sm:$0xff] %v16257_v63  ;;  %4567 = vmatprep.mubr.bf16.mxu1 %v16208_v11  ;;  %v16266_v17 = vadd.f32 %v4841_v54, %v3835_v61  ;;  %v4843_v58 = vsel %vm1851_vm4, %v4838_v32, %v4842_v55 }
 0x48b   : > { %20630 = vst [vmem:[#allocation111_spill] sm:$0xff] %v16262_v33  ;;  %v16269_v62 = vadd.f32 %v4843_v58, %v3837_v50 }
 0x48c   : > { %20631 = vst [vmem:[#allocation112_spill] sm:$0xff] %v16266_v17  ;;  %v3845_v9 = vpop.f32.mrb[236].mxu1  ;;  %v4197_v23 = vpop.f32.mrb[240].mxu0  ;;  %v20646_v17 = vld [vmem:[#allocation27_spill] sm:$0xff] }
 0x48d   : > { %20632 = vst [vmem:[#allocation113_spill] sm:$0xff] %v16269_v62  ;;  %v4844_v20 = vrot.slane %v4197_v23, 1  ;;  %v3847_v1 = vpop.f32.mrb[237].mxu1  ;;  %v4199_v60 = vpop.f32.mrb[241].mxu0 }
 0x48e   : > { %v4846_v63 = vrot.slane %v4199_v60, 1  ;;  %v3849_v56 = vpop.f32.mrb[238].mxu1  ;;  %v4201_v39 = vpop.f32.mrb[242].mxu0 }
 0x48f   : > { %v4848_v18 = vrot.slane %v4201_v39, 1  ;;  %v3851_v37 = vpop.f32.mrb[239].mxu1  ;;  %v4203_v33 = vpop.f32.mrb[243].mxu0  ;;  %v4845_v8 = vsel %vm1851_vm4, %v4840_v47, %v4844_v20 }
 0x490   : > { %v4850_v61 = vrot.slane %v4203_v33, 1  ;;  %v16272_v54 = vadd.f32 %v4845_v8, %v3839_v40  ;;  %v4847_v50 = vsel %vm1851_vm4, %v4842_v55, %v4846_v63 }
 0x491   : > { %11572 = vmatmul.mubr.msk.bf16.gmra.mrb[88].mxu1 %vm959_vm3, %v15949_v14  ;;  %v16277_v32 = vadd.f32 %v4847_v50, %v3841_v22  ;;  %v4849_v58 = vsel %vm1851_vm4, %v4844_v20, %v4848_v18  ;;  %v6561_v20 = vld [vmem:[#allocation3 + $0x18] sm:$0xff] }
 0x492   : > { %20633 = vst [vmem:[#allocation114_spill] sm:$0xff] %v16272_v54  ;;  %11618 = vmatprep.mubr.msk.bf16.mxu1 %vm451_vm1, %v6559_v26  ;;  %v16281_v23 = vadd.f32 %v4849_v58, %v3845_v9  ;;  %v4851_v60 = vsel %vm1851_vm4, %v4846_v63, %v4850_v61 }
 0x493   : > { %20634 = vst [vmem:[#allocation115_spill] sm:$0xff] %v16277_v32  ;;  %v16284_v39 = vadd.f32 %v4851_v60, %v3847_v1 }
 0x494   : > { %20635 = vst [vmem:[#allocation116_spill] sm:$0xff] %v16281_v23  ;;  %v3855_v33 = vpop.f32.mrb[240].mxu1  ;;  %v4207_v8 = vpop.f32.mrb[244].mxu0 }
 0x495   : > { %20636 = vst [vmem:[#allocation117_spill] sm:$0xff] %v16284_v39  ;;  %v4852_v40 = vrot.slane %v4207_v8, 1  ;;  %v3857_v47 = vpop.f32.mrb[241].mxu1  ;;  %v4209_v55 = vpop.f32.mrb[245].mxu0 }
 0x496   : > { %v4854_v54 = vrot.slane %v4209_v55, 1  ;;  %v3859_v62 = vpop.f32.mrb[242].mxu1  ;;  %v4211_v14 = vpop.f32.mrb[246].mxu0 }
 0x497   : > { %v4856_v22 = vrot.slane %v4211_v14, 1  ;;  %v3861_v50 = vpop.f32.mrb[243].mxu1  ;;  %v4213_v32 = vpop.f32.mrb[247].mxu0  ;;  %v4853_v26 = vsel %vm1851_vm4, %v4848_v18, %v4852_v40  ;;  %v5550_v14 = vlaneseq }
 0x498   : > { %v4858_v9 = vrot.slane %v4213_v32, 1  ;;  %v16287_v58 = vadd.f32 %v4853_v26, %v3849_v56  ;;  %v4855_v63 = vsel %vm1851_vm4, %v4850_v61, %v4854_v54 }
 0x499   : > { %7372 = vmatmul.mubr.bf16.vlgmr.msra.gmra.mrb[92].mxu1 %v16208_v11  ;;  %v16291_v1 = vadd.f32 %v4855_v63, %v3851_v37  ;;  %v4857_v60 = vsel %vm1851_vm4, %v4852_v40, %v4856_v22  ;;  %v5551_v40 = vshrl.u32 %v5550_v14, 7 }
 0x49a   : > { %20637 = vst [vmem:[#allocation118_spill] sm:$0xff] %v16287_v58  ;;  %11619 = vmatprep.mubr.msk.bf16.mxu1 %vm451_vm1, %v6561_v20  ;;  %v16295_v8 = vadd.f32 %v4857_v60, %v3855_v33  ;;  %v4859_v55 = vsel %vm1851_vm4, %v4854_v54, %v4858_v9 }
 0x49b   : > { %20638 = vst [vmem:[#allocation119_spill] sm:$0xff] %v16291_v1  ;;  %v16298_v39 = vadd.f32 %v4859_v55, %v3857_v47  ;;  %v5556_v14 = vsub.s32 1, %v5551_v40 }
 0x49c   : > { %20639 = vst [vmem:[#allocation120_spill] sm:$0xff] %v16295_v8  ;;  %v3865_v18 = vpop.f32.mrb[244].mxu1  ;;  %v4217_v56 = vpop.f32.mrb[248].mxu0 }
 0x49d   : > { %20640 = vst [vmem:[#allocation121_spill] sm:$0xff] %v16298_v39  ;;  %v4860_v32 = vrot.slane %v4217_v56, 1  ;;  %v3867_v26 = vpop.f32.mrb[245].mxu1  ;;  %v4219_v61 = vpop.f32.mrb[249].mxu0  ;;  %v5552_v56 = vsub.s32 0, %v5551_v40 }
 0x49e   : > { %v4862_v58 = vrot.slane %v4219_v61, 1  ;;  %v3869_v23 = vpop.f32.mrb[246].mxu1  ;;  %v4221_v37 = vpop.f32.mrb[250].mxu0 }
 0x49f   : > { %v3870_v63 = vpop.f32.mrb[247].mxu1  ;;  %v4222_v1 = vpop.f32.mrb[251].mxu0  ;;  %v4861_v20 = vsel %vm1851_vm4, %v4856_v22, %v4860_v32  ;;  %v16301_v33 = vadd.f32 %v4860_v32, %v3865_v18 }
 0x4a0   : > { %v16303_v60 = vadd.f32 %v4861_v20, %v3859_v62  ;;  %v4863_v54 = vsel %vm1851_vm4, %v4858_v9, %v4862_v58  ;;  %v16306_v47 = vadd.f32 %v4862_v58, %v3867_v26  ;;  %v5548_v1 = vld [vmem:[%s20233_s6] sm:$0x3] }
 0x4a1   : > { %20641 = vst [vmem:[#allocation122_spill] sm:$0xff] %v16301_v33  ;;  %7380 = vmatmul.mubr.bf16.gmra.mrb[96].mxu1 %v16208_v11  ;;  %v16309_v55 = vadd.f32 %v4863_v54, %v3861_v50  ;;  %v5658_v62 = vld [vmem:[%s20234_s7] sm:$0x3]  ;;  %v16317_v58 = vrot.slane %v5548_v1, %v5552_v56  ;;  %v16319_v50 = vrot.slane %v5548_v1, %v5556_v14 }
 0x4a2   : > { %20642 = vst [vmem:[#allocation123_spill] sm:$0xff] %v16303_v60  ;;  %20643 = vst [vmem:[#allocation124_spill] sm:$0xff] %v16306_v47  ;;  %v16322_v37 = vrot.slane %v5658_v62, %v5552_v56  ;;  %v16325_v40 = vrot.slane %v5658_v62, %v5556_v14  ;;  %v16338_v60 = vld [vmem:[#allocation3 + $0x10] sm:$0xf0] }
 0x4a3   : > { %20644 = vst [vmem:[#allocation125_spill] sm:$0xff] %v16309_v55 }
 0x4a4   : > { %v4331_v23 = vpop.f32.mrb[248].mxu1 }
 0x4a5   : > { %v4332_v22 = vpop.f32.mrb[249].mxu1 }
 0x4a6   : > { %v4333_v18 = vpop.f32.mrb[250].mxu1 }
 0x4a7   : > { %v5158_v9 = vrot.slane %v4333_v18, 2  ;;  %v4335_v32 = vpop.f32.mrb[251].mxu1 }
 0x4a8   : > { %v5159_v26 = vrot.slane %v4335_v32, 2 }
 0x4a9   : > { %v5450_v61 = vadd.f32 %v5158_v9, %v15862_v41 }
 0x4aa   : > { %v5451_v63 = vadd.f32 %v5159_v26, %v15864_v7 }
 0x4ab   : > { %v5560_v20 = vmul.f32 %v16317_v58, %v5450_v61 }
 0x4ac   : > { %v5561_v54 = vmul.f32 %v16319_v50, %v5451_v63  ;;  %v4339_v23 = vpop.f32.mrb[252].mxu1 }
 0x4ad   : > { %v5670_v22 = vadd.f32 %v16322_v37, %v5560_v20  ;;  %v5160_v18 = vrot.slane %v4339_v23, 2  ;;  %v4341_v47 = vpop.f32.mrb[253].mxu1  ;;  %v16336_v23 = vld [vmem:[#allocation3 + $0x18] sm:$0xf0] }
 0x4ae   : > { %v5671_v1 = vadd.f32 %v16325_v40, %v5561_v54  ;;  %v5162_v32 = vrot.slane %v4341_v47, 2  ;;  %v4343_v33 = vpop.f32.mrb[254].mxu1 }
 0x4af   : > { %v5161_v41 = vsel %vm2094_vm5, %v5158_v9, %v5160_v18  ;;  %v5164_v56 = vrot.slane %v4343_v33, 2  ;;  %v4345_v55 = vpop.f32.mrb[255].mxu1  ;;  %v5768_v61 = vmax.f32 %v5670_v22, 0.0 }
 0x4b0   : > { %v5452_v7 = vadd.f32 %v5161_v41, %v15890_v16  ;;  %v5163_v14 = vsel %vm2094_vm5, %v5159_v26, %v5162_v32  ;;  %v5166_v62 = vrot.slane %v4345_v55, 2  ;;  %v5769_v47 = vmax.f32 %v5671_v1, 0.0  ;;  %v20645_v1 = vld [vmem:[#allocation26_spill] sm:$0xff] }
 0x4b1   : > { %v5453_v63 = vadd.f32 %v5163_v14, %v15895_v30  ;;  %v5165_v20 = vsel %vm2094_vm5, %v5160_v18, %v5164_v56  ;;  %v5866_v14 = vmul.f32 %v5768_v61, %v20645_v1 }
 0x4b2   : > { %v5562_v54 = vmul.f32 %v16317_v58, %v5452_v7  ;;  %v5454_v33 = vadd.f32 %v5165_v20, %v15898_v43  ;;  %v5167_v9 = vsel %vm2094_vm5, %v5162_v32, %v5166_v62 }
 0x4b3   : > { %v5563_v16 = vmul.f32 %v16319_v50, %v5453_v63  ;;  %v5455_v55 = vadd.f32 %v5167_v9, %v15901_v34  ;;  %v5867_v63 = vmul.f32 %v5769_v47, %v20645_v1 }
 0x4b4   : > { %v5672_v26 = vadd.f32 %v16322_v37, %v5562_v54  ;;  %v5564_v30 = vmul.f32 %v16317_v58, %v5454_v33  ;;  %v4349_v22 = vpop.f32.mrb[0].mxu1 }
 0x4b5   : > { %v5673_v7 = vadd.f32 %v16325_v40, %v5563_v16  ;;  %v5565_v43 = vmul.f32 %v16319_v50, %v5455_v55  ;;  %v5168_v32 = vrot.slane %v4349_v22, 2  ;;  %v4351_v20 = vpop.f32.mrb[1].mxu1 }
 0x4b6   : > { %v5770_v34 = vmax.f32 %v5672_v26, 0.0  ;;  %v5674_v54 = vadd.f32 %v16322_v37, %v5564_v30  ;;  %v5170_v9 = vrot.slane %v4351_v20, 2  ;;  %v4353_v33 = vpop.f32.mrb[2].mxu1 }
 0x4b7   : > { %v5771_v39 = vmax.f32 %v5673_v7, 0.0  ;;  %v5675_v18 = vadd.f32 %v16325_v40, %v5565_v43  ;;  %v5169_v41 = vsel %vm2094_vm5, %v5164_v56, %v5168_v32  ;;  %v5172_v8 = vrot.slane %v4353_v33, 2  ;;  %v4355_v61 = vpop.f32.mrb[3].mxu1  ;;  %v20647_v43 = vld [vmem:[#allocation28_spill] sm:$0xff] }
 0x4b8   : > { %v5868_v16 = vmul.f32 %v5770_v34, %v20646_v17  ;;  %v5772_v46 = vmax.f32 %v5674_v54, 0.0  ;;  %v5456_v55 = vadd.f32 %v5169_v41, %v15915_v35  ;;  %v5171_v22 = vsel %vm2094_vm5, %v5166_v62, %v5170_v9 }
 0x4b9   : > { %v5869_v47 = vmul.f32 %v5771_v39, %v20646_v17  ;;  %v5773_v26 = vmax.f32 %v5675_v18, 0.0  ;;  %v5457_v30 = vadd.f32 %v5171_v22, %v15919_v51  ;;  %v5173_v1 = vsel %vm2094_vm5, %v5168_v32, %v5172_v8 }
 0x4ba   : > { %v5964_v7 = vpack.c.bf16 %v5868_v16, %v5866_v14  ;;  %v5870_v20 = vmul.f32 %v5772_v46, %v20647_v43  ;;  %v5566_v56 = vmul.f32 %v16317_v58, %v5456_v55  ;;  %v5458_v33 = vadd.f32 %v5173_v1, %v15922_v13 }
 0x4bb   : > { %v5965_v34 = vpack.c.bf16 %v5869_v47, %v5867_v63  ;;  %v5871_v54 = vmul.f32 %v5773_v26, %v20647_v43  ;;  %v5567_v35 = vmul.f32 %v16319_v50, %v5457_v30  ;;  %v5174_v62 = vrot.slane %v4355_v61, 2 }
 0x4bc   : > { %v6015_v41 = vshrl.u32 %v5964_v7, 16  ;;  %v6018_v17 = vshll.u32 %v5964_v7, 16  ;;  %v5676_v39 = vadd.f32 %v16322_v37, %v5566_v56  ;;  %v5568_v51 = vmul.f32 %v16317_v58, %v5458_v33  ;;  %v4359_v18 = vpop.f32.mrb[4].mxu1  ;;  %v20648_v33 = vld [vmem:[#allocation29_spill] sm:$0xff] }
 0x4bd   : > { %v6032_v14 = vshrl.u32 %v5965_v34, 16  ;;  %v6035_v32 = vshll.u32 %v5965_v34, 16  ;;  %v5677_v46 = vadd.f32 %v16325_v40, %v5567_v35  ;;  %v5175_v16 = vsel %vm2094_vm5, %v5170_v9, %v5174_v62  ;;  %v4361_v13 = vpop.f32.mrb[5].mxu1 }
 0x4be   : > { %v6017_v63 = vrot.slane %v6015_v41, 3  ;;  %v6020_v55 = vrot.slane %v6018_v17, 4  ;;  %v5774_v22 = vmax.f32 %v5676_v39, 0.0  ;;  %v5678_v47 = vadd.f32 %v16322_v37, %v5568_v51  ;;  %v4363_v61 = vpop.f32.mrb[6].mxu1  ;;  %v20649_v51 = vld [vmem:[#allocation30_spill] sm:$0xff] }
 0x4bf   : > { %v6034_v26 = vrot.slane %v6032_v14, 3  ;;  %v6037_v30 = vrot.slane %v6035_v32, 4  ;;  %v5775_v1 = vmax.f32 %v5677_v46, 0.0  ;;  %v5459_v7 = vadd.f32 %v5175_v16, %v15928_v24  ;;  %v4365_v43 = vpop.f32.mrb[7].mxu1 }
 0x4c0   : > { %v6021_v56 = vor.u32 %v6020_v55, %v6017_v63  ;;  %v5872_v34 = vmul.f32 %v5774_v22, %v20648_v33  ;;  %v5776_v2 = vmax.f32 %v5678_v47, 0.0  ;;  %v5176_v35 = vrot.slane %v4359_v18, 2 }
 0x4c1   : > { %v6038_v44 = vor.u32 %v6037_v30, %v6034_v26  ;;  %v5873_v9 = vmul.f32 %v5775_v1, %v20648_v33  ;;  %v5569_v41 = vmul.f32 %v16319_v50, %v5459_v7  ;;  %v5178_v17 = vrot.slane %v4361_v13, 2 }
 0x4c2   : > { %v5966_v39 = vpack.c.bf16 %v5872_v34, %v5870_v20  ;;  %v5874_v4 = vmul.f32 %v5776_v2, %v20649_v51  ;;  %v5177_v14 = vsel %vm2094_vm5, %v5172_v8, %v5176_v35  ;;  %v5180_v32 = vrot.slane %v4363_v61, 2 }
 0x4c3   : > { %v5967_v46 = vpack.c.bf16 %v5873_v9, %v5871_v54  ;;  %v5679_v24 = vadd.f32 %v16325_v40, %v5569_v41  ;;  %v5460_v16 = vadd.f32 %v5177_v14, %v15939_v0  ;;  %v5179_v63 = vsel %vm2094_vm5, %v5174_v62, %v5178_v17 }
 0x4c4   : > { %v6023_v18 = vshrl.u32 %v5966_v39, 16  ;;  %v6026_v55 = vshll.u32 %v5966_v39, 16  ;;  %v5461_v22 = vadd.f32 %v5179_v63, %v15942_v3  ;;  %v5181_v47 = vsel %vm2094_vm5, %v5176_v35, %v5180_v32  ;;  %v4369_v13 = vpop.f32.mrb[8].mxu1 }
 0x4c5   : > { %v6040_v20 = vshrl.u32 %v5967_v46, 16  ;;  %v6043_v26 = vshll.u32 %v5967_v46, 16  ;;  %v5777_v2 = vmax.f32 %v5679_v24, 0.0  ;;  %v5570_v8 = vmul.f32 %v16317_v58, %v5460_v16  ;;  %v16384_v61 = vpop.f32.mrb[9].mxu1 }
 0x4c6   : > { %v6025_v54 = vrot.slane %v6023_v18, 3  ;;  %v6028_v30 = vrot.slane %v6026_v55, 4  ;;  %v5571_v0 = vmul.f32 %v16319_v50, %v5461_v22  ;;  %v5462_v62 = vadd.f32 %v5181_v47, %v15945_v15  ;;  %v16388_v1 = vpop.f32.mrb[10].mxu1 }
 0x4c7   : > { %v6042_v7 = vrot.slane %v6040_v20, 3  ;;  %v6045_v3 = vrot.slane %v6043_v26, 4  ;;  %v5875_v33 = vmul.f32 %v5777_v2, %v20649_v51  ;;  %v5680_v34 = vadd.f32 %v16322_v37, %v5570_v8  ;;  %v16392_v35 = vpop.f32.mrb[11].mxu1 }
 0x4c8   : > { %v6029_v9 = vor.u32 %v6028_v30, %v6025_v54  ;;  %v5681_v41 = vadd.f32 %v16325_v40, %v5571_v0  ;;  %v5572_v39 = vmul.f32 %v16317_v58, %v5462_v62  ;;  %v5182_v14 = vrot.slane %v4365_v43, 2  ;;  %v20650_v43 = vld [vmem:[#allocation31_spill] sm:$0xff]  ;;  %v20651_v54 = vld [vmem:[#allocation60_spill] sm:$0xff] }
 0x4c9   : > { %v16396_v46 = vor.u32 %v6045_v3, %v6042_v7  ;;  %v5778_v24 = vmax.f32 %v5680_v34, 0.0  ;;  %v5184_v15 = vrot.slane %v4369_v13, 2  ;;  %v5186_v16 = vrot.slane %v16384_v61, 2  ;;  %v20652_v62 = vld [vmem:[#allocation32_spill] sm:$0xff] }
 0x4ca   : > { %v16400_v63 = vsel %vm2861_vm6, %v6021_v56, %v6029_v9  ;;  %v5779_v51 = vmax.f32 %v5681_v41, 0.0  ;;  %v5682_v18 = vadd.f32 %v16322_v37, %v5572_v39  ;;  %v5183_v55 = vsel %vm2094_vm5, %v5178_v17, %v5182_v14 }
 0x4cb   : > { %6510 = vst [vmem:[#allocation3 + $0x20] sm:$0xff] %v16400_v63  ;;  %v6047_v22 = vsel %vm2861_vm6, %v6038_v44, %v16396_v46  ;;  %v5876_v47 = vmul.f32 %v5778_v24, %v20650_v43  ;;  %v5463_v20 = vadd.f32 %v5183_v55, %v15951_v25  ;;  %v5185_v13 = vsel %vm2094_vm5, %v5180_v32, %v5184_v15 }
 0x4cc   : > { %6511 = vst.msk [vmem:[#allocation3 + $0x28] sm:$0xff] %vm451_vm1, %v6047_v22  ;;  %v5877_v56 = vmul.f32 %v5779_v51, %v20650_v43  ;;  %v5780_v26 = vmax.f32 %v5682_v18, 0.0  ;;  %v5464_v2 = vadd.f32 %v5185_v13, %v15959_v53  ;;  %v5187_v17 = vsel %vm2094_vm5, %v5182_v14, %v5186_v16  ;;  %v16414_v8 = vpop.f32.mrb[12].mxu1 }
 0x4cd   : > { %v5968_v61 = vpack.c.bf16 %v5876_v47, %v5874_v4  ;;  %v5573_v44 = vmul.f32 %v16319_v50, %v5463_v20  ;;  %v5465_v30 = vadd.f32 %v5187_v17, %v20651_v54  ;;  %v5188_v25 = vrot.slane %v16388_v1, 2  ;;  %v16419_v0 = vpop.f32.mrb[13].mxu1 }
 0x4ce   : > { %v5969_v32 = vpack.c.bf16 %v5877_v56, %v5875_v33  ;;  %v5878_v7 = vmul.f32 %v5780_v26, %v20652_v62  ;;  %v5574_v3 = vmul.f32 %v16317_v58, %v5464_v2  ;;  %v5190_v53 = vrot.slane %v16392_v35, 2  ;;  %v16424_v34 = vpop.f32.mrb[14].mxu1  ;;  %v20653_v56 = vld [vmem:[#allocation61_spill] sm:$0xff] }
 0x4cf   : > { %v6049_v41 = vshrl.u32 %v5968_v61, 16  ;;  %v6052_v39 = vshll.u32 %v5968_v61, 16  ;;  %v5683_v4 = vadd.f32 %v16325_v40, %v5573_v44  ;;  %v5575_v14 = vmul.f32 %v16319_v50, %v5465_v30  ;;  %v16428_v24 = vpop.f32.mrb[15].mxu1 }
 0x4d0   : > { %v6058_v1 = vshrl.u32 %v5969_v32, 16  ;;  %v6061_v51 = vshll.u32 %v5969_v32, 16  ;;  %v5684_v33 = vadd.f32 %v16322_v37, %v5574_v3  ;;  %v5189_v18 = vsel %vm2094_vm5, %v5184_v15, %v5188_v25  ;;  %v20654_v15 = vld [vmem:[#allocation33_spill] sm:$0xff] }
 0x4d1   : > { %v6051_v55 = vrot.slane %v6049_v41, 3  ;;  %v6054_v22 = vrot.slane %v6052_v39, 4  ;;  %v5781_v43 = vmax.f32 %v5683_v4, 0.0  ;;  %v5685_v35 = vadd.f32 %v16325_v40, %v5575_v14  ;;  %v20655_v41 = vld [vmem:[#allocation62_spill] sm:$0xff] }
 0x4d2   : > { %v6060_v47 = vrot.slane %v6058_v1, 3  ;;  %v6063_v20 = vrot.slane %v6061_v51, 4  ;;  %v5782_v13 = vmax.f32 %v5684_v33, 0.0  ;;  %v5466_v26 = vadd.f32 %v5189_v18, %v20653_v56 }
 0x4d3   : > { %v6055_v2 = vor.u32 %v6054_v22, %v6051_v55  ;;  %v5879_v17 = vmul.f32 %v5781_v43, %v20652_v62  ;;  %v5783_v61 = vmax.f32 %v5685_v35, 0.0  ;;  %v5191_v44 = vsel %vm2094_vm5, %v5186_v16, %v5190_v53  ;;  %v16436_v54 = vld [vmem:[#allocation3 + $0x28] sm:$0xff] }
 0x4d4   : > { %v6064_v30 = vor.u32 %v6063_v20, %v6060_v47  ;;  %v5880_v32 = vmul.f32 %v5782_v13, %v20654_v15  ;;  %v5576_v3 = vmul.f32 %v16317_v58, %v5466_v26  ;;  %v5467_v39 = vadd.f32 %v5191_v44, %v20655_v41  ;;  %v16441_v4 = vpop.f32.mrb[16].mxu1  ;;  %11620 = vmatprep.mubr.msk.bf16.mxu1 %vm451_vm1, %v16436_v54  ;;  %v20656_v44 = vld [vmem:[#allocation63_spill] sm:$0xff] }
 0x4d5   : > { %v16446_v14 = vsel %vm2861_vm6, %v6029_v9, %v6055_v2  ;;  %v5881_v62 = vmul.f32 %v5783_v61, %v20654_v15  ;;  %v5192_v16 = vrot.slane %v16414_v8, 2  ;;  %v5194_v1 = vrot.slane %v16419_v0, 2  ;;  %v16451_v51 = vpop.f32.mrb[17].mxu1  ;;  %7388 = vmatmul.mubr.bf16.gmra.mrb[100].mxu1 %v16400_v63 }
 0x4d6   : > { %6512 = vst [vmem:[#allocation3 + $0x30] sm:$0xff] %v16446_v14  ;;  %v6065_v33 = vsel %vm2861_vm6, %v16396_v46, %v6064_v30  ;;  %v5970_v18 = vpack.c.bf16 %v5880_v32, %v5878_v7  ;;  %v5686_v55 = vadd.f32 %v16322_v37, %v5576_v3  ;;  %v5577_v9 = vmul.f32 %v16319_v50, %v5467_v39  ;;  %v16459_v22 = vpop.f32.mrb[18].mxu1 }
 0x4d7   : > { %6513 = vst.msk [vmem:[#allocation3 + $0x38] sm:$0xff] %vm451_vm1, %v6065_v33  ;;  %v5971_v8 = vpack.c.bf16 %v5881_v62, %v5879_v17  ;;  %v5193_v0 = vsel %vm2094_vm5, %v5188_v25, %v5192_v16  ;;  %v5195_v43 = vsel %vm2094_vm5, %v5190_v53, %v5194_v1  ;;  %v5196_v35 = vrot.slane %v16424_v34, 2  ;;  %v16465_v47 = vpop.f32.mrb[19].mxu1  ;;  %v20657_v25 = vld [vmem:[#allocation34_spill] sm:$0xff] }
 0x4d8   : > { %v6067_v20 = vshrl.u32 %v5970_v18, 16  ;;  %v6070_v46 = vshll.u32 %v5970_v18, 16  ;;  %v5784_v7 = vmax.f32 %v5686_v55, 0.0  ;;  %v5687_v13 = vadd.f32 %v16325_v40, %v5577_v9 }
 0x4d9   : > { %v6076_v56 = vshrl.u32 %v5971_v8, 16  ;;  %v6079_v26 = vshll.u32 %v5971_v8, 16  ;;  %v5468_v61 = vadd.f32 %v5193_v0, %v15975_v45  ;;  %v5469_v15 = vadd.f32 %v5195_v43, %v20656_v44 }
 0x4da   : > { %v6069_v17 = vrot.slane %v6067_v20, 3  ;;  %v6072_v32 = vrot.slane %v6070_v46, 4  ;;  %v5882_v3 = vmul.f32 %v5784_v7, %v20657_v25  ;;  %v5785_v53 = vmax.f32 %v5687_v13, 0.0  ;;  %v20658_v20 = vld [vmem:[#allocation64_spill] sm:$0xff] }
 0x4db   : > { %v6078_v41 = vrot.slane %v6076_v56, 3  ;;  %v6081_v34 = vrot.slane %v6079_v26, 4  ;;  %v5578_v39 = vmul.f32 %v16317_v58, %v5468_v61  ;;  %v5579_v62 = vmul.f32 %v16319_v50, %v5469_v15 }
 0x4dc   : > { %v16473_v33 = vor.u32 %v6072_v32, %v6069_v17  ;;  %v5883_v18 = vmul.f32 %v5785_v53, %v20657_v25  ;;  %v5197_v55 = vsel %vm2094_vm5, %v5192_v16, %v5196_v35  ;;  %v5198_v45 = vrot.slane %v16428_v24, 2  ;;  %v16478_v9 = vpop.f32.mrb[20].mxu1 }
 0x4dd   : > { %v16480_v8 = vor.u32 %v6081_v34, %v6078_v41  ;;  %v5688_v0 = vadd.f32 %v16322_v37, %v5578_v39  ;;  %v5689_v43 = vadd.f32 %v16325_v40, %v5579_v62  ;;  %v5470_v46 = vadd.f32 %v5197_v55, %v20658_v20  ;;  %v16485_v7 = vpop.f32.mrb[21].mxu1 }
 0x4de   : > { %v16489_v13 = vsel %vm2861_vm6, %v6055_v2, %v16473_v33  ;;  %v5199_v16 = vsel %vm2094_vm5, %v5194_v1, %v5198_v45  ;;  %v5200_v24 = vrot.slane %v16441_v4, 2  ;;  %v20343_v56 = vrot.slane %v16436_v54, 4  ;;  %v16494_v26 = vld [vmem:[#allocation3 + $0x38] sm:$0xff]  ;;  %v16496_v61 = vpop.f32.mrb[22].mxu1 }
 0x4df   : > { %6514 = vst [vmem:[#allocation3 + $0x40] sm:$0xff] %v16489_v13  ;;  %v6083_v44 = vsel %vm2861_vm6, %v6064_v30, %v16480_v8  ;;  %v5786_v15 = vmax.f32 %v5688_v0, 0.0  ;;  %v5787_v17 = vmax.f32 %v5689_v43, 0.0  ;;  %v5580_v2 = vmul.f32 %v16317_v58, %v5470_v46  ;;  %11621 = vmatprep.mubr.msk.bf16.mxu1 %vm451_vm1, %v16494_v26  ;;  %v16504_v1 = vpop.f32.mrb[23].mxu1  ;;  %v20659_v4 = vld [vmem:[#allocation65_spill] sm:$0xff]  ;;  %v20660_v30 = vld [vmem:[#allocation35_spill] sm:$0xff] }
 0x4e0   : > { %6515 = vst.msk [vmem:[#allocation3 + $0x48] sm:$0xff] %vm451_vm1, %v6083_v44  ;;  %v5471_v32 = vadd.f32 %v5199_v16, %v20659_v4  ;;  %v5201_v25 = vsel %vm2094_vm5, %v5196_v35, %v5200_v24  ;;  %v5202_v53 = vrot.slane %v16451_v51, 2  ;;  %v5204_v41 = vrot.slane %v16459_v22, 2  ;;  %7396 = vmatmul.mubr.bf16.gmra.mrb[104].mxu1 %v16446_v14  ;;  %v20670_v22 = vld [vmem:[#allocation68_spill] sm:$0xff] }
 0x4e1   : > { %v5884_v34 = vmul.f32 %v5786_v15, %v20660_v30  ;;  %v5885_v39 = vmul.f32 %v5787_v17, %v20660_v30  ;;  %v5690_v62 = vadd.f32 %v16322_v37, %v5580_v2  ;;  %v5472_v55 = vadd.f32 %v5201_v25, %v15990_v28  ;;  %v20661_v28 = vld [vmem:[#allocation66_spill] sm:$0xff]  ;;  %v20662_v30 = vld [vmem:[#allocation36_spill] sm:$0xff] }
 0x4e2   : > { %v5581_v0 = vmul.f32 %v16319_v50, %v5471_v32  ;;  %v5203_v43 = vsel %vm2094_vm5, %v5198_v45, %v5202_v53  ;;  %v5205_v51 = vsel %vm2094_vm5, %v5200_v24, %v5204_v41  ;;  %v20341_v35 = vrot.slane %v16465_v47, 2 }
 0x4e3   : > { %v5972_v20 = vpack.c.bf16 %v5884_v34, %v5882_v3  ;;  %v5973_v46 = vpack.c.bf16 %v5885_v39, %v5883_v18  ;;  %v5788_v16 = vmax.f32 %v5690_v62, 0.0  ;;  %v5582_v44 = vmul.f32 %v16317_v58, %v5472_v55 }
 0x4e4   : > { %v5691_v15 = vadd.f32 %v16325_v40, %v5581_v0  ;;  %v5473_v17 = vadd.f32 %v5203_v43, %v15993_v29  ;;  %v5474_v2 = vadd.f32 %v5205_v51, %v20661_v28  ;;  %v5207_v45 = vsel %vm2094_vm5, %v5202_v53, %v20341_v35  ;;  %v16529_v4 = vpop.f32.mrb[24].mxu1 }
 0x4e5   : > { %v6085_v24 = vshrl.u32 %v5972_v20, 16  ;;  %v6088_v32 = vshll.u32 %v5972_v20, 16  ;;  %v6094_v25 = vshrl.u32 %v5973_v46, 16  ;;  %v6097_v3 = vshll.u32 %v5973_v46, 16  ;;  %v16531_v18 = vpop.f32.mrb[25].mxu1 }
 0x4e6   : > { %v5886_v34 = vmul.f32 %v5788_v16, %v20662_v30  ;;  %v5789_v39 = vmax.f32 %v5691_v15, 0.0  ;;  %v5692_v62 = vadd.f32 %v16322_v37, %v5582_v44  ;;  %v5583_v29 = vmul.f32 %v16319_v50, %v5473_v17  ;;  %v16536_v55 = vpop.f32.mrb[26].mxu1 }
 0x4e7   : > { %v6087_v0 = vrot.slane %v6085_v24, 3  ;;  %v6090_v43 = vrot.slane %v6088_v32, 4  ;;  %v6096_v53 = vrot.slane %v6094_v25, 3  ;;  %v6099_v51 = vrot.slane %v6097_v3, 4  ;;  %v16538_v28 = vld [vmem:[#allocation3 + $0x48] sm:$0xff]  ;;  %v16540_v20 = vpop.f32.mrb[27].mxu1 }
 0x4e8   : > { %v5887_v46 = vmul.f32 %v5789_v39, %v20662_v30  ;;  %v5790_v35 = vmax.f32 %v5692_v62, 0.0  ;;  %v5693_v16 = vadd.f32 %v16325_v40, %v5583_v29  ;;  %v5584_v15 = vmul.f32 %v16317_v58, %v5474_v2  ;;  %11622 = vmatprep.mubr.msk.bf16.mxu1 %vm451_vm1, %v16538_v28  ;;  %v20663_v24 = vld [vmem:[#allocation67_spill] sm:$0xff]  ;;  %v20666_v30 = vld [vmem:[#allocation37_spill] sm:$0xff] }
 0x4e9   : > { %v6091_v44 = vor.u32 %v6090_v43, %v6087_v0  ;;  %v16547_v17 = vor.u32 %v6099_v51, %v6096_v53  ;;  %v5475_v32 = vadd.f32 %v5207_v45, %v20663_v24  ;;  %v20664_v25 = vrot.slane %v16336_v23, 4  ;;  %7404 = vmatmul.mubr.bf16.gmra.mrb[108].mxu1 %v16489_v13  ;;  %v12927_v45 = vld [vmem:[#allocation6 + $0xa0] sm:$0xff]  }
 0x4ea   : > { %v5888_v39 = vmul.f32 %v5790_v35, %v20666_v30  ;;  %v5791_v2 = vmax.f32 %v5693_v16, 0.0  ;;  %v5694_v62 = vadd.f32 %v16322_v37, %v5584_v15  ;;  %v20342_v29 = vrot.slane %v16400_v63, 4 }
 0x4eb   : > { %v16555_v3 = vsel %vm3190_vm7, %v20664_v25, %v20343_v56  ;;  %v16565_v0 = vsel %vm2861_vm6, %v16473_v33, %v6091_v44  ;;  %v6101_v23 = vsel %vm2861_vm6, %v16480_v8, %v16547_v17  ;;  %v5585_v43 = vmul.f32 %v16319_v50, %v5475_v32 }
 0x4ec   : > { %20665 = vst [vmem:[#allocation26_spill] sm:$0xff] %v16555_v3  ;;  %11583 = vmatprep.mubr.msk.bf16.mxu0 %vm451_vm1, %v16555_v3  ;;  %v5208_v35 = vrot.slane %v16478_v9, 2  ;;  %6516 = vst [vmem:[#allocation3 + $0x50] sm:$0xff] %v16565_v0  ;;  %v5974_v53 = vpack.c.bf16 %v5888_v39, %v5886_v34  ;;  %v5889_v51 = vmul.f32 %v5791_v2, %v20666_v30  ;;  %v5792_v16 = vmax.f32 %v5694_v62, 0.0  ;;  %v16582_v8 = vpop.f32.mrb[28].mxu1  ;;  %v20669_v2 = vld [vmem:[#allocation38_spill] sm:$0xff] }
 0x4ed   : > { %6517 = vst.msk [vmem:[#allocation3 + $0x58] sm:$0xff] %vm451_vm1, %v6101_v23  ;;  %v20667_v33 = vrot.slane %v16338_v60, 4  ;;  %v5695_v24 = vadd.f32 %v16325_v40, %v5585_v43  ;;  %v5210_v34 = vrot.slane %v16485_v7, 2  ;;  %v20348_v32 = vrot.slane %v16496_v61, 2  ;;  %v16591_v25 = vpop.f32.mrb[29].mxu1  ;;  %v12928_v23 = vld [vmem:[#allocation6 + $0xa8] sm:$0xff]  }
 0x4ee   : > { %v5209_v9 = vsel %vm2094_vm5, %v5204_v41, %v5208_v35  ;;  %v6103_v60 = vshrl.u32 %v5974_v53, 16  ;;  %v6106_v30 = vshll.u32 %v5974_v53, 16  ;;  %v5975_v39 = vpack.c.bf16 %v5889_v51, %v5887_v46  ;;  %v16596_v43 = vpop.f32.mrb[30].mxu1 }
 0x4ef   : > { %v16580_v15 = vsel %vm3190_vm7, %v20667_v33, %v20342_v29  ;;  %v16594_v62 = vmul.f32 %v5792_v16, %v20669_v2  ;;  %v5793_v33 = vmax.f32 %v5695_v24, 0.0  ;;  %v5476_v29 = vadd.f32 %v5209_v9, %v20670_v22  ;;  %v16606_v46 = vpop.f32.mrb[31].mxu1  ;;  %v20672_v22 = vld [vmem:[#allocation69_spill] sm:$0xff] }
 0x4f0   : > { %20668 = vst [vmem:[#allocation27_spill] sm:$0xff] %v16580_v15  ;;  %7005 = vmatmul.mubr.bf16.vlgmr.msra.gmra.mrb[252].mxu0 %v16580_v15  ;;  %v20671_v41 = vrot.slane %v16465_v47, 2  ;;  %v5213_v56 = vsel %vm2094_vm5, %v5208_v35, %v20348_v32  ;;  %v6105_v53 = vrot.slane %v6103_v60, 3  ;;  %v6112_v51 = vshrl.u32 %v5975_v39, 16  ;;  %v20673_v15 = vld [vmem:[#allocation70_spill] sm:$0xff] }
 0x4f1   : > { %7661 = vmatpush1.bf16.msra.mxu0 %v12927_v45  ;;  %v6108_v45 = vrot.slane %v6106_v30, 4  ;;  %v6115_v16 = vshll.u32 %v5975_v39, 16  ;;  %v5891_v24 = vmul.f32 %v5793_v33, %v20669_v2  ;;  %v5586_v9 = vmul.f32 %v16317_v58, %v5476_v29 }
 0x4f2   : > { %v5211_v7 = vsel %vm2094_vm5, %v20671_v41, %v5210_v34  ;;  %7662 = vmatprep.subr.bf16.mxu0 %v16208_v11  ;;  %v5478_v41 = vadd.f32 %v5213_v56, %v20673_v15  ;;  %v6114_v10 = vrot.slane %v6112_v51, 3  ;;  %v5214_v32 = vrot.slane %v16504_v1, 2 }
 0x4f3   : > { %v5477_v47 = vadd.f32 %v5211_v7, %v20672_v22  ;;  %v16612_v3 = vor.u32 %v6108_v45, %v6105_v53  ;;  %v6117_v35 = vrot.slane %v6115_v16, 4  ;;  %v5696_v60 = vadd.f32 %v16322_v37, %v5586_v9 }
 0x4f4   : > { %v5588_v39 = vmul.f32 %v16317_v58, %v5478_v41  ;;  %v20350_v29 = vrot.slane %v16494_v26, 4  ;;  %v16619_v2 = vld [vmem:[#allocation3 + $0x58] sm:$0xff]  ;;  %v5215_v1 = vsel %vm2094_vm5, %v5210_v34, %v5214_v32  ;;  %v16632_v33 = vpop.f32.mrb[32].mxu1  ;;  %v20675_v51 = vrot.slane %v16436_v54, 4 }
 0x4f5   : > { %7663 = vmatpush1.bf16.msra.mxu0 %v12928_v23  ;;  %v5587_v30 = vmul.f32 %v16319_v50, %v5477_v47  ;;  %v16624_v56 = vsel %vm2861_vm6, %v6091_v44, %v16612_v3  ;;  %v16626_v15 = vor.u32 %v6117_v35, %v6114_v10  ;;  %v20349_v23 = vrot.slane %v16446_v14, 4  ;;  %11623 = vmatprep.mubr.msk.bf16.mxu1 %vm451_vm1, %v16619_v2  ;;  %v20674_v44 = vld [vmem:[#allocation71_spill] sm:$0xff]  ;;  %v16639_v10 = vpop.f32.mrb[33].mxu1 }
 0x4f6   : > { %7664 = vmatprep.subr.bf16.mxu0 %v16208_v11  ;;  %6518 = vst [vmem:[#allocation3 + $0x60] sm:$0xff] %v16624_v56  ;;  %v5794_v7 = vmax.f32 %v5696_v60, 0.0  ;;  %v5698_v53 = vadd.f32 %v16322_v37, %v5588_v39  ;;  %v5479_v45 = vadd.f32 %v5215_v1, %v20674_v44  ;;  %7412 = vmatmul.mubr.bf16.gmra.mrb[112].mxu1 %v16565_v0  ;;  %v20677_v9 = vrot.slane %v16400_v63, 4  ;;  %v16659_v41 = vpop.f32.mrb[34].mxu1  ;;  %v20679_v35 = vld [vmem:[#allocation39_spill] sm:$0xff] }
 0x4f7   : > { %v5697_v11 = vadd.f32 %v16325_v40, %v5587_v30  ;;  %v6119_v34 = vsel %vm2861_vm6, %v16547_v17, %v16626_v15  ;;  %v16649_v16 = vsel %vm3190_vm7, %v20675_v51, %v20350_v29  ;;  %v5216_v47 = vrot.slane %v16529_v4, 2  ;;  %v12930_v17 = vld [vmem:[#allocation6 + $0xb8] sm:$0xff]   ;;  %v16666_v63 = vpop.f32.mrb[35].mxu1  ;;  %v16668_v1 = vld [vmem:[#allocation3] sm:$0xff]  ;;  %v20683_v29 = vld [vmem:[#allocation73_spill] sm:$0xff] }
 0x4f8   : > { %20676 = vst [vmem:[#allocation28_spill] sm:$0xff] %v16649_v16  ;;  %v16656_v22 = vsel %vm3190_vm7, %v20677_v9, %v20349_v23  ;;  %6519 = vst.msk [vmem:[#allocation3 + $0x68] sm:$0xff] %vm451_vm1, %v6119_v34  ;;  %v5892_v54 = vmul.f32 %v5794_v7, %v20679_v35  ;;  %v5796_v30 = vmax.f32 %v5698_v53, 0.0  ;;  %v5589_v39 = vmul.f32 %v16319_v50, %v5479_v45  ;;  %v20681_v34 = vld [vmem:[#allocation40_spill] sm:$0xff] }
 0x4f9   : > { %20678 = vst [vmem:[#allocation29_spill] sm:$0xff] %v16656_v22  ;;  %7665 = vmatpush1.bf16.msra.mxu0 %v12929_v12  ;;  %v5795_v60 = vmax.f32 %v5697_v11, 0.0  ;;  %11584 = vmatprep.mubr.msk.bf16.mxu0 %vm451_vm1, %v16649_v16  ;;  %v20680_v12 = vrot.slane %v16496_v61, 2  ;;  %v5218_v7 = vrot.slane %v16531_v18, 2  ;;  %v20351_v11 = vrot.slane %v16536_v55, 2 }
 0x4fa   : > { %7666 = vmatprep.subr.bf16.mxu0 %v16668_v1  ;;  %7013 = vmatmul.mubr.bf16.gmra.mrb[0].mxu0 %v16656_v22  ;;  %v20354_v53 = vrot.slane %v16540_v20, 2  ;;  %v5976_v44 = vpack.c.bf16 %v5892_v54, %v16594_v62  ;;  %v5894_v51 = vmul.f32 %v5796_v30, %v20681_v34  ;;  %v5699_v9 = vadd.f32 %v16325_v40, %v5589_v39  ;;  %v12931_v62 = vld [vmem:[#allocation6 + $0xc0] sm:$0xff]  }
 0x4fb   : > { %v5217_v4 = vsel %vm2094_vm5, %v20680_v12, %v5216_v47  ;;  %v5893_v45 = vmul.f32 %v5795_v60, %v20679_v35  ;;  %v5219_v61 = vsel %vm2094_vm5, %v5214_v32, %v5218_v7  ;;  %v5221_v18 = vsel %vm2094_vm5, %v5216_v47, %v20351_v11  ;;  %v20682_v39 = vld [vmem:[#allocation72_spill] sm:$0xff] }
 0x4fc   : > { %v5480_v23 = vadd.f32 %v5217_v4, %v16021_v42  ;;  %v5223_v12 = vsel %vm2094_vm5, %v5218_v7, %v20354_v53  ;;  %v6121_v54 = vshrl.u32 %v5976_v44, 16  ;;  %v6124_v35 = vshll.u32 %v5976_v44, 16  ;;  %v16695_v11 = vpop.f32.mrb[36].mxu1 }
 0x4fd   : > { %7667 = vmatpush1.bf16.msra.mxu0 %v12930_v17  ;;  %v5977_v60 = vpack.c.bf16 %v5893_v45, %v5891_v24  ;;  %v5797_v30 = vmax.f32 %v5699_v9, 0.0  ;;  %v5481_v32 = vadd.f32 %v5219_v61, %v16024_v21  ;;  %v5482_v4 = vadd.f32 %v5221_v18, %v20682_v39  ;;  %v16697_v16 = vpop.f32.mrb[37].mxu1 }
 0x4fe   : > { %7668 = vmatprep.subr.bf16.mxu0 %v16668_v1  ;;  %v5590_v42 = vmul.f32 %v16317_v58, %v5480_v23  ;;  %v5483_v47 = vadd.f32 %v5223_v12, %v20683_v29  ;;  %v6123_v22 = vrot.slane %v6121_v54, 3  ;;  %v6126_v7 = vrot.slane %v6124_v35, 4  ;;  %v16705_v9 = vpop.f32.mrb[38].mxu1 }
 0x4ff   : > { %v6130_v17 = vshrl.u32 %v5977_v60, 16  ;;  %v6133_v53 = vshll.u32 %v5977_v60, 16  ;;  %v5895_v24 = vmul.f32 %v5797_v30, %v20681_v34  ;;  %v5591_v23 = vmul.f32 %v16319_v50, %v5481_v32  ;;  %v16703_v45 = vld [vmem:[#allocation3 + $0x68] sm:$0xff]  ;;  %v16712_v34 = vpop.f32.mrb[39].mxu1  ;;  %v20684_v32 = vld [vmem:[#allocation41_spill] sm:$0xff] }
 0x500   : > { %v5700_v44 = vadd.f32 %v16322_v37, %v5590_v42  ;;  %v5592_v21 = vmul.f32 %v16317_v58, %v5482_v4  ;;  %v16707_v29 = vor.u32 %v6126_v7, %v6123_v22  ;;  %v5593_v12 = vmul.f32 %v16319_v50, %v5483_v47  ;;  %11624 = vmatprep.mubr.msk.bf16.mxu1 %vm451_vm1, %v16703_v45 }
 0x501   : > { %7669 = vmatpush1.bf16.msra.mxu0 %v12931_v62  ;;  %v6132_v61 = vrot.slane %v6130_v17, 3  ;;  %v6135_v18 = vrot.slane %v6133_v53, 4  ;;  %v5701_v35 = vadd.f32 %v16325_v40, %v5591_v23  ;;  %v6722_v62 = vrot.slane %v16538_v28, 4  ;;  %7420 = vmatmul.mubr.bf16.gmra.mrb[116].mxu1 %v16624_v56 }
 0x502   : > { %7670 = vmatprep.subr.bf16.mxu0 %v16668_v1  ;;  %v5798_v54 = vmax.f32 %v5700_v44, 0.0  ;;  %v5702_v60 = vadd.f32 %v16322_v37, %v5592_v21  ;;  %v16722_v22 = vsel %vm2861_vm6, %v16612_v3, %v16707_v29  ;;  %v5703_v30 = vadd.f32 %v16325_v40, %v5593_v12 }
 0x503   : > { %v16724_v53 = vor.u32 %v6135_v18, %v6132_v61  ;;  %v20357_v42 = vrot.slane %v16489_v13, 4  ;;  %6520 = vst [vmem:[#allocation3 + $0x70] sm:$0xff] %v16722_v22  ;;  %v5799_v4 = vmax.f32 %v5701_v35, 0.0  ;;  %v20685_v28 = vrot.slane %v16494_v26, 4  ;;  %v20689_v18 = vld [vmem:[#allocation42_spill] sm:$0xff] }
 0x504   : > { %v5896_v39 = vmul.f32 %v5798_v54, %v20684_v32  ;;  %v5800_v47 = vmax.f32 %v5702_v60, 0.0  ;;  %v5801_v17 = vmax.f32 %v5703_v30, 0.0  ;;  %v20687_v44 = vrot.slane %v16446_v14, 4  ;;  %v16755_v54 = vpop.f32.mrb[40].mxu1 }
 0x505   : > { %v16733_v7 = vsel %vm3190_vm7, %v20685_v28, %v6722_v62  ;;  %v6137_v3 = vsel %vm2861_vm6, %v16626_v15, %v16724_v53  ;;  %v5224_v26 = vrot.slane %v16582_v8, 2  ;;  %v5897_v61 = vmul.f32 %v5799_v4, %v20684_v32  ;;  %v16765_v30 = vpop.f32.mrb[41].mxu1 }
 0x506   : > { %20686 = vst [vmem:[#allocation30_spill] sm:$0xff] %v16733_v7  ;;  %11585 = vmatprep.mubr.msk.bf16.mxu0 %vm451_vm1, %v16733_v7  ;;  %v16745_v23 = vsel %vm3190_vm7, %v20687_v44, %v20357_v42  ;;  %6521 = vst.msk [vmem:[#allocation3 + $0x78] sm:$0xff] %vm451_vm1, %v6137_v3  ;;  %v5978_v21 = vpack.c.bf16 %v5896_v39, %v5894_v51  ;;  %v16751_v15 = vmul.f32 %v5800_v47, %v20689_v18  ;;  %v16768_v47 = vpop.f32.mrb[42].mxu1 }
 0x507   : > { %20688 = vst [vmem:[#allocation31_spill] sm:$0xff] %v16745_v23  ;;  %7021 = vmatmul.mubr.bf16.gmra.mrb[4].mxu0 %v16745_v23  ;;  %v5226_v12 = vrot.slane %v16591_v25, 2  ;;  %v16758_v14 = vmul.f32 %v5801_v17, %v20689_v18  ;;  %v20690_v35 = vrot.slane %v16536_v55, 2  ;;  %v5228_v51 = vrot.slane %v16596_v43, 2 }
 0x508   : > { %v5230_v60 = vrot.slane %v16606_v46, 2  ;;  %v6139_v32 = vshrl.u32 %v5978_v21, 16  ;;  %v6142_v39 = vshll.u32 %v5978_v21, 16  ;;  %v5979_v4 = vpack.c.bf16 %v5897_v61, %v5895_v24  ;;  %v16776_v46 = vpop.f32.mrb[43].mxu1 }
 0x509   : > { %v5225_v8 = vsel %vm2094_vm5, %v20690_v35, %v5224_v26  ;;  %v20691_v28 = vrot.slane %v16540_v20, 2  ;;  %v5229_v55 = vsel %vm2094_vm5, %v5224_v26, %v5228_v51  ;;  %v6726_v43 = vrot.slane %v16619_v2, 4  ;;  %v20692_v35 = vld [vmem:[#allocation74_spill] sm:$0xff] }
 0x50a   : > { %v5484_v25 = vadd.f32 %v5225_v8, %v16036_v36  ;;  %v5231_v17 = vsel %vm2094_vm5, %v5226_v12, %v5230_v60  ;;  %v6141_v44 = vrot.slane %v6139_v32, 3  ;;  %v6144_v18 = vrot.slane %v6142_v39, 4  ;;  %v20693_v8 = vld [vmem:[#allocation75_spill] sm:$0xff] }
 0x50b   : > { %v5227_v3 = vsel %vm2094_vm5, %v20691_v28, %v5226_v12  ;;  %v6148_v21 = vshrl.u32 %v5979_v4, 16  ;;  %v6151_v24 = vshll.u32 %v5979_v4, 16  ;;  %v5486_v20 = vadd.f32 %v5229_v55, %v20692_v35 }
 0x50c   : > { %v5594_v36 = vmul.f32 %v16317_v58, %v5484_v25  ;;  %v5485_v61 = vadd.f32 %v5227_v3, %v16039_v57  ;;  %v5487_v28 = vadd.f32 %v5231_v17, %v20693_v8  ;;  %v16782_v42 = vor.u32 %v6144_v18, %v6141_v44  ;;  %v16808_v44 = vpop.f32.mrb[44].mxu1 }
 0x50d   : > { %v6150_v26 = vrot.slane %v6148_v21, 3  ;;  %v6153_v12 = vrot.slane %v6151_v24, 4  ;;  %v16787_v23 = vsel %vm3190_vm7, %v6722_v62, %v6726_v43  ;;  %v5596_v4 = vmul.f32 %v16317_v58, %v5486_v20  ;;  %v16795_v25 = vld [vmem:[#allocation3 + $0x78] sm:$0xff] }
 0x50e   : > { %20694 = vst [vmem:[#allocation60_spill] sm:$0xff] %v16787_v23  ;;  %v5704_v32 = vadd.f32 %v16322_v37, %v5594_v36  ;;  %v5595_v39 = vmul.f32 %v16319_v50, %v5485_v61  ;;  %v5597_v57 = vmul.f32 %v16319_v50, %v5487_v28  ;;  %11586 = vmatprep.mubr.msk.bf16.mxu0 %vm451_vm1, %v16787_v23  ;;  %v20360_v55 = vrot.slane %v16565_v0, 4  ;;  %v16815_v36 = vpop.f32.mrb[45].mxu1 }
 0x50f   : > { %v16800_v3 = vsel %vm2861_vm6, %v16707_v29, %v16782_v42  ;;  %v16802_v62 = vor.u32 %v6153_v12, %v6150_v26  ;;  %v5232_v17 = vrot.slane %v16632_v33, 2  ;;  %11625 = vmatprep.mubr.msk.bf16.mxu1 %vm451_vm1, %v16795_v25  ;;  %v5706_v24 = vadd.f32 %v16322_v37, %v5596_v4  ;;  %v16829_v28 = vpop.f32.mrb[46].mxu1  ;;  %v12932_v26 = vld [vmem:[#allocation6 + $0xc8] sm:$0xff]   ;;  %v20697_v12 = vld [vmem:[#allocation43_spill] sm:$0xff] }
 0x510   : > { %6522 = vst [vmem:[#allocation3 + $0x80] sm:$0xff] %v16800_v3  ;;  %v5802_v18 = vmax.f32 %v5704_v32, 0.0  ;;  %v5705_v21 = vadd.f32 %v16325_v40, %v5595_v39  ;;  %v5707_v29 = vadd.f32 %v16325_v40, %v5597_v57  ;;  %7428 = vmatmul.mubr.bf16.gmra.mrb[120].mxu1 %v16722_v22  ;;  %v20695_v61 = vrot.slane %v16489_v13, 4  ;;  %v16834_v13 = vpop.f32.mrb[47].mxu1  ;;  %7671 = vmatpush1.bf16.msra.mxu0 %v12932_v26 }
 0x511   : > { %v6155_v33 = vsel %vm2861_vm6, %v16724_v53, %v16802_v62  ;;  %v5233_v20 = vsel %vm2094_vm5, %v5228_v51, %v5232_v17  ;;  %v5234_v8 = vrot.slane %v16639_v10, 2  ;;  %v5804_v53 = vmax.f32 %v5706_v24, 0.0  ;;  %7672 = vmatprep.subr.bf16.mxu0 %v16668_v1 }
 0x512   : > { %v16825_v35 = vsel %vm3190_vm7, %v20695_v61, %v20360_v55  ;;  %6523 = vst.msk [vmem:[#allocation3 + $0x88] sm:$0xff] %vm451_vm1, %v6155_v33  ;;  %v5900_v32 = vmul.f32 %v5802_v18, %v20697_v12  ;;  %v5803_v39 = vmax.f32 %v5705_v21, 0.0  ;;  %v5805_v4 = vmax.f32 %v5707_v29, 0.0  ;;  %v20698_v21 = vld [vmem:[#allocation44_spill] sm:$0xff] }
 0x513   : > { %20696 = vst [vmem:[#allocation32_spill] sm:$0xff] %v16825_v35  ;;  %7029 = vmatmul.mubr.bf16.gmra.mrb[8].mxu0 %v16825_v35  ;;  %v5488_v57 = vadd.f32 %v5233_v20, %v16056_v49  ;;  %v5235_v51 = vsel %vm2094_vm5, %v5230_v60, %v5234_v8  ;;  %v5236_v10 = vrot.slane %v16659_v41, 2  ;;  %v5238_v61 = vrot.slane %v16666_v63, 2  ;;  %v20731_v35 = vld [vmem:[#allocation86_spill] sm:$0xff] }
 0x514   : > { %v5980_v33 = vpack.c.bf16 %v5900_v32, %v16751_v15  ;;  %v5901_v18 = vmul.f32 %v5803_v39, %v20697_v12  ;;  %v5902_v24 = vmul.f32 %v5804_v53, %v20698_v21  ;;  %v5903_v29 = vmul.f32 %v5805_v4, %v20698_v21  ;;  %v16857_v4 = vpop.f32.mrb[48].mxu1 }
 0x515   : > { %v5598_v55 = vmul.f32 %v16317_v58, %v5488_v57  ;;  %v5489_v49 = vadd.f32 %v5235_v51, %v16059_v19  ;;  %v5237_v60 = vsel %vm2094_vm5, %v5232_v17, %v5236_v10  ;;  %v5239_v41 = vsel %vm2094_vm5, %v5234_v8, %v5238_v61  ;;  %v16859_v21 = vpop.f32.mrb[49].mxu1 }
 0x516   : > { %v6157_v20 = vshrl.u32 %v5980_v33, 16  ;;  %v6160_v15 = vshll.u32 %v5980_v33, 16  ;;  %v5981_v26 = vpack.c.bf16 %v5901_v18, %v16758_v14  ;;  %v5490_v12 = vadd.f32 %v5237_v60, %v16062_v52 }
 0x517   : > { %v5708_v32 = vadd.f32 %v16322_v37, %v5598_v55  ;;  %v5599_v39 = vmul.f32 %v16319_v50, %v5489_v49  ;;  %v5491_v53 = vadd.f32 %v5239_v41, %v16065_v59  ;;  %v6730_v19 = vrot.slane %v16703_v45, 4  ;;  %v16866_v59 = vpop.f32.mrb[50].mxu1 }
 0x518   : > { %v6159_v17 = vrot.slane %v6157_v20, 3  ;;  %v6162_v57 = vrot.slane %v6160_v15, 4  ;;  %v6166_v51 = vshrl.u32 %v5981_v26, 16  ;;  %v6169_v8 = vshll.u32 %v5981_v26, 16  ;;  %v16877_v15 = vpop.f32.mrb[51].mxu1  ;;  %v20700_v26 = vld [vmem:[#allocation45_spill] sm:$0xff] }
 0x519   : > { %v5806_v33 = vmax.f32 %v5708_v32, 0.0  ;;  %v5709_v14 = vadd.f32 %v16325_v40, %v5599_v39  ;;  %v5600_v52 = vmul.f32 %v16317_v58, %v5490_v12  ;;  %v5601_v55 = vmul.f32 %v16319_v50, %v5491_v53  ;;  %v16864_v18 = vld [vmem:[#allocation3 + $0x88] sm:$0xff] }
 0x51a   : > { %v6163_v49 = vor.u32 %v6162_v57, %v6159_v17  ;;  %v6168_v60 = vrot.slane %v6166_v51, 3  ;;  %v6171_v41 = vrot.slane %v6169_v8, 4  ;;  %v16873_v20 = vsel %vm3190_vm7, %v6726_v43, %v6730_v19  ;;  %11626 = vmatprep.mubr.msk.bf16.mxu1 %vm451_vm1, %v16864_v18 }
 0x51b   : > { %20699 = vst [vmem:[#allocation61_spill] sm:$0xff] %v16873_v20  ;;  %v5904_v12 = vmul.f32 %v5806_v33, %v20700_v26  ;;  %v5807_v32 = vmax.f32 %v5709_v14, 0.0  ;;  %v5710_v39 = vadd.f32 %v16322_v37, %v5600_v52  ;;  %v5711_v53 = vadd.f32 %v16325_v40, %v5601_v55  ;;  %11587 = vmatprep.mubr.msk.bf16.mxu0 %vm451_vm1, %v16873_v20 }
 0x51c   : > { %7436 = vmatmul.mubr.bf16.gmra.mrb[124].mxu1 %v16800_v3  ;;  %v16887_v2 = vsel %vm2861_vm6, %v16782_v42, %v6163_v49  ;;  %v6172_v43 = vor.u32 %v6171_v41, %v6168_v60  ;;  %v20361_v17 = vrot.slane %v16624_v56, 4  ;;  %v5240_v57 = vrot.slane %v16695_v11, 2 }
 0x51d   : > { %6524 = vst [vmem:[#allocation3 + $0x90] sm:$0xff] %v16887_v2  ;;  %v5982_v51 = vpack.c.bf16 %v5904_v12, %v5902_v24  ;;  %v5905_v8 = vmul.f32 %v5807_v32, %v20700_v26  ;;  %v5808_v33 = vmax.f32 %v5710_v39, 0.0  ;;  %v5242_v14 = vrot.slane %v16697_v16, 2  ;;  %v20703_v12 = vld [vmem:[#allocation46_spill] sm:$0xff] }
 0x51e   : > { %v6173_v52 = vsel %vm2861_vm6, %v16802_v62, %v6172_v43  ;;  %v20701_v42 = vrot.slane %v16565_v0, 4  ;;  %v5241_v11 = vsel %vm2094_vm5, %v5236_v10, %v5240_v57  ;;  %v5809_v60 = vmax.f32 %v5711_v53, 0.0  ;;  %v16907_v62 = vpop.f32.mrb[52].mxu1 }
 0x51f   : > { %6525 = vst.msk [vmem:[#allocation3 + $0x98] sm:$0xff] %vm451_vm1, %v6173_v52  ;;  %v6175_v24 = vshrl.u32 %v5982_v51, 16  ;;  %v6178_v41 = vshll.u32 %v5982_v51, 16  ;;  %v5983_v26 = vpack.c.bf16 %v5905_v8, %v5903_v29  ;;  %v5492_v16 = vadd.f32 %v5241_v11, %v16097_v27  ;;  %v16917_v53 = vpop.f32.mrb[53].mxu1 }
 0x520   : > { %v16901_v55 = vsel %vm3190_vm7, %v20701_v42, %v20361_v17  ;;  %v5906_v32 = vmul.f32 %v5808_v33, %v20703_v12  ;;  %v5243_v0 = vsel %vm2094_vm5, %v5238_v61, %v5242_v14  ;;  %v16914_v10 = vmul.f32 %v5809_v60, %v20703_v12  ;;  %v16919_v27 = vpop.f32.mrb[54].mxu1 }
 0x521   : > { %20702 = vst [vmem:[#allocation33_spill] sm:$0xff] %v16901_v55  ;;  %7037 = vmatmul.mubr.bf16.gmra.mrb[12].mxu0 %v16901_v55  ;;  %v5244_v39 = vrot.slane %v16705_v9, 2  ;;  %v6177_v29 = vrot.slane %v6175_v24, 3  ;;  %v6180_v51 = vrot.slane %v6178_v41, 4  ;;  %v6184_v8 = vshrl.u32 %v5983_v26, 16  ;;  %v16925_v11 = vpop.f32.mrb[55].mxu1 }
 0x522   : > { %v6187_v52 = vshll.u32 %v5983_v26, 16  ;;  %v5602_v42 = vmul.f32 %v16317_v58, %v5492_v16  ;;  %v5493_v33 = vadd.f32 %v5243_v0, %v16101_v5  ;;  %v5246_v61 = vrot.slane %v16712_v34, 2  ;;  %v20704_v24 = vld [vmem:[#allocation76_spill] sm:$0xff] }
 0x523   : > { %v5245_v63 = vsel %vm2094_vm5, %v5240_v57, %v5244_v39  ;;  %v16927_v60 = vor.u32 %v6180_v51, %v6177_v29  ;;  %v6186_v9 = vrot.slane %v6184_v8, 3  ;;  %v20363_v5 = vrot.slane %v16795_v25, 4  ;;  %v20705_v29 = vld [vmem:[#allocation77_spill] sm:$0xff] }
 0x524   : > { %v6189_v12 = vrot.slane %v6187_v52, 4  ;;  %v5494_v41 = vadd.f32 %v5245_v63, %v20704_v24  ;;  %v5712_v26 = vadd.f32 %v16322_v37, %v5602_v42  ;;  %v5603_v17 = vmul.f32 %v16319_v50, %v5493_v33  ;;  %v16963_v45 = vpop.f32.mrb[56].mxu1 }
 0x525   : > { %v5247_v16 = vsel %vm2094_vm5, %v5242_v14, %v5246_v61  ;;  %v16936_v57 = vsel %vm2861_vm6, %v6163_v49, %v16927_v60  ;;  %v16949_v14 = vsel %vm3190_vm7, %v6730_v19, %v20363_v5  ;;  %v20362_v49 = vrot.slane %v16722_v22, 4  ;;  %v12933_v19 = vld [vmem:[#allocation6 + $0xd0] sm:$0xff]  }
 0x526   : > { %v16938_v34 = vor.u32 %v6189_v12, %v6186_v9  ;;  %v5604_v0 = vmul.f32 %v16317_v58, %v5494_v41  ;;  %v5495_v51 = vadd.f32 %v5247_v16, %v20705_v29  ;;  %6526 = vst [vmem:[#allocation3 + $0xa0] sm:$0xff] %v16936_v57  ;;  %v5810_v8 = vmax.f32 %v5712_v26, 0.0  ;;  %20706 = vst [vmem:[#allocation62_spill] sm:$0xff] %v16949_v14  ;;  %v16952_v42 = vld [vmem:[#allocation3 + $0x98] sm:$0xff]  ;;  %v20707_v12 = vld [vmem:[#allocation47_spill] sm:$0xff]  ;;  %v16976_v16 = vpop.f32.mrb[57].mxu1 }
 0x527   : > { %v5713_v52 = vadd.f32 %v16325_v40, %v5603_v17  ;;  %11588 = vmatprep.mubr.msk.bf16.mxu0 %vm451_vm1, %v16949_v14  ;;  %v5248_v17 = vrot.slane %v16755_v54, 2  ;;  %11627 = vmatprep.mubr.msk.bf16.mxu1 %vm451_vm1, %v16952_v42  ;;  %v20708_v41 = vrot.slane %v16624_v56, 4  ;;  %v5250_v54 = vrot.slane %v16765_v30, 2 }
 0x528   : > { %v6191_v33 = vsel %vm2861_vm6, %v6172_v43, %v16938_v34  ;;  %v5714_v63 = vadd.f32 %v16322_v37, %v5604_v0  ;;  %v5605_v9 = vmul.f32 %v16319_v50, %v5495_v51  ;;  %v5908_v24 = vmul.f32 %v5810_v8, %v20707_v12  ;;  %7444 = vmatmul.mubr.bf16.gmra.mrb[128].mxu1 %v16887_v2 }
 0x529   : > { %6527 = vst.msk [vmem:[#allocation3 + $0xa8] sm:$0xff] %vm451_vm1, %v6191_v33  ;;  %v5811_v43 = vmax.f32 %v5713_v52, 0.0  ;;  %v16972_v26 = vsel %vm3190_vm7, %v20708_v41, %v20362_v49  ;;  %v5249_v51 = vsel %vm2094_vm5, %v5244_v39, %v5248_v17  ;;  %v20370_v8 = vrot.slane %v16768_v47, 2  ;;  %v16982_v52 = vpop.f32.mrb[58].mxu1  ;;  %v20710_v41 = vld [vmem:[#allocation78_spill] sm:$0xff]  ;;  %7673 = vmatpush1.bf16.msra.mxu0 %v12933_v19 }
 0x52a   : > { %20709 = vst [vmem:[#allocation63_spill] sm:$0xff] %v16972_v26  ;;  %v5812_v0 = vmax.f32 %v5714_v63, 0.0  ;;  %v5715_v29 = vadd.f32 %v16325_v40, %v5605_v9  ;;  %7045 = vmatmul.mubr.bf16.gmra.mrb[16].mxu0 %v16972_v26  ;;  %v5984_v56 = vpack.c.bf16 %v5908_v24, %v5906_v32  ;;  %v5496_v30 = vadd.f32 %v5249_v51, %v20710_v41  ;;  %v16987_v5 = vpop.f32.mrb[59].mxu1  ;;  %v20711_v63 = vld [vmem:[#allocation48_spill] sm:$0xff]  ;;  %v20712_v26 = vld [vmem:[#allocation79_spill] sm:$0xff] }
 0x52b   : > { %v5909_v33 = vmul.f32 %v5811_v43, %v20707_v12  ;;  %v5251_v49 = vsel %vm2094_vm5, %v5246_v61, %v5250_v54  ;;  %v5253_v39 = vsel %vm2094_vm5, %v5248_v17, %v20370_v8  ;;  %7674 = vmatprep.subr.bf16.mxu0 %v16668_v1 }
 0x52c   : > { %v5910_v9 = vmul.f32 %v5812_v0, %v20711_v63  ;;  %v5813_v14 = vmax.f32 %v5715_v29, 0.0  ;;  %v5497_v55 = vadd.f32 %v5251_v49, %v20712_v26  ;;  %v6193_v32 = vshrl.u32 %v5984_v56, 16  ;;  %v20713_v0 = vld [vmem:[#allocation80_spill] sm:$0xff] }
 0x52d   : > { %v6196_v12 = vshll.u32 %v5984_v56, 16  ;;  %v5985_v24 = vpack.c.bf16 %v5909_v33, %v16914_v10  ;;  %v5606_v61 = vmul.f32 %v16317_v58, %v5496_v30  ;;  %v5498_v29 = vadd.f32 %v5253_v39, %v20713_v0  ;;  %v20714_v39 = vld [vmem:[#allocation81_spill] sm:$0xff] }
 0x52e   : > { %v5911_v43 = vmul.f32 %v5813_v14, %v20711_v63  ;;  %v5607_v19 = vmul.f32 %v16319_v50, %v5497_v55  ;;  %v5254_v49 = vrot.slane %v16776_v46, 2  ;;  %v6195_v26 = vrot.slane %v6193_v32, 3  ;;  %v17007_v14 = vpop.f32.mrb[60].mxu1 }
 0x52f   : > { %v6198_v51 = vrot.slane %v6196_v12, 4  ;;  %v6202_v41 = vshrl.u32 %v5985_v24, 16  ;;  %v6205_v17 = vshll.u32 %v5985_v24, 16  ;;  %v5716_v8 = vadd.f32 %v16322_v37, %v5606_v61  ;;  %v17014_v12 = vpop.f32.mrb[61].mxu1 }
 0x530   : > { %v5717_v56 = vadd.f32 %v16325_v40, %v5607_v19  ;;  %v5608_v10 = vmul.f32 %v16317_v58, %v5498_v29  ;;  %v5255_v33 = vsel %vm2094_vm5, %v5250_v54, %v5254_v49  ;;  %v17005_v30 = vld [vmem:[#allocation3 + $0xa8] sm:$0xff]  ;;  %v6738_v54 = vrot.slane %v16864_v18, 4  ;;  %v17019_v0 = vpop.f32.mrb[62].mxu1 }
 0x531   : > { %v17009_v55 = vor.u32 %v6198_v51, %v6195_v26  ;;  %v6204_v63 = vrot.slane %v6202_v41, 3  ;;  %v6207_v46 = vrot.slane %v6205_v17, 4  ;;  %v5499_v32 = vadd.f32 %v5255_v33, %v20714_v39  ;;  %11628 = vmatprep.mubr.msk.bf16.mxu1 %vm451_vm1, %v17005_v30  ;;  %v20715_v17 = vld [vmem:[#allocation49_spill] sm:$0xff] }
 0x532   : > { %v5814_v24 = vmax.f32 %v5716_v8, 0.0  ;;  %v5815_v61 = vmax.f32 %v5717_v56, 0.0  ;;  %v5718_v19 = vadd.f32 %v16322_v37, %v5608_v10  ;;  %7452 = vmatmul.mubr.bf16.gmra.mrb[132].mxu1 %v16936_v57  ;;  %v20371_v41 = vrot.slane %v16800_v3, 4  ;;  %v17028_v8 = vpop.f32.mrb[63].mxu1 }
 0x533   : > { %v17024_v29 = vsel %vm2861_vm6, %v16927_v60, %v17009_v55  ;;  %v6208_v26 = vor.u32 %v6207_v46, %v6204_v63  ;;  %v5609_v51 = vmul.f32 %v16319_v50, %v5499_v32  ;;  %v20716_v33 = vrot.slane %v16795_v25, 4 }
 0x534   : > { %6528 = vst [vmem:[#allocation3 + $0xb0] sm:$0xff] %v17024_v29  ;;  %v5912_v18 = vmul.f32 %v5814_v24, %v20715_v17  ;;  %v5913_v56 = vmul.f32 %v5815_v61, %v20715_v17  ;;  %v5816_v10 = vmax.f32 %v5718_v19, 0.0  ;;  %v20718_v46 = vrot.slane %v16722_v22, 4  ;;  %v20720_v19 = vld [vmem:[#allocation50_spill] sm:$0xff] }
 0x535   : > { %v17036_v39 = vsel %vm3190_vm7, %v20716_v33, %v6738_v54  ;;  %v6209_v60 = vsel %vm2861_vm6, %v16938_v34, %v6208_v26  ;;  %v5719_v63 = vadd.f32 %v16325_v40, %v5609_v51  ;;  %v5256_v25 = vrot.slane %v16808_v44, 2 }
 0x536   : > { %20717 = vst [vmem:[#allocation34_spill] sm:$0xff] %v17036_v39  ;;  %11589 = vmatprep.mubr.msk.bf16.mxu0 %vm451_vm1, %v17036_v39  ;;  %v17048_v32 = vsel %vm3190_vm7, %v20718_v46, %v20371_v41  ;;  %6529 = vst.msk [vmem:[#allocation3 + $0xb8] sm:$0xff] %vm451_vm1, %v6209_v60  ;;  %v5986_v24 = vpack.c.bf16 %v5912_v18, %v5910_v9  ;;  %v5987_v61 = vpack.c.bf16 %v5913_v56, %v5911_v43  ;;  %v17062_v18 = vpop.f32.mrb[64].mxu1  ;;  %v20722_v39 = vld [vmem:[#allocation82_spill] sm:$0xff] }
 0x537   : > { %20719 = vst [vmem:[#allocation64_spill] sm:$0xff] %v17048_v32  ;;  %v17053_v34 = vmul.f32 %v5816_v10, %v20720_v19  ;;  %7053 = vmatmul.mubr.bf16.gmra.mrb[20].mxu0 %v17048_v32  ;;  %v5258_v51 = vrot.slane %v16815_v36, 2  ;;  %v5817_v17 = vmax.f32 %v5719_v63, 0.0  ;;  %v20721_v33 = vrot.slane %v16768_v47, 2  ;;  %v17070_v63 = vpop.f32.mrb[65].mxu1 }
 0x538   : > { %v5260_v46 = vrot.slane %v16829_v28, 2  ;;  %v5262_v44 = vrot.slane %v16834_v13, 2  ;;  %v6211_v41 = vshrl.u32 %v5986_v24, 16  ;;  %v6214_v60 = vshll.u32 %v5986_v24, 16  ;;  %v17072_v24 = vpop.f32.mrb[66].mxu1 }
 0x539   : > { %v5257_v22 = vsel %vm2094_vm5, %v20721_v33, %v5256_v25  ;;  %v6220_v9 = vshrl.u32 %v5987_v61, 16  ;;  %v6223_v43 = vshll.u32 %v5987_v61, 16  ;;  %v17065_v56 = vmul.f32 %v5817_v17, %v20720_v19  ;;  %v20723_v19 = vld [vmem:[#allocation83_spill] sm:$0xff] }
 0x53a   : > { %v5500_v36 = vadd.f32 %v5257_v22, %v16133_v38  ;;  %v5259_v10 = vsel %vm2094_vm5, %v5254_v49, %v5258_v51  ;;  %v5261_v47 = vsel %vm2094_vm5, %v5256_v25, %v5260_v46  ;;  %v6213_v28 = vrot.slane %v6211_v41, 3  ;;  %v17078_v22 = vpop.f32.mrb[67].mxu1  ;;  %v20724_v41 = vld [vmem:[#allocation84_spill] sm:$0xff] }
 0x53b   : > { %v6216_v33 = vrot.slane %v6214_v60, 4  ;;  %v6222_v13 = vrot.slane %v6220_v9, 3  ;;  %v6225_v32 = vrot.slane %v6223_v43, 4  ;;  %v5501_v20 = vadd.f32 %v5259_v10, %v20722_v39 }
 0x53c   : > { %v5610_v61 = vmul.f32 %v16317_v58, %v5500_v36  ;;  %v5502_v17 = vadd.f32 %v5261_v47, %v20723_v19  ;;  %v5263_v38 = vsel %vm2094_vm5, %v5258_v51, %v5262_v44  ;;  %v20379_v9 = vrot.slane %v16952_v42, 4 }
 0x53d   : > { %v17080_v49 = vor.u32 %v6216_v33, %v6213_v28  ;;  %v17082_v25 = vor.u32 %v6225_v32, %v6222_v13  ;;  %v5503_v60 = vadd.f32 %v5263_v38, %v20724_v41  ;;  %v5611_v36 = vmul.f32 %v16319_v50, %v5501_v20  ;;  %v17090_v47 = vld [vmem:[#allocation3 + $0xb8] sm:$0xff]  ;;  %v17126_v41 = vpop.f32.mrb[68].mxu1 }
 0x53e   : > { %v5720_v43 = vadd.f32 %v16322_v37, %v5610_v61  ;;  %v5612_v39 = vmul.f32 %v16317_v58, %v5502_v17  ;;  %v20378_v10 = vrot.slane %v16887_v2, 4  ;;  %v17103_v20 = vsel %vm3190_vm7, %v6738_v54, %v20379_v9  ;;  %11629 = vmatprep.mubr.msk.bf16.mxu1 %vm451_vm1, %v17090_v47 }
 0x53f   : > { %v17095_v51 = vsel %vm2861_vm6, %v17009_v55, %v17080_v49  ;;  %v6227_v32 = vsel %vm2861_vm6, %v6208_v26, %v17082_v25  ;;  %v5613_v28 = vmul.f32 %v16319_v50, %v5503_v60  ;;  %20725 = vst [vmem:[#allocation65_spill] sm:$0xff] %v17103_v20  ;;  %v5721_v55 = vadd.f32 %v16325_v40, %v5611_v36  ;;  %v20728_v60 = vld [vmem:[#allocation51_spill] sm:$0xff] }
 0x540   : > { %6530 = vst [vmem:[#allocation3 + $0xc0] sm:$0xff] %v17095_v51  ;;  %6531 = vst.msk [vmem:[#allocation3 + $0xc8] sm:$0xff] %vm451_vm1, %v6227_v32  ;;  %v5818_v33 = vmax.f32 %v5720_v43, 0.0  ;;  %v5722_v13 = vadd.f32 %v16322_v37, %v5612_v39  ;;  %11590 = vmatprep.mubr.msk.bf16.mxu0 %vm451_vm1, %v17103_v20  ;;  %v20726_v54 = vrot.slane %v16800_v3, 4  ;;  %7460 = vmatmul.mubr.bf16.gmra.mrb[136].mxu1 %v17024_v29  ;;  %v5264_v19 = vrot.slane %v16857_v4, 2  ;;  %v17130_v32 = vpop.f32.mrb[69].mxu1 }
 0x541   : > { %v5723_v61 = vadd.f32 %v16325_v40, %v5613_v28  ;;  %v5266_v17 = vrot.slane %v16859_v21, 2  ;;  %v20388_v38 = vrot.slane %v16866_v59, 2  ;;  %v5819_v3 = vmax.f32 %v5721_v55, 0.0  ;;  %v17137_v9 = vpop.f32.mrb[70].mxu1 }
 0x542   : > { %v17118_v26 = vsel %vm3190_vm7, %v20726_v54, %v20378_v10  ;;  %v5916_v43 = vmul.f32 %v5818_v33, %v20728_v60  ;;  %v5820_v36 = vmax.f32 %v5722_v13, 0.0  ;;  %v12935_v54 = vld [vmem:[#allocation6 + $0x140] sm:$0xff]   ;;  %v5265_v10 = vsel %vm2094_vm5, %v5260_v46, %v5264_v19  ;;  %v20729_v13 = vld [vmem:[#allocation11_spill] sm:$0xff]  ;;  %v17143_v20 = vpop.f32.mrb[71].mxu1 }
 0x543   : > { %20727 = vst [vmem:[#allocation35_spill] sm:$0xff] %v17118_v26  ;;  %7061 = vmatmul.mubr.bf16.gmra.mrb[24].mxu0 %v17118_v26  ;;  %v5821_v28 = vmax.f32 %v5723_v61, 0.0  ;;  %v5267_v4 = vsel %vm2094_vm5, %v5262_v44, %v5266_v17  ;;  %v5269_v21 = vsel %vm2094_vm5, %v5264_v19, %v20388_v38  ;;  %v5917_v55 = vmul.f32 %v5819_v3, %v20728_v60  ;;  %v20730_v44 = vld [vmem:[#allocation85_spill] sm:$0xff] }
 0x544   : > { %v5988_v33 = vpack.c.bf16 %v5916_v43, %v17053_v34  ;;  %v5918_v39 = vmul.f32 %v5820_v36, %v20729_v13  ;;  %v5504_v26 = vadd.f32 %v5265_v10, %v16149_v6  ;;  %8043 = vmatpush1.bf16.msra.mxu1 %v12935_v54  ;;  %v5505_v61 = vadd.f32 %v5267_v4, %v20730_v44  ;;  %v20733_v36 = vld [vmem:[#allocation87_spill] sm:$0xff] }
 0x545   : > { %v5919_v46 = vmul.f32 %v5821_v28, %v20729_v13  ;;  %v5506_v23 = vadd.f32 %v5269_v21, %v20731_v35  ;;  %v20732_v19 = vrot.slane %v16877_v15, 2  ;;  %8044 = vmatprep.subr.bf16.mxu1 %v16668_v1  ;;  %v5989_v43 = vpack.c.bf16 %v5917_v55, %v17065_v56  ;;  %v12936_v55 = vld [vmem:[#allocation6 + $0x148] sm:$0xff]  }
 0x546   : > { %v6229_v34 = vshrl.u32 %v5988_v33, 16  ;;  %v6232_v60 = vshll.u32 %v5988_v33, 16  ;;  %v5614_v6 = vmul.f32 %v16317_v58, %v5504_v26  ;;  %v5615_v10 = vmul.f32 %v16319_v50, %v5505_v61 }
 0x547   : > { %v5271_v38 = vsel %vm2094_vm5, %v5266_v17, %v20732_v19  ;;  %v5616_v3 = vmul.f32 %v16317_v58, %v5506_v23  ;;  %v20389_v35 = vrot.slane %v17005_v30, 4  ;;  %v17158_v28 = vld [vmem:[#allocation3 + $0xc8] sm:$0xff]  ;;  %v6238_v21 = vshrl.u32 %v5989_v43, 16 }
 0x548   : > { %v5507_v54 = vadd.f32 %v5271_v38, %v20733_v36  ;;  %v6231_v4 = vrot.slane %v6229_v34, 3  ;;  %v6234_v17 = vrot.slane %v6232_v60, 4  ;;  %v6241_v13 = vshll.u32 %v5989_v43, 16  ;;  %11630 = vmatprep.mubr.msk.bf16.mxu1 %vm451_vm1, %v17158_v28  ;;  %v17167_v38 = vpop.f32.mrb[72].mxu1  ;;  %8045 = vmatpush1.bf16.msra.mxu1 %v12936_v55  ;;  %v20737_v55 = vld [vmem:[#allocation13_spill] sm:$0xff] }
 0x549   : > { %v5724_v56 = vadd.f32 %v16322_v37, %v5614_v6  ;;  %v5725_v26 = vadd.f32 %v16325_v40, %v5615_v10  ;;  %v5726_v33 = vadd.f32 %v16322_v37, %v5616_v3  ;;  %7468 = vmatmul.mubr.bf16.gmra.mrb[140].mxu1 %v17095_v51  ;;  %v6240_v61 = vrot.slane %v6238_v21, 3  ;;  %v17178_v43 = vpop.f32.mrb[73].mxu1  ;;  %8046 = vmatprep.subr.bf16.mxu1 %v16668_v1 }
 0x54a   : > { %v5617_v23 = vmul.f32 %v16319_v50, %v5507_v54  ;;  %v17169_v44 = vor.u32 %v6234_v17, %v6231_v4  ;;  %v6243_v19 = vrot.slane %v6241_v13, 4  ;;  %v20734_v34 = vrot.slane %v16952_v42, 4  ;;  %v17183_v54 = vpop.f32.mrb[74].mxu1 }
 0x54b   : > { %v5822_v6 = vmax.f32 %v5724_v56, 0.0  ;;  %v5823_v10 = vmax.f32 %v5725_v26, 0.0  ;;  %v5824_v3 = vmax.f32 %v5726_v33, 0.0  ;;  %v20390_v17 = vrot.slane %v16936_v57, 4  ;;  %v17194_v13 = vpop.f32.mrb[75].mxu1  ;;  %v12934_v56 = vld [vmem:[#allocation6 + $0xd8] sm:$0xff]  }
 0x54c   : > { %v17176_v60 = vsel %vm3190_vm7, %v20734_v34, %v20389_v35  ;;  %v5727_v36 = vadd.f32 %v16325_v40, %v5617_v23  ;;  %v17188_v42 = vsel %vm2861_vm6, %v17080_v49, %v17169_v44  ;;  %v17190_v4 = vor.u32 %v6243_v19, %v6240_v61  ;;  %v20736_v26 = vld [vmem:[#allocation12_spill] sm:$0xff]  ;;  %v12937_v19 = vld [vmem:[#allocation6 + $0x150] sm:$0xff]   ;;  %7675 = vmatpush1.bf16.msra.mxu0 %v12934_v56 }
 0x54d   : > { %20735 = vst [vmem:[#allocation66_spill] sm:$0xff] %v17176_v60  ;;  %11591 = vmatprep.mubr.msk.bf16.mxu0 %vm451_vm1, %v17176_v60  ;;  %v5272_v21 = vrot.slane %v16907_v62, 2  ;;  %6532 = vst [vmem:[#allocation3 + $0xd0] sm:$0xff] %v17188_v42  ;;  %v5920_v33 = vmul.f32 %v5822_v6, %v20736_v26  ;;  %v5921_v23 = vmul.f32 %v5823_v10, %v20736_v26  ;;  %v20738_v34 = vrot.slane %v16887_v2, 4 }
 0x54e   : > { %v17201_v49 = vmul.f32 %v5824_v3, %v20737_v55  ;;  %v5825_v61 = vmax.f32 %v5727_v36, 0.0  ;;  %v6245_v62 = vsel %vm2861_vm6, %v17082_v25, %v17190_v4  ;;  %v20740_v6 = vrot.slane %v16866_v59, 2  ;;  %8047 = vmatpush1.bf16.msra.mxu1 %v12937_v19  ;;  %7676 = vmatprep.subr.bf16.mxu0 %v16668_v1 }
 0x54f   : > { %v17211_v35 = vsel %vm3190_vm7, %v20738_v34, %v20390_v17  ;;  %v5274_v3 = vrot.slane %v16917_v53, 2  ;;  %6533 = vst.msk [vmem:[#allocation3 + $0xd8] sm:$0xff] %vm451_vm1, %v6245_v62  ;;  %v5990_v36 = vpack.c.bf16 %v5920_v33, %v5918_v39  ;;  %v5991_v26 = vpack.c.bf16 %v5921_v23, %v5919_v46  ;;  %v12938_v39 = vld [vmem:[#allocation6 + $0x158] sm:$0xff]   ;;  %v12940_v46 = vld [vmem:[#allocation6 + $0xe0] sm:$0xff]   ;;  %8048 = vmatprep.subr.bf16.mxu1 %v16668_v1 }
 0x550   : > { %20739 = vst [vmem:[#allocation36_spill] sm:$0xff] %v17211_v35  ;;  %v5273_v10 = vsel %vm2094_vm5, %v20740_v6, %v5272_v21  ;;  %v17219_v25 = vmul.f32 %v5825_v61, %v20737_v55  ;;  %7069 = vmatmul.mubr.bf16.gmra.mrb[28].mxu0 %v17211_v35  ;;  %v20741_v34 = vrot.slane %v16877_v15, 2  ;;  %v5276_v6 = vrot.slane %v16919_v27, 2  ;;  %v20743_v35 = vld [vmem:[#allocation89_spill] sm:$0xff] }
 0x551   : > { %v5508_v2 = vadd.f32 %v5273_v10, %v16164_v48  ;;  %v5278_v53 = vrot.slane %v16925_v11, 2  ;;  %v6247_v33 = vshrl.u32 %v5990_v36, 16  ;;  %v6250_v23 = vshll.u32 %v5990_v36, 16  ;;  %v17230_v48 = vpop.f32.mrb[76].mxu1  ;;  %7677 = vmatpush1.bf16.msra.mxu0 %v12940_v46 }
 0x552   : > { %v5275_v59 = vsel %vm2094_vm5, %v20741_v34, %v5274_v3  ;;  %v6256_v55 = vshrl.u32 %v5991_v26, 16  ;;  %v6259_v61 = vshll.u32 %v5991_v26, 16  ;;  %v5277_v62 = vsel %vm2094_vm5, %v5272_v21, %v5276_v6  ;;  %v17239_v10 = vpop.f32.mrb[77].mxu1  ;;  %7678 = vmatprep.subr.bf16.mxu0 %v16668_v1  ;;  %v20742_v21 = vld [vmem:[#allocation88_spill] sm:$0xff]  ;;  %8049 = vmatpush1.bf16.msra.mxu1 %v12938_v39 }
 0x553   : > { %v5618_v15 = vmul.f32 %v16317_v58, %v5508_v2  ;;  %v5509_v27 = vadd.f32 %v5275_v59, %v16167_v31  ;;  %v5279_v19 = vsel %vm2094_vm5, %v5274_v3, %v5278_v53  ;;  %v6249_v36 = vrot.slane %v6247_v33, 3  ;;  %v17241_v56 = vpop.f32.mrb[78].mxu1  ;;  %8050 = vmatprep.subr.bf16.mxu1 %v16668_v1 }
 0x554   : > { %v6252_v34 = vrot.slane %v6250_v23, 4  ;;  %v6258_v26 = vrot.slane %v6256_v55, 3  ;;  %v6261_v17 = vrot.slane %v6259_v61, 4  ;;  %v5510_v59 = vadd.f32 %v5277_v62, %v20742_v21  ;;  %v17248_v3 = vpop.f32.mrb[79].mxu1 }
 0x555   : > { %v5728_v2 = vadd.f32 %v16322_v37, %v5618_v15  ;;  %v5619_v31 = vmul.f32 %v16319_v50, %v5509_v27  ;;  %v5511_v60 = vadd.f32 %v5279_v19, %v20743_v35  ;;  %v20744_v23 = vrot.slane %v17090_v47, 4  ;;  %v12939_v27 = vld [vmem:[#allocation6 + $0x160] sm:$0xff]  }
 0x556   : > { %v17250_v46 = vor.u32 %v6252_v34, %v6249_v36  ;;  %v17252_v33 = vor.u32 %v6261_v17, %v6258_v26  ;;  %v20745_v55 = vrot.slane %v17005_v30, 4  ;;  %v20395_v15 = vrot.slane %v17024_v29, 4  ;;  %v17268_v19 = vld [vmem:[#allocation3 + $0xd8] sm:$0xff]  ;;  %8051 = vmatpush1.bf16.msra.mxu1 %v12939_v27 }
 0x557   : > { %v5826_v35 = vmax.f32 %v5728_v2, 0.0  ;;  %v5729_v62 = vadd.f32 %v16325_v40, %v5619_v31  ;;  %v5620_v39 = vmul.f32 %v16317_v58, %v5510_v59  ;;  %v5621_v17 = vmul.f32 %v16319_v50, %v5511_v60  ;;  %11631 = vmatprep.mubr.msk.bf16.mxu1 %vm451_vm1, %v17268_v19 }
 0x558   : > { %v17259_v61 = vsel %vm3190_vm7, %v20745_v55, %v20744_v23  ;;  %v17273_v30 = vsel %vm2861_vm6, %v17169_v44, %v17250_v46  ;;  %v6263_v1 = vsel %vm2861_vm6, %v17190_v4, %v17252_v33  ;;  %v20747_v36 = vrot.slane %v16936_v57, 4  ;;  %v20749_v44 = vld [vmem:[#allocation14_spill] sm:$0xff]  ;;  %7476 = vmatmul.mubr.bf16.gmra.mrb[144].mxu1 %v17188_v42  ;;  %v17299_v23 = vpop.f32.mrb[80].mxu1 }
 0x559   : > { %20746 = vst [vmem:[#allocation67_spill] sm:$0xff] %v17259_v61  ;;  %11592 = vmatprep.mubr.msk.bf16.mxu0 %vm451_vm1, %v17259_v61  ;;  %v5280_v34 = vrot.slane %v16963_v45, 2  ;;  %6534 = vst [vmem:[#allocation3 + $0xe0] sm:$0xff] %v17273_v30  ;;  %v5924_v26 = vmul.f32 %v5826_v35, %v20749_v44  ;;  %v5827_v2 = vmax.f32 %v5729_v62, 0.0  ;;  %v5730_v4 = vadd.f32 %v16322_v37, %v5620_v39  ;;  %v12941_v55 = vld [vmem:[#allocation6 + $0x168] sm:$0xff]  }
 0x55a   : > { %v17283_v60 = vsel %vm3190_vm7, %v20747_v36, %v20395_v15  ;;  %6535 = vst.msk [vmem:[#allocation3 + $0xe8] sm:$0xff] %vm451_vm1, %v6263_v1  ;;  %v5731_v31 = vadd.f32 %v16325_v40, %v5621_v17  ;;  %v5282_v45 = vrot.slane %v16976_v16, 2  ;;  %v20396_v21 = vrot.slane %v16982_v52, 2  ;;  %v17303_v1 = vpop.f32.mrb[81].mxu1  ;;  %v17305_v36 = vld [vmem:[#allocation3] sm:$0xff] }
 0x55b   : > { %20748 = vst [vmem:[#allocation37_spill] sm:$0xff] %v17283_v60  ;;  %7077 = vmatmul.mubr.bf16.gmra.mrb[32].mxu0 %v17283_v60  ;;  %v5281_v57 = vsel %vm2094_vm5, %v5276_v6, %v5280_v34  ;;  %v20401_v59 = vrot.slane %v16987_v5, 2  ;;  %v5992_v35 = vpack.c.bf16 %v5924_v26, %v17201_v49  ;;  %v5925_v62 = vmul.f32 %v5827_v2, %v20749_v44  ;;  %v20750_v16 = vld [vmem:[#allocation90_spill] sm:$0xff]  ;;  %v17318_v44 = vpop.f32.mrb[82].mxu1  ;;  %v20754_v60 = vld [vmem:[#allocation92_spill] sm:$0xff] }
 0x55c   : > { %v5828_v39 = vmax.f32 %v5730_v4, 0.0  ;;  %v5829_v17 = vmax.f32 %v5731_v31, 0.0  ;;  %8052 = vmatprep.subr.bf16.mxu1 %v17305_v36  ;;  %v5512_v6 = vadd.f32 %v5281_v57, %v20750_v16  ;;  %v5283_v15 = vsel %vm2094_vm5, %v5278_v53, %v5282_v45  ;;  %v20751_v31 = vld [vmem:[#allocation15_spill] sm:$0xff]  ;;  %v17322_v16 = vpop.f32.mrb[83].mxu1 }
 0x55d   : > { %v5285_v49 = vsel %vm2094_vm5, %v5280_v34, %v20396_v21  ;;  %v5287_v27 = vsel %vm2094_vm5, %v5282_v45, %v20401_v59  ;;  %v6265_v26 = vshrl.u32 %v5992_v35, 16  ;;  %v6268_v2 = vshll.u32 %v5992_v35, 16  ;;  %20752 = vst [vmem:[#allocation38_spill] sm:$0xff] %v17322_v16  ;;  %v20753_v34 = vld [vmem:[#allocation91_spill] sm:$0xff]  ;;  %8053 = vmatpush1.bf16.msra.mxu1 %v12941_v55 }
 0x55e   : > { %v5993_v4 = vpack.c.bf16 %v5925_v62, %v17219_v25  ;;  %v5926_v57 = vmul.f32 %v5828_v39, %v20751_v31  ;;  %v17325_v11 = vmul.f32 %v5829_v17, %v20751_v31  ;;  %v5622_v53 = vmul.f32 %v16317_v58, %v5512_v6  ;;  %8054 = vmatprep.subr.bf16.mxu1 %v17305_v36  ;;  %v12942_v25 = vld [vmem:[#allocation6 + $0x170] sm:$0xff]   ;;  %v20755_v31 = vld [vmem:[#allocation93_spill] sm:$0xff] }
 0x55f   : > { %v5513_v21 = vadd.f32 %v5283_v15, %v20753_v34  ;;  %v5514_v61 = vadd.f32 %v5285_v49, %v20754_v60  ;;  %v6267_v45 = vrot.slane %v6265_v26, 3  ;;  %v6270_v59 = vrot.slane %v6268_v2, 4 }
 0x560   : > { %v6274_v7 = vshrl.u32 %v5993_v4, 16  ;;  %v6277_v35 = vshll.u32 %v5993_v4, 16  ;;  %v5732_v62 = vadd.f32 %v16322_v37, %v5622_v53  ;;  %v5515_v6 = vadd.f32 %v5287_v27, %v20755_v31  ;;  %v17346_v27 = vpop.f32.mrb[84].mxu1 }
 0x561   : > { %v5623_v39 = vmul.f32 %v16319_v50, %v5513_v21  ;;  %v5624_v17 = vmul.f32 %v16317_v58, %v5514_v61  ;;  %v17335_v16 = vld [vmem:[#allocation3 + $0xe8] sm:$0xff]  ;;  %v17337_v15 = vor.u32 %v6270_v59, %v6267_v45  ;;  %v20404_v49 = vrot.slane %v17158_v28, 4  ;;  %v12946_v59 = vld [vmem:[#allocation6 + $0xe8] sm:$0xff]   ;;  %8055 = vmatpush1.bf16.msra.mxu1 %v12942_v25 }
 0x562   : > { %v6276_v60 = vrot.slane %v6274_v7, 3  ;;  %v6279_v55 = vrot.slane %v6277_v35, 4  ;;  %11632 = vmatprep.mubr.msk.bf16.mxu1 %vm451_vm1, %v17335_v16  ;;  %v5830_v26 = vmax.f32 %v5732_v62, 0.0  ;;  %v5625_v61 = vmul.f32 %v16319_v50, %v5515_v6  ;;  %v17363_v35 = vpop.f32.mrb[85].mxu1  ;;  %v12943_v62 = vld [vmem:[#allocation6 + $0x178] sm:$0xff]   ;;  %8056 = vmatprep.subr.bf16.mxu1 %v17305_v36 }
 0x563   : > { %v5733_v2 = vadd.f32 %v16325_v40, %v5623_v39  ;;  %v5734_v21 = vadd.f32 %v16322_v37, %v5624_v17  ;;  %7484 = vmatmul.mubr.bf16.gmra.mrb[148].mxu1 %v17273_v30  ;;  %v17351_v7 = vsel %vm2861_vm6, %v17250_v46, %v17337_v15  ;;  %v20756_v53 = vrot.slane %v17090_v47, 4  ;;  %v20758_v39 = vld [vmem:[#allocation16_spill] sm:$0xff]  ;;  %v17370_v47 = vpop.f32.mrb[86].mxu1  ;;  %7679 = vmatpush1.bf16.msra.mxu0 %v12946_v59 }
 0x564   : > { %v17353_v4 = vor.u32 %v6279_v55, %v6276_v60  ;;  %v20407_v45 = vrot.slane %v17095_v51, 4  ;;  %6536 = vst [vmem:[#allocation3 + $0xf0] sm:$0xff] %v17351_v7  ;;  %v5928_v46 = vmul.f32 %v5830_v26, %v20758_v39  ;;  %v5735_v6 = vadd.f32 %v16325_v40, %v5625_v61  ;;  %9024 = vmatprep.subr.bf16.mxu0 %v17305_v36 }
 0x565   : > { %v17360_v34 = vsel %vm3190_vm7, %v20756_v53, %v20404_v49  ;;  %v5831_v17 = vmax.f32 %v5733_v2, 0.0  ;;  %v5832_v31 = vmax.f32 %v5734_v21, 0.0  ;;  %v20759_v60 = vrot.slane %v17024_v29, 4  ;;  %v17385_v21 = vpop.f32.mrb[87].mxu1  ;;  %8057 = vmatpush1.bf16.msra.mxu1 %v12943_v62 }
 0x566   : > { %20757 = vst [vmem:[#allocation68_spill] sm:$0xff] %v17360_v34  ;;  %11593 = vmatprep.mubr.msk.bf16.mxu0 %vm451_vm1, %v17360_v34  ;;  %v6281_v25 = vsel %vm2861_vm6, %v17252_v33, %v17353_v4  ;;  %v5288_v26 = vrot.slane %v17007_v14, 2  ;;  %v5290_v2 = vrot.slane %v17014_v12, 2  ;;  %20761 = vst [vmem:[#allocation70_spill] sm:$0xff] %v17385_v21  ;;  %v5994_v61 = vpack.c.bf16 %v5928_v46, %v5926_v57  ;;  %v20762_v33 = vld [vmem:[#allocation17_spill] sm:$0xff]  ;;  %v17409_v21 = vpop.f32.mrb[88].mxu1 }
 0x567   : > { %v17381_v55 = vsel %vm3190_vm7, %v20759_v60, %v20407_v45  ;;  %6537 = vst.msk [vmem:[#allocation3 + $0xf8] sm:$0xff] %vm451_vm1, %v6281_v25  ;;  %v5929_v53 = vmul.f32 %v5831_v17, %v20758_v39  ;;  %v17390_v49 = vmul.f32 %v5832_v31, %v20762_v33  ;;  %v5833_v34 = vmax.f32 %v5735_v6, 0.0  ;;  %v12944_v46 = vld [vmem:[#allocation6 + $0x180] sm:$0xff]   ;;  %8058 = vmatprep.subr.bf16.mxu1 %v17305_v36 }
 0x568   : > { %20760 = vst [vmem:[#allocation69_spill] sm:$0xff] %v17381_v55  ;;  %7085 = vmatmul.mubr.bf16.gmra.mrb[36].mxu0 %v17381_v55  ;;  %v20763_v14 = vrot.slane %v16982_v52, 2  ;;  %v20764_v29 = vrot.slane %v16987_v5, 2  ;;  %v5292_v57 = vrot.slane %v17019_v0, 2  ;;  %v5294_v39 = vrot.slane %v17028_v8, 2  ;;  %v20765_v52 = vld [vmem:[#allocation94_spill] sm:$0xff] }
 0x569   : > { %v6283_v17 = vshrl.u32 %v5994_v61, 16  ;;  %v6286_v31 = vshll.u32 %v5994_v61, 16  ;;  %v5995_v6 = vpack.c.bf16 %v5929_v53, %v17325_v11  ;;  %v5931_v25 = vmul.f32 %v5833_v34, %v20762_v33  ;;  %v20767_v61 = vld [vmem:[#allocation96_spill] sm:$0xff]  ;;  %v20768_v33 = vld [vmem:[#allocation97_spill] sm:$0xff]  ;;  %8059 = vmatpush1.bf16.msra.mxu1 %v12944_v46 }
 0x56a   : > { %v5289_v12 = vsel %vm2094_vm5, %v20763_v14, %v5288_v26  ;;  %v5291_v59 = vsel %vm2094_vm5, %v20764_v29, %v5290_v2  ;;  %v20766_v14 = vld [vmem:[#allocation95_spill] sm:$0xff]  ;;  %v5293_v29 = vsel %vm2094_vm5, %v5288_v26, %v5292_v57  ;;  %v5295_v0 = vsel %vm2094_vm5, %v5290_v2, %v5294_v39  ;;  %8060 = vmatprep.subr.bf16.mxu1 %v17305_v36 }
 0x56b   : > { %v5516_v60 = vadd.f32 %v5289_v12, %v20765_v52  ;;  %v5517_v5 = vadd.f32 %v5291_v59, %v20766_v14  ;;  %v6285_v45 = vrot.slane %v6283_v17, 3  ;;  %v6288_v8 = vrot.slane %v6286_v31, 4  ;;  %v17415_v52 = vpop.f32.mrb[89].mxu1 }
 0x56c   : > { %v6292_v62 = vshrl.u32 %v5995_v6, 16  ;;  %v6295_v55 = vshll.u32 %v5995_v6, 16  ;;  %v5518_v53 = vadd.f32 %v5293_v29, %v20767_v61  ;;  %v5519_v12 = vadd.f32 %v5295_v0, %v20768_v33  ;;  %v17420_v31 = vpop.f32.mrb[90].mxu1  ;;  %v12945_v6 = vld [vmem:[#allocation6 + $0x188] sm:$0xff]  }
 0x56d   : > { %v5626_v11 = vmul.f32 %v16317_v58, %v5516_v60  ;;  %v5627_v34 = vmul.f32 %v16319_v50, %v5517_v5  ;;  %v17417_v26 = vor.u32 %v6288_v8, %v6285_v45  ;;  %v20411_v17 = vrot.slane %v17268_v19, 4  ;;  %v17429_v45 = vpop.f32.mrb[91].mxu1  ;;  %8061 = vmatpush1.bf16.msra.mxu1 %v12945_v6 }
 0x56e   : > { %v6294_v2 = vrot.slane %v6292_v62, 3  ;;  %v6297_v59 = vrot.slane %v6295_v55, 4  ;;  %v5628_v5 = vmul.f32 %v16317_v58, %v5518_v53  ;;  %v5629_v29 = vmul.f32 %v16319_v50, %v5519_v12  ;;  %v17427_v46 = vld [vmem:[#allocation3 + $0xf8] sm:$0xff]  ;;  %8333 = vmatprep.subr.bf16.mxu1 %v17305_v36  ;;  %v17475_v6 = vpop.f32.mrb[92].mxu1 }
 0x56f   : > { %v5736_v60 = vadd.f32 %v16322_v37, %v5626_v11  ;;  %v5737_v14 = vadd.f32 %v16325_v40, %v5627_v34  ;;  %v17434_v55 = vsel %vm2861_vm6, %v17337_v15, %v17417_v26  ;;  %v20769_v8 = vrot.slane %v17158_v28, 4  ;;  %11633 = vmatprep.mubr.msk.bf16.mxu1 %vm451_vm1, %v17427_v46 }
 0x570   : > { %v17436_v0 = vor.u32 %v6297_v59, %v6294_v2  ;;  %v20410_v11 = vrot.slane %v17188_v42, 4  ;;  %6538 = vst [vmem:[#allocation3 + $0x100] sm:$0xff] %v17434_v55  ;;  %v5738_v15 = vadd.f32 %v16322_v37, %v5628_v5  ;;  %v5739_v53 = vadd.f32 %v16325_v40, %v5629_v29  ;;  %7492 = vmatmul.mubr.bf16.gmra.mrb[152].mxu1 %v17351_v7 }
 0x571   : > { %v17443_v62 = vsel %vm3190_vm7, %v20769_v8, %v20411_v17  ;;  %v5834_v34 = vmax.f32 %v5736_v60, 0.0  ;;  %v5835_v61 = vmax.f32 %v5737_v14, 0.0  ;;  %v20771_v33 = vrot.slane %v17095_v51, 4  ;;  %v20773_v60 = vld [vmem:[#allocation18_spill] sm:$0xff] }
 0x572   : > { %20770 = vst [vmem:[#allocation71_spill] sm:$0xff] %v17443_v62  ;;  %11594 = vmatprep.mubr.msk.bf16.mxu0 %vm451_vm1, %v17443_v62  ;;  %v6299_v28 = vsel %vm2861_vm6, %v17353_v4, %v17436_v0  ;;  %v5296_v2 = vrot.slane %v17062_v18, 2  ;;  %v5298_v59 = vrot.slane %v17070_v63, 2  ;;  %v5836_v29 = vmax.f32 %v5738_v15, 0.0 }
 0x573   : > { %v17462_v12 = vsel %vm3190_vm7, %v20771_v33, %v20410_v11  ;;  %6539 = vst.msk [vmem:[#allocation3 + $0x108] sm:$0xff] %vm451_vm1, %v6299_v28  ;;  %v5932_v14 = vmul.f32 %v5834_v34, %v20773_v60  ;;  %v5933_v5 = vmul.f32 %v5835_v61, %v20773_v60  ;;  %v5837_v4 = vmax.f32 %v5739_v53, 0.0  ;;  %v20774_v61 = vld [vmem:[#allocation19_spill] sm:$0xff]  ;;  %v7375_v33 = vpop.f32.mrb[93].mxu1  ;;  %v20775_v60 = vld [vmem:[#allocation98_spill] sm:$0xff] }
 0x574   : > { %20772 = vst [vmem:[#allocation39_spill] sm:$0xff] %v17462_v12  ;;  %7093 = vmatmul.mubr.bf16.gmra.mrb[40].mxu0 %v17462_v12  ;;  %v5297_v51 = vsel %vm2094_vm5, %v5292_v57, %v5296_v2  ;;  %v5299_v8 = vsel %vm2094_vm5, %v5294_v39, %v5298_v59  ;;  %v20414_v18 = vrot.slane %v17072_v24, 2  ;;  %v20415_v63 = vrot.slane %v17078_v22, 2  ;;  %v20776_v11 = vld [vmem:[#allocation99_spill] sm:$0xff] }
 0x575   : > { %v5996_v34 = vpack.c.bf16 %v5932_v14, %v17390_v49  ;;  %v5997_v28 = vpack.c.bf16 %v5933_v5, %v5931_v25  ;;  %v5934_v15 = vmul.f32 %v5836_v29, %v20774_v61  ;;  %v5935_v53 = vmul.f32 %v5837_v4, %v20774_v61  ;;  %v20777_v4 = vld [vmem:[#allocation100_spill] sm:$0xff]  ;;  %v20778_v61 = vld [vmem:[#allocation101_spill] sm:$0xff] }
 0x576   : > { %v5520_v36 = vadd.f32 %v5297_v51, %v20775_v60  ;;  %v5521_v57 = vadd.f32 %v5299_v8, %v20776_v11  ;;  %v5301_v39 = vsel %vm2094_vm5, %v5296_v2, %v20414_v18  ;;  %v5303_v17 = vsel %vm2094_vm5, %v5298_v59, %v20415_v63 }
 0x577   : > { %v6301_v12 = vshrl.u32 %v5996_v34, 16  ;;  %v6304_v49 = vshll.u32 %v5996_v34, 16  ;;  %v6310_v25 = vshrl.u32 %v5997_v28, 16  ;;  %v6313_v14 = vshll.u32 %v5997_v28, 16 }
 0x578   : > { %v5630_v5 = vmul.f32 %v16317_v58, %v5520_v36  ;;  %v5631_v29 = vmul.f32 %v16319_v50, %v5521_v57  ;;  %v5522_v51 = vadd.f32 %v5301_v39, %v20777_v4  ;;  %v5523_v11 = vadd.f32 %v5303_v17, %v20778_v61 }
 0x579   : > { %v6303_v8 = vrot.slane %v6301_v12, 3  ;;  %v6306_v33 = vrot.slane %v6304_v49, 4  ;;  %v6312_v60 = vrot.slane %v6310_v25, 3  ;;  %v6315_v2 = vrot.slane %v6313_v14, 4 }
 0x57a   : > { %v5740_v18 = vadd.f32 %v16322_v37, %v5630_v5  ;;  %v5741_v59 = vadd.f32 %v16325_v40, %v5631_v29  ;;  %v5632_v34 = vmul.f32 %v16317_v58, %v5522_v51  ;;  %v5633_v28 = vmul.f32 %v16319_v50, %v5523_v11  ;;  %v17496_v63 = vld [vmem:[#allocation3 + $0x108] sm:$0xff]  ;;  %v17509_v5 = vpop.f32.mrb[94].mxu1 }
 0x57b   : > { %v17498_v36 = vor.u32 %v6306_v33, %v6303_v8  ;;  %v17500_v57 = vor.u32 %v6315_v2, %v6312_v60  ;;  %v20417_v17 = vrot.slane %v17335_v16, 4  ;;  %v20416_v12 = vrot.slane %v17273_v30, 4  ;;  %11634 = vmatprep.mubr.msk.bf16.mxu1 %vm451_vm1, %v17496_v63 }
 0x57c   : > { %v5838_v39 = vmax.f32 %v5740_v18, 0.0  ;;  %v5839_v49 = vmax.f32 %v5741_v59, 0.0  ;;  %v5742_v25 = vadd.f32 %v16322_v37, %v5632_v34  ;;  %v5743_v14 = vadd.f32 %v16325_v40, %v5633_v28  ;;  %7500 = vmatmul.mubr.bf16.gmra.mrb[156].mxu1 %v17434_v55 }
 0x57d   : > { %v17514_v29 = vsel %vm2861_vm6, %v17417_v26, %v17498_v36  ;;  %v6317_v4 = vsel %vm2861_vm6, %v17436_v0, %v17500_v57  ;;  %v20779_v18 = vrot.slane %v17268_v19, 4  ;;  %v20781_v61 = vrot.slane %v17188_v42, 4  ;;  %v7378_v26 = vpop.f32.mrb[95].mxu1  ;;  %v20783_v0 = vld [vmem:[#allocation20_spill] sm:$0xff] }
 0x57e   : > { %6540 = vst [vmem:[#allocation3 + $0x110] sm:$0xff] %v17514_v29  ;;  %6541 = vst.msk [vmem:[#allocation3 + $0x118] sm:$0xff] %vm451_vm1, %v6317_v4  ;;  %v5936_v8 = vmul.f32 %v5838_v39, %v20783_v0  ;;  %v5937_v33 = vmul.f32 %v5839_v49, %v20783_v0  ;;  %v5840_v19 = vmax.f32 %v5742_v25, 0.0  ;;  %v5841_v60 = vmax.f32 %v5743_v14, 0.0  ;;  %v17539_v2 = vpop.f32.mrb[96].mxu1  ;;  %v20784_v25 = vld [vmem:[#allocation21_spill] sm:$0xff] }
 0x57f   : > { %v17524_v51 = vsel %vm3190_vm7, %v20779_v18, %v20417_v17  ;;  %v17531_v11 = vsel %vm3190_vm7, %v20781_v61, %v20416_v12  ;;  %v5304_v42 = vrot.slane %v17126_v41, 2  ;;  %v5306_v59 = vrot.slane %v17130_v32, 2  ;;  %v7383_v39 = vpop.f32.mrb[97].mxu1 }
 0x580   : > { %20780 = vst [vmem:[#allocation40_spill] sm:$0xff] %v17524_v51  ;;  %20782 = vst [vmem:[#allocation72_spill] sm:$0xff] %v17531_v11  ;;  %11595 = vmatprep.mubr.msk.bf16.mxu0 %vm451_vm1, %v17524_v51  ;;  %v5308_v34 = vrot.slane %v17137_v9, 2  ;;  %v5310_v28 = vrot.slane %v17143_v20, 2  ;;  %v5998_v4 = vpack.c.bf16 %v5936_v8, %v5934_v15  ;;  %v5999_v49 = vpack.c.bf16 %v5937_v33, %v5935_v53  ;;  %v17548_v61 = vpop.f32.mrb[98].mxu1 }
 0x581   : > { %7101 = vmatmul.mubr.bf16.gmra.mrb[44].mxu0 %v17531_v11  ;;  %v5938_v14 = vmul.f32 %v5840_v19, %v20784_v25  ;;  %v5939_v18 = vmul.f32 %v5841_v60, %v20784_v25  ;;  %v20785_v26 = vrot.slane %v17072_v24, 2  ;;  %v20786_v41 = vrot.slane %v17078_v22, 2  ;;  %v7386_v15 = vpop.f32.mrb[99].mxu1  ;;  %v20787_v60 = vld [vmem:[#allocation102_spill] sm:$0xff]  ;;  %v20788_v25 = vld [vmem:[#allocation103_spill] sm:$0xff]  ;;  %v20789_v24 = vld [vmem:[#allocation104_spill] sm:$0xff] }
 0x582   : > { %v5309_v9 = vsel %vm2094_vm5, %v5304_v42, %v5308_v34  ;;  %v5311_v20 = vsel %vm2094_vm5, %v5306_v59, %v5310_v28  ;;  %v6319_v53 = vshrl.u32 %v5998_v4, 16  ;;  %v6322_v8 = vshll.u32 %v5998_v4, 16 }
 0x583   : > { %v5305_v0 = vsel %vm2094_vm5, %v20785_v26, %v5304_v42  ;;  %v5307_v32 = vsel %vm2094_vm5, %v20786_v41, %v5306_v59  ;;  %v6328_v33 = vshrl.u32 %v5999_v49, 16  ;;  %v6331_v19 = vshll.u32 %v5999_v49, 16  ;;  %v20790_v26 = vld [vmem:[#allocation105_spill] sm:$0xff] }
 0x584   : > { %v5524_v39 = vadd.f32 %v5305_v0, %v20787_v60  ;;  %v5525_v12 = vadd.f32 %v5307_v32, %v20788_v25  ;;  %v5526_v17 = vadd.f32 %v5309_v9, %v20789_v24  ;;  %v5527_v11 = vadd.f32 %v5311_v20, %v20790_v26  ;;  %v20795_v24 = vld [vmem:[#allocation22_spill] sm:$0xff] }
 0x585   : > { %v6321_v22 = vrot.slane %v6319_v53, 3  ;;  %v6324_v51 = vrot.slane %v6322_v8, 4  ;;  %v6330_v41 = vrot.slane %v6328_v33, 3  ;;  %v6333_v62 = vrot.slane %v6331_v19, 4  ;;  %v17566_v15 = vld [vmem:[#allocation3 + $0x118] sm:$0xff] }
 0x586   : > { %v5634_v42 = vmul.f32 %v16317_v58, %v5524_v39  ;;  %v5635_v59 = vmul.f32 %v16319_v50, %v5525_v12  ;;  %v5636_v4 = vmul.f32 %v16317_v58, %v5526_v17  ;;  %v5637_v49 = vmul.f32 %v16319_v50, %v5527_v11  ;;  %11635 = vmatprep.mubr.msk.bf16.mxu1 %vm451_vm1, %v17566_v15 }
 0x587   : > { %v17568_v0 = vor.u32 %v6324_v51, %v6321_v22  ;;  %v17570_v32 = vor.u32 %v6333_v62, %v6330_v41  ;;  %v6766_v9 = vrot.slane %v17427_v46, 4  ;;  %v6764_v20 = vrot.slane %v17351_v7, 4  ;;  %7508 = vmatmul.mubr.bf16.gmra.mrb[160].mxu1 %v17514_v29  ;;  %v20796_v41 = vld [vmem:[#allocation23_spill] sm:$0xff] }
 0x588   : > { %v5744_v53 = vadd.f32 %v16322_v37, %v5634_v42  ;;  %v5745_v12 = vadd.f32 %v16325_v40, %v5635_v59  ;;  %v5746_v17 = vadd.f32 %v16322_v37, %v5636_v4  ;;  %v5747_v11 = vadd.f32 %v16325_v40, %v5637_v49 }
 0x589   : > { %v17584_v62 = vsel %vm2861_vm6, %v17498_v36, %v17568_v0  ;;  %v6335_v7 = vsel %vm2861_vm6, %v17500_v57, %v17570_v32  ;;  %v20791_v46 = vrot.slane %v17335_v16, 4  ;;  %v20793_v8 = vrot.slane %v17273_v30, 4 }
 0x58a   : > { %6542 = vst [vmem:[#allocation3 + $0x120] sm:$0xff] %v17584_v62  ;;  %6543 = vst.msk [vmem:[#allocation3 + $0x128] sm:$0xff] %vm451_vm1, %v6335_v7  ;;  %v5842_v36 = vmax.f32 %v5744_v53, 0.0  ;;  %v5843_v19 = vmax.f32 %v5745_v12, 0.0  ;;  %v5844_v60 = vmax.f32 %v5746_v17, 0.0  ;;  %v5845_v39 = vmax.f32 %v5747_v11, 0.0 }
 0x58b   : > { %v17592_v51 = vsel %vm3190_vm7, %v20791_v46, %v6766_v9  ;;  %v17597_v33 = vsel %vm3190_vm7, %v20793_v8, %v6764_v20  ;;  %v5312_v16 = vrot.slane %v17167_v38, 2  ;;  %v5314_v30 = vrot.slane %v17178_v43, 2  ;;  %v20797_v12 = vld [vmem:[#allocation106_spill] sm:$0xff]  ;;  %v20798_v17 = vld [vmem:[#allocation107_spill] sm:$0xff]  ;;  %v20799_v7 = vld [vmem:[#allocation108_spill] sm:$0xff] }
 0x58c   : > { %20792 = vst [vmem:[#allocation73_spill] sm:$0xff] %v17592_v51  ;;  %20794 = vst [vmem:[#allocation41_spill] sm:$0xff] %v17597_v33  ;;  %11596 = vmatprep.mubr.msk.bf16.mxu0 %vm451_vm1, %v17592_v51  ;;  %v5316_v57 = vrot.slane %v17183_v54, 2  ;;  %v5318_v25 = vrot.slane %v17194_v13, 2  ;;  %v5940_v26 = vmul.f32 %v5842_v36, %v20795_v24  ;;  %v5941_v22 = vmul.f32 %v5843_v19, %v20795_v24  ;;  %v20800_v8 = vld [vmem:[#allocation109_spill] sm:$0xff] }
 0x58d   : > { %7109 = vmatmul.mubr.bf16.gmra.mrb[48].mxu0 %v17597_v33  ;;  %v5942_v42 = vmul.f32 %v5844_v60, %v20796_v41  ;;  %v5943_v59 = vmul.f32 %v5845_v39, %v20796_v41  ;;  %v5313_v4 = vsel %vm2094_vm5, %v5308_v34, %v5312_v16  ;;  %v5315_v49 = vsel %vm2094_vm5, %v5310_v28, %v5314_v30 }
 0x58e   : > { %v5317_v38 = vsel %vm2094_vm5, %v5312_v16, %v5316_v57  ;;  %v5319_v43 = vsel %vm2094_vm5, %v5314_v30, %v5318_v25  ;;  %v6000_v53 = vpack.c.bf16 %v5940_v26, %v5938_v14  ;;  %v6001_v54 = vpack.c.bf16 %v5941_v22, %v5939_v18 }
 0x58f   : > { %v5528_v13 = vadd.f32 %v5313_v4, %v20797_v12  ;;  %v5529_v11 = vadd.f32 %v5315_v49, %v20798_v17  ;;  %v5530_v46 = vadd.f32 %v5317_v38, %v20799_v7  ;;  %v5531_v36 = vadd.f32 %v5319_v43, %v20800_v8 }
 0x590   : > { %v6770_v19 = vrot.slane %v17496_v63, 4  ;;  %v6768_v34 = vrot.slane %v17434_v55, 4  ;;  %v6337_v60 = vshrl.u32 %v6000_v53, 16  ;;  %v6340_v28 = vshll.u32 %v6000_v53, 16 }
 0x591   : > { %v6346_v39 = vshrl.u32 %v6001_v54, 16  ;;  %v6349_v16 = vshll.u32 %v6001_v54, 16  ;;  %v5638_v30 = vmul.f32 %v16317_v58, %v5528_v13  ;;  %v5639_v14 = vmul.f32 %v16319_v50, %v5529_v11  ;;  %v17626_v26 = vld [vmem:[#allocation3 + $0x128] sm:$0xff] }
 0x592   : > { %v5640_v18 = vmul.f32 %v16317_v58, %v5530_v46  ;;  %v5641_v24 = vmul.f32 %v16319_v50, %v5531_v36  ;;  %v6339_v22 = vrot.slane %v6337_v60, 3  ;;  %v6342_v41 = vrot.slane %v6340_v28, 4  ;;  %11636 = vmatprep.mubr.msk.bf16.mxu1 %vm451_vm1, %v17626_v26 }
 0x593   : > { %v6348_v4 = vrot.slane %v6346_v39, 3  ;;  %v6351_v49 = vrot.slane %v6349_v16, 4  ;;  %v5748_v38 = vadd.f32 %v16322_v37, %v5638_v30  ;;  %v5749_v43 = vadd.f32 %v16325_v40, %v5639_v14  ;;  %7516 = vmatmul.mubr.bf16.gmra.mrb[164].mxu1 %v17584_v62  ;;  %v20803_v39 = vld [vmem:[#allocation25_spill] sm:$0xff]  ;;  %v20804_v14 = vld [vmem:[#allocation24_spill] sm:$0xff] }
 0x594   : > { %v5750_v53 = vadd.f32 %v16322_v37, %v5640_v18  ;;  %v5751_v54 = vadd.f32 %v16325_v40, %v5641_v24  ;;  %v6343_v12 = vor.u32 %v6342_v41, %v6339_v22  ;;  %v17638_v17 = vsel %vm3190_vm7, %v6766_v9, %v6770_v19 }
 0x595   : > { %v6352_v13 = vor.u32 %v6351_v49, %v6348_v4  ;;  %20801 = vst [vmem:[#allocation42_spill] sm:$0xff] %v17638_v17  ;;  %v17643_v11 = vsel %vm3190_vm7, %v6764_v20, %v6768_v34  ;;  %v5846_v7 = vmax.f32 %v5748_v38, 0.0  ;;  %v5847_v46 = vmax.f32 %v5749_v43, 0.0  ;;  %11597 = vmatprep.mubr.msk.bf16.mxu0 %vm451_vm1, %v17638_v17  ;;  %v20805_v4 = vld [vmem:[#allocation110_spill] sm:$0xff]  ;;  %v20806_v38 = vld [vmem:[#allocation111_spill] sm:$0xff] }
 0x596   : > { %20802 = vst [vmem:[#allocation74_spill] sm:$0xff] %v17643_v11  ;;  %v5848_v8 = vmax.f32 %v5750_v53, 0.0  ;;  %v5849_v36 = vmax.f32 %v5751_v54, 0.0  ;;  %v17649_v60 = vsel %vm2861_vm6, %v17568_v0, %v6343_v12  ;;  %7117 = vmatmul.mubr.bf16.gmra.mrb[52].mxu0 %v17643_v11  ;;  %v5320_v28 = vrot.slane %v17230_v48, 2 }
 0x597   : > { %v6353_v9 = vsel %vm2861_vm6, %v17570_v32, %v6352_v13  ;;  %v5322_v20 = vrot.slane %v17239_v10, 2  ;;  %6544 = vst [vmem:[#allocation3 + $0x130] sm:$0xff] %v17649_v60  ;;  %v5944_v16 = vmul.f32 %v5846_v7, %v20803_v39  ;;  %v5945_v30 = vmul.f32 %v5847_v46, %v20803_v39 }
 0x598   : > { %6545 = vst.msk [vmem:[#allocation3 + $0x138] sm:$0xff] %vm451_vm1, %v6353_v9  ;;  %v5946_v0 = vmul.f32 %v5848_v8, %v20804_v14  ;;  %v5947_v18 = vmul.f32 %v5849_v36, %v20804_v14  ;;  %v5321_v32 = vsel %vm2094_vm5, %v5316_v57, %v5320_v28  ;;  %v5324_v48 = vrot.slane %v17241_v56, 2  ;;  %v20808_v9 = vld [vmem:[#allocation113_spill] sm:$0xff] }
 0x599   : > { %v5323_v24 = vsel %vm2094_vm5, %v5318_v25, %v5322_v20  ;;  %v5326_v10 = vrot.slane %v17248_v3, 2  ;;  %v6002_v22 = vpack.c.bf16 %v5944_v16, %v5942_v42  ;;  %v6003_v41 = vpack.c.bf16 %v5945_v30, %v5943_v59  ;;  %v20807_v59 = vld [vmem:[#allocation112_spill] sm:$0xff] }
 0x59a   : > { %v5532_v49 = vadd.f32 %v5321_v32, %v20805_v4  ;;  %v5533_v43 = vadd.f32 %v5323_v24, %v20806_v38  ;;  %v5325_v53 = vsel %vm2094_vm5, %v5320_v28, %v5324_v48  ;;  %v6774_v7 = vrot.slane %v17566_v15, 4 }
 0x59b   : > { %v5327_v54 = vsel %vm2094_vm5, %v5322_v20, %v5326_v10  ;;  %v6772_v57 = vrot.slane %v17514_v29, 4  ;;  %v6355_v46 = vshrl.u32 %v6002_v22, 16  ;;  %v6358_v25 = vshll.u32 %v6002_v22, 16 }
 0x59c   : > { %v6364_v8 = vshrl.u32 %v6003_v41, 16  ;;  %v6367_v56 = vshll.u32 %v6003_v41, 16  ;;  %v5642_v3 = vmul.f32 %v16317_v58, %v5532_v49  ;;  %v5643_v42 = vmul.f32 %v16319_v50, %v5533_v43 }
 0x59d   : > { %v5534_v36 = vadd.f32 %v5325_v53, %v20807_v59  ;;  %v5535_v39 = vadd.f32 %v5327_v54, %v20808_v9  ;;  %v6357_v16 = vrot.slane %v6355_v46, 3  ;;  %v6360_v28 = vrot.slane %v6358_v25, 4  ;;  %v20812_v9 = vld [vmem:[#allocation38_spill] sm:$0xff] }
 0x59e   : > { %v6366_v30 = vrot.slane %v6364_v8, 3  ;;  %v6369_v20 = vrot.slane %v6367_v56, 4  ;;  %v5752_v14 = vadd.f32 %v16322_v37, %v5642_v3  ;;  %v5753_v32 = vadd.f32 %v16325_v40, %v5643_v42  ;;  %v20811_v8 = vld [vmem:[#allocation52_spill] sm:$0xff] }
 0x59f   : > { %v5644_v24 = vmul.f32 %v16317_v58, %v5534_v36  ;;  %v5645_v22 = vmul.f32 %v16319_v50, %v5535_v39  ;;  %v17680_v41 = vld [vmem:[#allocation3 + $0x138] sm:$0xff]  ;;  %v6361_v4 = vor.u32 %v6360_v28, %v6357_v16  ;;  %v17687_v38 = vsel %vm3190_vm7, %v6770_v19, %v6774_v7 }
 0x5a0   : > { %v6370_v49 = vor.u32 %v6369_v20, %v6366_v30  ;;  %20809 = vst [vmem:[#allocation75_spill] sm:$0xff] %v17687_v38  ;;  %v17694_v43 = vsel %vm3190_vm7, %v6768_v34, %v6772_v57  ;;  %11637 = vmatprep.mubr.msk.bf16.mxu1 %vm451_vm1, %v17680_v41  ;;  %v5850_v53 = vmax.f32 %v5752_v14, 0.0  ;;  %v5851_v54 = vmax.f32 %v5753_v32, 0.0  ;;  %11598 = vmatprep.mubr.msk.bf16.mxu0 %vm451_vm1, %v17687_v38  ;;  %v20813_v16 = vld [vmem:[#allocation53_spill] sm:$0xff]  ;;  %v20814_v20 = vld [vmem:[#allocation114_spill] sm:$0xff]  ;;  %v20815_v32 = vld [vmem:[#allocation115_spill] sm:$0xff] }
 0x5a1   : > { %20810 = vst [vmem:[#allocation43_spill] sm:$0xff] %v17694_v43  ;;  %v5754_v46 = vadd.f32 %v16322_v37, %v5644_v24  ;;  %v5755_v25 = vadd.f32 %v16325_v40, %v5645_v22  ;;  %7524 = vmatmul.mubr.bf16.gmra.mrb[168].mxu1 %v17649_v60  ;;  %v17704_v63 = vsel %vm2861_vm6, %v6343_v12, %v6361_v4  ;;  %v5328_v19 = vrot.slane %v17299_v23, 2 }
 0x5a2   : > { %v6371_v55 = vsel %vm2861_vm6, %v6352_v13, %v6370_v49  ;;  %7125 = vmatmul.mubr.bf16.gmra.mrb[56].mxu0 %v17694_v43  ;;  %v5330_v34 = vrot.slane %v17303_v1, 2  ;;  %6546 = vst [vmem:[#allocation3 + $0x140] sm:$0xff] %v17704_v63  ;;  %v5948_v56 = vmul.f32 %v5850_v53, %v20811_v8  ;;  %v5949_v3 = vmul.f32 %v5851_v54, %v20811_v8 }
 0x5a3   : > { %6547 = vst.msk [vmem:[#allocation3 + $0x148] sm:$0xff] %vm451_vm1, %v6371_v55  ;;  %v5852_v42 = vmax.f32 %v5754_v46, 0.0  ;;  %v5853_v59 = vmax.f32 %v5755_v25, 0.0  ;;  %v5329_v12 = vsel %vm2094_vm5, %v5324_v48, %v5328_v19  ;;  %v5332_v36 = vrot.slane %v17318_v44, 2  ;;  %v20817_v55 = vld [vmem:[#allocation117_spill] sm:$0xff] }
 0x5a4   : > { %v5331_v13 = vsel %vm2094_vm5, %v5326_v10, %v5330_v34  ;;  %v5334_v23 = vrot.slane %v20812_v9, 2  ;;  %v6004_v39 = vpack.c.bf16 %v5948_v56, %v5946_v0  ;;  %v6005_v1 = vpack.c.bf16 %v5949_v3, %v5947_v18  ;;  %v20816_v18 = vld [vmem:[#allocation116_spill] sm:$0xff] }
 0x5a5   : > { %v5950_v28 = vmul.f32 %v5852_v42, %v20813_v16  ;;  %v5951_v30 = vmul.f32 %v5853_v59, %v20813_v16  ;;  %v5536_v14 = vadd.f32 %v5329_v12, %v20814_v20  ;;  %v5537_v24 = vadd.f32 %v5331_v13, %v20815_v32 }
 0x5a6   : > { %v5333_v22 = vsel %vm2094_vm5, %v5328_v19, %v5332_v36  ;;  %v5335_v48 = vsel %vm2094_vm5, %v5330_v34, %v5334_v23  ;;  %v6373_v53 = vshrl.u32 %v6004_v39, 16  ;;  %v6376_v10 = vshll.u32 %v6004_v39, 16 }
 0x5a7   : > { %v6382_v54 = vshrl.u32 %v6005_v1, 16  ;;  %v6385_v44 = vshll.u32 %v6005_v1, 16  ;;  %v5646_v46 = vmul.f32 %v16317_v58, %v5536_v14  ;;  %v5647_v0 = vmul.f32 %v16319_v50, %v5537_v24 }
 0x5a8   : > { %v5538_v25 = vadd.f32 %v5333_v22, %v20816_v18  ;;  %v5539_v8 = vadd.f32 %v5335_v48, %v20817_v55  ;;  %v6375_v56 = vrot.slane %v6373_v53, 3  ;;  %v6378_v3 = vrot.slane %v6376_v10, 4 }
 0x5a9   : > { %v6384_v42 = vrot.slane %v6382_v54, 3  ;;  %v6387_v59 = vrot.slane %v6385_v44, 4  ;;  %v5756_v19 = vadd.f32 %v16322_v37, %v5646_v46  ;;  %v5757_v34 = vadd.f32 %v16325_v40, %v5647_v0  ;;  %v20821_v0 = vld [vmem:[#allocation70_spill] sm:$0xff] }
 0x5aa   : > { %v5648_v12 = vmul.f32 %v16317_v58, %v5538_v25  ;;  %v5649_v13 = vmul.f32 %v16319_v50, %v5539_v8  ;;  %v17732_v9 = vld [vmem:[#allocation3 + $0x148] sm:$0xff]  ;;  %v17734_v39 = vor.u32 %v6378_v3, %v6375_v56  ;;  %v6778_v16 = vrot.slane %v17626_v26, 4 }
 0x5ab   : > { %v17736_v1 = vor.u32 %v6387_v59, %v6384_v42  ;;  %v6776_v20 = vrot.slane %v17584_v62, 4  ;;  %11638 = vmatprep.mubr.msk.bf16.mxu1 %vm451_vm1, %v17732_v9  ;;  %v5854_v14 = vmax.f32 %v5756_v19, 0.0  ;;  %v5855_v32 = vmax.f32 %v5757_v34, 0.0  ;;  %v20822_v8 = vld [vmem:[#allocation55_spill] sm:$0xff] }
 0x5ac   : > { %v5758_v24 = vadd.f32 %v16322_v37, %v5648_v12  ;;  %v5759_v22 = vadd.f32 %v16325_v40, %v5649_v13  ;;  %7532 = vmatmul.mubr.bf16.gmra.mrb[172].mxu1 %v17704_v63  ;;  %v17747_v48 = vsel %vm2861_vm6, %v6361_v4, %v17734_v39  ;;  %v17756_v10 = vsel %vm3190_vm7, %v6774_v7, %v6778_v16  ;;  %v20820_v4 = vld [vmem:[#allocation54_spill] sm:$0xff]  ;;  %v17782_v13 = vpop.f32.mrb[100].mxu1 }
 0x5ad   : > { %v6389_v53 = vsel %vm2861_vm6, %v6370_v49, %v17736_v1  ;;  %20818 = vst [vmem:[#allocation44_spill] sm:$0xff] %v17756_v10  ;;  %v17763_v54 = vsel %vm3190_vm7, %v6772_v57, %v6776_v20  ;;  %6548 = vst [vmem:[#allocation3 + $0x150] sm:$0xff] %v17747_v48  ;;  %v5952_v49 = vmul.f32 %v5854_v14, %v20820_v4  ;;  %11599 = vmatprep.mubr.msk.bf16.mxu0 %vm451_vm1, %v17756_v10  ;;  %v20824_v14 = vld [vmem:[#allocation119_spill] sm:$0xff] }
 0x5ae   : > { %20819 = vst [vmem:[#allocation45_spill] sm:$0xff] %v17763_v54  ;;  %6549 = vst.msk [vmem:[#allocation3 + $0x158] sm:$0xff] %vm451_vm1, %v6389_v53  ;;  %v5953_v44 = vmul.f32 %v5855_v32, %v20820_v4  ;;  %v5856_v46 = vmax.f32 %v5758_v24, 0.0  ;;  %v5857_v15 = vmax.f32 %v5759_v22, 0.0  ;;  %7133 = vmatmul.mubr.bf16.gmra.mrb[60].mxu0 %v17763_v54  ;;  %v5336_v29 = vrot.slane %v17346_v27, 2  ;;  %v20825_v24 = vld [vmem:[#allocation120_spill] sm:$0xff] }
 0x5af   : > { %v5338_v7 = vrot.slane %v17363_v35, 2  ;;  %v5340_v57 = vrot.slane %v17370_v47, 2  ;;  %v5342_v18 = vrot.slane %v20821_v0, 2  ;;  %v6006_v25 = vpack.c.bf16 %v5952_v49, %v5950_v28  ;;  %v20823_v28 = vld [vmem:[#allocation118_spill] sm:$0xff]  ;;  %v20826_v53 = vld [vmem:[#allocation121_spill] sm:$0xff]  ;;  %v7391_v4 = vpop.f32.mrb[101].mxu1 }
 0x5b0   : > { %v6007_v55 = vpack.c.bf16 %v5953_v44, %v5951_v30  ;;  %v5954_v56 = vmul.f32 %v5856_v46, %v20822_v8  ;;  %v5955_v3 = vmul.f32 %v5857_v15, %v20822_v8  ;;  %v5337_v42 = vsel %vm2094_vm5, %v5332_v36, %v5336_v29  ;;  %v17788_v15 = vpop.f32.mrb[102].mxu1 }
 0x5b1   : > { %v5339_v59 = vsel %vm2094_vm5, %v5334_v23, %v5338_v7  ;;  %v5341_v19 = vsel %vm2094_vm5, %v5336_v29, %v5340_v57  ;;  %v5343_v27 = vsel %vm2094_vm5, %v5338_v7, %v5342_v18  ;;  %v6391_v34 = vshrl.u32 %v6006_v25, 16  ;;  %v7394_v8 = vpop.f32.mrb[103].mxu1 }
 0x5b2   : > { %v6394_v35 = vshll.u32 %v6006_v25, 16  ;;  %v6400_v12 = vshrl.u32 %v6007_v55, 16  ;;  %v6403_v47 = vshll.u32 %v6007_v55, 16  ;;  %v5540_v30 = vadd.f32 %v5337_v42, %v20823_v28 }
 0x5b3   : > { %v5541_v32 = vadd.f32 %v5339_v59, %v20824_v14  ;;  %v5542_v22 = vadd.f32 %v5341_v19, %v20825_v24  ;;  %v5543_v36 = vadd.f32 %v5343_v27, %v20826_v53  ;;  %v6393_v23 = vrot.slane %v6391_v34, 3  ;;  %v20829_v53 = vld [vmem:[#allocation56_spill] sm:$0xff] }
 0x5b4   : > { %v6396_v49 = vrot.slane %v6394_v35, 4  ;;  %v6402_v44 = vrot.slane %v6400_v12, 3  ;;  %v6405_v46 = vrot.slane %v6403_v47, 4  ;;  %v5650_v29 = vmul.f32 %v16317_v58, %v5540_v30 }
 0x5b5   : > { %v5651_v7 = vmul.f32 %v16319_v50, %v5541_v32  ;;  %v5652_v0 = vmul.f32 %v16317_v58, %v5542_v22  ;;  %v5653_v25 = vmul.f32 %v16319_v50, %v5543_v36  ;;  %v17794_v55 = vld [vmem:[#allocation3 + $0x158] sm:$0xff]  ;;  %v6782_v19 = vrot.slane %v17680_v41, 4 }
 0x5b6   : > { %v17796_v42 = vor.u32 %v6396_v49, %v6393_v23  ;;  %v17798_v59 = vor.u32 %v6405_v46, %v6402_v44  ;;  %v6780_v27 = vrot.slane %v17649_v60, 4  ;;  %11639 = vmatprep.mubr.msk.bf16.mxu1 %vm451_vm1, %v17794_v55  ;;  %v5760_v34 = vadd.f32 %v16322_v37, %v5650_v29  ;;  %v20830_v23 = vld [vmem:[#allocation57_spill] sm:$0xff] }
 0x5b7   : > { %v5761_v35 = vadd.f32 %v16325_v40, %v5651_v7  ;;  %v5762_v12 = vadd.f32 %v16322_v37, %v5652_v0  ;;  %v5763_v47 = vadd.f32 %v16325_v40, %v5653_v25  ;;  %7540 = vmatmul.mubr.bf16.gmra.mrb[176].mxu1 %v17747_v48  ;;  %v17822_v14 = vsel %vm3190_vm7, %v6778_v16, %v6782_v19  ;;  %v20831_v0 = vld [vmem:[#allocation123_spill] sm:$0xff]  ;;  %v20832_v25 = vld [vmem:[#allocation125_spill] sm:$0xff] }
 0x5b8   : > { %v17812_v28 = vsel %vm2861_vm6, %v17734_v39, %v17796_v42  ;;  %v6407_v30 = vsel %vm2861_vm6, %v17736_v1, %v17798_v59  ;;  %20827 = vst [vmem:[#allocation46_spill] sm:$0xff] %v17822_v14  ;;  %v17829_v32 = vsel %vm3190_vm7, %v6776_v20, %v6780_v27  ;;  %v5858_v39 = vmax.f32 %v5760_v34, 0.0  ;;  %11600 = vmatprep.mubr.msk.bf16.mxu0 %vm451_vm1, %v17822_v14  ;;  %v17850_v34 = vpop.f32.mrb[104].mxu1 }
 0x5b9   : > { %20828 = vst [vmem:[#allocation76_spill] sm:$0xff] %v17829_v32  ;;  %6550 = vst [vmem:[#allocation3 + $0x160] sm:$0xff] %v17812_v28  ;;  %v5859_v1 = vmax.f32 %v5761_v35, 0.0  ;;  %v5860_v24 = vmax.f32 %v5762_v12, 0.0  ;;  %v5861_v22 = vmax.f32 %v5763_v47, 0.0  ;;  %7141 = vmatmul.mubr.bf16.gmra.mrb[64].mxu0 %v17829_v32  ;;  %v5344_v26 = vrot.slane %v17409_v21, 2 }
 0x5ba   : > { %6551 = vst.msk [vmem:[#allocation3 + $0x168] sm:$0xff] %vm451_vm1, %v6407_v30  ;;  %v5346_v62 = vrot.slane %v17415_v52, 2  ;;  %v5348_v16 = vrot.slane %v17420_v31, 2  ;;  %v5350_v20 = vrot.slane %v17429_v45, 2  ;;  %v5956_v36 = vmul.f32 %v5858_v39, %v20829_v53  ;;  %v20833_v35 = vld [vmem:[#allocation122_spill] sm:$0xff]  ;;  %v20834_v47 = vld [vmem:[#allocation124_spill] sm:$0xff] }
 0x5bb   : > { %v5957_v4 = vmul.f32 %v5859_v1, %v20829_v53  ;;  %v5958_v49 = vmul.f32 %v5860_v24, %v20830_v23  ;;  %v5959_v44 = vmul.f32 %v5861_v22, %v20830_v23  ;;  %v5345_v46 = vsel %vm2094_vm5, %v5340_v57, %v5344_v26  ;;  %v7399_v39 = vpop.f32.mrb[105].mxu1 }
 0x5bc   : > { %v5347_v29 = vsel %vm2094_vm5, %v5342_v18, %v5346_v62  ;;  %v5349_v21 = vsel %vm2094_vm5, %v5344_v26, %v5348_v16  ;;  %v5351_v52 = vsel %vm2094_vm5, %v5346_v62, %v5350_v20  ;;  %v6008_v7 = vpack.c.bf16 %v5956_v36, %v5954_v56 }
 0x5bd   : > { %v6009_v31 = vpack.c.bf16 %v5957_v4, %v5955_v3  ;;  %v5544_v45 = vadd.f32 %v5345_v46, %v20831_v0  ;;  %v5545_v8 = vadd.f32 %v5347_v29, %v20832_v25  ;;  %v5546_v12 = vadd.f32 %v5349_v21, %v20833_v35  ;;  %v17856_v3 = vpop.f32.mrb[106].mxu1 }
 0x5be   : > { %v5547_v30 = vadd.f32 %v5351_v52, %v20834_v47  ;;  %v6786_v57 = vrot.slane %v17732_v9, 4  ;;  %v6784_v18 = vrot.slane %v17704_v63, 4  ;;  %v6409_v1 = vshrl.u32 %v6008_v7, 16  ;;  %v7402_v36 = vpop.f32.mrb[107].mxu1 }
 0x5bf   : > { %v6412_v24 = vshll.u32 %v6008_v7, 16  ;;  %v6418_v22 = vshrl.u32 %v6009_v31, 16  ;;  %v6421_v56 = vshll.u32 %v6009_v31, 16  ;;  %v5654_v26 = vmul.f32 %v16317_v58, %v5544_v45  ;;  %v17904_v39 = vpop.f32.mrb[108].mxu1 }
 0x5c0   : > { %v5655_v62 = vmul.f32 %v16319_v50, %v5545_v8  ;;  %v5656_v16 = vmul.f32 %v16317_v58, %v5546_v12  ;;  %v5657_v20 = vmul.f32 %v16319_v50, %v5547_v30  ;;  %v6411_v4 = vrot.slane %v6409_v1, 3 }
 0x5c1   : > { %v17862_v53 = vld [vmem:[#allocation3 + $0x168] sm:$0xff]  ;;  %v6414_v63 = vrot.slane %v6412_v24, 4  ;;  %v6420_v23 = vrot.slane %v6418_v22, 3  ;;  %v6423_v46 = vrot.slane %v6421_v56, 4  ;;  %v5764_v29 = vadd.f32 %v16322_v37, %v5654_v26  ;;  %v7407_v24 = vpop.f32.mrb[109].mxu1 }
 0x5c2   : > { %11640 = vmatprep.mubr.msk.bf16.mxu1 %vm451_vm1, %v17862_v53  ;;  %v5765_v21 = vadd.f32 %v16325_v40, %v5655_v62  ;;  %v5766_v52 = vadd.f32 %v16322_v37, %v5656_v16  ;;  %v5767_v58 = vadd.f32 %v16325_v40, %v5657_v20  ;;  %v17878_v31 = vsel %vm3190_vm7, %v6782_v19, %v6786_v57  ;;  %v17912_v16 = vpop.f32.mrb[110].mxu1 }
 0x5c3   : > { %7548 = vmatmul.mubr.bf16.gmra.mrb[180].mxu1 %v17812_v28  ;;  %v17871_v50 = vor.u32 %v6414_v63, %v6411_v4  ;;  %v17873_v7 = vor.u32 %v6423_v46, %v6420_v23  ;;  %20835 = vst [vmem:[#allocation77_spill] sm:$0xff] %v17878_v31  ;;  %v17883_v0 = vsel %vm3190_vm7, %v6780_v27, %v6784_v18  ;;  %v5862_v45 = vmax.f32 %v5764_v29, 0.0  ;;  %v20837_v27 = vld [vmem:[#allocation59_spill] sm:$0xff]  ;;  %v7410_v36 = vpop.f32.mrb[111].mxu1  ;;  %v7006_v23 = vpop.f32.mrb[252].mxu0 }
 0x5c4   : > { %20836 = vst [vmem:[#allocation47_spill] sm:$0xff] %v17883_v0  ;;  %v5863_v37 = vmax.f32 %v5765_v21, 0.0  ;;  %v5864_v25 = vmax.f32 %v5766_v52, 0.0  ;;  %v5865_v40 = vmax.f32 %v5767_v58, 0.0  ;;  %11601 = vmatprep.mubr.msk.bf16.mxu0 %vm451_vm1, %v17878_v31  ;;  %v6790_v60 = vrot.slane %v17794_v55, 4  ;;  %v7008_v58 = vpop.f32.mrb[253].mxu0 }
 0x5c5   : > { %v17890_v8 = vsel %vm2861_vm6, %v17796_v42, %v17871_v50  ;;  %v6425_v41 = vsel %vm2861_vm6, %v17798_v59, %v17873_v7  ;;  %7149 = vmatmul.mubr.bf16.gmra.mrb[68].mxu0 %v17883_v0  ;;  %v6788_v19 = vrot.slane %v17747_v48, 4  ;;  %v5960_v35 = vmul.f32 %v5862_v45, %v20837_v27  ;;  %v20838_v42 = vld [vmem:[#allocation58_spill] sm:$0xff] }
 0x5c6   : > { %6552 = vst [vmem:[#allocation3 + $0x170] sm:$0xff] %v17890_v8  ;;  %6553 = vst.msk [vmem:[#allocation3 + $0x178] sm:$0xff] %vm451_vm1, %v6425_v41  ;;  %v5961_v12 = vmul.f32 %v5863_v37, %v20837_v27  ;;  %v5962_v47 = vmul.f32 %v5864_v25, %v20838_v42  ;;  %v5963_v30 = vmul.f32 %v5865_v40, %v20838_v42  ;;  %v6794_v1 = vrot.slane %v17862_v53, 4 }
 0x5c7   : > { %v17907_v59 = vsel %vm3190_vm7, %v6786_v57, %v6790_v60  ;;  %v6010_v22 = vpack.c.bf16 %v5960_v35, %v5958_v49  ;;  %v17917_v20 = vsel %vm3190_vm7, %v6784_v18, %v6788_v19  ;;  %v7009_v18 = vpop.f32.mrb[254].mxu0  ;;  %v6796_v58 = vrot.slane %v17890_v8, 4 }
 0x5c8   : > { %20839 = vst [vmem:[#allocation78_spill] sm:$0xff] %v17907_v59  ;;  %v6011_v56 = vpack.c.bf16 %v5961_v12, %v5959_v44  ;;  %v6012_v26 = vpack.c.bf16 %v5962_v47, %v5962_v47  ;;  %v6013_v62 = vpack.c.bf16 %v5963_v30, %v5963_v30  ;;  %11602 = vmatprep.mubr.msk.bf16.mxu0 %vm451_vm1, %v17907_v59  ;;  %20840 = vst [vmem:[#allocation48_spill] sm:$0xff] %v17917_v20  ;;  %v7011_v42 = vpop.f32.mrb[255].mxu0 }
 0x5c9   : > { %v17920_v57 = vsel %vm3190_vm7, %v6790_v60, %v6794_v1  ;;  %v6427_v4 = vshrl.u32 %v6010_v22, 16  ;;  %v6430_v63 = vshll.u32 %v6010_v22, 16 }
 0x5ca   : > { %20841 = vst [vmem:[#allocation79_spill] sm:$0xff] %v17920_v57  ;;  %v6436_v49 = vshrl.u32 %v6011_v56, 16  ;;  %v6439_v44 = vshll.u32 %v6011_v56, 16  ;;  %v6445_v46 = vshrl.u32 %v6012_v26, 16  ;;  %v6448_v29 = vshll.u32 %v6012_v26, 16 }
 0x5cb   : > { %v6454_v21 = vshrl.u32 %v6013_v62, 16  ;;  %v6457_v52 = vshll.u32 %v6013_v62, 16  ;;  %v6429_v45 = vrot.slane %v6427_v4, 3  ;;  %v6432_v37 = vrot.slane %v6430_v63, 4 }
 0x5cc   : > { %v6438_v25 = vrot.slane %v6436_v49, 3  ;;  %v6441_v40 = vrot.slane %v6439_v44, 4  ;;  %v6447_v41 = vrot.slane %v6445_v46, 3  ;;  %v6450_v27 = vrot.slane %v6448_v29, 4 }
 0x5cd   : > { %v6456_v60 = vrot.slane %v6454_v21, 3  ;;  %v6459_v35 = vrot.slane %v6457_v52, 4  ;;  %7157 = vmatmul.mubr.bf16.gmra.mrb[72].mxu0 %v17917_v20  ;;  %v17923_v12 = vld [vmem:[#allocation3 + $0x178] sm:$0xff]  ;;  %v6433_v47 = vor.u32 %v6432_v37, %v6429_v45  ;;  %v17932_v26 = vadd.f32 %v17475_v6, %v7006_v23  ;;  %v7014_v46 = vpop.f32.mrb[0].mxu0 }
 0x5ce   : > { %v6442_v30 = vor.u32 %v6441_v40, %v6438_v25  ;;  %11603 = vmatprep.mubr.msk.bf16.mxu0 %vm451_vm1, %v17920_v57  ;;  %11641 = vmatprep.mubr.msk.bf16.mxu1 %vm451_vm1, %v17923_v12  ;;  %v6451_v24 = vor.u32 %v6450_v27, %v6447_v41  ;;  %v6798_v56 = vrot.slane %v17923_v12, 4  ;;  %v6792_v4 = vrot.slane %v17812_v28, 4  ;;  %v7016_v21 = vpop.f32.mrb[1].mxu0  ;;  %v20847_v25 = vld [vmem:[#allocation26_spill] sm:$0xff] }
 0x5cf   : > { %v6460_v22 = vor.u32 %v6459_v35, %v6456_v60  ;;  %7556 = vmatmul.mubr.bf16.gmra.mrb[184].mxu1 %v17890_v8  ;;  %20842 = vst [vmem:[#allocation80_spill] sm:$0xff] %v17932_v26  ;;  %v17936_v62 = vsel %vm2861_vm6, %v17871_v50, %v6433_v47  ;;  %v17942_v63 = vadd.f32 %v17509_v5, %v7009_v18  ;;  %v17952_v50 = vpop.f32.mrb[112].mxu1 }
 0x5d0   : > { %v6443_v36 = vsel %vm2861_vm6, %v17873_v7, %v6442_v30  ;;  %6554 = vst [vmem:[#allocation3 + $0x180] sm:$0xff] %v17936_v62  ;;  %v17947_v49 = vsel %vm2861_vm6, %v6433_v47, %v6451_v24  ;;  %v17955_v7 = vsel %vm3190_vm7, %v6794_v1, %v6798_v56  ;;  %v7415_v5 = vpop.f32.mrb[113].mxu1  ;;  %v17960_v44 = vsel %vm3190_vm7, %v6788_v19, %v6792_v4  ;;  %v7017_v1 = vpop.f32.mrb[2].mxu0 }
 0x5d1   : > { %20843 = vst [vmem:[#allocation81_spill] sm:$0xff] %v17942_v63  ;;  %6555 = vst.msk [vmem:[#allocation3 + $0x188] sm:$0xff] %vm451_vm1, %v6443_v36  ;;  %v6461_v6 = vsel %vm2861_vm6, %v6442_v30, %v6460_v22  ;;  %v17962_v23 = vpop.f32.mrb[114].mxu1  ;;  %v17968_v52 = vadd.f32 %v17539_v2, %v7014_v46  ;;  %v7019_v19 = vpop.f32.mrb[3].mxu0  ;;  %v17974_v45 = vadd.f32 %v17548_v61, %v7017_v1  ;;  %v6800_v35 = vrot.slane %v17936_v62, 4  ;;  %v20850_v30 = vld [vmem:[#allocation27_spill] sm:$0xff] }
 0x5d2   : > { %6556 = vst [vmem:[#allocation3 + $0x190] sm:$0xff] %v17947_v49  ;;  %6557 = vst.msk [vmem:[#allocation3 + $0x198] sm:$0xff] %vm451_vm1, %v6461_v6  ;;  %v7418_v29 = vpop.f32.mrb[115].mxu1  ;;  %v17986_v40 = vsel %vm3190_vm7, %v6792_v4, %v6796_v58  ;;  %v20853_v36 = vld [vmem:[#allocation28_spill] sm:$0xff]  ;;  %v20855_v1 = vld [vmem:[#allocation29_spill] sm:$0xff] }
 0x5d3   : > { %20844 = vst [vmem:[#allocation49_spill] sm:$0xff] %v17955_v7  ;;  %20845 = vst [vmem:[#allocation50_spill] sm:$0xff] %v17968_v52  ;;  %v18009_v6 = vsel %vm3190_vm7, %v6796_v58, %v6800_v35  ;;  %v6804_v29 = vrot.slane %v17947_v49, 4  ;;  %v20860_v52 = vld [vmem:[#allocation60_spill] sm:$0xff]  ;;  %v18088_v63 = vld [vmem:[#allocation3 + $0x58] sm:$0xff] }
 0x5d4   : > { %20846 = vst [vmem:[#allocation82_spill] sm:$0xff] %v17974_v45  ;;  %20849 = vst [vmem:[#allocation84_spill] sm:$0xff] %v17986_v40  ;;  %v17991_v61 = vpop.f32.mrb[116].mxu1  ;;  %v20859_v45 = vld [vmem:[#allocation31_spill] sm:$0xff] }
 0x5d5   : > { %7165 = vmatmul.mubr.bf16.gmra.mrb[76].mxu0 %v17960_v44  ;;  %v7423_v41 = vpop.f32.mrb[117].mxu1  ;;  %20868 = vst [vmem:[#allocation89_spill] sm:$0xff] %v18088_v63 }
 0x5d6   : > { %11604 = vmatprep.mubr.msk.bf16.mxu0 %vm451_vm1, %v17955_v7  ;;  %v17996_v60 = vpop.f32.mrb[118].mxu1 }
 0x5d7   : > { %v7426_v42 = vpop.f32.mrb[119].mxu1 }
 0x5d8   : > { %v17971_v48 = vld [vmem:[#allocation3 + $0x188] sm:$0xff] }
 0x5d9   : > { %11642 = vmatprep.mubr.msk.bf16.mxu1 %vm451_vm1, %v17971_v48  ;;  %v6802_v37 = vrot.slane %v17971_v48, 4  ;;  %v17988_v18 = vld [vmem:[#allocation3 + $0x198] sm:$0xff] }
 0x5da   : > { %7564 = vmatmul.mubr.bf16.gmra.mrb[188].mxu1 %v17936_v62  ;;  %v6806_v27 = vrot.slane %v17988_v18, 4  ;;  %v7022_v47 = vpop.f32.mrb[4].mxu0 }
 0x5db   : > { %11688 = vmatprep.mubr.msk.bf16.mxu1 %vm451_vm1, %v20847_v25  ;;  %v17983_v2 = vsel %vm3190_vm7, %v6798_v56, %v6802_v37  ;;  %v7024_v24 = vpop.f32.mrb[5].mxu0  ;;  %v18001_v22 = vadd.f32 %v17782_v13, %v7022_v47  ;;  %v6613_v13 = vld [vmem:[#allocation3 + $0x1a8] sm:$0xf] }
 0x5dc   : > { %20848 = vst [vmem:[#allocation83_spill] sm:$0xff] %v17983_v2  ;;  %v18004_v56 = vsel %vm3190_vm7, %v6802_v37, %v6806_v27  ;;  %v7025_v4 = vpop.f32.mrb[6].mxu0  ;;  %v6810_v21 = vrot.slane %v6613_v13, 4  ;;  %v20856_v37 = vld [vmem:[#allocation30_spill] sm:$0xff] }
 0x5dd   : > { %7173 = vmatmul.mubr.bf16.gmra.mrb[80].mxu0 %v17986_v40  ;;  %20851 = vst [vmem:[#allocation51_spill] sm:$0xff] %v18001_v22  ;;  %20852 = vst [vmem:[#allocation11_spill] sm:$0xff] %v18004_v56  ;;  %v7027_v5 = vpop.f32.mrb[7].mxu0  ;;  %v18012_v46 = vadd.f32 %v17788_v15, %v7025_v4  ;;  %v18024_v15 = vsel %vm3190_vm7, %v6800_v35, %v6804_v29  ;;  %v6612_v24 = vld [vmem:[#allocation3 + $0x1a0] sm:$0xf] }
 0x5de   : > { %11605 = vmatprep.mubr.msk.bf16.mxu0 %vm451_vm1, %v17983_v2  ;;  %v18030_v47 = vsel %vm3190_vm7, %v6806_v27, %v6810_v21  ;;  %v6808_v22 = vrot.slane %v6612_v24, 4  ;;  %v18049_v21 = vld [vmem:[#allocation3 + $0x38] sm:$0xff] }
 0x5df   : > { %20854 = vst [vmem:[#allocation85_spill] sm:$0xff] %v18012_v46 }
 0x5e0   : > { %v18044_v27 = vsel %vm3190_vm7, %v6804_v29, %v6808_v22  ;;  %v20863_v29 = vld [vmem:[#allocation61_spill] sm:$0xff] }
 0x5e2   : > { %8075 = vmatmul.mubr.bf16.vlgmr.msra.gmra.mrb[192].mxu1 %v20850_v30 }
 0x5e3   : > { %11689 = vmatprep.mubr.msk.bf16.mxu1 %vm451_vm1, %v20853_v36  ;;  %v18019_v19 = vpop.f32.mrb[120].mxu1 }
 0x5e4   : > { %v7431_v58 = vpop.f32.mrb[121].mxu1 }
 0x5e5   : > { %7181 = vmatmul.mubr.bf16.gmra.mrb[84].mxu0 %v18009_v6  ;;  %v18026_v42 = vpop.f32.mrb[122].mxu1 }
 0x5e6   : > { %11606 = vmatprep.mubr.msk.bf16.mxu0 %vm451_vm1, %v18004_v56  ;;  %v7030_v41 = vpop.f32.mrb[8].mxu0  ;;  %v7434_v5 = vpop.f32.mrb[123].mxu1 }
 0x5e7   : > { %v7032_v4 = vpop.f32.mrb[9].mxu0  ;;  %v18033_v13 = vadd.f32 %v17850_v34, %v7030_v41  ;;  %v12947_v5 = vld [vmem:[#allocation6 + $0x230] sm:$0xff]  }
 0x5e8   : > { %v7033_v58 = vpop.f32.mrb[10].mxu0 }
 0x5e9   : > { %20857 = vst [vmem:[#allocation86_spill] sm:$0xff] %v18033_v13  ;;  %v7035_v35 = vpop.f32.mrb[11].mxu0  ;;  %v18038_v46 = vadd.f32 %v17856_v3, %v7033_v58  ;;  %v20861_v58 = vld [vmem:[#allocation32_spill] sm:$0xff] }
 0x5ea   : > { %8082 = vmatmul.mubr.bf16.gmra.mrb[196].mxu1 %v20855_v1  ;;  %v20875_v1 = vld [vmem:[#allocation64_spill] sm:$0xff] }
 0x5eb   : > { %11690 = vmatprep.mubr.msk.bf16.mxu1 %vm451_vm1, %v20856_v37  ;;  %20858 = vst [vmem:[#allocation87_spill] sm:$0xff] %v18038_v46 }
 0x5ed   : > { %7189 = vmatmul.mubr.bf16.gmra.mrb[88].mxu0 %v18024_v15 }
 0x5ee   : > { %11607 = vmatprep.mubr.msk.bf16.mxu0 %vm451_vm1, %v18030_v47 }
 0x5ef   : > { %v18047_v34 = vpop.f32.mrb[124].mxu1 }
 0x5f0   : > { %v7439_v3 = vpop.f32.mrb[125].mxu1 }
 0x5f1   : > { %v18053_v41 = vpop.f32.mrb[126].mxu1  ;;  %v18064_v3 = vld [vmem:[#allocation3 + $0x30] sm:$0xff] }
 0x5f2   : > { %8090 = vmatmul.mubr.bf16.gmra.mrb[200].mxu1 %v20859_v45  ;;  %v7442_v24 = vpop.f32.mrb[127].mxu1  ;;  %v18085_v45 = vld [vmem:[#allocation3 + $0x40] sm:$0xff] }
 0x5f3   : > { %11691 = vmatprep.mubr.msk.bf16.mxu1 %vm451_vm1, %v20860_v52  ;;  %v18067_v24 = vld [vmem:[#allocation3 + $0x48] sm:$0xff] }
 0x5f4   : > { %v7038_v4 = vpop.f32.mrb[12].mxu0 }
 0x5f5   : > { %7197 = vmatmul.mubr.bf16.gmra.mrb[92].mxu0 %v18044_v27  ;;  %v7040_v35 = vpop.f32.mrb[13].mxu0  ;;  %v18057_v22 = vadd.f32 %v17904_v39, %v7038_v4  ;;  %v12948_v39 = vld [vmem:[#allocation6 + $0x238] sm:$0xff]   ;;  %v18071_v4 = vld [vmem:[#allocation3] sm:$0xff] }
 0x5f6   : > { %11653 = vmatprep.mubr.msk.bf16.mxu0 %vm451_vm1, %v18049_v21  ;;  %v7041_v46 = vpop.f32.mrb[14].mxu0  ;;  %v20865_v35 = vld [vmem:[#allocation33_spill] sm:$0xff] }
 0x5f7   : > { %20862 = vst [vmem:[#allocation12_spill] sm:$0xff] %v18057_v22  ;;  %v7043_v13 = vpop.f32.mrb[15].mxu0  ;;  %v18062_v52 = vadd.f32 %v17912_v16, %v7041_v46  ;;  %v12949_v16 = vld [vmem:[#allocation6 + $0x240] sm:$0xff]  }
 0x5f8   : > { %v20866_v13 = vld [vmem:[#allocation62_spill] sm:$0xff] }
 0x5f9   : > { %20864 = vst [vmem:[#allocation13_spill] sm:$0xff] %v18062_v52 }
 0x5fa   : > { %8098 = vmatmul.mubr.bf16.gmra.mrb[204].mxu1 %v20861_v58 }
 0x5fb   : > { %11692 = vmatprep.mubr.msk.bf16.mxu1 %vm451_vm1, %v20863_v29  ;;  %v18075_v46 = vpop.f32.mrb[128].mxu1 }
 0x5fc   : > { %v7447_v52 = vpop.f32.mrb[129].mxu1 }
 0x5fd   : > { %7693 = vmatmul.mubr.bf16.vlgmr.msra.gmra.mrb[96].mxu0 %v18064_v3  ;;  %v18080_v29 = vpop.f32.mrb[130].mxu1  ;;  %v12950_v52 = vld [vmem:[#allocation6 + $0x248] sm:$0xff]  }
 0x5fe   : > { %9025 = vmatpush1.bf16.msra.mxu0 %v12947_v5  ;;  %11654 = vmatprep.mubr.msk.bf16.mxu0 %vm451_vm1, %v18067_v24  ;;  %v7046_v5 = vpop.f32.mrb[16].mxu0 }
 0x5ff   : > { %9026 = vmatprep.subr.bf16.mxu0 %v18071_v4  ;;  %v7048_v22 = vpop.f32.mrb[17].mxu0  ;;  %v18083_v58 = vadd.f32 %v17952_v50, %v7046_v5  ;;  %v20870_v50 = vld [vmem:[#allocation63_spill] sm:$0xff]  ;;  %v20871_v5 = vld [vmem:[#allocation34_spill] sm:$0xff] }
 0x600   : > { %v12955_v22 = vld [vmem:[#allocation6 + $0xf0] sm:$0xff]  }
 0x601   : > { %20867 = vst [vmem:[#allocation88_spill] sm:$0xff] %v18083_v58  ;;  %8334 = vmatpush1.bf16.msra.mxu1 %v12955_v22  ;;  %v12952_v22 = vld [vmem:[#allocation6 + $0x258] sm:$0xff]  }
 0x602   : > { %8106 = vmatmul.mubr.bf16.gmra.mrb[208].mxu1 %v20865_v35  ;;  %9027 = vmatpush1.bf16.msra.mxu0 %v12948_v39  ;;  %v7049_v39 = vpop.f32.mrb[18].mxu0  ;;  %v7450_v35 = vpop.f32.mrb[131].mxu1 }
 0x603   : > { %11693 = vmatprep.mubr.msk.bf16.mxu1 %vm451_vm1, %v20866_v13  ;;  %9028 = vmatprep.subr.bf16.mxu0 %v18071_v4  ;;  %v7051_v13 = vpop.f32.mrb[19].mxu0  ;;  %v18093_v26 = vadd.f32 %v17962_v23, %v7049_v39  ;;  %v12951_v35 = vld [vmem:[#allocation6 + $0x250] sm:$0xff]   ;;  %v18108_v39 = vld [vmem:[#allocation3 + $0x68] sm:$0xff] }
 0x604   : > { %8335 = vmatprep.subr.bf16.mxu1 %v18071_v4  ;;  %v18103_v13 = vld [vmem:[#allocation3 + $0x50] sm:$0xff]  ;;  %20873 = vst [vmem:[#allocation15_spill] sm:$0xff] %v18108_v39 }
 0x605   : > { %7701 = vmatmul.mubr.bf16.gmra.mrb[100].mxu0 %v18085_v45  ;;  %20869 = vst [vmem:[#allocation14_spill] sm:$0xff] %v18093_v26  ;;  %v18100_v58 = vpop.f32.mrb[132].mxu1  ;;  %20872 = vst [vmem:[#allocation90_spill] sm:$0xff] %v18103_v13  ;;  %v12956_v26 = vld [vmem:[#allocation6 + $0xf8] sm:$0xff]  }
 0x606   : > { %11655 = vmatprep.mubr.msk.bf16.mxu0 %vm451_vm1, %v18088_v63  ;;  %9029 = vmatpush1.bf16.msra.mxu0 %v12949_v16  ;;  %v7455_v16 = vpop.f32.mrb[133].mxu1 }
 0x607   : > { %9030 = vmatprep.subr.bf16.mxu0 %v18071_v4  ;;  %v18106_v23 = vpop.f32.mrb[134].mxu1  ;;  %8336 = vmatpush1.bf16.msra.mxu1 %v12956_v26  ;;  %v12957_v16 = vld [vmem:[#allocation6 + $0x100] sm:$0xff]   ;;  %v18124_v26 = vld [vmem:[#allocation3 + $0x60] sm:$0xff] }
 0x608   : > { %8337 = vmatprep.subr.bf16.mxu1 %v18071_v4 }
 0x60a   : > { %8114 = vmatmul.mubr.bf16.gmra.mrb[212].mxu1 %v20870_v50  ;;  %9031 = vmatpush1.bf16.msra.mxu0 %v12950_v52  ;;  %v7458_v52 = vpop.f32.mrb[135].mxu1 }
 0x60b   : > { %11694 = vmatprep.mubr.msk.bf16.mxu1 %vm451_vm1, %v20871_v5  ;;  %9032 = vmatprep.subr.bf16.mxu0 %v18071_v4  ;;  %v7054_v5 = vpop.f32.mrb[20].mxu0  ;;  %v12953_v52 = vld [vmem:[#allocation6 + $0x260] sm:$0xff]  }
 0x60c   : > { %v7056_v50 = vpop.f32.mrb[21].mxu0  ;;  %v18114_v37 = vadd.f32 %v17991_v61, %v7054_v5  ;;  %8338 = vmatpush1.bf16.msra.mxu1 %v12957_v16  ;;  %v18128_v61 = vld [vmem:[#allocation3 + $0x78] sm:$0xff] }
 0x60d   : > { %7709 = vmatmul.mubr.bf16.gmra.mrb[104].mxu0 %v18103_v13  ;;  %v7057_v13 = vpop.f32.mrb[22].mxu0  ;;  %8339 = vmatprep.subr.bf16.mxu1 %v18071_v4  ;;  %20878 = vst [vmem:[#allocation93_spill] sm:$0xff] %v18128_v61 }
 0x60e   : > { %11656 = vmatprep.mubr.msk.bf16.mxu0 %vm451_vm1, %v18108_v39  ;;  %9033 = vmatpush1.bf16.msra.mxu0 %v12951_v35  ;;  %20874 = vst [vmem:[#allocation91_spill] sm:$0xff] %v18114_v37  ;;  %v7059_v63 = vpop.f32.mrb[23].mxu0  ;;  %v18119_v35 = vadd.f32 %v17996_v60, %v7057_v13  ;;  %v20877_v39 = vld [vmem:[#allocation65_spill] sm:$0xff] }
 0x60f   : > { %9034 = vmatprep.subr.bf16.mxu0 %v18071_v4  ;;  %v12954_v63 = vld [vmem:[#allocation6 + $0x268] sm:$0xff]  }
 0x610   : > { %20876 = vst [vmem:[#allocation92_spill] sm:$0xff] %v18119_v35  ;;  %v12958_v60 = vld [vmem:[#allocation6 + $0x108] sm:$0xff]  }
 0x611   : > { %8340 = vmatpush1.bf16.msra.mxu1 %v12958_v60 }
 0x612   : > { %8122 = vmatmul.mubr.bf16.gmra.mrb[216].mxu1 %v20875_v1  ;;  %9035 = vmatpush1.bf16.msra.mxu0 %v12952_v22  ;;  %v20879_v22 = vld [vmem:[#allocation35_spill] sm:$0xff] }
 0x613   : > { %11695 = vmatprep.mubr.msk.bf16.mxu1 %vm451_vm1, %v20877_v39  ;;  %9036 = vmatprep.subr.bf16.mxu0 %v18071_v4  ;;  %v18133_v50 = vpop.f32.mrb[136].mxu1 }
 0x614   : > { %v7463_v13 = vpop.f32.mrb[137].mxu1  ;;  %8341 = vmatprep.subr.bf16.mxu1 %v18071_v4 }
 0x615   : > { %7717 = vmatmul.mubr.bf16.gmra.mrb[108].mxu0 %v18124_v26  ;;  %v18137_v35 = vpop.f32.mrb[138].mxu1 }
 0x616   : > { %11657 = vmatprep.mubr.msk.bf16.mxu0 %vm451_vm1, %v18128_v61  ;;  %9037 = vmatpush1.bf16.msra.mxu0 %v12953_v52  ;;  %v7062_v5 = vpop.f32.mrb[24].mxu0  ;;  %v20881_v52 = vld [vmem:[#allocation66_spill] sm:$0xff]  ;;  %v7466_v1 = vpop.f32.mrb[139].mxu1 }
 0x617   : > { %9038 = vmatprep.subr.bf16.mxu0 %v18071_v4  ;;  %v7064_v16 = vpop.f32.mrb[25].mxu0  ;;  %v18140_v37 = vadd.f32 %v18019_v19, %v7062_v5  ;;  %v12959_v61 = vld [vmem:[#allocation6 + $0x110] sm:$0xff]   ;;  %v18151_v19 = vld [vmem:[#allocation3 + $0x88] sm:$0xff] }
 0x618   : > { %v7065_v39 = vpop.f32.mrb[26].mxu0  ;;  %8342 = vmatpush1.bf16.msra.mxu1 %v12959_v61  ;;  %20884 = vst [vmem:[#allocation95_spill] sm:$0xff] %v18151_v19  ;;  %v12961_v1 = vld [vmem:[#allocation6 + $0x118] sm:$0xff]  }
 0x619   : > { %20880 = vst [vmem:[#allocation16_spill] sm:$0xff] %v18140_v37  ;;  %v7067_v60 = vpop.f32.mrb[27].mxu0  ;;  %v18146_v13 = vadd.f32 %v18026_v42, %v7065_v39  ;;  %8343 = vmatprep.subr.bf16.mxu1 %v18071_v4  ;;  %v20885_v42 = vld [vmem:[#allocation36_spill] sm:$0xff]  ;;  %v20886_v61 = vld [vmem:[#allocation67_spill] sm:$0xff] }
 0x61a   : > { %8130 = vmatmul.mubr.bf16.gmra.mrb[220].mxu1 %v20879_v22  ;;  %9039 = vmatpush1.bf16.msra.mxu0 %v12954_v63  ;;  %v18148_v22 = vld [vmem:[#allocation3 + $0x70] sm:$0xff]  ;;  %v12960_v63 = vld [vmem:[#allocation6 + $0x270] sm:$0xff]  }
 0x61b   : > { %11696 = vmatprep.mubr.msk.bf16.mxu1 %vm451_vm1, %v20881_v52  ;;  %9040 = vmatprep.subr.bf16.mxu0 %v18071_v4  ;;  %20882 = vst [vmem:[#allocation17_spill] sm:$0xff] %v18146_v13  ;;  %20883 = vst [vmem:[#allocation94_spill] sm:$0xff] %v18148_v22  ;;  %v12962_v60 = vld [vmem:[#allocation6 + $0x120] sm:$0xff]   ;;  %v18165_v37 = vld [vmem:[#allocation3 + $0x80] sm:$0xff] }
 0x61c   : > { %v18157_v5 = vpop.f32.mrb[140].mxu1  ;;  %8344 = vmatpush1.bf16.msra.mxu1 %v12961_v1  ;;  %20887 = vst [vmem:[#allocation96_spill] sm:$0xff] %v18165_v37  ;;  %v12963_v1 = vld [vmem:[#allocation6 + $0x128] sm:$0xff]  }
 0x61d   : > { %7725 = vmatmul.mubr.bf16.gmra.mrb[112].mxu0 %v18148_v22  ;;  %v7471_v39 = vpop.f32.mrb[141].mxu1  ;;  %8345 = vmatprep.subr.bf16.mxu1 %v18071_v4  ;;  %v18183_v22 = vld [vmem:[#allocation3 + $0x90] sm:$0xff] }
 0x61e   : > { %11658 = vmatprep.mubr.msk.bf16.mxu0 %vm451_vm1, %v18151_v19  ;;  %9041 = vmatpush1.bf16.msra.mxu0 %v12960_v63  ;;  %v18163_v16 = vpop.f32.mrb[142].mxu1  ;;  %v18168_v63 = vld [vmem:[#allocation3 + $0x98] sm:$0xff]  ;;  %20893 = vst [vmem:[#allocation98_spill] sm:$0xff] %v18183_v22 }
 0x61f   : > { %9042 = vmatprep.subr.bf16.mxu0 %v18071_v4  ;;  %v7474_v13 = vpop.f32.mrb[143].mxu1  ;;  %20888 = vst [vmem:[#allocation97_spill] sm:$0xff] %v18168_v63 }
 0x620   : > { %8346 = vmatpush1.bf16.msra.mxu1 %v12962_v60  ;;  %v20890_v13 = vld [vmem:[#allocation37_spill] sm:$0xff] }
 0x621   : > { %8347 = vmatprep.subr.bf16.mxu1 %v18071_v4 }
 0x622   : > { %8138 = vmatmul.mubr.bf16.gmra.mrb[224].mxu1 %v20885_v42 }
 0x623   : > { %11697 = vmatprep.mubr.msk.bf16.mxu1 %vm451_vm1, %v20886_v61  ;;  %v7070_v39 = vpop.f32.mrb[28].mxu0 }
 0x624   : > { %v7072_v42 = vpop.f32.mrb[29].mxu0  ;;  %v18174_v61 = vadd.f32 %v18047_v34, %v7070_v39  ;;  %8348 = vmatpush1.bf16.msra.mxu1 %v12963_v1  ;;  %v12965_v34 = vld [vmem:[#allocation6 + $0x138] sm:$0xff]  }
 0x625   : > { %7733 = vmatmul.mubr.bf16.gmra.mrb[116].mxu0 %v18165_v37  ;;  %v7073_v52 = vpop.f32.mrb[30].mxu0  ;;  %8349 = vmatprep.subr.bf16.mxu1 %v18071_v4  ;;  %v20892_v37 = vld [vmem:[#allocation68_spill] sm:$0xff] }
 0x626   : > { %11659 = vmatprep.mubr.msk.bf16.mxu0 %vm451_vm1, %v18168_v63  ;;  %20889 = vst [vmem:[#allocation18_spill] sm:$0xff] %v18174_v61  ;;  %v7075_v19 = vpop.f32.mrb[31].mxu0  ;;  %v18179_v60 = vadd.f32 %v18053_v41, %v7073_v52  ;;  %v12964_v63 = vld [vmem:[#allocation6 + $0x130] sm:$0xff]   ;;  %v18186_v42 = vld [vmem:[#allocation3 + $0xa8] sm:$0xff]  ;;  %v20896_v61 = vld [vmem:[#allocation69_spill] sm:$0xff] }
 0x627   : > { %20894 = vst [vmem:[#allocation99_spill] sm:$0xff] %v18186_v42  ;;  %v12966_v39 = vld [vmem:[#allocation6 + $0x278] sm:$0xff]  }
 0x628   : > { %20891 = vst [vmem:[#allocation19_spill] sm:$0xff] %v18179_v60  ;;  %8350 = vmatpush1.bf16.msra.mxu1 %v12964_v63  ;;  %9043 = vmatpush1.bf16.msra.mxu0 %v12966_v39 }
 0x629   : > { %8351 = vmatprep.subr.bf16.mxu1 %v18071_v4  ;;  %9316 = vmatprep.subr.bf16.mxu0 %v18071_v4 }
 0x62a   : > { %8146 = vmatmul.mubr.bf16.gmra.mrb[228].mxu1 %v20890_v13  ;;  %v20897_v13 = vld [vmem:[#allocation71_spill] sm:$0xff] }
 0x62b   : > { %11698 = vmatprep.mubr.msk.bf16.mxu1 %vm451_vm1, %v20892_v37  ;;  %v18191_v41 = vpop.f32.mrb[144].mxu1 }
 0x62c   : > { %v7479_v1 = vpop.f32.mrb[145].mxu1  ;;  %8352 = vmatpush1.bf16.msra.mxu1 %v12965_v34  ;;  %v18209_v34 = vld [vmem:[#allocation3 + $0xb8] sm:$0xff] }
 0x62d   : > { %7741 = vmatmul.mubr.bf16.gmra.mrb[120].mxu0 %v18183_v22  ;;  %v18197_v37 = vpop.f32.mrb[146].mxu1  ;;  %8644 = vmatprep.subr.bf16.mxu1 %v18071_v4  ;;  %20899 = vst [vmem:[#allocation20_spill] sm:$0xff] %v18209_v34  ;;  %v20900_v1 = vld [vmem:[#allocation39_spill] sm:$0xff] }
 0x62e   : > { %11660 = vmatprep.mubr.msk.bf16.mxu0 %vm451_vm1, %v18186_v42  ;;  %v7078_v19 = vpop.f32.mrb[32].mxu0  ;;  %v7482_v22 = vpop.f32.mrb[147].mxu1 }
 0x62f   : > { %v7080_v52 = vpop.f32.mrb[33].mxu0  ;;  %v18194_v60 = vadd.f32 %v18075_v46, %v7078_v19  ;;  %v18206_v46 = vld [vmem:[#allocation3 + $0xa0] sm:$0xff] }
 0x630   : > { %v7081_v63 = vpop.f32.mrb[34].mxu0 }
 0x631   : > { %20895 = vst [vmem:[#allocation100_spill] sm:$0xff] %v18194_v60  ;;  %v7083_v42 = vpop.f32.mrb[35].mxu0  ;;  %v18203_v52 = vadd.f32 %v18080_v29, %v7081_v63  ;;  %v18220_v63 = vld [vmem:[#allocation3 + $0xb0] sm:$0xff]  ;;  %v18223_v60 = vld [vmem:[#allocation3 + $0xc8] sm:$0xff] }
 0x632   : > { %8154 = vmatmul.mubr.bf16.gmra.mrb[232].mxu1 %v20896_v61  ;;  %v20901_v42 = vld [vmem:[#allocation40_spill] sm:$0xff]  ;;  %20902 = vst [vmem:[#allocation21_spill] sm:$0xff] %v18220_v63 }
 0x633   : > { %11699 = vmatprep.mubr.msk.bf16.mxu1 %vm451_vm1, %v20897_v13  ;;  %20898 = vst [vmem:[#allocation101_spill] sm:$0xff] %v18203_v52 }
 0x635   : > { %7749 = vmatmul.mubr.bf16.gmra.mrb[124].mxu0 %v18206_v46 }
 0x636   : > { %11661 = vmatprep.mubr.msk.bf16.mxu0 %vm451_vm1, %v18209_v34  ;;  %v18213_v19 = vpop.f32.mrb[148].mxu1  ;;  %v18239_v34 = vld [vmem:[#allocation3 + $0xd8] sm:$0xff] }
 0x637   : > { %v7487_v22 = vpop.f32.mrb[149].mxu1  ;;  %20906 = vst [vmem:[#allocation104_spill] sm:$0xff] %v18239_v34 }
 0x638   : > { %v18218_v29 = vpop.f32.mrb[150].mxu1 }
 0x639   : > { %v7490_v39 = vpop.f32.mrb[151].mxu1 }
 0x63a   : > { %8162 = vmatmul.mubr.bf16.gmra.mrb[236].mxu1 %v20900_v1  ;;  %v20905_v39 = vld [vmem:[#allocation72_spill] sm:$0xff] }
 0x63b   : > { %11700 = vmatprep.mubr.msk.bf16.mxu1 %vm451_vm1, %v20901_v42  ;;  %v7086_v52 = vpop.f32.mrb[36].mxu0 }
 0x63c   : > { %v7088_v13 = vpop.f32.mrb[37].mxu0  ;;  %v18228_v1 = vadd.f32 %v18100_v58, %v7086_v52 }
 0x63d   : > { %7757 = vmatmul.mubr.bf16.gmra.mrb[128].mxu0 %v18220_v63  ;;  %v7089_v22 = vpop.f32.mrb[38].mxu0  ;;  %v18236_v63 = vld [vmem:[#allocation3 + $0xc0] sm:$0xff] }
 0x63e   : > { %11662 = vmatprep.mubr.msk.bf16.mxu0 %vm451_vm1, %v18223_v60  ;;  %20903 = vst [vmem:[#allocation102_spill] sm:$0xff] %v18228_v1  ;;  %v7091_v61 = vpop.f32.mrb[39].mxu0  ;;  %v18231_v42 = vadd.f32 %v18106_v23, %v7089_v22 }
 0x640   : > { %20904 = vst [vmem:[#allocation103_spill] sm:$0xff] %v18231_v42 }
 0x642   : > { %8170 = vmatmul.mubr.bf16.gmra.mrb[240].mxu1 %v20905_v39 }
 0x643   : > { %11701 = vmatprep.mubr.msk.bf16.mxu1 %vm451_vm1, %v17592_v51  ;;  %v18243_v58 = vpop.f32.mrb[152].mxu1 }
 0x644   : > { %v7495_v61 = vpop.f32.mrb[153].mxu1 }
 0x645   : > { %7765 = vmatmul.mubr.bf16.gmra.mrb[132].mxu0 %v18236_v63  ;;  %v18245_v23 = vpop.f32.mrb[154].mxu1  ;;  %v18259_v61 = vld [vmem:[#allocation3 + $0xe8] sm:$0xff] }
 0x646   : > { %11663 = vmatprep.mubr.msk.bf16.mxu0 %vm451_vm1, %v18239_v34  ;;  %v7498_v51 = vpop.f32.mrb[155].mxu1  ;;  %v18256_v34 = vld [vmem:[#allocation3 + $0xd0] sm:$0xff] }
 0x647   : > { %v7094_v13 = vpop.f32.mrb[40].mxu0 }
 0x648   : > { %v18248_v52 = vadd.f32 %v18133_v50, %v7094_v13  ;;  %v7096_v22 = vpop.f32.mrb[41].mxu0  ;;  %v18270_v13 = vld [vmem:[#allocation3 + $0xe0] sm:$0xff] }
 0x649   : > { %v7097_v39 = vpop.f32.mrb[42].mxu0 }
 0x64a   : > { %20907 = vst [vmem:[#allocation105_spill] sm:$0xff] %v18248_v52  ;;  %8178 = vmatmul.mubr.bf16.gmra.mrb[244].mxu1 %v17597_v33  ;;  %v18254_v42 = vadd.f32 %v18137_v35, %v7097_v39  ;;  %v7099_v1 = vpop.f32.mrb[43].mxu0  ;;  %v18276_v33 = vld [vmem:[#allocation3 + $0xf8] sm:$0xff] }
 0x64b   : > { %11702 = vmatprep.mubr.msk.bf16.mxu1 %vm451_vm1, %v17638_v17  ;;  %v18309_v52 = vld [vmem:[#allocation3 + $0x118] sm:$0xff] }
 0x64c   : > { %20908 = vst [vmem:[#allocation22_spill] sm:$0xff] %v18254_v42  ;;  %v18306_v42 = vld [vmem:[#allocation3 + $0x100] sm:$0xff] }
 0x64d   : > { %7773 = vmatmul.mubr.bf16.gmra.mrb[136].mxu0 %v18256_v34 }
 0x64e   : > { %11664 = vmatprep.mubr.msk.bf16.mxu0 %vm451_vm1, %v18259_v61 }
 0x64f   : > { %v18263_v51 = vpop.f32.mrb[156].mxu1 }
 0x650   : > { %v7503_v50 = vpop.f32.mrb[157].mxu1 }
 0x651   : > { %v18268_v35 = vpop.f32.mrb[158].mxu1 }
 0x652   : > { %8186 = vmatmul.mubr.bf16.gmra.mrb[248].mxu1 %v17643_v11  ;;  %v7506_v39 = vpop.f32.mrb[159].mxu1 }
 0x653   : > { %11703 = vmatprep.mubr.msk.bf16.mxu1 %vm451_vm1, %v17687_v38 }
 0x654   : > { %v7102_v1 = vpop.f32.mrb[44].mxu0 }
 0x655   : > { %7781 = vmatmul.mubr.bf16.gmra.mrb[140].mxu0 %v18270_v13  ;;  %v18274_v22 = vadd.f32 %v18157_v5, %v7102_v1  ;;  %v7104_v17 = vpop.f32.mrb[45].mxu0  ;;  %v18288_v5 = vld [vmem:[#allocation3 + $0xf0] sm:$0xff]  ;;  %v18291_v1 = vld [vmem:[#allocation3 + $0x108] sm:$0xff] }
 0x656   : > { %11665 = vmatprep.mubr.msk.bf16.mxu0 %vm451_vm1, %v18276_v33  ;;  %v7105_v50 = vpop.f32.mrb[46].mxu0 }
 0x657   : > { %20909 = vst [vmem:[#allocation23_spill] sm:$0xff] %v18274_v22  ;;  %v18281_v38 = vadd.f32 %v18163_v16, %v7105_v50  ;;  %v7107_v11 = vpop.f32.mrb[47].mxu0 }
 0x659   : > { %20910 = vst [vmem:[#allocation106_spill] sm:$0xff] %v18281_v38 }
 0x65a   : > { %8194 = vmatmul.mubr.bf16.gmra.mrb[252].mxu1 %v17694_v43  ;;  %v18286_v39 = vpop.f32.mrb[160].mxu1 }
 0x65b   : > { %11704 = vmatprep.mubr.msk.bf16.mxu1 %vm451_vm1, %v17756_v10  ;;  %v7511_v17 = vpop.f32.mrb[161].mxu1 }
 0x65c   : > { %v18295_v16 = vpop.f32.mrb[162].mxu1 }
 0x65d   : > { %7789 = vmatmul.mubr.bf16.gmra.mrb[144].mxu0 %v18288_v5  ;;  %v7514_v50 = vpop.f32.mrb[163].mxu1 }
 0x65e   : > { %11666 = vmatprep.mubr.msk.bf16.mxu0 %vm451_vm1, %v18291_v1 }
 0x660   : > { %v7110_v11 = vpop.f32.mrb[48].mxu0 }
 0x661   : > { %v18298_v43 = vadd.f32 %v18191_v41, %v7110_v11  ;;  %v7112_v10 = vpop.f32.mrb[49].mxu0 }
 0x662   : > { %v7113_v38 = vpop.f32.mrb[50].mxu0  ;;  %8202 = vmatmul.mubr.bf16.gmra.mrb[0].mxu1 %v17763_v54  ;;  %v18323_v54 = vld [vmem:[#allocation3 + $0x110] sm:$0xff] }
 0x663   : > { %20911 = vst [vmem:[#allocation107_spill] sm:$0xff] %v18298_v43  ;;  %v18302_v22 = vadd.f32 %v18197_v37, %v7113_v38  ;;  %v7115_v17 = vpop.f32.mrb[51].mxu0  ;;  %11705 = vmatprep.mubr.msk.bf16.mxu1 %vm451_vm1, %v17822_v14  ;;  %v18329_v43 = vld [vmem:[#allocation3 + $0x128] sm:$0xff] }
 0x665   : > { %20912 = vst [vmem:[#allocation108_spill] sm:$0xff] %v18302_v22  ;;  %7797 = vmatmul.mubr.bf16.gmra.mrb[148].mxu0 %v18306_v42 }
 0x666   : > { %11667 = vmatprep.mubr.msk.bf16.mxu0 %vm451_vm1, %v18309_v52  ;;  %v18313_v10 = vpop.f32.mrb[164].mxu1 }
 0x667   : > { %v7519_v41 = vpop.f32.mrb[165].mxu1 }
 0x668   : > { %v18315_v11 = vpop.f32.mrb[166].mxu1 }
 0x669   : > { %v7118_v38 = vpop.f32.mrb[52].mxu0  ;;  %v7522_v37 = vpop.f32.mrb[167].mxu1 }
 0x66a   : > { %8210 = vmatmul.mubr.bf16.gmra.mrb[4].mxu1 %v17829_v32  ;;  %v18321_v50 = vadd.f32 %v18213_v19, %v7118_v38  ;;  %v7120_v17 = vpop.f32.mrb[53].mxu0  ;;  %v18338_v38 = vld [vmem:[#allocation3 + $0x120] sm:$0xff] }
 0x66b   : > { %11706 = vmatprep.mubr.msk.bf16.mxu1 %vm451_vm1, %v17878_v31  ;;  %v7121_v14 = vpop.f32.mrb[54].mxu0 }
 0x66c   : > { %v18327_v41 = vadd.f32 %v18218_v29, %v7121_v14  ;;  %v7123_v22 = vpop.f32.mrb[55].mxu0  ;;  %v18341_v29 = vld [vmem:[#allocation3 + $0x138] sm:$0xff] }
 0x66d   : > { %7805 = vmatmul.mubr.bf16.gmra.mrb[152].mxu0 %v18323_v54 }
 0x66e   : > { %20913 = vst [vmem:[#allocation109_spill] sm:$0xff] %v18327_v41  ;;  %11668 = vmatprep.mubr.msk.bf16.mxu0 %vm451_vm1, %v18329_v43 }
 0x672   : > { %8218 = vmatmul.mubr.bf16.gmra.mrb[8].mxu1 %v17883_v0 }
 0x673   : > { %11707 = vmatprep.mubr.msk.bf16.mxu1 %vm451_vm1, %v17907_v59 }
 0x674   : > { %v18336_v19 = vpop.f32.mrb[168].mxu1 }
 0x675   : > { %7813 = vmatmul.mubr.bf16.gmra.mrb[156].mxu0 %v18338_v38  ;;  %v7126_v37 = vpop.f32.mrb[56].mxu0  ;;  %v7527_v14 = vpop.f32.mrb[169].mxu1 }
 0x676   : > { %11669 = vmatprep.mubr.msk.bf16.mxu0 %vm451_vm1, %v18341_v29  ;;  %v18346_v22 = vadd.f32 %v18243_v58, %v7126_v37  ;;  %v7128_v17 = vpop.f32.mrb[57].mxu0  ;;  %v18348_v0 = vpop.f32.mrb[170].mxu1  ;;  %v18356_v14 = vld [vmem:[#allocation3 + $0x130] sm:$0xff] }
 0x677   : > { %v7129_v59 = vpop.f32.mrb[58].mxu0  ;;  %v7530_v31 = vpop.f32.mrb[171].mxu1 }
 0x678   : > { %v18351_v32 = vadd.f32 %v18245_v23, %v7129_v59  ;;  %v7131_v41 = vpop.f32.mrb[59].mxu0 }
 0x67a   : > { %8226 = vmatmul.mubr.bf16.gmra.mrb[12].mxu1 %v17917_v20  ;;  %v18371_v20 = vld [vmem:[#allocation3 + $0x140] sm:$0xff] }
 0x67b   : > { %11708 = vmatprep.mubr.msk.bf16.mxu1 %vm451_vm1, %v17920_v57 }
 0x67d   : > { %7821 = vmatmul.mubr.bf16.gmra.mrb[160].mxu0 %v18356_v14 }
 0x67e   : > { %11670 = vmatprep.mubr.msk.bf16.mxu0 %vm451_vm1, %v17732_v9 }
 0x67f   : > { %v18361_v58 = vpop.f32.mrb[172].mxu1 }
 0x680   : > { %v7535_v37 = vpop.f32.mrb[173].mxu1 }
 0x681   : > { %v18363_v31 = vpop.f32.mrb[174].mxu1  ;;  %v7134_v59 = vpop.f32.mrb[60].mxu0 }
 0x682   : > { %8234 = vmatmul.mubr.bf16.gmra.mrb[16].mxu1 %v17960_v44  ;;  %v7538_v23 = vpop.f32.mrb[175].mxu1  ;;  %v18367_v41 = vadd.f32 %v18263_v51, %v7134_v59  ;;  %v7136_v17 = vpop.f32.mrb[61].mxu0 }
 0x683   : > { %11709 = vmatprep.mubr.msk.bf16.mxu1 %vm451_vm1, %v17955_v7  ;;  %v7137_v57 = vpop.f32.mrb[62].mxu0  ;;  %v18386_v17 = vld [vmem:[#allocation3 + $0x150] sm:$0xff] }
 0x684   : > { %v18375_v9 = vadd.f32 %v18268_v35, %v7137_v57  ;;  %v7139_v37 = vpop.f32.mrb[63].mxu0 }
 0x685   : > { %7829 = vmatmul.mubr.bf16.gmra.mrb[164].mxu0 %v18371_v20 }
 0x686   : > { %11671 = vmatprep.mubr.msk.bf16.mxu0 %vm451_vm1, %v17794_v55 }
 0x68a   : > { %8242 = vmatmul.mubr.bf16.gmra.mrb[20].mxu1 %v17986_v40  ;;  %v18380_v51 = vpop.f32.mrb[176].mxu1 }
 0x68b   : > { %11710 = vmatprep.mubr.msk.bf16.mxu1 %vm451_vm1, %v17983_v2  ;;  %v7543_v59 = vpop.f32.mrb[177].mxu1 }
 0x68c   : > { %v18384_v23 = vpop.f32.mrb[178].mxu1  ;;  %v7142_v57 = vpop.f32.mrb[64].mxu0 }
 0x68d   : > { %7837 = vmatmul.mubr.bf16.gmra.mrb[168].mxu0 %v18386_v17  ;;  %v7546_v35 = vpop.f32.mrb[179].mxu1  ;;  %v18392_v55 = vadd.f32 %v18286_v39, %v7142_v57  ;;  %v7144_v37 = vpop.f32.mrb[65].mxu0 }
 0x68e   : > { %11672 = vmatprep.mubr.msk.bf16.mxu0 %vm451_vm1, %v17862_v53  ;;  %v7145_v40 = vpop.f32.mrb[66].mxu0 }
 0x68f   : > { %v18395_v7 = vadd.f32 %v18295_v16, %v7145_v40  ;;  %v7147_v59 = vpop.f32.mrb[67].mxu0 }
 0x692   : > { %8250 = vmatmul.mubr.bf16.gmra.mrb[24].mxu1 %v18009_v6 }
 0x693   : > { %11711 = vmatprep.mubr.msk.bf16.mxu1 %vm451_vm1, %v18004_v56 }
 0x695   : > { %7845 = vmatmul.mubr.bf16.gmra.mrb[172].mxu0 %v17812_v28 }
 0x696   : > { %v7549_v35 = vpop.f32.mrb[180].mxu1  ;;  %11673 = vmatprep.mubr.msk.bf16.mxu0 %vm451_vm1, %v17923_v12 }
 0x697   : > { %v7551_v53 = vpop.f32.mrb[181].mxu1 }
 0x698   : > { %v7552_v39 = vpop.f32.mrb[182].mxu1  ;;  %v7150_v57 = vpop.f32.mrb[68].mxu0 }
 0x699   : > { %v7554_v37 = vpop.f32.mrb[183].mxu1  ;;  %v18404_v2 = vadd.f32 %v18313_v10, %v7150_v57  ;;  %v7152_v40 = vpop.f32.mrb[69].mxu0 }
 0x69a   : > { %v7153_v16 = vpop.f32.mrb[70].mxu0  ;;  %8258 = vmatmul.mubr.bf16.gmra.mrb[28].mxu1 %v18024_v15  ;;  %v18422_v40 = vld [vmem:[#allocation3 + $0x8] sm:$0xff] }
 0x69b   : > { %v18408_v59 = vadd.f32 %v18315_v11, %v7153_v16  ;;  %v7155_v56 = vpop.f32.mrb[71].mxu0  ;;  %11712 = vmatprep.mubr.msk.bf16.mxu1 %vm451_vm1, %v18030_v47 }
 0x69d   : > { %7853 = vmatmul.mubr.bf16.gmra.mrb[176].mxu0 %v17890_v8 }
 0x69e   : > { %11674 = vmatprep.mubr.msk.bf16.mxu0 %vm451_vm1, %v17971_v48 }
 0x6a0   : > { %v7158_v28 = vpop.f32.mrb[72].mxu0 }
 0x6a1   : > { %v18416_v12 = vadd.f32 %v18336_v19, %v7158_v28  ;;  %v7160_v10 = vpop.f32.mrb[73].mxu0 }
 0x6a2   : > { %v7161_v53 = vpop.f32.mrb[74].mxu0  ;;  %8266 = vmatmul.mubr.bf16.gmra.mrb[32].mxu1 %v18044_v27  ;;  %v7557_v57 = vpop.f32.mrb[184].mxu1 }
 0x6a3   : > { %v18420_v11 = vadd.f32 %v18348_v0, %v7161_v53  ;;  %v7163_v56 = vpop.f32.mrb[75].mxu0  ;;  %v7559_v37 = vpop.f32.mrb[185].mxu1  ;;  %11723 = vmatprep.mubr.msk.bf16.mxu1 %vm451_vm1, %v18422_v40 }
 0x6a4   : > { %v7560_v8 = vpop.f32.mrb[186].mxu1  ;;  %v18436_v56 = vld [vmem:[#allocation3 + $0x1a8] sm:$0xff]  ;;  %v18438_v37 = vld [vmem:[#allocation3 + $0x18] sm:$0xff] }
 0x6a5   : > { %7861 = vmatmul.mubr.bf16.gmra.mrb[180].mxu0 %v17936_v62  ;;  %v7562_v48 = vpop.f32.mrb[187].mxu1  ;;  %20914 = vst [vmem:[#allocation25_spill] sm:$0xff] %v18436_v56  ;;  %20915 = vst [vmem:[#allocation24_spill] sm:$0xff] %v18438_v37 }
 0x6a6   : > { %11675 = vmatprep.mubr.msk.bf16.mxu0 %vm451_vm1, %v17988_v18 }
 0x6a8   : > { %v7166_v19 = vpop.f32.mrb[76].mxu0 }
 0x6a9   : > { %v18430_v16 = vadd.f32 %v18361_v58, %v7166_v19  ;;  %v7168_v0 = vpop.f32.mrb[77].mxu0 }
 0x6aa   : > { %v7169_v28 = vpop.f32.mrb[78].mxu0  ;;  %8366 = vmatmul.mubr.bf16.vlgmr.msra.gmra.mrb[192].mxu1 %v18071_v4 }
 0x6ab   : > { %v18434_v10 = vadd.f32 %v18363_v31, %v7169_v28  ;;  %v7171_v53 = vpop.f32.mrb[79].mxu0  ;;  %11724 = vmatprep.mubr.msk.bf16.mxu1 %vm451_vm1, %v18438_v37 }
 0x6ad   : > { %7869 = vmatmul.mubr.bf16.gmra.mrb[184].mxu0 %v17947_v49  ;;  %v7565_v62 = vpop.f32.mrb[188].mxu1  ;;  %v18452_v49 = vld [vmem:[#allocation3 + $0x28] sm:$0xff] }
 0x6ae   : > { %11676 = vmatprep.mubr.msk.bf16.mxu0 %vm451_vm1, %v18436_v56  ;;  %v7567_v18 = vpop.f32.mrb[189].mxu1 }
 0x6af   : > { %v7568_v58 = vpop.f32.mrb[190].mxu1  ;;  %v18456_v18 = vld [vmem:[#allocation3 + $0x1b8] sm:$0xff] }
 0x6b0   : > { %v7174_v48 = vpop.f32.mrb[80].mxu0  ;;  %v7569_v19 = vpop.f32.mrb[191].mxu1  ;;  %20916 = vst [vmem:[#allocation110_spill] sm:$0xff] %v18456_v18 }
 0x6b1   : > { %v18446_v31 = vadd.f32 %v18380_v51, %v7174_v48  ;;  %v7176_v0 = vpop.f32.mrb[81].mxu0 }
 0x6b2   : > { %v7177_v28 = vpop.f32.mrb[82].mxu0  ;;  %8373 = vmatmul.mubr.bf16.gmra.mrb[196].mxu1 %v18071_v4 }
 0x6b3   : > { %v18450_v53 = vadd.f32 %v18384_v23, %v7177_v28  ;;  %v7179_v37 = vpop.f32.mrb[83].mxu0  ;;  %11725 = vmatprep.mubr.msk.bf16.mxu1 %vm451_vm1, %v18452_v49  ;;  %v18463_v23 = vld [vmem:[#allocation3 + $0x20] sm:$0xff] }
 0x6b5   : > { %7877 = vmatmul.mubr.bf16.gmra.mrb[188].mxu0 %v18071_v4 }
 0x6b6   : > { %11677 = vmatprep.mubr.msk.bf16.mxu0 %vm451_vm1, %v18456_v18  ;;  %v12967_v18 = vld [vmem:[#allocation6 + $0x1e0] sm:$0xff]  }
 0x6b8   : > { %v7182_v51 = vpop.f32.mrb[84].mxu0 }
 0x6b9   : > { %v18461_v58 = vadd.f32 %v7549_v35, %v7182_v51  ;;  %v7184_v48 = vpop.f32.mrb[85].mxu0 }
 0x6ba   : > { %v7185_v19 = vpop.f32.mrb[86].mxu0  ;;  %8381 = vmatmul.mubr.bf16.gmra.mrb[200].mxu1 %v18463_v23 }
 0x6bb   : > { %v18466_v37 = vadd.f32 %v7552_v39, %v7185_v19  ;;  %v7187_v0 = vpop.f32.mrb[87].mxu0  ;;  %11726 = vmatprep.mubr.msk.bf16.mxu1 %vm451_vm1, %v18049_v21 }
 0x6bd   : > { %7885 = vmatmul.mubr.bf16.gmra.mrb[192].mxu0 %v18071_v4 }
 0x6be   : > { %11793 = vmatprep.mubr.msk.bf16.mxu0 %vm451_vm1, %v20847_v25  ;;  %v12968_v25 = vld [vmem:[#allocation6 + $0x1e8] sm:$0xff]  }
 0x6c0   : > { %v7190_v28 = vpop.f32.mrb[88].mxu0 }
 0x6c1   : > { %v18473_v35 = vadd.f32 %v7557_v57, %v7190_v28  ;;  %v7192_v51 = vpop.f32.mrb[89].mxu0  ;;  %v20920_v28 = vld [vmem:[#allocation80_spill] sm:$0xff] }
 0x6c2   : > { %v7193_v48 = vpop.f32.mrb[90].mxu0  ;;  %8389 = vmatmul.mubr.bf16.gmra.mrb[204].mxu1 %v18064_v3 }
 0x6c3   : > { %v18476_v56 = vadd.f32 %v7560_v8, %v7193_v48  ;;  %v7195_v39 = vpop.f32.mrb[91].mxu0  ;;  %11727 = vmatprep.mubr.msk.bf16.mxu1 %vm451_vm1, %v18067_v24  ;;  %v12969_v8 = vld [vmem:[#allocation6 + $0x1f0] sm:$0xff]   ;;  %v20917_v24 = vld [vmem:[#allocation89_spill] sm:$0xff] }
 0x6c4   : > { %v20921_v39 = vld [vmem:[#allocation90_spill] sm:$0xff] }
 0x6c5   : > { %9057 = vmatmul.mubr.bf16.vlgmr.msra.gmra.mrb[196].mxu0 %v20850_v30  ;;  %v20918_v30 = vld [vmem:[#allocation29_spill] sm:$0xff] }
 0x6c6   : > { %9317 = vmatpush1.bf16.msra.mxu0 %v12967_v18  ;;  %11794 = vmatprep.mubr.msk.bf16.mxu0 %vm451_vm1, %v20853_v36  ;;  %v20919_v36 = vld [vmem:[#allocation30_spill] sm:$0xff] }
 0x6c7   : > { %9318 = vmatprep.subr.bf16.mxu0 %v18071_v4 }
 0x6c8   : > { %v7198_v21 = vpop.f32.mrb[92].mxu0 }
 0x6c9   : > { %v18484_v57 = vadd.f32 %v7565_v62, %v7198_v21  ;;  %v7200_v19 = vpop.f32.mrb[93].mxu0  ;;  %v12970_v62 = vld [vmem:[#allocation6 + $0x1f8] sm:$0xff]   ;;  %v20922_v21 = vld [vmem:[#allocation81_spill] sm:$0xff] }
 0x6ca   : > { %v7201_v3 = vpop.f32.mrb[94].mxu0  ;;  %8397 = vmatmul.mubr.bf16.gmra.mrb[208].mxu1 %v18085_v45  ;;  %9319 = vmatpush1.bf16.msra.mxu0 %v12968_v25  ;;  %v12971_v25 = vld [vmem:[#allocation6 + $0x200] sm:$0xff]  }
 0x6cb   : > { %v7202_v0 = vpop.f32.mrb[95].mxu0  ;;  %11728 = vmatprep.mubr.msk.bf16.mxu1 %vm451_vm1, %v20917_v24  ;;  %9320 = vmatprep.subr.bf16.mxu0 %v18071_v4  ;;  %v20924_v24 = vld [vmem:[#allocation31_spill] sm:$0xff] }
 0x6cc   : > { %v20923_v0 = vld [vmem:[#allocation15_spill] sm:$0xff] }
 0x6cd   : > { %9064 = vmatmul.mubr.bf16.gmra.mrb[200].mxu0 %v20918_v30  ;;  %v20925_v30 = vld [vmem:[#allocation60_spill] sm:$0xff] }
 0x6ce   : > { %11795 = vmatprep.mubr.msk.bf16.mxu0 %vm451_vm1, %v20919_v36  ;;  %9321 = vmatpush1.bf16.msra.mxu0 %v12969_v8  ;;  %v12975_v8 = vld [vmem:[#allocation6 + $0x190] sm:$0xff]   ;;  %v12972_v36 = vld [vmem:[#allocation6 + $0x208] sm:$0xff]  }
 0x6cf   : > { %9322 = vmatprep.subr.bf16.mxu0 %v18071_v4  ;;  %8645 = vmatpush1.bf16.msra.mxu1 %v12975_v8  ;;  %v20928_v8 = vld [vmem:[#allocation93_spill] sm:$0xff] }
 0x6d0   : > { %v7694_v18 = vpop.f32.mrb[96].mxu0  ;;  %8646 = vmatprep.subr.bf16.mxu1 %v18071_v4 }
 0x6d1   : > { %v18495_v45 = vadd.f32 %v7694_v18, %v20920_v28  ;;  %v7696_v51 = vpop.f32.mrb[97].mxu0  ;;  %v20926_v28 = vld [vmem:[#allocation50_spill] sm:$0xff] }
 0x6d2   : > { %v7697_v48 = vpop.f32.mrb[98].mxu0  ;;  %8405 = vmatmul.mubr.bf16.gmra.mrb[212].mxu1 %v20921_v39  ;;  %9323 = vmatpush1.bf16.msra.mxu0 %v12970_v62  ;;  %v12976_v62 = vld [vmem:[#allocation6 + $0x198] sm:$0xff]  }
 0x6d3   : > { %v18499_v19 = vadd.f32 %v7697_v48, %v20922_v21  ;;  %v7699_v3 = vpop.f32.mrb[99].mxu0  ;;  %11729 = vmatprep.mubr.msk.bf16.mxu1 %vm451_vm1, %v20923_v0  ;;  %9324 = vmatprep.subr.bf16.mxu0 %v18071_v4  ;;  %v12973_v21 = vld [vmem:[#allocation6 + $0x210] sm:$0xff]  }
 0x6d4   : > { %8647 = vmatpush1.bf16.msra.mxu1 %v12976_v62  ;;  %v20927_v3 = vld [vmem:[#allocation82_spill] sm:$0xff]  ;;  %v20930_v62 = vld [vmem:[#allocation61_spill] sm:$0xff] }
 0x6d5   : > { %9072 = vmatmul.mubr.bf16.gmra.mrb[204].mxu0 %v20924_v24  ;;  %v12977_v24 = vld [vmem:[#allocation6 + $0x1a0] sm:$0xff]   ;;  %8648 = vmatprep.subr.bf16.mxu1 %v18071_v4 }
 0x6d6   : > { %11796 = vmatprep.mubr.msk.bf16.mxu0 %vm451_vm1, %v20925_v30  ;;  %9325 = vmatpush1.bf16.msra.mxu0 %v12971_v25  ;;  %v20929_v30 = vld [vmem:[#allocation32_spill] sm:$0xff] }
 0x6d7   : > { %9326 = vmatprep.subr.bf16.mxu0 %v18071_v4 }
 0x6d8   : > { %v7702_v18 = vpop.f32.mrb[100].mxu0  ;;  %8649 = vmatpush1.bf16.msra.mxu1 %v12977_v24 }
 0x6d9   : > { %v18510_v51 = vadd.f32 %v7702_v18, %v20926_v28  ;;  %v7704_v48 = vpop.f32.mrb[101].mxu0  ;;  %8650 = vmatprep.subr.bf16.mxu1 %v18071_v4  ;;  %v20931_v28 = vld [vmem:[#allocation51_spill] sm:$0xff] }
 0x6da   : > { %v7705_v39 = vpop.f32.mrb[102].mxu0  ;;  %8413 = vmatmul.mubr.bf16.gmra.mrb[216].mxu1 %v18124_v26  ;;  %9327 = vmatpush1.bf16.msra.mxu0 %v12972_v36  ;;  %v12974_v26 = vld [vmem:[#allocation6 + $0x218] sm:$0xff]   ;;  %v12978_v36 = vld [vmem:[#allocation6 + $0x1a8] sm:$0xff]  }
 0x6db   : > { %v18514_v0 = vadd.f32 %v7705_v39, %v20927_v3  ;;  %v7707_v25 = vpop.f32.mrb[103].mxu0  ;;  %11730 = vmatprep.mubr.msk.bf16.mxu1 %vm451_vm1, %v20928_v8  ;;  %9328 = vmatprep.subr.bf16.mxu0 %v18071_v4  ;;  %v20934_v8 = vld [vmem:[#allocation85_spill] sm:$0xff] }
 0x6dc   : > { %8651 = vmatpush1.bf16.msra.mxu1 %v12978_v36  ;;  %v20933_v25 = vld [vmem:[#allocation94_spill] sm:$0xff]  ;;  %v12980_v36 = vld [vmem:[#allocation6 + $0x220] sm:$0xff]  }
 0x6dd   : > { %9080 = vmatmul.mubr.bf16.gmra.mrb[208].mxu0 %v20929_v30  ;;  %v20936_v30 = vld [vmem:[#allocation95_spill] sm:$0xff]  ;;  %8652 = vmatprep.subr.bf16.mxu1 %v18071_v4 }
 0x6de   : > { %11797 = vmatprep.mubr.msk.bf16.mxu0 %vm451_vm1, %v20930_v62  ;;  %9329 = vmatpush1.bf16.msra.mxu0 %v12973_v21  ;;  %v12979_v62 = vld [vmem:[#allocation6 + $0x1b0] sm:$0xff]  }
 0x6df   : > { %9330 = vmatprep.subr.bf16.mxu0 %v18071_v4 }
 0x6e0   : > { %v7710_v18 = vpop.f32.mrb[104].mxu0  ;;  %8653 = vmatpush1.bf16.msra.mxu1 %v12979_v62  ;;  %v20942_v62 = vld [vmem:[#allocation87_spill] sm:$0xff] }
 0x6e1   : > { %v18526_v48 = vadd.f32 %v7710_v18, %v20931_v28  ;;  %v7712_v39 = vpop.f32.mrb[105].mxu0  ;;  %v20937_v18 = vld [vmem:[#allocation33_spill] sm:$0xff]  ;;  %v20938_v28 = vld [vmem:[#allocation62_spill] sm:$0xff]  ;;  %8654 = vmatprep.subr.bf16.mxu1 %v18071_v4 }
 0x6e2   : > { %v7713_v3 = vpop.f32.mrb[106].mxu0  ;;  %8421 = vmatmul.mubr.bf16.gmra.mrb[220].mxu1 %v20933_v25  ;;  %9331 = vmatpush1.bf16.msra.mxu0 %v12974_v26  ;;  %v12981_v26 = vld [vmem:[#allocation6 + $0x1b8] sm:$0xff]  }
 0x6e3   : > { %20932 = vst [vmem:[#allocation111_spill] sm:$0xff] %v18526_v48  ;;  %v18530_v24 = vadd.f32 %v7713_v3, %v20934_v8  ;;  %v7715_v21 = vpop.f32.mrb[107].mxu0  ;;  %11731 = vmatprep.mubr.msk.bf16.mxu1 %vm451_vm1, %v20936_v30  ;;  %9332 = vmatprep.subr.bf16.mxu0 %v18071_v4  ;;  %v20939_v3 = vld [vmem:[#allocation86_spill] sm:$0xff]  ;;  %v20941_v30 = vld [vmem:[#allocation96_spill] sm:$0xff]  ;;  %v20945_v48 = vld [vmem:[#allocation63_spill] sm:$0xff] }
 0x6e4   : > { %8655 = vmatpush1.bf16.msra.mxu1 %v12981_v26  ;;  %v12983_v26 = vld [vmem:[#allocation6 + $0x1c8] sm:$0xff]  }
 0x6e5   : > { %20935 = vst [vmem:[#allocation112_spill] sm:$0xff] %v18530_v24  ;;  %9088 = vmatmul.mubr.bf16.gmra.mrb[212].mxu0 %v20937_v18  ;;  %8656 = vmatprep.subr.bf16.mxu1 %v18071_v4  ;;  %v20944_v24 = vld [vmem:[#allocation97_spill] sm:$0xff] }
 0x6e6   : > { %11798 = vmatprep.mubr.msk.bf16.mxu0 %vm451_vm1, %v20938_v28  ;;  %9333 = vmatpush1.bf16.msra.mxu0 %v12980_v36  ;;  %v12982_v36 = vld [vmem:[#allocation6 + $0x1c0] sm:$0xff]  }
 0x6e7   : > { %9334 = vmatprep.subr.bf16.mxu0 %v18071_v4 }
 0x6e8   : > { %v7718_v39 = vpop.f32.mrb[108].mxu0  ;;  %8657 = vmatpush1.bf16.msra.mxu1 %v12982_v36 }
 0x6e9   : > { %v18542_v25 = vadd.f32 %v7718_v39, %v20939_v3  ;;  %v7720_v8 = vpop.f32.mrb[109].mxu0  ;;  %v20946_v39 = vld [vmem:[#allocation34_spill] sm:$0xff]  ;;  %8658 = vmatprep.subr.bf16.mxu1 %v18071_v4 }
 0x6ea   : > { %v7721_v21 = vpop.f32.mrb[110].mxu0  ;;  %8429 = vmatmul.mubr.bf16.gmra.mrb[224].mxu1 %v20941_v30  ;;  %v20947_v8 = vld [vmem:[#allocation12_spill] sm:$0xff] }
 0x6eb   : > { %20940 = vst [vmem:[#allocation113_spill] sm:$0xff] %v18542_v25  ;;  %v18547_v18 = vadd.f32 %v7721_v21, %v20942_v62  ;;  %v7723_v28 = vpop.f32.mrb[111].mxu0  ;;  %11732 = vmatprep.mubr.msk.bf16.mxu1 %vm451_vm1, %v20944_v24  ;;  %v20949_v24 = vld [vmem:[#allocation13_spill] sm:$0xff]  ;;  %v20952_v25 = vld [vmem:[#allocation64_spill] sm:$0xff] }
 0x6ec   : > { %8659 = vmatpush1.bf16.msra.mxu1 %v12983_v26  ;;  %v20948_v28 = vld [vmem:[#allocation98_spill] sm:$0xff]  ;;  %v12985_v26 = vld [vmem:[#allocation6 + $0x1d8] sm:$0xff]  }
 0x6ed   : > { %20943 = vst [vmem:[#allocation52_spill] sm:$0xff] %v18547_v18  ;;  %9096 = vmatmul.mubr.bf16.gmra.mrb[216].mxu0 %v20945_v48  ;;  %8660 = vmatprep.subr.bf16.mxu1 %v18071_v4  ;;  %v20951_v18 = vld [vmem:[#allocation99_spill] sm:$0xff] }
 0x6ee   : > { %11799 = vmatprep.mubr.msk.bf16.mxu0 %vm451_vm1, %v20946_v39  ;;  %v12984_v39 = vld [vmem:[#allocation6 + $0x1d0] sm:$0xff]  }
 0x6f0   : > { %v7726_v3 = vpop.f32.mrb[112].mxu0  ;;  %8661 = vmatpush1.bf16.msra.mxu1 %v12984_v39  ;;  %v20957_v39 = vld [vmem:[#allocation20_spill] sm:$0xff] }
 0x6f1   : > { %v18556_v30 = vadd.f32 %v7726_v3, %v20947_v8  ;;  %v7728_v21 = vpop.f32.mrb[113].mxu0  ;;  %v20953_v3 = vld [vmem:[#allocation65_spill] sm:$0xff]  ;;  %8662 = vmatprep.subr.bf16.mxu1 %v18071_v4 }
 0x6f2   : > { %v7729_v62 = vpop.f32.mrb[114].mxu0  ;;  %8437 = vmatmul.mubr.bf16.gmra.mrb[228].mxu1 %v20948_v28  ;;  %v20954_v21 = vld [vmem:[#allocation88_spill] sm:$0xff] }
 0x6f3   : > { %v18561_v48 = vadd.f32 %v7729_v62, %v20949_v24  ;;  %v7731_v36 = vpop.f32.mrb[115].mxu0  ;;  %11733 = vmatprep.mubr.msk.bf16.mxu1 %vm451_vm1, %v20951_v18  ;;  %v12986_v24 = vld [vmem:[#allocation6 + $0x228] sm:$0xff]  }
 0x6f4   : > { %8663 = vmatpush1.bf16.msra.mxu1 %v12985_v26  ;;  %v20956_v18 = vld [vmem:[#allocation14_spill] sm:$0xff]  ;;  %9335 = vmatpush1.bf16.msra.mxu0 %v12986_v24  ;;  %v20965_v24 = vld [vmem:[#allocation67_spill] sm:$0xff] }
 0x6f5   : > { %20950 = vst [vmem:[#allocation38_spill] sm:$0xff] %v18561_v48  ;;  %9104 = vmatmul.mubr.bf16.gmra.mrb[220].mxu0 %v20952_v25  ;;  %9628 = vmatprep.subr.bf16.mxu0 %v18071_v4  ;;  %v20964_v4 = vld [vmem:[#allocation36_spill] sm:$0xff] }
 0x6f6   : > { %11800 = vmatprep.mubr.msk.bf16.mxu0 %vm451_vm1, %v20953_v3  ;;  %v20958_v3 = vld [vmem:[#allocation35_spill] sm:$0xff] }
 0x6f8   : > { %v7734_v8 = vpop.f32.mrb[116].mxu0 }
 0x6f9   : > { %v18570_v28 = vadd.f32 %v7734_v8, %v20954_v21  ;;  %v7736_v62 = vpop.f32.mrb[117].mxu0  ;;  %v20959_v8 = vld [vmem:[#allocation66_spill] sm:$0xff]  ;;  %v20960_v21 = vld [vmem:[#allocation91_spill] sm:$0xff] }
 0x6fa   : > { %v7737_v36 = vpop.f32.mrb[118].mxu0  ;;  %8445 = vmatmul.mubr.bf16.gmra.mrb[232].mxu1 %v18206_v46 }
 0x6fb   : > { %20955 = vst [vmem:[#allocation53_spill] sm:$0xff] %v18570_v28  ;;  %v18574_v48 = vadd.f32 %v7737_v36, %v20956_v18  ;;  %v7739_v25 = vpop.f32.mrb[119].mxu0  ;;  %11734 = vmatprep.mubr.msk.bf16.mxu1 %vm451_vm1, %v20957_v39  ;;  %v20961_v36 = vld [vmem:[#allocation21_spill] sm:$0xff]  ;;  %v20962_v18 = vld [vmem:[#allocation92_spill] sm:$0xff] }
 0x6fd   : > { %9112 = vmatmul.mubr.bf16.gmra.mrb[224].mxu0 %v20958_v3 }
 0x6fe   : > { %11801 = vmatprep.mubr.msk.bf16.mxu0 %vm451_vm1, %v20959_v8  ;;  %v20966_v8 = vld [vmem:[#allocation16_spill] sm:$0xff] }
 0x700   : > { %v7742_v26 = vpop.f32.mrb[120].mxu0 }
 0x701   : > { %v18583_v62 = vadd.f32 %v7742_v26, %v20960_v21  ;;  %v7744_v46 = vpop.f32.mrb[121].mxu0 }
 0x702   : > { %v7745_v28 = vpop.f32.mrb[122].mxu0  ;;  %8453 = vmatmul.mubr.bf16.gmra.mrb[236].mxu1 %v20961_v36  ;;  %v20967_v36 = vld [vmem:[#allocation17_spill] sm:$0xff] }
 0x703   : > { %v18587_v25 = vadd.f32 %v7745_v28, %v20962_v18  ;;  %v7747_v39 = vpop.f32.mrb[123].mxu0  ;;  %11735 = vmatprep.mubr.msk.bf16.mxu1 %vm451_vm1, %v18223_v60  ;;  %v20969_v60 = vld [vmem:[#allocation37_spill] sm:$0xff] }
 0x704   : > { %v20968_v39 = vld [vmem:[#allocation104_spill] sm:$0xff] }
 0x705   : > { %20963 = vst [vmem:[#allocation114_spill] sm:$0xff] %v18587_v25  ;;  %9120 = vmatmul.mubr.bf16.gmra.mrb[228].mxu0 %v20964_v4  ;;  %v20970_v4 = vld [vmem:[#allocation68_spill] sm:$0xff]  ;;  %v20971_v25 = vld [vmem:[#allocation18_spill] sm:$0xff] }
 0x706   : > { %11802 = vmatprep.mubr.msk.bf16.mxu0 %vm451_vm1, %v20965_v24 }
 0x708   : > { %v7750_v3 = vpop.f32.mrb[124].mxu0 }
 0x709   : > { %v18595_v26 = vadd.f32 %v7750_v3, %v20966_v8  ;;  %v7752_v21 = vpop.f32.mrb[125].mxu0 }
 0x70a   : > { %v7753_v46 = vpop.f32.mrb[126].mxu0  ;;  %8461 = vmatmul.mubr.bf16.gmra.mrb[240].mxu1 %v18236_v63  ;;  %v20972_v63 = vld [vmem:[#allocation19_spill] sm:$0xff] }
 0x70b   : > { %v18599_v28 = vadd.f32 %v7753_v46, %v20967_v36  ;;  %v7755_v18 = vpop.f32.mrb[127].mxu0  ;;  %11736 = vmatprep.mubr.msk.bf16.mxu1 %vm451_vm1, %v20968_v39  ;;  %v20974_v39 = vld [vmem:[#allocation71_spill] sm:$0xff] }
 0x70c   : > { %v20973_v18 = vld [vmem:[#allocation69_spill] sm:$0xff] }
 0x70d   : > { %9128 = vmatmul.mubr.bf16.gmra.mrb[232].mxu0 %v20969_v60 }
 0x70e   : > { %11803 = vmatprep.mubr.msk.bf16.mxu0 %vm451_vm1, %v20970_v4  ;;  %v20975_v4 = vld [vmem:[#allocation100_spill] sm:$0xff] }
 0x710   : > { %v7758_v24 = vpop.f32.mrb[128].mxu0 }
 0x711   : > { %v18607_v3 = vadd.f32 %v7758_v24, %v20971_v25  ;;  %v7760_v8 = vpop.f32.mrb[129].mxu0 }
 0x712   : > { %v7761_v21 = vpop.f32.mrb[130].mxu0  ;;  %8469 = vmatmul.mubr.bf16.gmra.mrb[244].mxu1 %v18256_v34  ;;  %v20976_v34 = vld [vmem:[#allocation101_spill] sm:$0xff] }
 0x713   : > { %v18611_v46 = vadd.f32 %v7761_v21, %v20972_v63  ;;  %v7763_v36 = vpop.f32.mrb[131].mxu0  ;;  %11737 = vmatprep.mubr.msk.bf16.mxu1 %vm451_vm1, %v18259_v61  ;;  %v20977_v61 = vld [vmem:[#allocation39_spill] sm:$0xff] }
 0x714   : > { %v20978_v36 = vld [vmem:[#allocation40_spill] sm:$0xff] }
 0x715   : > { %9136 = vmatmul.mubr.bf16.gmra.mrb[236].mxu0 %v20973_v18 }
 0x716   : > { %11804 = vmatprep.mubr.msk.bf16.mxu0 %vm451_vm1, %v20974_v39  ;;  %v20979_v39 = vld [vmem:[#allocation102_spill] sm:$0xff] }
 0x718   : > { %v7766_v60 = vpop.f32.mrb[132].mxu0 }
 0x719   : > { %v18619_v25 = vadd.f32 %v7766_v60, %v20975_v4  ;;  %v7768_v24 = vpop.f32.mrb[133].mxu0 }
 0x71a   : > { %v7769_v8 = vpop.f32.mrb[134].mxu0  ;;  %8477 = vmatmul.mubr.bf16.gmra.mrb[248].mxu1 %v18270_v13  ;;  %v20980_v13 = vld [vmem:[#allocation103_spill] sm:$0xff] }
 0x71b   : > { %v18623_v21 = vadd.f32 %v7769_v8, %v20976_v34  ;;  %v7771_v63 = vpop.f32.mrb[135].mxu0  ;;  %11738 = vmatprep.mubr.msk.bf16.mxu1 %vm451_vm1, %v18276_v33  ;;  %v20981_v33 = vld [vmem:[#allocation72_spill] sm:$0xff] }
 0x71c   : > { %v20982_v63 = vld [vmem:[#allocation73_spill] sm:$0xff] }
 0x71d   : > { %9144 = vmatmul.mubr.bf16.gmra.mrb[240].mxu0 %v20977_v61 }
 0x71e   : > { %11805 = vmatprep.mubr.msk.bf16.mxu0 %vm451_vm1, %v20978_v36  ;;  %v20983_v36 = vld [vmem:[#allocation105_spill] sm:$0xff] }
 0x720   : > { %v7774_v18 = vpop.f32.mrb[136].mxu0 }
 0x721   : > { %v18631_v60 = vadd.f32 %v7774_v18, %v20979_v39  ;;  %v7776_v4 = vpop.f32.mrb[137].mxu0 }
 0x722   : > { %v7777_v24 = vpop.f32.mrb[138].mxu0  ;;  %8485 = vmatmul.mubr.bf16.gmra.mrb[252].mxu1 %v18288_v5  ;;  %v20984_v5 = vld [vmem:[#allocation22_spill] sm:$0xff] }
 0x723   : > { %v18635_v8 = vadd.f32 %v7777_v24, %v20980_v13  ;;  %v7779_v34 = vpop.f32.mrb[139].mxu0  ;;  %11739 = vmatprep.mubr.msk.bf16.mxu1 %vm451_vm1, %v18291_v1  ;;  %v20985_v1 = vld [vmem:[#allocation41_spill] sm:$0xff] }
 0x724   : > { %v20986_v34 = vld [vmem:[#allocation42_spill] sm:$0xff] }
 0x725   : > { %9152 = vmatmul.mubr.bf16.gmra.mrb[244].mxu0 %v20981_v33 }
 0x726   : > { %11806 = vmatprep.mubr.msk.bf16.mxu0 %vm451_vm1, %v20982_v63  ;;  %v20987_v63 = vld [vmem:[#allocation23_spill] sm:$0xff] }
 0x728   : > { %v7782_v61 = vpop.f32.mrb[140].mxu0 }
 0x729   : > { %v18643_v18 = vadd.f32 %v7782_v61, %v20983_v36  ;;  %v7784_v39 = vpop.f32.mrb[141].mxu0 }
 0x72a   : > { %v7785_v4 = vpop.f32.mrb[142].mxu0  ;;  %8493 = vmatmul.mubr.bf16.gmra.mrb[0].mxu1 %v18306_v42  ;;  %v20989_v42 = vld [vmem:[#allocation106_spill] sm:$0xff] }
 0x72b   : > { %v18647_v24 = vadd.f32 %v7785_v4, %v20984_v5  ;;  %v7787_v13 = vpop.f32.mrb[143].mxu0  ;;  %11740 = vmatprep.mubr.msk.bf16.mxu1 %vm451_vm1, %v18309_v52  ;;  %v20990_v52 = vld [vmem:[#allocation74_spill] sm:$0xff] }
 0x72c   : > { %v20991_v13 = vld [vmem:[#allocation75_spill] sm:$0xff] }
 0x72d   : > { %9160 = vmatmul.mubr.bf16.gmra.mrb[248].mxu0 %v20985_v1 }
 0x72e   : > { %11807 = vmatprep.mubr.msk.bf16.mxu0 %vm451_vm1, %v20986_v34  ;;  %v20992_v34 = vld [vmem:[#allocation107_spill] sm:$0xff] }
 0x730   : > { %v7790_v33 = vpop.f32.mrb[144].mxu0 }
 0x731   : > { %v18655_v61 = vadd.f32 %v7790_v33, %v20987_v63  ;;  %v7792_v36 = vpop.f32.mrb[145].mxu0 }
 0x732   : > { %v7793_v39 = vpop.f32.mrb[146].mxu0  ;;  %8501 = vmatmul.mubr.bf16.gmra.mrb[4].mxu1 %v18323_v54 }
 0x733   : > { %20988 = vst [vmem:[#allocation115_spill] sm:$0xff] %v18655_v61  ;;  %v18659_v4 = vadd.f32 %v7793_v39, %v20989_v42  ;;  %v7795_v5 = vpop.f32.mrb[147].mxu0  ;;  %11741 = vmatprep.mubr.msk.bf16.mxu1 %vm451_vm1, %v18329_v43  ;;  %v20994_v61 = vld [vmem:[#allocation108_spill] sm:$0xff] }
 0x734   : > { %v20995_v5 = vld [vmem:[#allocation43_spill] sm:$0xff] }
 0x735   : > { %9168 = vmatmul.mubr.bf16.gmra.mrb[252].mxu0 %v20990_v52  ;;  %v20996_v52 = vld [vmem:[#allocation44_spill] sm:$0xff] }
 0x736   : > { %11808 = vmatprep.mubr.msk.bf16.mxu0 %vm451_vm1, %v20991_v13 }
 0x738   : > { %v7798_v1 = vpop.f32.mrb[148].mxu0 }
 0x739   : > { %v18667_v33 = vadd.f32 %v7798_v1, %v20992_v34  ;;  %v7800_v63 = vpop.f32.mrb[149].mxu0 }
 0x73a   : > { %v7801_v36 = vpop.f32.mrb[150].mxu0  ;;  %8509 = vmatmul.mubr.bf16.gmra.mrb[8].mxu1 %v18338_v38 }
 0x73b   : > { %20993 = vst [vmem:[#allocation116_spill] sm:$0xff] %v18667_v33  ;;  %v18671_v39 = vadd.f32 %v7801_v36, %v20994_v61  ;;  %v7803_v42 = vpop.f32.mrb[151].mxu0  ;;  %11742 = vmatprep.mubr.msk.bf16.mxu1 %vm451_vm1, %v18341_v29  ;;  %v20998_v33 = vld [vmem:[#allocation109_spill] sm:$0xff] }
 0x73c   : > { %v18685_v42 = vld [vmem:[#allocation3 + $0x148] sm:$0xff] }
 0x73d   : > { %9176 = vmatmul.mubr.bf16.gmra.mrb[0].mxu0 %v20995_v5  ;;  %v21000_v5 = vld [vmem:[#allocation45_spill] sm:$0xff] }
 0x73e   : > { %11809 = vmatprep.mubr.msk.bf16.mxu0 %vm451_vm1, %v20996_v52  ;;  %v21001_v52 = vld [vmem:[#allocation46_spill] sm:$0xff] }
 0x740   : > { %v7806_v13 = vpop.f32.mrb[152].mxu0 }
 0x741   : > { %v18679_v1 = vadd.f32 %v7806_v13, %v18321_v50  ;;  %v7808_v34 = vpop.f32.mrb[153].mxu0 }
 0x742   : > { %v7809_v63 = vpop.f32.mrb[154].mxu0  ;;  %8517 = vmatmul.mubr.bf16.gmra.mrb[12].mxu1 %v18356_v14 }
 0x743   : > { %20997 = vst [vmem:[#allocation117_spill] sm:$0xff] %v18679_v1  ;;  %v18683_v61 = vadd.f32 %v7809_v63, %v20998_v33  ;;  %v7811_v36 = vpop.f32.mrb[155].mxu0  ;;  %11743 = vmatprep.mubr.msk.bf16.mxu1 %vm451_vm1, %v18685_v42 }
 0x744   : > { %v18699_v36 = vld [vmem:[#allocation3 + $0x158] sm:$0xff] }
 0x745   : > { %20999 = vst [vmem:[#allocation54_spill] sm:$0xff] %v18683_v61  ;;  %9184 = vmatmul.mubr.bf16.gmra.mrb[4].mxu0 %v21000_v5  ;;  %21004 = vst [vmem:[#allocation118_spill] sm:$0xff] %v18699_v36  ;;  %v21005_v5 = vld [vmem:[#allocation76_spill] sm:$0xff]  ;;  %v18939_v61 = vld [vmem:[#allocation3 + $0x118] sm:$0xff] }
 0x746   : > { %11810 = vmatprep.mubr.msk.bf16.mxu0 %vm451_vm1, %v21001_v52  ;;  %v21006_v52 = vld [vmem:[#allocation77_spill] sm:$0xff] }
 0x748   : > { %v7814_v50 = vpop.f32.mrb[156].mxu0 }
 0x749   : > { %v18693_v13 = vadd.f32 %v7814_v50, %v18346_v22  ;;  %v7816_v34 = vpop.f32.mrb[157].mxu0 }
 0x74a   : > { %v7817_v1 = vpop.f32.mrb[158].mxu0  ;;  %8525 = vmatmul.mubr.bf16.gmra.mrb[16].mxu1 %v18371_v20 }
 0x74b   : > { %21002 = vst [vmem:[#allocation70_spill] sm:$0xff] %v18693_v13  ;;  %v18697_v33 = vadd.f32 %v7817_v1, %v18351_v32  ;;  %v7819_v63 = vpop.f32.mrb[159].mxu0  ;;  %11744 = vmatprep.mubr.msk.bf16.mxu1 %vm451_vm1, %v18699_v36 }
 0x74c   : > { %v18713_v63 = vld [vmem:[#allocation3 + $0x168] sm:$0xff] }
 0x74d   : > { %21003 = vst [vmem:[#allocation55_spill] sm:$0xff] %v18697_v33  ;;  %9192 = vmatmul.mubr.bf16.gmra.mrb[8].mxu0 %v21005_v5  ;;  %21009 = vst [vmem:[#allocation121_spill] sm:$0xff] %v18713_v63  ;;  %v21010_v5 = vld [vmem:[#allocation47_spill] sm:$0xff] }
 0x74e   : > { %11811 = vmatprep.mubr.msk.bf16.mxu0 %vm451_vm1, %v21006_v52  ;;  %v21011_v52 = vld [vmem:[#allocation78_spill] sm:$0xff] }
 0x74f   : > { %v18723_v33 = vld [vmem:[#allocation3 + $0x160] sm:$0xff] }
 0x750   : > { %v7822_v22 = vpop.f32.mrb[160].mxu0  ;;  %21013 = vst [vmem:[#allocation57_spill] sm:$0xff] %v18723_v33 }
 0x751   : > { %v18707_v50 = vadd.f32 %v7822_v22, %v18367_v41  ;;  %v7824_v34 = vpop.f32.mrb[161].mxu0 }
 0x752   : > { %v7825_v13 = vpop.f32.mrb[162].mxu0  ;;  %8533 = vmatmul.mubr.bf16.gmra.mrb[20].mxu1 %v18386_v17 }
 0x753   : > { %21007 = vst [vmem:[#allocation119_spill] sm:$0xff] %v18707_v50  ;;  %v18711_v32 = vadd.f32 %v7825_v13, %v18375_v9  ;;  %v7827_v1 = vpop.f32.mrb[163].mxu0  ;;  %11745 = vmatprep.mubr.msk.bf16.mxu1 %vm451_vm1, %v18713_v63 }
 0x754   : > { %v18729_v1 = vld [vmem:[#allocation3 + $0x178] sm:$0xff] }
 0x755   : > { %21008 = vst [vmem:[#allocation120_spill] sm:$0xff] %v18711_v32  ;;  %9200 = vmatmul.mubr.bf16.gmra.mrb[12].mxu0 %v21010_v5  ;;  %21015 = vst [vmem:[#allocation125_spill] sm:$0xff] %v18729_v1  ;;  %v21016_v5 = vld [vmem:[#allocation48_spill] sm:$0xff] }
 0x756   : > { %11812 = vmatprep.mubr.msk.bf16.mxu0 %vm451_vm1, %v21011_v52  ;;  %v21017_v52 = vld [vmem:[#allocation79_spill] sm:$0xff]  ;;  %v18739_v32 = vld [vmem:[#allocation3 + $0x170] sm:$0xff] }
 0x757   : > { %21019 = vst [vmem:[#allocation124_spill] sm:$0xff] %v18739_v32 }
 0x758   : > { %v7830_v41 = vpop.f32.mrb[164].mxu0 }
 0x759   : > { %v18721_v22 = vadd.f32 %v7830_v41, %v18392_v55  ;;  %v7832_v34 = vpop.f32.mrb[165].mxu0 }
 0x75a   : > { %v7833_v50 = vpop.f32.mrb[166].mxu0  ;;  %8541 = vmatmul.mubr.bf16.gmra.mrb[24].mxu1 %v18723_v33 }
 0x75b   : > { %21012 = vst [vmem:[#allocation56_spill] sm:$0xff] %v18721_v22  ;;  %v18727_v9 = vadd.f32 %v7833_v50, %v18395_v7  ;;  %v7835_v13 = vpop.f32.mrb[167].mxu0  ;;  %11746 = vmatprep.mubr.msk.bf16.mxu1 %vm451_vm1, %v18729_v1 }
 0x75c   : > { %v18745_v13 = vld [vmem:[#allocation3 + $0x188] sm:$0xff] }
 0x75d   : > { %21014 = vst [vmem:[#allocation123_spill] sm:$0xff] %v18727_v9  ;;  %9208 = vmatmul.mubr.bf16.gmra.mrb[16].mxu0 %v21016_v5  ;;  %21021 = vst [vmem:[#allocation58_spill] sm:$0xff] %v18745_v13  ;;  %v21022_v5 = vld [vmem:[#allocation49_spill] sm:$0xff]  ;;  %v18936_v9 = vld [vmem:[#allocation3 + $0x100] sm:$0xff] }
 0x75e   : > { %11813 = vmatprep.mubr.msk.bf16.mxu0 %vm451_vm1, %v21017_v52 }
 0x760   : > { %v7838_v55 = vpop.f32.mrb[168].mxu0 }
 0x761   : > { %v18737_v41 = vadd.f32 %v7838_v55, %v18404_v2  ;;  %v7840_v34 = vpop.f32.mrb[169].mxu0 }
 0x762   : > { %v7841_v22 = vpop.f32.mrb[170].mxu0  ;;  %8549 = vmatmul.mubr.bf16.gmra.mrb[28].mxu1 %v18739_v32 }
 0x763   : > { %21018 = vst [vmem:[#allocation122_spill] sm:$0xff] %v18737_v41  ;;  %v18743_v7 = vadd.f32 %v7841_v22, %v18408_v59  ;;  %v7843_v50 = vpop.f32.mrb[171].mxu0  ;;  %11747 = vmatprep.mubr.msk.bf16.mxu1 %vm451_vm1, %v18745_v13  ;;  %v18755_v41 = vld [vmem:[#allocation3 + $0x180] sm:$0xff] }
 0x764   : > { %v18761_v50 = vld [vmem:[#allocation3 + $0x38] sm:$0xff] }
 0x765   : > { %21020 = vst [vmem:[#allocation59_spill] sm:$0xff] %v18743_v7  ;;  %9216 = vmatmul.mubr.bf16.gmra.mrb[20].mxu0 %v17960_v44  ;;  %v21025_v44 = vld [vmem:[#allocation84_spill] sm:$0xff] }
 0x766   : > { %11814 = vmatprep.mubr.msk.bf16.mxu0 %vm451_vm1, %v21022_v5  ;;  %v21026_v5 = vld [vmem:[#allocation83_spill] sm:$0xff]  ;;  %v18771_v7 = vld [vmem:[#allocation3 + $0x30] sm:$0xff] }
 0x768   : > { %v7846_v2 = vpop.f32.mrb[172].mxu0 }
 0x769   : > { %v18753_v52 = vadd.f32 %v7846_v2, %v18416_v12  ;;  %v7848_v55 = vpop.f32.mrb[173].mxu0 }
 0x76a   : > { %v7849_v34 = vpop.f32.mrb[174].mxu0  ;;  %8557 = vmatmul.mubr.bf16.gmra.mrb[32].mxu1 %v18755_v41 }
 0x76b   : > { %21023 = vst [vmem:[#allocation26_spill] sm:$0xff] %v18753_v52  ;;  %v18759_v59 = vadd.f32 %v7849_v34, %v18420_v11  ;;  %v7851_v22 = vpop.f32.mrb[175].mxu0  ;;  %11758 = vmatprep.mubr.msk.bf16.mxu1 %vm451_vm1, %v18761_v50 }
 0x76c   : > { %v18777_v22 = vld [vmem:[#allocation3 + $0x48] sm:$0xff] }
 0x76d   : > { %21024 = vst [vmem:[#allocation27_spill] sm:$0xff] %v18759_v59  ;;  %9224 = vmatmul.mubr.bf16.gmra.mrb[24].mxu0 %v21025_v44  ;;  %v21029_v44 = vld [vmem:[#allocation11_spill] sm:$0xff] }
 0x76e   : > { %11815 = vmatprep.mubr.msk.bf16.mxu0 %vm451_vm1, %v21026_v5  ;;  %v18929_v59 = vld [vmem:[#allocation3 + $0x108] sm:$0xff] }
 0x770   : > { %v7854_v12 = vpop.f32.mrb[176].mxu0 }
 0x771   : > { %v18769_v2 = vadd.f32 %v7854_v12, %v18430_v16  ;;  %v7856_v55 = vpop.f32.mrb[177].mxu0 }
 0x772   : > { %v7857_v52 = vpop.f32.mrb[178].mxu0  ;;  %8677 = vmatmul.mubr.bf16.vlgmr.msra.gmra.mrb[192].mxu1 %v18771_v7 }
 0x773   : > { %21027 = vst [vmem:[#allocation28_spill] sm:$0xff] %v18769_v2  ;;  %v18775_v11 = vadd.f32 %v7857_v52, %v18434_v10  ;;  %v7859_v34 = vpop.f32.mrb[179].mxu0  ;;  %11759 = vmatprep.mubr.msk.bf16.mxu1 %vm451_vm1, %v18777_v22  ;;  %v18787_v2 = vld [vmem:[#allocation3 + $0x40] sm:$0xff] }
 0x774   : > { %v18793_v34 = vld [vmem:[#allocation3 + $0x58] sm:$0xff] }
 0x775   : > { %21028 = vst [vmem:[#allocation89_spill] sm:$0xff] %v18775_v11  ;;  %9232 = vmatmul.mubr.bf16.gmra.mrb[28].mxu0 %v18009_v6  ;;  %v18919_v11 = vld [vmem:[#allocation3 + $0xf8] sm:$0xff] }
 0x776   : > { %11816 = vmatprep.mubr.msk.bf16.mxu0 %vm451_vm1, %v21029_v44 }
 0x778   : > { %v7862_v16 = vpop.f32.mrb[180].mxu0 }
 0x779   : > { %v18785_v5 = vadd.f32 %v7862_v16, %v18446_v31  ;;  %v7864_v12 = vpop.f32.mrb[181].mxu0 }
 0x77a   : > { %v7865_v55 = vpop.f32.mrb[182].mxu0  ;;  %8684 = vmatmul.mubr.bf16.gmra.mrb[196].mxu1 %v18787_v2  ;;  %v18803_v12 = vld [vmem:[#allocation3 + $0x50] sm:$0xff] }
 0x77b   : > { %21030 = vst [vmem:[#allocation29_spill] sm:$0xff] %v18785_v5  ;;  %v18791_v10 = vadd.f32 %v7865_v55, %v18450_v53  ;;  %v7867_v52 = vpop.f32.mrb[183].mxu0  ;;  %11760 = vmatprep.mubr.msk.bf16.mxu1 %vm451_vm1, %v18793_v34  ;;  %v18916_v5 = vld [vmem:[#allocation3 + $0xe0] sm:$0xff] }
 0x77c   : > { %v18809_v52 = vld [vmem:[#allocation3 + $0x68] sm:$0xff] }
 0x77d   : > { %21031 = vst [vmem:[#allocation30_spill] sm:$0xff] %v18791_v10  ;;  %9240 = vmatmul.mubr.bf16.gmra.mrb[32].mxu0 %v18024_v15  ;;  %v18909_v10 = vld [vmem:[#allocation3 + $0xe8] sm:$0xff] }
 0x77e   : > { %11817 = vmatprep.mubr.msk.bf16.mxu0 %vm451_vm1, %v18030_v47 }
 0x780   : > { %v7870_v6 = vpop.f32.mrb[184].mxu0 }
 0x781   : > { %v18801_v31 = vadd.f32 %v7870_v6, %v18461_v58  ;;  %v7872_v44 = vpop.f32.mrb[185].mxu0 }
 0x782   : > { %v7873_v16 = vpop.f32.mrb[186].mxu0  ;;  %8692 = vmatmul.mubr.bf16.gmra.mrb[200].mxu1 %v18803_v12  ;;  %v12987_v44 = vld [vmem:[#allocation6 + $0x280] sm:$0xff]  }
 0x783   : > { %21032 = vst [vmem:[#allocation80_spill] sm:$0xff] %v18801_v31  ;;  %v18807_v53 = vadd.f32 %v7873_v16, %v18466_v37  ;;  %v7875_v55 = vpop.f32.mrb[187].mxu0  ;;  %11761 = vmatprep.mubr.msk.bf16.mxu1 %vm451_vm1, %v18809_v52  ;;  %v18819_v37 = vld [vmem:[#allocation3 + $0x60] sm:$0xff]  ;;  %v18906_v31 = vld [vmem:[#allocation3 + $0xd0] sm:$0xff] }
 0x785   : > { %21033 = vst [vmem:[#allocation90_spill] sm:$0xff] %v18807_v53  ;;  %9248 = vmatmul.mubr.bf16.gmra.mrb[36].mxu0 %v18044_v27  ;;  %v18825_v53 = vld [vmem:[#allocation3 + $0x78] sm:$0xff]  ;;  %v18829_v27 = vld [vmem:[#allocation3] sm:$0xff] }
 0x786   : > { %11828 = vmatprep.mubr.msk.bf16.mxu0 %vm451_vm1, %v18422_v40  ;;  %21036 = vst [vmem:[#allocation31_spill] sm:$0xff] %v18829_v27  ;;  %v21037_v40 = vld [vmem:[#allocation24_spill] sm:$0xff] }
 0x788   : > { %v7878_v15 = vpop.f32.mrb[188].mxu0 }
 0x789   : > { %v18817_v47 = vadd.f32 %v7878_v15, %v18473_v35  ;;  %v7880_v58 = vpop.f32.mrb[189].mxu0  ;;  %v12988_v35 = vld [vmem:[#allocation6 + $0x288] sm:$0xff]  }
 0x78a   : > { %v7881_v6 = vpop.f32.mrb[190].mxu0  ;;  %8700 = vmatmul.mubr.bf16.gmra.mrb[204].mxu1 %v18819_v37 }
 0x78b   : > { %21034 = vst [vmem:[#allocation81_spill] sm:$0xff] %v18817_v47  ;;  %v18823_v16 = vadd.f32 %v7881_v6, %v18476_v56  ;;  %v7883_v55 = vpop.f32.mrb[191].mxu0  ;;  %11762 = vmatprep.mubr.msk.bf16.mxu1 %vm451_vm1, %v18825_v53 }
 0x78c   : > { %v18838_v55 = vld [vmem:[#allocation3 + $0x70] sm:$0xff] }
 0x78d   : > { %21035 = vst [vmem:[#allocation15_spill] sm:$0xff] %v18823_v16  ;;  %9349 = vmatmul.mubr.bf16.vlgmr.msra.gmra.mrb[196].mxu0 %v18829_v27  ;;  %v12989_v16 = vld [vmem:[#allocation6 + $0x290] sm:$0xff]  }
 0x78e   : > { %9629 = vmatpush1.bf16.msra.mxu0 %v12987_v44  ;;  %11829 = vmatprep.mubr.msk.bf16.mxu0 %vm451_vm1, %v21037_v40  ;;  %v18841_v44 = vld [vmem:[#allocation3 + $0x88] sm:$0xff]  ;;  %v18850_v40 = vld [vmem:[#allocation3 + $0x80] sm:$0xff] }
 0x78f   : > { %9630 = vmatprep.subr.bf16.mxu0 %v18829_v27 }
 0x790   : > { %v7886_v15 = vpop.f32.mrb[192].mxu0 }
 0x791   : > { %v18836_v56 = vadd.f32 %v7886_v15, %v18484_v57  ;;  %v7888_v58 = vpop.f32.mrb[193].mxu0  ;;  %v12990_v57 = vld [vmem:[#allocation6 + $0x298] sm:$0xff]   ;;  %v12993_v15 = vld [vmem:[#allocation6 + $0x2b0] sm:$0xff]  }
 0x792   : > { %v7889_v6 = vpop.f32.mrb[194].mxu0  ;;  %8708 = vmatmul.mubr.bf16.gmra.mrb[208].mxu1 %v18838_v55  ;;  %9631 = vmatpush1.bf16.msra.mxu0 %v12988_v35  ;;  %v18853_v35 = vld [vmem:[#allocation3 + $0x98] sm:$0xff]  ;;  %v18865_v58 = vld [vmem:[#allocation3 + $0xa8] sm:$0xff] }
 0x793   : > { %21038 = vst [vmem:[#allocation60_spill] sm:$0xff] %v18836_v56  ;;  %v7890_v47 = vpop.f32.mrb[195].mxu0  ;;  %11763 = vmatprep.mubr.msk.bf16.mxu1 %vm451_vm1, %v18841_v44  ;;  %9632 = vmatprep.subr.bf16.mxu0 %v18829_v27  ;;  %v18874_v6 = vld [vmem:[#allocation3 + $0xa0] sm:$0xff]  ;;  %v12996_v56 = vld [vmem:[#allocation6 + $0x2c8] sm:$0xff]  }
 0x794   : > { %v12991_v47 = vld [vmem:[#allocation6 + $0x2a0] sm:$0xff]  }
 0x795   : > { %9356 = vmatmul.mubr.bf16.gmra.mrb[200].mxu0 %v18829_v27 }
 0x796   : > { %11830 = vmatprep.mubr.msk.bf16.mxu0 %vm451_vm1, %v18452_v49  ;;  %9633 = vmatpush1.bf16.msra.mxu0 %v12989_v16  ;;  %v12992_v49 = vld [vmem:[#allocation6 + $0x2a8] sm:$0xff]   ;;  %v18862_v16 = vld [vmem:[#allocation3 + $0x90] sm:$0xff] }
 0x797   : > { %9634 = vmatprep.subr.bf16.mxu0 %v18829_v27 }
 0x79a   : > { %8716 = vmatmul.mubr.bf16.gmra.mrb[212].mxu1 %v18850_v40  ;;  %9635 = vmatpush1.bf16.msra.mxu0 %v12990_v57  ;;  %v18877_v57 = vld [vmem:[#allocation3 + $0xb8] sm:$0xff] }
 0x79b   : > { %11764 = vmatprep.mubr.msk.bf16.mxu1 %vm451_vm1, %v18853_v35  ;;  %9636 = vmatprep.subr.bf16.mxu0 %v18829_v27 }
 0x79d   : > { %9364 = vmatmul.mubr.bf16.gmra.mrb[204].mxu0 %v18463_v23  ;;  %v12994_v23 = vld [vmem:[#allocation6 + $0x2b8] sm:$0xff]  }
 0x79e   : > { %11831 = vmatprep.mubr.msk.bf16.mxu0 %vm451_vm1, %v18761_v50  ;;  %9637 = vmatpush1.bf16.msra.mxu0 %v12991_v47  ;;  %v12995_v47 = vld [vmem:[#allocation6 + $0x2c0] sm:$0xff]  }
 0x79f   : > { %9638 = vmatprep.subr.bf16.mxu0 %v18829_v27 }
 0x7a2   : > { %8724 = vmatmul.mubr.bf16.gmra.mrb[216].mxu1 %v18862_v16  ;;  %9639 = vmatpush1.bf16.msra.mxu0 %v12992_v49  ;;  %v18886_v49 = vld [vmem:[#allocation3 + $0xb0] sm:$0xff] }
 0x7a3   : > { %11765 = vmatprep.mubr.msk.bf16.mxu1 %vm451_vm1, %v18865_v58  ;;  %9640 = vmatprep.subr.bf16.mxu0 %v18829_v27 }
 0x7a5   : > { %9372 = vmatmul.mubr.bf16.gmra.mrb[208].mxu0 %v18771_v7 }
 0x7a6   : > { %11832 = vmatprep.mubr.msk.bf16.mxu0 %vm451_vm1, %v18777_v22  ;;  %9641 = vmatpush1.bf16.msra.mxu0 %v12993_v15  ;;  %v18889_v15 = vld [vmem:[#allocation3 + $0xc8] sm:$0xff] }
 0x7a7   : > { %9642 = vmatprep.subr.bf16.mxu0 %v18829_v27 }
 0x7aa   : > { %8732 = vmatmul.mubr.bf16.gmra.mrb[220].mxu1 %v18874_v6  ;;  %9643 = vmatpush1.bf16.msra.mxu0 %v12994_v23  ;;  %v18896_v23 = vld [vmem:[#allocation3 + $0xc0] sm:$0xff] }
 0x7ab   : > { %11766 = vmatprep.mubr.msk.bf16.mxu1 %vm451_vm1, %v18877_v57  ;;  %9644 = vmatprep.subr.bf16.mxu0 %v18829_v27 }
 0x7ad   : > { %9380 = vmatmul.mubr.bf16.gmra.mrb[212].mxu0 %v18787_v2 }
 0x7ae   : > { %11833 = vmatprep.mubr.msk.bf16.mxu0 %vm451_vm1, %v18793_v34  ;;  %9645 = vmatpush1.bf16.msra.mxu0 %v12995_v47  ;;  %v18899_v47 = vld [vmem:[#allocation3 + $0xd8] sm:$0xff] }
 0x7af   : > { %9646 = vmatprep.subr.bf16.mxu0 %v18829_v27 }
 0x7b2   : > { %8740 = vmatmul.mubr.bf16.gmra.mrb[224].mxu1 %v18886_v49  ;;  %9647 = vmatpush1.bf16.msra.mxu0 %v12996_v56  ;;  %v18926_v56 = vld [vmem:[#allocation3 + $0xf0] sm:$0xff] }
 0x7b3   : > { %11767 = vmatprep.mubr.msk.bf16.mxu1 %vm451_vm1, %v18889_v15 }
 0x7b5   : > { %9388 = vmatmul.mubr.bf16.gmra.mrb[216].mxu0 %v18803_v12 }
 0x7b6   : > { %11834 = vmatprep.mubr.msk.bf16.mxu0 %vm451_vm1, %v18809_v52 }
 0x7ba   : > { %8748 = vmatmul.mubr.bf16.gmra.mrb[228].mxu1 %v18896_v23 }
 0x7bb   : > { %11768 = vmatprep.mubr.msk.bf16.mxu1 %vm451_vm1, %v18899_v47 }
 0x7bd   : > { %9396 = vmatmul.mubr.bf16.gmra.mrb[220].mxu0 %v18819_v37 }
 0x7be   : > { %11835 = vmatprep.mubr.msk.bf16.mxu0 %vm451_vm1, %v18825_v53 }
 0x7c2   : > { %8756 = vmatmul.mubr.bf16.gmra.mrb[232].mxu1 %v18906_v31 }
 0x7c3   : > { %11769 = vmatprep.mubr.msk.bf16.mxu1 %vm451_vm1, %v18909_v10 }
 0x7c5   : > { %9404 = vmatmul.mubr.bf16.gmra.mrb[224].mxu0 %v18838_v55 }
 0x7c6   : > { %11836 = vmatprep.mubr.msk.bf16.mxu0 %vm451_vm1, %v18841_v44 }
 0x7ca   : > { %8764 = vmatmul.mubr.bf16.gmra.mrb[236].mxu1 %v18916_v5 }
 0x7cb   : > { %11770 = vmatprep.mubr.msk.bf16.mxu1 %vm451_vm1, %v18919_v11 }
 0x7cd   : > { %9412 = vmatmul.mubr.bf16.gmra.mrb[228].mxu0 %v18850_v40 }
 0x7ce   : > { %11837 = vmatprep.mubr.msk.bf16.mxu0 %vm451_vm1, %v18853_v35 }
 0x7d2   : > { %8772 = vmatmul.mubr.bf16.gmra.mrb[240].mxu1 %v18926_v56 }
 0x7d3   : > { %11771 = vmatprep.mubr.msk.bf16.mxu1 %vm451_vm1, %v18929_v59 }
 0x7d5   : > { %9420 = vmatmul.mubr.bf16.gmra.mrb[232].mxu0 %v18862_v16 }
 0x7d6   : > { %11838 = vmatprep.mubr.msk.bf16.mxu0 %vm451_vm1, %v18865_v58 }
 0x7da   : > { %8780 = vmatmul.mubr.bf16.gmra.mrb[244].mxu1 %v18936_v9 }
 0x7db   : > { %11772 = vmatprep.mubr.msk.bf16.mxu1 %vm451_vm1, %v18939_v61 }
 0x7dd   : > { %9428 = vmatmul.mubr.bf16.gmra.mrb[236].mxu0 %v18874_v6 }
 0x7de   : > { %11839 = vmatprep.mubr.msk.bf16.mxu0 %vm451_vm1, %v18877_v57 }
 0x7e2   : > { %8788 = vmatmul.mubr.bf16.gmra.mrb[248].mxu1 %v18323_v54  ;;  %v18988_v54 = vld [vmem:[#allocation3 + $0x128] sm:$0xff] }
 0x7e3   : > { %11773 = vmatprep.mubr.msk.bf16.mxu1 %vm451_vm1, %v18329_v43  ;;  %v18985_v43 = vld [vmem:[#allocation3 + $0x110] sm:$0xff]  ;;  %21040 = vst [vmem:[#allocation82_spill] sm:$0xff] %v18988_v54 }
 0x7e4   : > { %21039 = vst [vmem:[#allocation50_spill] sm:$0xff] %v18985_v43 }
 0x7e5   : > { %9436 = vmatmul.mubr.bf16.gmra.mrb[240].mxu0 %v18886_v49 }
 0x7e6   : > { %11840 = vmatprep.mubr.msk.bf16.mxu0 %vm451_vm1, %v18889_v15 }
 0x7ea   : > { %8796 = vmatmul.mubr.bf16.gmra.mrb[252].mxu1 %v18338_v38  ;;  %v18997_v38 = vld [vmem:[#allocation3 + $0x120] sm:$0xff] }
 0x7eb   : > { %11774 = vmatprep.mubr.msk.bf16.mxu1 %vm451_vm1, %v18341_v29  ;;  %v19000_v29 = vld [vmem:[#allocation3 + $0x138] sm:$0xff] }
 0x7ec   : > { %21042 = vst [vmem:[#allocation32_spill] sm:$0xff] %v19000_v29 }
 0x7ed   : > { %9444 = vmatmul.mubr.bf16.gmra.mrb[244].mxu0 %v18896_v23 }
 0x7ee   : > { %11841 = vmatprep.mubr.msk.bf16.mxu0 %vm451_vm1, %v18899_v47 }
 0x7f2   : > { %8804 = vmatmul.mubr.bf16.gmra.mrb[0].mxu1 %v18356_v14  ;;  %v19004_v14 = vld [vmem:[#allocation3 + $0x190] sm:$0xff] }
 0x7f3   : > { %11775 = vmatprep.mubr.msk.bf16.mxu1 %vm451_vm1, %v18685_v42  ;;  %21043 = vst [vmem:[#allocation61_spill] sm:$0xff] %v19004_v14 }
 0x7f5   : > { %9452 = vmatmul.mubr.bf16.gmra.mrb[248].mxu0 %v18906_v31 }
 0x7f6   : > { %11842 = vmatprep.mubr.msk.bf16.mxu0 %vm451_vm1, %v18909_v10 }
 0x7fa   : > { %8812 = vmatmul.mubr.bf16.gmra.mrb[4].mxu1 %v18371_v20  ;;  %v18993_v20 = vld [vmem:[#allocation3 + $0x198] sm:$0xff] }
 0x7fb   : > { %11776 = vmatprep.mubr.msk.bf16.mxu1 %vm451_vm1, %v18699_v36  ;;  %21041 = vst [vmem:[#allocation93_spill] sm:$0xff] %v18993_v20 }
 0x7fd   : > { %9460 = vmatmul.mubr.bf16.gmra.mrb[252].mxu0 %v18916_v5 }
 0x7fe   : > { %11843 = vmatprep.mubr.msk.bf16.mxu0 %vm451_vm1, %v18919_v11 }
 0x802   : > { %8820 = vmatmul.mubr.bf16.gmra.mrb[8].mxu1 %v18386_v17 }
 0x803   : > { %11777 = vmatprep.mubr.msk.bf16.mxu1 %vm451_vm1, %v18713_v63 }
 0x805   : > { %9468 = vmatmul.mubr.bf16.gmra.mrb[0].mxu0 %v18926_v56 }
 0x806   : > { %11844 = vmatprep.mubr.msk.bf16.mxu0 %vm451_vm1, %v18929_v59 }
 0x80a   : > { %8828 = vmatmul.mubr.bf16.gmra.mrb[12].mxu1 %v18723_v33 }
 0x80b   : > { %11778 = vmatprep.mubr.msk.bf16.mxu1 %vm451_vm1, %v18729_v1 }
 0x80d   : > { %9476 = vmatmul.mubr.bf16.gmra.mrb[4].mxu0 %v18936_v9 }
 0x80e   : > { %11845 = vmatprep.mubr.msk.bf16.mxu0 %vm451_vm1, %v18939_v61 }
 0x812   : > { %8836 = vmatmul.mubr.bf16.gmra.mrb[16].mxu1 %v18739_v32 }
 0x813   : > { %11779 = vmatprep.mubr.msk.bf16.mxu1 %vm451_vm1, %v18745_v13 }
 0x815   : > { %9484 = vmatmul.mubr.bf16.gmra.mrb[8].mxu0 %v18985_v43  ;;  %v19009_v43 = vld [vmem:[#allocation3 + $0x130] sm:$0xff] }
 0x816   : > { %11846 = vmatprep.mubr.msk.bf16.mxu0 %vm451_vm1, %v18988_v54  ;;  %v21044_v54 = vld [vmem:[#allocation25_spill] sm:$0xff] }
 0x81a   : > { %8844 = vmatmul.mubr.bf16.gmra.mrb[20].mxu1 %v18755_v41 }
 0x81b   : > { %11780 = vmatprep.mubr.msk.bf16.mxu1 %vm451_vm1, %v18993_v20  ;;  %v21045_v20 = vld [vmem:[#allocation110_spill] sm:$0xff] }
 0x81d   : > { %9492 = vmatmul.mubr.bf16.gmra.mrb[12].mxu0 %v18997_v38 }
 0x81e   : > { %11847 = vmatprep.mubr.msk.bf16.mxu0 %vm451_vm1, %v19000_v29  ;;  %v19017_v29 = vld [vmem:[#allocation3 + $0x140] sm:$0xff] }
 0x81f   : > { %21046 = vst [vmem:[#allocation51_spill] sm:$0xff] %v19017_v29 }
 0x822   : > { %8852 = vmatmul.mubr.bf16.gmra.mrb[24].mxu1 %v19004_v14 }
 0x823   : > { %11781 = vmatprep.mubr.msk.bf16.mxu1 %vm451_vm1, %v21044_v54 }
 0x825   : > { %9500 = vmatmul.mubr.bf16.gmra.mrb[16].mxu0 %v19009_v43 }
 0x826   : > { %11848 = vmatprep.mubr.msk.bf16.mxu0 %vm451_vm1, %v18685_v42 }
 0x82a   : > { %8860 = vmatmul.mubr.bf16.gmra.mrb[28].mxu1 %v18829_v27 }
 0x82b   : > { %11782 = vmatprep.mubr.msk.bf16.mxu1 %vm451_vm1, %v21045_v20 }
 0x82d   : > { %9508 = vmatmul.mubr.bf16.gmra.mrb[20].mxu0 %v19017_v29 }
 0x82e   : > { %11849 = vmatprep.mubr.msk.bf16.mxu0 %vm451_vm1, %v18699_v36 }
 0x832   : > { %8868 = vmatmul.mubr.bf16.gmra.mrb[32].mxu1 %v18829_v27 }
 0x835   : > { %9516 = vmatmul.mubr.bf16.gmra.mrb[24].mxu0 %v18386_v17 }
 0x836   : > { %11850 = vmatprep.mubr.msk.bf16.mxu0 %vm451_vm1, %v18713_v63 }
 0x83d   : > { %9524 = vmatmul.mubr.bf16.gmra.mrb[28].mxu0 %v18723_v33 }
 0x83e   : > { %11851 = vmatprep.mubr.msk.bf16.mxu0 %vm451_vm1, %v18729_v1 }
 0x845   : > { %9532 = vmatmul.mubr.bf16.gmra.mrb[32].mxu0 %v18739_v32  ;;  %v8678_v54 = vpop.f32.mrb[192].mxu1 }
 0x846   : > { %11852 = vmatprep.mubr.msk.bf16.mxu0 %vm451_vm1, %v18745_v13  ;;  %v8679_v20 = vpop.f32.mrb[193].mxu1 }
 0x847   : > { %v8680_v14 = vpop.f32.mrb[194].mxu1 }
 0x848   : > { %v9957_v36 = vrot.slane %v8680_v14, 1  ;;  %v8682_v27 = vpop.f32.mrb[195].mxu1 }
 0x84a   : > { %v19033_v17 = vadd.f32 %v9957_v36, %v18495_v45 }
 0x84d   : > { %9540 = vmatmul.mubr.bf16.gmra.mrb[36].mxu0 %v18755_v41  ;;  %v8685_v63 = vpop.f32.mrb[196].mxu1 }
 0x84e   : > { %11863 = vmatprep.mubr.msk.bf16.mxu0 %vm451_vm1, %v18761_v50  ;;  %v9958_v1 = vrot.slane %v8685_v63, 1  ;;  %v8687_v33 = vpop.f32.mrb[197].mxu1 }
 0x84f   : > { %v8688_v32 = vpop.f32.mrb[198].mxu1 }
 0x850   : > { %v9959_v54 = vsel %vm1851_vm4, %v9957_v36, %v9958_v1  ;;  %v9960_v29 = vrot.slane %v8688_v32, 1  ;;  %v8690_v13 = vpop.f32.mrb[199].mxu1 }
 0x851   : > { %v19040_v20 = vadd.f32 %v9959_v54, %v18499_v19 }
 0x852   : > { %v9961_v27 = vsel %vm1851_vm4, %v9958_v1, %v9960_v29 }
 0x853   : > { %v19044_v45 = vadd.f32 %v9961_v27, %v18510_v51  ;;  %v21047_v51 = vld [vmem:[#allocation111_spill] sm:$0xff] }
 0x855   : > { %9661 = vmatmul.mubr.bf16.vlgmr.msra.gmra.mrb[196].mxu0 %v18771_v7  ;;  %v8693_v14 = vpop.f32.mrb[200].mxu1 }
 0x856   : > { %11864 = vmatprep.mubr.msk.bf16.mxu0 %vm451_vm1, %v18777_v22  ;;  %v9962_v33 = vrot.slane %v8693_v14, 1  ;;  %v8695_v63 = vpop.f32.mrb[201].mxu1 }
 0x857   : > { %v8696_v50 = vpop.f32.mrb[202].mxu1 }
 0x858   : > { %v9963_v36 = vsel %vm1851_vm4, %v9960_v29, %v9962_v33  ;;  %v9964_v32 = vrot.slane %v8696_v50, 1  ;;  %v8698_v13 = vpop.f32.mrb[203].mxu1 }
 0x859   : > { %v19051_v19 = vadd.f32 %v9963_v36, %v18514_v0  ;;  %v21048_v0 = vld [vmem:[#allocation112_spill] sm:$0xff]  ;;  %v21049_v13 = vld [vmem:[#allocation113_spill] sm:$0xff] }
 0x85a   : > { %v9965_v1 = vsel %vm1851_vm4, %v9962_v33, %v9964_v32 }
 0x85b   : > { %v19055_v54 = vadd.f32 %v9965_v1, %v21047_v51 }
 0x85d   : > { %9668 = vmatmul.mubr.bf16.gmra.mrb[200].mxu0 %v18787_v2  ;;  %v8701_v7 = vpop.f32.mrb[204].mxu1 }
 0x85e   : > { %11865 = vmatprep.mubr.msk.bf16.mxu0 %vm451_vm1, %v18793_v34  ;;  %v9966_v22 = vrot.slane %v8701_v7, 1  ;;  %v8703_v27 = vpop.f32.mrb[205].mxu1 }
 0x85f   : > { %v8704_v14 = vpop.f32.mrb[206].mxu1 }
 0x860   : > { %v9967_v29 = vsel %vm1851_vm4, %v9964_v32, %v9966_v22  ;;  %v9968_v63 = vrot.slane %v8704_v14, 1  ;;  %v8706_v50 = vpop.f32.mrb[207].mxu1 }
 0x861   : > { %v19062_v36 = vadd.f32 %v9967_v29, %v21048_v0  ;;  %v21050_v29 = vld [vmem:[#allocation52_spill] sm:$0xff] }
 0x862   : > { %v9969_v33 = vsel %vm1851_vm4, %v9966_v22, %v9968_v63 }
 0x863   : > { %v19066_v1 = vadd.f32 %v9969_v33, %v21049_v13 }
 0x865   : > { %9676 = vmatmul.mubr.bf16.gmra.mrb[204].mxu0 %v18803_v12  ;;  %v8709_v2 = vpop.f32.mrb[208].mxu1 }
 0x866   : > { %11866 = vmatprep.mubr.msk.bf16.mxu0 %vm451_vm1, %v18809_v52  ;;  %v9970_v34 = vrot.slane %v8709_v2, 1  ;;  %v8711_v51 = vpop.f32.mrb[209].mxu1 }
 0x867   : > { %v8712_v7 = vpop.f32.mrb[210].mxu1 }
 0x868   : > { %v9971_v32 = vsel %vm1851_vm4, %v9968_v63, %v9970_v34  ;;  %v9972_v27 = vrot.slane %v8712_v7, 1  ;;  %v8714_v14 = vpop.f32.mrb[211].mxu1  ;;  %v21051_v7 = vld [vmem:[#allocation38_spill] sm:$0xff] }
 0x869   : > { %v19073_v50 = vadd.f32 %v9971_v32, %v21050_v29 }
 0x86a   : > { %v9973_v22 = vsel %vm1851_vm4, %v9970_v34, %v9972_v27 }
 0x86b   : > { %v19077_v0 = vadd.f32 %v9973_v22, %v18556_v30  ;;  %v21052_v30 = vld [vmem:[#allocation53_spill] sm:$0xff] }
 0x86d   : > { %9684 = vmatmul.mubr.bf16.gmra.mrb[208].mxu0 %v18819_v37  ;;  %v8717_v12 = vpop.f32.mrb[212].mxu1 }
 0x86e   : > { %11867 = vmatprep.mubr.msk.bf16.mxu0 %vm451_vm1, %v18825_v53  ;;  %v9974_v52 = vrot.slane %v8717_v12, 1  ;;  %v8719_v33 = vpop.f32.mrb[213].mxu1 }
 0x86f   : > { %v8720_v13 = vpop.f32.mrb[214].mxu1 }
 0x870   : > { %v9975_v63 = vsel %vm1851_vm4, %v9972_v27, %v9974_v52  ;;  %v9976_v2 = vrot.slane %v8720_v13, 1  ;;  %v8722_v51 = vpop.f32.mrb[215].mxu1 }
 0x871   : > { %v19084_v32 = vadd.f32 %v9975_v63, %v21051_v7 }
 0x872   : > { %v9977_v34 = vsel %vm1851_vm4, %v9974_v52, %v9976_v2 }
 0x873   : > { %v19088_v14 = vadd.f32 %v9977_v34, %v21052_v30 }
 0x875   : > { %9692 = vmatmul.mubr.bf16.gmra.mrb[212].mxu0 %v18838_v55  ;;  %v8725_v37 = vpop.f32.mrb[216].mxu1 }
 0x876   : > { %11868 = vmatprep.mubr.msk.bf16.mxu0 %vm451_vm1, %v18841_v44  ;;  %v9978_v53 = vrot.slane %v8725_v37, 1  ;;  %v8727_v29 = vpop.f32.mrb[217].mxu1 }
 0x877   : > { %v8728_v22 = vpop.f32.mrb[218].mxu1 }
 0x878   : > { %v9979_v27 = vsel %vm1851_vm4, %v9976_v2, %v9978_v53  ;;  %v9980_v12 = vrot.slane %v8728_v22, 1  ;;  %v8730_v33 = vpop.f32.mrb[219].mxu1 }
 0x879   : > { %v19095_v13 = vadd.f32 %v9979_v27, %v18574_v48  ;;  %v21053_v48 = vld [vmem:[#allocation114_spill] sm:$0xff] }
 0x87a   : > { %v9981_v52 = vsel %vm1851_vm4, %v9978_v53, %v9980_v12 }
 0x87b   : > { %v19099_v63 = vadd.f32 %v9981_v52, %v18583_v62 }
 0x87d   : > { %9700 = vmatmul.mubr.bf16.gmra.mrb[216].mxu0 %v18850_v40  ;;  %v8733_v55 = vpop.f32.mrb[220].mxu1 }
 0x87e   : > { %11869 = vmatprep.mubr.msk.bf16.mxu0 %vm451_vm1, %v18853_v35  ;;  %v9982_v44 = vrot.slane %v8733_v55, 1  ;;  %v8735_v51 = vpop.f32.mrb[221].mxu1 }
 0x87f   : > { %v8736_v7 = vpop.f32.mrb[222].mxu1 }
 0x880   : > { %v9983_v2 = vsel %vm1851_vm4, %v9980_v12, %v9982_v44  ;;  %v9984_v34 = vrot.slane %v8736_v7, 1  ;;  %v8738_v30 = vpop.f32.mrb[223].mxu1 }
 0x881   : > { %v19106_v37 = vadd.f32 %v9983_v2, %v21053_v48 }
 0x882   : > { %v9985_v53 = vsel %vm1851_vm4, %v9982_v44, %v9984_v34 }
 0x883   : > { %v19110_v62 = vadd.f32 %v9985_v53, %v18595_v26 }
 0x885   : > { %9708 = vmatmul.mubr.bf16.gmra.mrb[220].mxu0 %v18862_v16  ;;  %v8741_v40 = vpop.f32.mrb[224].mxu1 }
 0x886   : > { %11870 = vmatprep.mubr.msk.bf16.mxu0 %vm451_vm1, %v18865_v58  ;;  %v9986_v35 = vrot.slane %v8741_v40, 1  ;;  %v8743_v29 = vpop.f32.mrb[225].mxu1 }
 0x887   : > { %v8744_v22 = vpop.f32.mrb[226].mxu1 }
 0x888   : > { %v9987_v27 = vsel %vm1851_vm4, %v9984_v34, %v9986_v35  ;;  %v9988_v12 = vrot.slane %v8744_v22, 1  ;;  %v8746_v33 = vpop.f32.mrb[227].mxu1 }
 0x889   : > { %v19117_v52 = vadd.f32 %v9987_v27, %v18599_v28 }
 0x88a   : > { %v9989_v55 = vsel %vm1851_vm4, %v9986_v35, %v9988_v12 }
 0x88b   : > { %v19121_v26 = vadd.f32 %v9989_v55, %v18607_v3 }
 0x88d   : > { %9716 = vmatmul.mubr.bf16.gmra.mrb[224].mxu0 %v18874_v6  ;;  %v8749_v16 = vpop.f32.mrb[228].mxu1 }
 0x88e   : > { %11871 = vmatprep.mubr.msk.bf16.mxu0 %vm451_vm1, %v18877_v57  ;;  %v9990_v58 = vrot.slane %v8749_v16, 1  ;;  %v8751_v44 = vpop.f32.mrb[229].mxu1 }
 0x88f   : > { %v8752_v51 = vpop.f32.mrb[230].mxu1 }
 0x890   : > { %v9991_v7 = vsel %vm1851_vm4, %v9988_v12, %v9990_v58  ;;  %v9992_v2 = vrot.slane %v8752_v51, 1  ;;  %v8754_v34 = vpop.f32.mrb[231].mxu1 }
 0x891   : > { %v19128_v28 = vadd.f32 %v9991_v7, %v18611_v46 }
 0x892   : > { %v9993_v30 = vsel %vm1851_vm4, %v9990_v58, %v9992_v2 }
 0x893   : > { %v19132_v3 = vadd.f32 %v9993_v30, %v18619_v25 }
 0x895   : > { %9724 = vmatmul.mubr.bf16.gmra.mrb[228].mxu0 %v18886_v49  ;;  %v8757_v6 = vpop.f32.mrb[232].mxu1 }
 0x896   : > { %11872 = vmatprep.mubr.msk.bf16.mxu0 %vm451_vm1, %v18889_v15  ;;  %v9994_v57 = vrot.slane %v8757_v6, 1  ;;  %v8759_v48 = vpop.f32.mrb[233].mxu1 }
 0x897   : > { %v8760_v53 = vpop.f32.mrb[234].mxu1 }
 0x898   : > { %v9995_v40 = vsel %vm1851_vm4, %v9992_v2, %v9994_v57  ;;  %v9996_v35 = vrot.slane %v8760_v53, 1  ;;  %v8762_v29 = vpop.f32.mrb[235].mxu1 }
 0x899   : > { %v19139_v46 = vadd.f32 %v9995_v40, %v18623_v21 }
 0x89a   : > { %v9997_v22 = vsel %vm1851_vm4, %v9994_v57, %v9996_v35 }
 0x89b   : > { %v19143_v25 = vadd.f32 %v9997_v22, %v18631_v60  ;;  %v21055_v22 = vld [vmem:[#allocation116_spill] sm:$0xff] }
 0x89d   : > { %9732 = vmatmul.mubr.bf16.gmra.mrb[232].mxu0 %v18896_v23  ;;  %v8765_v49 = vpop.f32.mrb[236].mxu1 }
 0x89e   : > { %11873 = vmatprep.mubr.msk.bf16.mxu0 %vm451_vm1, %v18899_v47  ;;  %v9998_v15 = vrot.slane %v8765_v49, 1  ;;  %v8767_v27 = vpop.f32.mrb[237].mxu1 }
 0x89f   : > { %v8768_v12 = vpop.f32.mrb[238].mxu1 }
 0x8a0   : > { %v9999_v33 = vsel %vm1851_vm4, %v9996_v35, %v9998_v15  ;;  %v10000_v55 = vrot.slane %v8768_v12, 1  ;;  %v8770_v16 = vpop.f32.mrb[239].mxu1 }
 0x8a1   : > { %v19150_v21 = vadd.f32 %v9999_v33, %v18635_v8 }
 0x8a2   : > { %v10001_v58 = vsel %vm1851_vm4, %v9998_v15, %v10000_v55 }
 0x8a3   : > { %v19154_v60 = vadd.f32 %v10001_v58, %v18643_v18  ;;  %v21054_v18 = vld [vmem:[#allocation115_spill] sm:$0xff]  ;;  %v21056_v58 = vld [vmem:[#allocation117_spill] sm:$0xff] }
 0x8a5   : > { %9740 = vmatmul.mubr.bf16.gmra.mrb[236].mxu0 %v18906_v31  ;;  %v8773_v23 = vpop.f32.mrb[240].mxu1 }
 0x8a6   : > { %11874 = vmatprep.mubr.msk.bf16.mxu0 %vm451_vm1, %v18909_v10  ;;  %v10002_v47 = vrot.slane %v8773_v23, 1  ;;  %v8775_v44 = vpop.f32.mrb[241].mxu1 }
 0x8a7   : > { %v8776_v51 = vpop.f32.mrb[242].mxu1 }
 0x8a8   : > { %v10003_v7 = vsel %vm1851_vm4, %v10000_v55, %v10002_v47  ;;  %v10004_v2 = vrot.slane %v8776_v51, 1  ;;  %v8778_v34 = vpop.f32.mrb[243].mxu1 }
 0x8a9   : > { %v19161_v8 = vadd.f32 %v10003_v7, %v18647_v24 }
 0x8aa   : > { %v10005_v30 = vsel %vm1851_vm4, %v10002_v47, %v10004_v2 }
 0x8ab   : > { %v19165_v6 = vadd.f32 %v10005_v30, %v21054_v18  ;;  %v21058_v18 = vld [vmem:[#allocation70_spill] sm:$0xff] }
 0x8ad   : > { %9748 = vmatmul.mubr.bf16.gmra.mrb[240].mxu0 %v18916_v5  ;;  %v8781_v31 = vpop.f32.mrb[244].mxu1 }
 0x8ae   : > { %11875 = vmatprep.mubr.msk.bf16.mxu0 %vm451_vm1, %v18919_v11  ;;  %v10006_v10 = vrot.slane %v8781_v31, 1  ;;  %v8783_v57 = vpop.f32.mrb[245].mxu1 }
 0x8af   : > { %v8784_v48 = vpop.f32.mrb[246].mxu1  ;;  %v21060_v57 = vld [vmem:[#allocation82_spill] sm:$0xff] }
 0x8b0   : > { %v10007_v53 = vsel %vm1851_vm4, %v10004_v2, %v10006_v10  ;;  %v10008_v40 = vrot.slane %v8784_v48, 1  ;;  %v8786_v35 = vpop.f32.mrb[247].mxu1 }
 0x8b1   : > { %v19172_v24 = vadd.f32 %v10007_v53, %v18659_v4 }
 0x8b2   : > { %v10009_v29 = vsel %vm1851_vm4, %v10006_v10, %v10008_v40 }
 0x8b3   : > { %v19176_v49 = vadd.f32 %v10009_v29, %v21055_v22  ;;  %v21061_v22 = vld [vmem:[#allocation55_spill] sm:$0xff] }
 0x8b5   : > { %9756 = vmatmul.mubr.bf16.gmra.mrb[244].mxu0 %v18926_v56  ;;  %v8789_v5 = vpop.f32.mrb[248].mxu1 }
 0x8b6   : > { %11876 = vmatprep.mubr.msk.bf16.mxu0 %vm451_vm1, %v18929_v59  ;;  %v10010_v11 = vrot.slane %v8789_v5, 1  ;;  %v8791_v15 = vpop.f32.mrb[249].mxu1 }
 0x8b7   : > { %v8792_v27 = vpop.f32.mrb[250].mxu1  ;;  %v21062_v15 = vld [vmem:[#allocation119_spill] sm:$0xff] }
 0x8b8   : > { %v10011_v12 = vsel %vm1851_vm4, %v10008_v40, %v10010_v11  ;;  %v10012_v33 = vrot.slane %v8792_v27, 1  ;;  %v8794_v55 = vpop.f32.mrb[251].mxu1 }
 0x8b9   : > { %v19183_v4 = vadd.f32 %v10011_v12, %v18671_v39  ;;  %v21057_v39 = vld [vmem:[#allocation54_spill] sm:$0xff] }
 0x8ba   : > { %v10013_v16 = vsel %vm1851_vm4, %v10010_v11, %v10012_v33 }
 0x8bb   : > { %v19187_v23 = vadd.f32 %v10013_v16, %v21056_v58 }
 0x8bd   : > { %9764 = vmatmul.mubr.bf16.gmra.mrb[248].mxu0 %v18936_v9  ;;  %v8797_v56 = vpop.f32.mrb[252].mxu1  ;;  %v21059_v9 = vld [vmem:[#allocation50_spill] sm:$0xff] }
 0x8be   : > { %11877 = vmatprep.mubr.msk.bf16.mxu0 %vm451_vm1, %v18939_v61  ;;  %v10014_v59 = vrot.slane %v8797_v56, 1  ;;  %v8799_v47 = vpop.f32.mrb[253].mxu1 }
 0x8bf   : > { %v8800_v44 = vpop.f32.mrb[254].mxu1 }
 0x8c0   : > { %v10015_v51 = vsel %vm1851_vm4, %v10012_v33, %v10014_v59  ;;  %v10016_v7 = vrot.slane %v8800_v44, 1  ;;  %v8802_v2 = vpop.f32.mrb[255].mxu1  ;;  %v21063_v33 = vld [vmem:[#allocation32_spill] sm:$0xff] }
 0x8c1   : > { %v19194_v34 = vadd.f32 %v10015_v51, %v21057_v39  ;;  %v21064_v44 = vld [vmem:[#allocation120_spill] sm:$0xff] }
 0x8c2   : > { %v10017_v30 = vsel %vm1851_vm4, %v10014_v59, %v10016_v7  ;;  %v21065_v2 = vld [vmem:[#allocation56_spill] sm:$0xff] }
 0x8c3   : > { %v19198_v31 = vadd.f32 %v10017_v30, %v21058_v18 }
 0x8c5   : > { %9772 = vmatmul.mubr.bf16.gmra.mrb[252].mxu0 %v21059_v9  ;;  %v8805_v10 = vpop.f32.mrb[0].mxu1 }
 0x8c6   : > { %11878 = vmatprep.mubr.msk.bf16.mxu0 %vm451_vm1, %v21060_v57  ;;  %v10018_v61 = vrot.slane %v8805_v10, 1  ;;  %v8807_v48 = vpop.f32.mrb[1].mxu1 }
 0x8c7   : > { %v8808_v53 = vpop.f32.mrb[2].mxu1  ;;  %v21066_v48 = vld [vmem:[#allocation123_spill] sm:$0xff] }
 0x8c8   : > { %v10019_v40 = vsel %vm1851_vm4, %v10016_v7, %v10018_v61  ;;  %v10020_v35 = vrot.slane %v8808_v53, 1  ;;  %v8810_v29 = vpop.f32.mrb[3].mxu1 }
 0x8c9   : > { %v19205_v5 = vadd.f32 %v10019_v40, %v21061_v22 }
 0x8ca   : > { %v10021_v11 = vsel %vm1851_vm4, %v10018_v61, %v10020_v35 }
 0x8cb   : > { %v19209_v27 = vadd.f32 %v10021_v11, %v21062_v15  ;;  %v21069_v11 = vld [vmem:[#allocation118_spill] sm:$0xff] }
 0x8cd   : > { %9780 = vmatmul.mubr.bf16.gmra.mrb[0].mxu0 %v18997_v38  ;;  %v8813_v12 = vpop.f32.mrb[4].mxu1 }
 0x8ce   : > { %11879 = vmatprep.mubr.msk.bf16.mxu0 %vm451_vm1, %v21063_v33  ;;  %v10022_v55 = vrot.slane %v8813_v12, 1  ;;  %v8815_v16 = vpop.f32.mrb[5].mxu1 }
 0x8cf   : > { %v8816_v58 = vpop.f32.mrb[6].mxu1 }
 0x8d0   : > { %v10023_v56 = vsel %vm1851_vm4, %v10020_v35, %v10022_v55  ;;  %v10024_v59 = vrot.slane %v8816_v58, 1  ;;  %v8818_v47 = vpop.f32.mrb[7].mxu1  ;;  %v21067_v35 = vld [vmem:[#allocation122_spill] sm:$0xff]  ;;  %v21070_v58 = vld [vmem:[#allocation59_spill] sm:$0xff] }
 0x8d1   : > { %v19216_v51 = vadd.f32 %v10023_v56, %v21064_v44  ;;  %v21071_v47 = vld [vmem:[#allocation26_spill] sm:$0xff] }
 0x8d2   : > { %v10025_v7 = vsel %vm1851_vm4, %v10022_v55, %v10024_v59 }
 0x8d3   : > { %v19220_v39 = vadd.f32 %v10025_v7, %v21065_v2  ;;  %v13400_v7 = vld [vmem:[#allocation3 + $0x150] sm:$0xff] }
 0x8d5   : > { %9788 = vmatmul.mubr.bf16.gmra.mrb[4].mxu0 %v19009_v43  ;;  %v8821_v38 = vpop.f32.mrb[8].mxu1  ;;  %v21068_v43 = vld [vmem:[#allocation51_spill] sm:$0xff] }
 0x8d6   : > { %11880 = vmatprep.mubr.msk.bf16.mxu0 %vm451_vm1, %v18685_v42  ;;  %v10026_v30 = vrot.slane %v8821_v38, 1  ;;  %v8823_v18 = vpop.f32.mrb[9].mxu1  ;;  %v21072_v38 = vld [vmem:[#allocation121_spill] sm:$0xff] }
 0x8d7   : > { %v8824_v9 = vpop.f32.mrb[10].mxu1 }
 0x8d8   : > { %v10027_v10 = vsel %vm1851_vm4, %v10024_v59, %v10026_v30  ;;  %v10028_v57 = vrot.slane %v8824_v9, 1  ;;  %v8826_v61 = vpop.f32.mrb[11].mxu1 }
 0x8d9   : > { %v19227_v53 = vadd.f32 %v10027_v10, %v21066_v48  ;;  %v21073_v48 = vld [vmem:[#allocation27_spill] sm:$0xff] }
 0x8da   : > { %v10029_v40 = vsel %vm1851_vm4, %v10026_v30, %v10028_v57 }
 0x8db   : > { %v19231_v29 = vadd.f32 %v10029_v40, %v21067_v35 }
 0x8dd   : > { %9796 = vmatmul.mubr.bf16.gmra.mrb[8].mxu0 %v21068_v43  ;;  %v8829_v22 = vpop.f32.mrb[12].mxu1  ;;  %v21074_v43 = vld [vmem:[#allocation28_spill] sm:$0xff] }
 0x8de   : > { %11881 = vmatprep.mubr.msk.bf16.mxu0 %vm451_vm1, %v21069_v11  ;;  %v10030_v42 = vrot.slane %v8829_v22, 1  ;;  %v8831_v15 = vpop.f32.mrb[13].mxu1  ;;  %v21075_v11 = vld [vmem:[#allocation57_spill] sm:$0xff] }
 0x8df   : > { %v8832_v12 = vpop.f32.mrb[14].mxu1  ;;  %v21076_v15 = vld [vmem:[#allocation125_spill] sm:$0xff] }
 0x8e0   : > { %v10031_v33 = vsel %vm1851_vm4, %v10028_v57, %v10030_v42  ;;  %v10032_v55 = vrot.slane %v8832_v12, 1  ;;  %v8834_v16 = vpop.f32.mrb[15].mxu1 }
 0x8e1   : > { %v19238_v56 = vadd.f32 %v10031_v33, %v21070_v58 }
 0x8e2   : > { %v10033_v59 = vsel %vm1851_vm4, %v10030_v42, %v10032_v55 }
 0x8e3   : > { %v19242_v44 = vadd.f32 %v10033_v59, %v21071_v47  ;;  %v21077_v47 = vld [vmem:[#allocation89_spill] sm:$0xff] }
 0x8e5   : > { %9804 = vmatmul.mubr.bf16.gmra.mrb[12].mxu0 %v13400_v7  ;;  %v8837_v2 = vpop.f32.mrb[16].mxu1 }
 0x8e6   : > { %11882 = vmatprep.mubr.msk.bf16.mxu0 %vm451_vm1, %v21072_v38  ;;  %v10034_v30 = vrot.slane %v8837_v2, 1  ;;  %v8839_v18 = vpop.f32.mrb[17].mxu1  ;;  %v21078_v38 = vld [vmem:[#allocation29_spill] sm:$0xff] }
 0x8e7   : > { %v8840_v9 = vpop.f32.mrb[18].mxu1  ;;  %v21080_v18 = vld [vmem:[#allocation124_spill] sm:$0xff] }
 0x8e8   : > { %v10035_v10 = vsel %vm1851_vm4, %v10032_v55, %v10034_v30  ;;  %v10036_v57 = vrot.slane %v8840_v9, 1  ;;  %v8842_v61 = vpop.f32.mrb[19].mxu1 }
 0x8e9   : > { %v19248_v40 = vadd.f32 %v10035_v10, %v21073_v48  ;;  %v21081_v10 = vld [vmem:[#allocation58_spill] sm:$0xff] }
 0x8ea   : > { %v10037_v35 = vsel %vm1851_vm4, %v10034_v30, %v10036_v57 }
 0x8eb   : > { %v19252_v22 = vadd.f32 %v10037_v35, %v21074_v43 }
 0x8ed   : > { %9812 = vmatmul.mubr.bf16.gmra.mrb[16].mxu0 %v21075_v11  ;;  %v8845_v42 = vpop.f32.mrb[20].mxu1 }
 0x8ee   : > { %11883 = vmatprep.mubr.msk.bf16.mxu0 %vm451_vm1, %v21076_v15  ;;  %v10038_v12 = vrot.slane %v8845_v42, 1  ;;  %v8847_v33 = vpop.f32.mrb[21].mxu1  ;;  %v21082_v42 = vld [vmem:[#allocation30_spill] sm:$0xff] }
 0x8ef   : > { %v8848_v16 = vpop.f32.mrb[22].mxu1  ;;  %v21084_v33 = vld [vmem:[#allocation80_spill] sm:$0xff] }
 0x8f0   : > { %v10039_v55 = vsel %vm1851_vm4, %v10036_v57, %v10038_v12  ;;  %v10040_v58 = vrot.slane %v8848_v16, 1  ;;  %v8850_v59 = vpop.f32.mrb[23].mxu1 }
 0x8f1   : > { %v19259_v7 = vadd.f32 %v10039_v55, %v21077_v47  ;;  %v21086_v59 = vld [vmem:[#allocation93_spill] sm:$0xff] }
 0x8f2   : > { %v10041_v2 = vsel %vm1851_vm4, %v10038_v12, %v10040_v58 }
 0x8f3   : > { %v19263_v30 = vadd.f32 %v10041_v2, %v21078_v38 }
 0x8f5   : > { %21079 = vst [vmem:[#allocation94_spill] sm:$0xff] %v19263_v30  ;;  %9820 = vmatmul.mubr.bf16.gmra.mrb[20].mxu0 %v21080_v18  ;;  %v8853_v9 = vpop.f32.mrb[24].mxu1 }
 0x8f6   : > { %11884 = vmatprep.mubr.msk.bf16.mxu0 %vm451_vm1, %v21081_v10  ;;  %v10042_v61 = vrot.slane %v8853_v9, 1  ;;  %v8855_v48 = vpop.f32.mrb[25].mxu1  ;;  %v21087_v10 = vld [vmem:[#allocation90_spill] sm:$0xff] }
 0x8f7   : > { %v8856_v35 = vpop.f32.mrb[26].mxu1 }
 0x8f8   : > { %v10043_v57 = vsel %vm1851_vm4, %v10040_v58, %v10042_v61  ;;  %v10044_v43 = vrot.slane %v8856_v35, 1  ;;  %v8858_v11 = vpop.f32.mrb[27].mxu1  ;;  %v21089_v35 = vld [vmem:[#allocation81_spill] sm:$0xff] }
 0x8f9   : > { %v19270_v15 = vadd.f32 %v10043_v57, %v21082_v42  ;;  %v13401_v42 = vld [vmem:[#allocation3 + $0x1a8] sm:$0xff] }
 0x8fa   : > { %v10045_v12 = vsel %vm1851_vm4, %v10042_v61, %v10044_v43 }
 0x8fb   : > { %21083 = vst [vmem:[#allocation85_spill] sm:$0xff] %v19270_v15  ;;  %v19274_v16 = vadd.f32 %v10045_v12, %v21084_v33 }
 0x8fd   : > { %21085 = vst [vmem:[#allocation95_spill] sm:$0xff] %v19274_v16  ;;  %9828 = vmatmul.mubr.bf16.gmra.mrb[24].mxu0 %v18755_v41  ;;  %v8861_v55 = vpop.f32.mrb[28].mxu1  ;;  %v21091_v41 = vld [vmem:[#allocation61_spill] sm:$0xff] }
 0x8fe   : > { %11885 = vmatprep.mubr.msk.bf16.mxu0 %vm451_vm1, %v21086_v59  ;;  %v10046_v47 = vrot.slane %v8861_v55, 1  ;;  %v8863_v2 = vpop.f32.mrb[29].mxu1  ;;  %v21092_v59 = vld [vmem:[#allocation60_spill] sm:$0xff] }
 0x8ff   : > { %v8864_v38 = vpop.f32.mrb[30].mxu1 }
 0x900   : > { %v10047_v58 = vsel %vm1851_vm4, %v10044_v43, %v10046_v47  ;;  %v10048_v18 = vrot.slane %v8864_v38, 1  ;;  %v8866_v9 = vpop.f32.mrb[31].mxu1 }
 0x901   : > { %v19281_v48 = vadd.f32 %v10047_v58, %v21087_v10  ;;  %v21096_v9 = vld [vmem:[#allocation31_spill] sm:$0xff]  ;;  %v13402_v10 = vld [vmem:[#allocation3 + $0x1b8] sm:$0xff] }
 0x902   : > { %v10049_v61 = vsel %vm1851_vm4, %v10046_v47, %v10048_v18  ;;  %v21094_v47 = vld [vmem:[#allocation15_spill] sm:$0xff] }
 0x903   : > { %21088 = vst [vmem:[#allocation33_spill] sm:$0xff] %v19281_v48  ;;  %v19285_v57 = vadd.f32 %v10049_v61, %v21089_v35 }
 0x905   : > { %21090 = vst [vmem:[#allocation62_spill] sm:$0xff] %v19285_v57  ;;  %9836 = vmatmul.mubr.bf16.gmra.mrb[28].mxu0 %v21091_v41  ;;  %v8869_v11 = vpop.f32.mrb[32].mxu1 }
 0x906   : > { %11886 = vmatprep.mubr.msk.bf16.mxu0 %vm451_vm1, %v13401_v42  ;;  %v10050_v12 = vrot.slane %v8869_v11, 1  ;;  %v8871_v33 = vpop.f32.mrb[33].mxu1  ;;  %v19300_v42 = vld [vmem:[#allocation8] ss:$0 sm:$0xff] }
 0x907   : > { %v8872_v43 = vpop.f32.mrb[34].mxu1 }
 0x908   : > { %v10051_v55 = vsel %vm1851_vm4, %v10048_v18, %v10050_v12  ;;  %v19291_v2 = vadd.f32 %v10050_v12, %v21092_v59  ;;  %v8873_v38 = vpop.f32.mrb[35].mxu1 }
 0x909   : > { %v19294_v58 = vadd.f32 %v10051_v55, %v21094_v47 }
 0x90a   : > { %21093 = vst [vmem:[#allocation86_spill] sm:$0xff] %v19291_v2 }
 0x90b   : > { %21095 = vst [vmem:[#allocation96_spill] sm:$0xff] %v19294_v58 }
 0x90d   : > { %9844 = vmatmul.mubr.bf16.gmra.mrb[32].mxu0 %v21096_v9 }
 0x90e   : > { %11887 = vmatprep.mubr.msk.bf16.mxu0 %vm451_vm1, %v13402_v10 }
 0x915   : > { %9852 = vmatmul.mubr.bf16.gmra.mrb[36].mxu0 %v21096_v9 }
 0x928   : > { %v9662_v61 = vpop.f32.mrb[196].mxu0 }
 0x929   : > { %v9663_v35 = vpop.f32.mrb[197].mxu0 }
 0x92a   : > { %v9664_v41 = vpop.f32.mrb[198].mxu0 }
 0x92b   : > { %v10199_v11 = vrot.slane %v9664_v41, 2  ;;  %v9666_v18 = vpop.f32.mrb[199].mxu0 }
 0x92d   : > { %v10345_v12 = vadd.f32 %v10199_v11, %v19033_v17 }
 0x92f   : > { %v19309_v33 = vadd.f32 %v19300_v42, %v10345_v12 }
 0x930   : > { %v9669_v43 = vpop.f32.mrb[200].mxu0 }
 0x931   : > { %10450 = vst [vmem:[%s19306_s12 - $0x7] sm:$0x80] %v19309_v33  ;;  %v10499_v55 = vmul.f32 1.442695, %v19309_v33  ;;  %v10649_v59 = vand.u32 2147483647, %v19309_v33 }
 0x932   : > { %v10200_v38 = vrot.slane %v9669_v43, 2  ;;  %v9671_v47 = vpop.f32.mrb[201].mxu0  ;;  %vm10845_vm11 = vcmp.ge.f32.partialorder %v19309_v33, 0.0 }
 0x933   : > { %12997 = vpow2.f32 %v10499_v55  ;;  %v10698_v17 = vsub.f32 0.0, %v10649_v59  ;;  %v9672_v10 = vpop.f32.mrb[202].mxu0 }
 0x934   : > { %v10201_v9 = vsel %vm2094_vm5, %v10199_v11, %v10200_v38  ;;  %v10202_v35 = vrot.slane %v9672_v10, 2  ;;  %v9674_v41 = vpop.f32.mrb[203].mxu0 }
 0x935   : > { %v10346_v61 = vadd.f32 %v10201_v9, %v19040_v20  ;;  %v10747_v18 = vmul.f32 1.442695, %v10698_v17 }
 0x936   : > { %v10203_v2 = vsel %vm2094_vm5, %v10200_v38, %v10202_v35 }
 0x937   : > { %v19318_v12 = vadd.f32 %v19300_v42, %v10346_v61  ;;  %12999 = vpow2.f32 %v10747_v18  ;;  %v10347_v43 = vadd.f32 %v10203_v2, %v19044_v45 }
 0x938   : > { %v9677_v59 = vpop.f32.mrb[204].mxu0 }
 0x939   : > { %10451 = vst [vmem:[%s19306_s12 + $0x1] sm:$0xff] %v19318_v12  ;;  %v10501_v55 = vmul.f32 1.442695, %v19318_v12  ;;  %v10650_v11 = vand.u32 2147483647, %v19318_v12  ;;  %v19327_v20 = vadd.f32 %v19300_v42, %v10347_v43  ;;  %v10204_v47 = vrot.slane %v9677_v59, 2 }
 0x93a   : > { %v9679_v17 = vpop.f32.mrb[205].mxu0  ;;  %vm10846_vm13 = vcmp.ge.f32.partialorder %v19318_v12, 0.0 }
 0x93b   : > { %13001 = vpow2.f32 %v10501_v55  ;;  %v10699_v9 = vsub.f32 0.0, %v10650_v11  ;;  %v9680_v10 = vpop.f32.mrb[206].mxu0  ;;  %10452 = vst [vmem:[%s19306_s12 + $0x9] sm:$0xff] %v19327_v20  ;;  %v10503_v45 = vmul.f32 1.442695, %v19327_v20  ;;  %v10205_v38 = vsel %vm2094_vm5, %v10202_v35, %v10204_v47 }
 0x93c   : > { %v10651_v2 = vand.u32 2147483647, %v19327_v20  ;;  %v9682_v61 = vpop.f32.mrb[207].mxu0  ;;  %v10348_v18 = vadd.f32 %v10205_v38, %v19051_v19  ;;  %v10206_v43 = vrot.slane %v9680_v10, 2  ;;  %vm10847_vm14 = vcmp.ge.f32.partialorder %v19327_v20, 0.0 }
 0x93d   : > { %v10749_v41 = vmul.f32 1.442695, %v10699_v9  ;;  %v12998_v59 = vpop.eup %12997  ;;  %13003 = vpow2.f32 %v10503_v45 }
 0x93e   : > { %v10700_v55 = vsub.f32 0.0, %v10651_v2  ;;  %10598 = vst.msk [vmem:[%s19306_s12 - $0x7] sm:$0x80] %vm10597_vm8, %v12998_v59  ;;  %v19337_v11 = vadd.f32 %v19300_v42, %v10348_v18  ;;  %v10207_v17 = vsel %vm2094_vm5, %v10204_v47, %v10206_v43 }
 0x93f   : > { %13005 = vpow2.f32 %v10749_v41  ;;  %v10349_v57 = vadd.f32 %v10207_v17, %v19055_v54 }
 0x940   : > { %v10751_v58 = vmul.f32 1.442695, %v10700_v55  ;;  %10453 = vst [vmem:[%s19306_s12 + $0x11] sm:$0xff] %v19337_v11  ;;  %v10505_v35 = vmul.f32 1.442695, %v19337_v11  ;;  %v9685_v9 = vpop.f32.mrb[208].mxu0 }
 0x941   : > { %v10652_v19 = vand.u32 2147483647, %v19337_v11  ;;  %v19345_v10 = vpop.eup %12999  ;;  %v19348_v45 = vadd.f32 %v19300_v42, %v10349_v57  ;;  %v10208_v2 = vrot.slane %v9685_v9, 2  ;;  %v9687_v38 = vpop.f32.mrb[209].mxu0  ;;  %vm10848_vm15 = vcmp.ge.f32.partialorder %v19337_v11, 0.0 }
 0x942   : > { %13007 = vpow2.f32 %v10751_v58  ;;  %v10894_v47 = vadd.f32 1.0, %v19345_v10  ;;  %v9688_v61 = vpop.f32.mrb[210].mxu0 }
 0x943   : > { %13009 = vpow2.f32 %v10505_v35  ;;  %v10701_v54 = vsub.f32 0.0, %v10652_v19  ;;  %10454 = vst [vmem:[%s19306_s12 + $0x19] sm:$0xff] %v19348_v45  ;;  %v10507_v41 = vmul.f32 1.442695, %v19348_v45  ;;  %v10653_v18 = vand.u32 2147483647, %v19348_v45 }
 0x944   : > { %v10209_v58 = vsel %vm2094_vm5, %v10206_v43, %v10208_v2  ;;  %v9690_v59 = vpop.f32.mrb[211].mxu0  ;;  %13011 = vrcp.f32 %v10894_v47  ;;  %v10210_v9 = vrot.slane %v9688_v61, 2  ;;  %vm10849_vm0 = vcmp.ge.f32.partialorder %v19348_v45, 0.0 }
 0x945   : > { %v13002_v57 = vpop.eup %13001  ;;  %v10753_v55 = vmul.f32 1.442695, %v10701_v54  ;;  %v10350_v17 = vadd.f32 %v10209_v58, %v19062_v36  ;;  %13013 = vpow2.f32 %v10507_v41  ;;  %v10702_v35 = vsub.f32 0.0, %v10653_v18 }
 0x946   : > { %10600 = vst.msk [vmem:[%s19306_s12 + $0x1] sm:$0xff] %vm10599_vm9, %v13002_v57  ;;  %v10211_v38 = vsel %vm2094_vm5, %v10208_v2, %v10210_v9 }
 0x947   : > { %13015 = vpow2.f32 %v10753_v55  ;;  %v19360_v19 = vadd.f32 %v19300_v42, %v10350_v17  ;;  %v13004_v43 = vpop.eup %13003  ;;  %v10755_v59 = vmul.f32 1.442695, %v10702_v35  ;;  %v10351_v48 = vadd.f32 %v10211_v38, %v19066_v1 }
 0x948   : > { %10601 = vst.msk [vmem:[%s19306_s12 + $0x9] sm:$0xff] %vm10599_vm9, %v13004_v43  ;;  %v9693_v54 = vpop.f32.mrb[212].mxu0 }
 0x949   : > { %v19364_v16 = vpop.eup %13005  ;;  %10455 = vst [vmem:[%s19306_s12 + $0x21] sm:$0xff] %v19360_v19  ;;  %v10509_v36 = vmul.f32 1.442695, %v19360_v19  ;;  %v10654_v47 = vand.u32 2147483647, %v19360_v19  ;;  %13017 = vpow2.f32 %v10755_v59  ;;  %v19374_v2 = vadd.f32 %v19300_v42, %v10351_v48  ;;  %v9695_v1 = vpop.f32.mrb[213].mxu0 }
 0x94a   : > { %v10895_v61 = vadd.f32 1.0, %v19364_v16  ;;  %v10212_v41 = vrot.slane %v9693_v54, 2  ;;  %v9696_v58 = vpop.f32.mrb[214].mxu0  ;;  %vm10850_vm1 = vcmp.ge.f32.partialorder %v19360_v19, 0.0 }
 0x94b   : > { %13019 = vpow2.f32 %v10509_v36  ;;  %v10703_v18 = vsub.f32 0.0, %v10654_v47  ;;  %10456 = vst [vmem:[%s19306_s12 + $0x29] sm:$0xff] %v19374_v2  ;;  %v10511_v55 = vmul.f32 1.442695, %v19374_v2  ;;  %v10655_v17 = vand.u32 2147483647, %v19374_v2 }
 0x94c   : > { %v19376_v57 = vpop.eup %13007  ;;  %13021 = vrcp.f32 %v10895_v61  ;;  %v9698_v35 = vpop.f32.mrb[215].mxu0  ;;  %v10213_v59 = vsel %vm2094_vm5, %v10210_v9, %v10212_v41  ;;  %v10214_v54 = vrot.slane %v9696_v58, 2  ;;  %vm10851_vm2 = vcmp.ge.f32.partialorder %v19374_v2, 0.0 }
 0x94d   : > { %v13010_v38 = vpop.eup %13009  ;;  %v10896_v48 = vadd.f32 1.0, %v19376_v57  ;;  %v10757_v43 = vmul.f32 1.442695, %v10703_v18  ;;  %13023 = vpow2.f32 %v10511_v55  ;;  %v10704_v36 = vsub.f32 0.0, %v10655_v17 }
 0x94e   : > { %10602 = vst.msk [vmem:[%s19306_s12 + $0x11] sm:$0xff] %vm10599_vm9, %v13010_v38  ;;  %v10352_v47 = vadd.f32 %v10213_v59, %v19073_v50  ;;  %v13012_v61 = vpop.eup %13011  ;;  %v10215_v1 = vsel %vm2094_vm5, %v10212_v41, %v10214_v54 }
 0x94f   : > { %13025 = vrcp.f32 %v10896_v48  ;;  %v13014_v35 = vpop.eup %13013  ;;  %v11041_v18 = vmul.f32 %v13012_v61, %v19345_v10  ;;  %v10759_v9 = vmul.f32 1.442695, %v10704_v36  ;;  %v10353_v50 = vadd.f32 %v10215_v1, %v19077_v0 }
 0x950   : > { %13027 = vpow2.f32 %v10757_v43  ;;  %v19390_v58 = vadd.f32 %v19300_v42, %v10352_v47  ;;  %10603 = vst.msk [vmem:[%s19306_s12 + $0x19] sm:$0xff] %vm10599_vm9, %v13014_v35  ;;  %v9701_v55 = vpop.f32.mrb[216].mxu0 }
 0x951   : > { %v19392_v38 = vpop.eup %13015  ;;  %v11090_v17 = vsel %vm10845_vm11, %v13012_v61, %v11041_v18  ;;  %13029 = vpow2.f32 %v10759_v9  ;;  %v9703_v48 = vpop.f32.mrb[217].mxu0  ;;  %v19406_v33 = vadd.f32 %v19300_v42, %v10353_v50  ;;  %v10216_v0 = vrot.slane %v9701_v55, 2 }
 0x952   : > { %v10897_v41 = vadd.f32 1.0, %v19392_v38  ;;  %10457 = vst [vmem:[%s19306_s12 + $0x31] sm:$0xff] %v19390_v58  ;;  %v10513_v10 = vmul.f32 1.442695, %v19390_v58  ;;  %11140 = vst.msk [vmem:[%s19306_s12 - $0x7] sm:$0x80] %vm11139_vm10, %v11090_v17 }
 0x953   : > { %v10656_v43 = vand.u32 2147483647, %v19390_v58  ;;  %v9704_v59 = vpop.f32.mrb[218].mxu0  ;;  %v19408_v36 = vpop.eup %13017  ;;  %10458 = vst [vmem:[%s19306_s12 + $0x39] sm:$0xff] %v19406_v33  ;;  %v10515_v9 = vmul.f32 1.442695, %v19406_v33  ;;  %v10217_v55 = vsel %vm2094_vm5, %v10214_v54, %v10216_v0 }
 0x954   : > { %13031 = vrcp.f32 %v10897_v41  ;;  %v10218_v47 = vrot.slane %v9704_v59, 2  ;;  %v9706_v61 = vpop.f32.mrb[219].mxu0  ;;  %v10898_v35 = vadd.f32 1.0, %v19408_v36  ;;  %v10657_v50 = vand.u32 2147483647, %v19406_v33 }
 0x955   : > { %v13020_v1 = vpop.eup %13019  ;;  %13033 = vpow2.f32 %v10513_v10  ;;  %v10705_v18 = vsub.f32 0.0, %v10656_v43  ;;  %v10354_v43 = vadd.f32 %v10217_v55, %v19084_v32  ;;  %vm10852_vm3 = vcmp.ge.f32.partialorder %v19390_v58, 0.0 }
 0x956   : > { %v13022_v17 = vpop.eup %13021  ;;  %10604 = vst.msk [vmem:[%s19306_s12 + $0x21] sm:$0xff] %vm10599_vm9, %v13020_v1  ;;  %v10219_v41 = vsel %vm2094_vm5, %v10216_v0, %v10218_v47  ;;  %13035 = vrcp.f32 %v10898_v35  ;;  %v10706_v61 = vsub.f32 0.0, %v10657_v50  ;;  %vm10853_vm4 = vcmp.ge.f32.partialorder %v19406_v33, 0.0 }
 0x957   : > { %v11042_v48 = vmul.f32 %v13022_v17, %v19364_v16  ;;  %v10761_v10 = vmul.f32 1.442695, %v10705_v18  ;;  %v13024_v59 = vpop.eup %13023  ;;  %13037 = vpow2.f32 %v10515_v9  ;;  %v10355_v1 = vadd.f32 %v10219_v41, %v19088_v14 }
 0x958   : > { %10605 = vst.msk [vmem:[%s19306_s12 + $0x29] sm:$0xff] %vm10599_vm9, %v13024_v59  ;;  %v19426_v16 = vadd.f32 %v19300_v42, %v10354_v43  ;;  %v9709_v54 = vpop.f32.mrb[220].mxu0  ;;  %v10763_v12 = vmul.f32 1.442695, %v10706_v61 }
 0x959   : > { %v13026_v15 = vpop.eup %13025  ;;  %v11091_v30 = vsel %vm10846_vm13, %v13022_v17, %v11042_v48  ;;  %13039 = vpow2.f32 %v10761_v10  ;;  %v19434_v14 = vadd.f32 %v19300_v42, %v10355_v1  ;;  %v10220_v35 = vrot.slane %v9709_v54, 2  ;;  %v9711_v18 = vpop.f32.mrb[221].mxu0 }
 0x95a   : > { %v19428_v0 = vpop.eup %13027  ;;  %11142 = vst.msk [vmem:[%s19306_s12 + $0x1] sm:$0xff] %vm11141_vm12, %v11091_v30  ;;  %v11043_v32 = vmul.f32 %v13026_v15, %v19376_v57  ;;  %10459 = vst [vmem:[%s19306_s12 + $0x41] sm:$0xff] %v19426_v16  ;;  %v10517_v17 = vmul.f32 1.442695, %v19426_v16  ;;  %v10658_v50 = vand.u32 2147483647, %v19426_v16  ;;  %13041 = vpow2.f32 %v10763_v12 }
 0x95b   : > { %v10899_v9 = vadd.f32 1.0, %v19428_v0  ;;  %v19442_v30 = vpop.eup %13029  ;;  %10460 = vst [vmem:[%s19306_s12 + $0x49] sm:$0xff] %v19434_v14  ;;  %v10519_v55 = vmul.f32 1.442695, %v19434_v14  ;;  %v10659_v41 = vand.u32 2147483647, %v19434_v14 }
 0x95c   : > { %v11092_v57 = vsel %vm10847_vm14, %v13026_v15, %v11043_v32  ;;  %v9712_v48 = vpop.f32.mrb[222].mxu0  ;;  %v10900_v20 = vadd.f32 1.0, %v19442_v30  ;;  %v10707_v10 = vsub.f32 0.0, %v10658_v50  ;;  %v10221_v15 = vsel %vm2094_vm5, %v10218_v47, %v10220_v35 }
 0x95d   : > { %11143 = vst.msk [vmem:[%s19306_s12 + $0x9] sm:$0xff] %vm11141_vm12, %v11092_v57  ;;  %13043 = vrcp.f32 %v10899_v9  ;;  %v9714_v43 = vpop.f32.mrb[223].mxu0  ;;  %v10708_v61 = vsub.f32 0.0, %v10659_v41  ;;  %v10222_v1 = vrot.slane %v9712_v48, 2  ;;  %v10356_v18 = vadd.f32 %v10221_v15, %v19095_v13 }
 0x95e   : > { %v13032_v59 = vpop.eup %13031  ;;  %13045 = vpow2.f32 %v10517_v17  ;;  %v10765_v12 = vmul.f32 1.442695, %v10707_v10  ;;  %vm10854_vm6 = vcmp.ge.f32.partialorder %v19426_v16, 0.0  ;;  %vm10855_vm7 = vcmp.ge.f32.partialorder %v19434_v14, 0.0 }
 0x95f   : > { %v13034_v54 = vpop.eup %13033  ;;  %v11044_v32 = vmul.f32 %v13032_v59, %v19392_v38  ;;  %13047 = vrcp.f32 %v10900_v20  ;;  %v10767_v9 = vmul.f32 1.442695, %v10708_v61  ;;  %v10223_v17 = vsel %vm2094_vm5, %v10220_v35, %v10222_v1 }
 0x960   : > { %10606 = vst.msk [vmem:[%s19306_s12 + $0x31] sm:$0xff] %vm10599_vm9, %v13034_v54  ;;  %13049 = vpow2.f32 %v10519_v55  ;;  %v13036_v47 = vpop.eup %13035  ;;  %v19459_v38 = vadd.f32 %v19300_v42, %v10356_v18  ;;  %v10357_v57 = vadd.f32 %v10223_v17, %v19099_v63  ;;  %v9717_v41 = vpop.f32.mrb[224].mxu0 }
 0x961   : > { %v11093_v50 = vsel %vm10848_vm15, %v13032_v59, %v11044_v32  ;;  %13051 = vpow2.f32 %v10765_v12  ;;  %v13038_v13 = vpop.eup %13037  ;;  %v11045_v11 = vmul.f32 %v13036_v47, %v19408_v36  ;;  %v10224_v55 = vrot.slane %v9717_v41, 2  ;;  %v9719_v48 = vpop.f32.mrb[225].mxu0 }
 0x962   : > { %11144 = vst.msk [vmem:[%s19306_s12 + $0x11] sm:$0xff] %vm11141_vm12, %v11093_v50  ;;  %13053 = vpow2.f32 %v10767_v9  ;;  %10461 = vst [vmem:[%s19306_s12 + $0x51] sm:$0xff] %v19459_v38  ;;  %v10521_v63 = vmul.f32 1.442695, %v19459_v38  ;;  %v10660_v20 = vand.u32 2147483647, %v19459_v38  ;;  %v19475_v10 = vadd.f32 %v19300_v42, %v10357_v57 }
 0x963   : > { %v19465_v35 = vpop.eup %13039  ;;  %10607 = vst.msk [vmem:[%s19306_s12 + $0x39] sm:$0xff] %vm10599_vm9, %v13038_v13  ;;  %v9720_v36 = vpop.f32.mrb[226].mxu0  ;;  %v11094_v43 = vsel %vm10849_vm0, %v13036_v47, %v11045_v11  ;;  %v10225_v61 = vsel %vm2094_vm5, %v10222_v1, %v10224_v55  ;;  %vm10856_vm8 = vcmp.ge.f32.partialorder %v19459_v38, 0.0 }
 0x964   : > { %v10901_v59 = vadd.f32 1.0, %v19465_v35  ;;  %v10226_v15 = vrot.slane %v9720_v36, 2  ;;  %v9722_v54 = vpop.f32.mrb[227].mxu0  ;;  %11145 = vst.msk [vmem:[%s19306_s12 + $0x19] sm:$0xff] %vm11141_vm12, %v11094_v43  ;;  %13055 = vpow2.f32 %v10521_v63  ;;  %v10709_v45 = vsub.f32 0.0, %v10660_v20  ;;  %10462 = vst [vmem:[%s19306_s12 + $0x59] sm:$0xff] %v19475_v10  ;;  %v19485_v18 = vpop.eup %13041 }
 0x965   : > { %v10523_v32 = vmul.f32 1.442695, %v19475_v10  ;;  %v10661_v12 = vand.u32 2147483647, %v19475_v10  ;;  %v10358_v9 = vadd.f32 %v10225_v61, %v19106_v37  ;;  %v10902_v47 = vadd.f32 1.0, %v19485_v18 }
 0x966   : > { %13057 = vrcp.f32 %v10901_v59  ;;  %v10227_v1 = vsel %vm2094_vm5, %v10224_v55, %v10226_v15  ;;  %v10769_v50 = vmul.f32 1.442695, %v10709_v45  ;;  %vm10857_vm10 = vcmp.ge.f32.partialorder %v19475_v10, 0.0 }
 0x967   : > { %v13044_v17 = vpop.eup %13043  ;;  %13059 = vpow2.f32 %v10523_v32  ;;  %v10710_v57 = vsub.f32 0.0, %v10661_v12  ;;  %v19492_v11 = vadd.f32 %v19300_v42, %v10358_v9  ;;  %v10359_v48 = vadd.f32 %v10227_v1, %v19110_v62 }
 0x968   : > { %v13046_v41 = vpop.eup %13045  ;;  %v11046_v13 = vmul.f32 %v13044_v17, %v19428_v0  ;;  %13061 = vrcp.f32 %v10902_v47  ;;  %v9725_v55 = vpop.f32.mrb[228].mxu0 }
 0x969   : > { %v13048_v63 = vpop.eup %13047  ;;  %10608 = vst.msk [vmem:[%s19306_s12 + $0x41] sm:$0xff] %vm10599_vm9, %v13046_v41  ;;  %v10771_v37 = vmul.f32 1.442695, %v10710_v57  ;;  %13063 = vpow2.f32 %v10769_v50  ;;  %10463 = vst [vmem:[%s19306_s12 + $0x61] sm:$0xff] %v19492_v11  ;;  %v10525_v0 = vmul.f32 1.442695, %v19492_v11 }
 0x96a   : > { %v13050_v20 = vpop.eup %13049  ;;  %v11095_v36 = vsel %vm10850_vm1, %v13044_v17, %v11046_v13  ;;  %v11047_v43 = vmul.f32 %v13048_v63, %v19442_v30  ;;  %v9727_v62 = vpop.f32.mrb[229].mxu0  ;;  %v10662_v19 = vand.u32 2147483647, %v19492_v11  ;;  %v19511_v30 = vadd.f32 %v19300_v42, %v10359_v48 }
 0x96b   : > { %v19502_v59 = vpop.eup %13051  ;;  %11146 = vst.msk [vmem:[%s19306_s12 + $0x21] sm:$0xff] %vm11141_vm12, %v11095_v36  ;;  %13065 = vpow2.f32 %v10771_v37  ;;  %v9728_v61 = vpop.f32.mrb[230].mxu0  ;;  %v10228_v12 = vrot.slane %v9725_v55, 2  ;;  %vm10858_vm11 = vcmp.ge.f32.partialorder %v19492_v11, 0.0 }
 0x96c   : > { %10609 = vst.msk [vmem:[%s19306_s12 + $0x49] sm:$0xff] %vm10599_vm9, %v13050_v20  ;;  %v19513_v54 = vpop.eup %13053  ;;  %v11096_v45 = vsel %vm10851_vm2, %v13048_v63, %v11047_v43  ;;  %v10903_v32 = vadd.f32 1.0, %v19502_v59  ;;  %13067 = vpow2.f32 %v10525_v0  ;;  %v9730_v9 = vpop.f32.mrb[231].mxu0  ;;  %v10711_v1 = vsub.f32 0.0, %v10662_v19  ;;  %10464 = vst [vmem:[%s19306_s12 + $0x69] sm:$0xff] %v19511_v30 }
 0x96d   : > { %11147 = vst.msk [vmem:[%s19306_s12 + $0x29] sm:$0xff] %vm11141_vm12, %v11096_v45  ;;  %v10904_v2 = vadd.f32 1.0, %v19513_v54  ;;  %v10527_v17 = vmul.f32 1.442695, %v19511_v30  ;;  %v10663_v47 = vand.u32 2147483647, %v19511_v30  ;;  %v10229_v50 = vsel %vm2094_vm5, %v10226_v15, %v10228_v12 }
 0x96e   : > { %13069 = vrcp.f32 %v10903_v32  ;;  %v10230_v57 = vrot.slane %v9728_v61, 2  ;;  %v13056_v41 = vpop.eup %13055  ;;  %v10773_v13 = vmul.f32 1.442695, %v10711_v1  ;;  %v10360_v63 = vadd.f32 %v10229_v50, %v19117_v52 }
 0x96f   : > { %13071 = vrcp.f32 %v10904_v2  ;;  %v10712_v48 = vsub.f32 0.0, %v10663_v47  ;;  %10610 = vst.msk [vmem:[%s19306_s12 + $0x51] sm:$0xff] %vm10599_vm9, %v13056_v41  ;;  %vm10859_vm13 = vcmp.ge.f32.partialorder %v19511_v30, 0.0 }
 0x970   : > { %v13058_v37 = vpop.eup %13057  ;;  %13073 = vpow2.f32 %v10527_v17  ;;  %v10231_v55 = vsel %vm2094_vm5, %v10228_v12, %v10230_v57  ;;  %v19530_v43 = vadd.f32 %v19300_v42, %v10360_v63  ;;  %v9733_v0 = vpop.f32.mrb[232].mxu0 }
 0x971   : > { %v13060_v20 = vpop.eup %13059  ;;  %v11048_v36 = vmul.f32 %v13058_v37, %v19465_v35  ;;  %13075 = vpow2.f32 %v10773_v13  ;;  %v10775_v15 = vmul.f32 1.442695, %v10712_v48  ;;  %v10361_v52 = vadd.f32 %v10231_v55, %v19121_v26  ;;  %v9735_v19 = vpop.f32.mrb[233].mxu0 }
 0x972   : > { %10611 = vst.msk [vmem:[%s19306_s12 + $0x59] sm:$0xff] %vm10599_vm9, %v13060_v20  ;;  %v10232_v62 = vrot.slane %v9733_v0, 2  ;;  %v13062_v61 = vpop.eup %13061  ;;  %10465 = vst [vmem:[%s19306_s12 + $0x71] sm:$0xff] %v19530_v43  ;;  %v10529_v35 = vmul.f32 1.442695, %v19530_v43  ;;  %v19540_v12 = vpop.f32.mrb[234].mxu0 }
 0x973   : > { %v11097_v45 = vsel %vm10852_vm3, %v13058_v37, %v11048_v36  ;;  %13077 = vpow2.f32 %v10775_v15  ;;  %v10664_v32 = vand.u32 2147483647, %v19530_v43  ;;  %v19542_v9 = vpop.eup %13063  ;;  %v11049_v26 = vmul.f32 %v13062_v61, %v19485_v18  ;;  %v9738_v1 = vpop.f32.mrb[235].mxu0 }
 0x974   : > { %11148 = vst.msk [vmem:[%s19306_s12 + $0x31] sm:$0xff] %vm11141_vm12, %v11097_v45  ;;  %v19549_v58 = vadd.f32 %v19300_v42, %v10361_v52  ;;  %v10233_v2 = vsel %vm2094_vm5, %v10230_v57, %v10232_v62  ;;  %v10905_v47 = vadd.f32 1.0, %v19542_v9  ;;  %13079 = vpow2.f32 %v10529_v35 }
 0x975   : > { %v19552_v17 = vpop.eup %13065  ;;  %v10713_v50 = vsub.f32 0.0, %v10664_v32  ;;  %v10362_v41 = vadd.f32 %v10233_v2, %v19128_v28  ;;  %v11098_v33 = vsel %vm10853_vm4, %v13062_v61, %v11049_v26  ;;  %v10234_v20 = vrot.slane %v19540_v12, 2 }
 0x976   : > { %v13068_v13 = vpop.eup %13067  ;;  %v10906_v48 = vadd.f32 1.0, %v19552_v17  ;;  %10466 = vst [vmem:[%s19306_s12 + $0x79] sm:$0xff] %v19549_v58  ;;  %v10531_v18 = vmul.f32 1.442695, %v19549_v58  ;;  %v10665_v57 = vand.u32 2147483647, %v19549_v58  ;;  %13081 = vrcp.f32 %v10905_v47 }
 0x977   : > { %11149 = vst.msk [vmem:[%s19306_s12 + $0x39] sm:$0xff] %vm11141_vm12, %v11098_v33  ;;  %v10777_v63 = vmul.f32 1.442695, %v10713_v50  ;;  %v19566_v37 = vadd.f32 %v19300_v42, %v10362_v41  ;;  %v10235_v2 = vsel %vm2094_vm5, %v10232_v62, %v10234_v20  ;;  %vm10860_vm14 = vcmp.ge.f32.partialorder %v19530_v43, 0.0 }
 0x978   : > { %10612 = vst.msk [vmem:[%s19306_s12 + $0x61] sm:$0xff] %vm10599_vm9, %v13068_v13  ;;  %v13070_v28 = vpop.eup %13069  ;;  %13083 = vrcp.f32 %v10906_v48  ;;  %v10714_v55 = vsub.f32 0.0, %v10665_v57  ;;  %v9741_v19 = vpop.f32.mrb[236].mxu0  ;;  %v10363_v47 = vadd.f32 %v10235_v2, %v19132_v3  ;;  %vm10861_vm15 = vcmp.ge.f32.partialorder %v19549_v58, 0.0 }
 0x979   : > { %v13072_v36 = vpop.eup %13071  ;;  %v11050_v15 = vmul.f32 %v13070_v28, %v19502_v59  ;;  %13085 = vpow2.f32 %v10777_v63  ;;  %10467 = vst [vmem:[%s19306_s12 + $0x81] sm:$0xff] %v19566_v37  ;;  %v10533_v0 = vmul.f32 1.442695, %v19566_v37  ;;  %v10666_v52 = vand.u32 2147483647, %v19566_v37  ;;  %v9743_v32 = vpop.f32.mrb[237].mxu0 }
 0x97a   : > { %v13074_v61 = vpop.eup %13073  ;;  %v11051_v45 = vmul.f32 %v13072_v36, %v19513_v54  ;;  %13087 = vpow2.f32 %v10531_v18  ;;  %v10779_v35 = vmul.f32 1.442695, %v10714_v55  ;;  %v9744_v1 = vpop.f32.mrb[238].mxu0  ;;  %v10236_v13 = vrot.slane %v9741_v19, 2 }
 0x97b   : > { %v19577_v12 = vpop.eup %13075  ;;  %v11099_v59 = vsel %vm10854_vm6, %v13070_v28, %v11050_v15  ;;  %10613 = vst.msk [vmem:[%s19306_s12 + $0x69] sm:$0xff] %vm10599_vm9, %v13074_v61  ;;  %13089 = vpow2.f32 %v10533_v0  ;;  %v10715_v26 = vsub.f32 0.0, %v10666_v52  ;;  %v9746_v50 = vpop.f32.mrb[239].mxu0  ;;  %v10238_v33 = vrot.slane %v9744_v1, 2 }
 0x97c   : > { %11150 = vst.msk [vmem:[%s19306_s12 + $0x41] sm:$0xff] %vm11141_vm12, %v11099_v59  ;;  %v11100_v14 = vsel %vm10855_vm7, %v13072_v36, %v11051_v45  ;;  %v10907_v54 = vadd.f32 1.0, %v19577_v12  ;;  %13091 = vpow2.f32 %v10779_v35  ;;  %v19594_v48 = vadd.f32 %v19300_v42, %v10363_v47 }
 0x97d   : > { %v19588_v16 = vpop.eup %13077  ;;  %11151 = vst.msk [vmem:[%s19306_s12 + $0x49] sm:$0xff] %vm11141_vm12, %v11100_v14  ;;  %v10781_v41 = vmul.f32 1.442695, %v10715_v26  ;;  %v10237_v57 = vsel %vm2094_vm5, %v10234_v20, %v10236_v13  ;;  %v10239_v3 = vsel %vm2094_vm5, %v10236_v13, %v10238_v33  ;;  %vm10862_vm0 = vcmp.ge.f32.partialorder %v19566_v37, 0.0 }
 0x97e   : > { %13093 = vrcp.f32 %v10907_v54  ;;  %v10908_v62 = vadd.f32 1.0, %v19588_v16  ;;  %v13080_v18 = vpop.eup %13079  ;;  %10468 = vst [vmem:[%s19306_s12 + $0x89] sm:$0xff] %v19594_v48  ;;  %v10535_v63 = vmul.f32 1.442695, %v19594_v48  ;;  %v10667_v28 = vand.u32 2147483647, %v19594_v48 }
 0x97f   : > { %13095 = vpow2.f32 %v10781_v41  ;;  %10614 = vst.msk [vmem:[%s19306_s12 + $0x71] sm:$0xff] %vm10599_vm9, %v13080_v18  ;;  %v10364_v36 = vadd.f32 %v10237_v57, %v19139_v46  ;;  %v10365_v15 = vadd.f32 %v10239_v3, %v19143_v25  ;;  %vm10863_vm1 = vcmp.ge.f32.partialorder %v19594_v48, 0.0 }
 0x980   : > { %13097 = vrcp.f32 %v10908_v62  ;;  %v13082_v55 = vpop.eup %13081  ;;  %v9749_v0 = vpop.f32.mrb[240].mxu0  ;;  %v10716_v19 = vsub.f32 0.0, %v10667_v28 }
 0x981   : > { %v11052_v52 = vmul.f32 %v13082_v55, %v19542_v9  ;;  %13099 = vpow2.f32 %v10535_v63  ;;  %v10240_v61 = vrot.slane %v9749_v0, 2  ;;  %v9751_v45 = vpop.f32.mrb[241].mxu0  ;;  %v19613_v46 = vadd.f32 %v19300_v42, %v10364_v36 }
 0x982   : > { %v13084_v20 = vpop.eup %13083  ;;  %v19616_v25 = vadd.f32 %v19300_v42, %v10365_v15  ;;  %v19618_v9 = vpop.f32.mrb[242].mxu0  ;;  %v10783_v10 = vmul.f32 1.442695, %v10716_v19 }
 0x983   : > { %v19608_v35 = vpop.eup %13085  ;;  %v11053_v32 = vmul.f32 %v13084_v20, %v19552_v17  ;;  %v11101_v26 = vsel %vm10856_vm8, %v13082_v55, %v11052_v52  ;;  %v10241_v17 = vsel %vm2094_vm5, %v10238_v33, %v10240_v61  ;;  %v9754_v1 = vpop.f32.mrb[243].mxu0  ;;  %10469 = vst [vmem:[%s19306_s12 + $0x91] sm:$0xff] %v19613_v46  ;;  %v10537_v47 = vmul.f32 1.442695, %v19613_v46 }
 0x984   : > { %v13088_v59 = vpop.eup %13087  ;;  %v10909_v2 = vadd.f32 1.0, %v19608_v35  ;;  %11152 = vst.msk [vmem:[%s19306_s12 + $0x51] sm:$0xff] %vm11141_vm12, %v11101_v26  ;;  %v10668_v38 = vand.u32 2147483647, %v19613_v46  ;;  %10470 = vst [vmem:[%s19306_s12 + $0x99] sm:$0xff] %v19616_v25  ;;  %v10366_v18 = vadd.f32 %v10241_v17, %v19150_v21  ;;  %v10242_v63 = vrot.slane %v19618_v9, 2 }
 0x985   : > { %v13090_v14 = vpop.eup %13089  ;;  %v11102_v54 = vsel %vm10857_vm10, %v13084_v20, %v11053_v32  ;;  %10615 = vst.msk [vmem:[%s19306_s12 + $0x79] sm:$0xff] %vm10599_vm9, %v13088_v59  ;;  %v10539_v41 = vmul.f32 1.442695, %v19616_v25  ;;  %v10669_v13 = vand.u32 2147483647, %v19616_v25  ;;  %vm10864_vm2 = vcmp.ge.f32.partialorder %v19613_v46, 0.0 }
 0x986   : > { %v19634_v50 = vpop.eup %13091  ;;  %11153 = vst.msk [vmem:[%s19306_s12 + $0x59] sm:$0xff] %vm11141_vm12, %v11102_v54  ;;  %13101 = vrcp.f32 %v10909_v2  ;;  %v10717_v62 = vsub.f32 0.0, %v10668_v38  ;;  %v19650_v15 = vadd.f32 %v19300_v42, %v10366_v18  ;;  %v10243_v19 = vsel %vm2094_vm5, %v10240_v61, %v10242_v63 }
 0x987   : > { %10616 = vst.msk [vmem:[%s19306_s12 + $0x81] sm:$0xff] %vm10599_vm9, %v13090_v14  ;;  %v10910_v33 = vadd.f32 1.0, %v19634_v50  ;;  %13103 = vpow2.f32 %v10783_v10  ;;  %v10718_v3 = vsub.f32 0.0, %v10669_v13  ;;  %v10367_v11 = vadd.f32 %v10243_v19, %v19154_v60 }
 0x988   : > { %v13094_v57 = vpop.eup %13093  ;;  %13105 = vpow2.f32 %v10537_v47  ;;  %v10785_v36 = vmul.f32 1.442695, %v10717_v62  ;;  %v9757_v0 = vpop.f32.mrb[244].mxu0  ;;  %10471 = vst [vmem:[%s19306_s12 + $0xa1] sm:$0xff] %v19650_v15  ;;  %v10541_v9 = vmul.f32 1.442695, %v19650_v15 }
 0x989   : > { %v19646_v28 = vpop.eup %13095  ;;  %v11054_v55 = vmul.f32 %v13094_v57, %v19577_v12  ;;  %13107 = vrcp.f32 %v10910_v33  ;;  %v10787_v52 = vmul.f32 1.442695, %v10718_v3  ;;  %v9759_v45 = vpop.f32.mrb[245].mxu0  ;;  %v10670_v61 = vand.u32 2147483647, %v19650_v15 }
 0x98a   : > { %v13098_v21 = vpop.eup %13097  ;;  %v10911_v20 = vadd.f32 1.0, %v19646_v28  ;;  %13109 = vpow2.f32 %v10539_v41  ;;  %v19660_v59 = vpop.f32.mrb[246].mxu0  ;;  %v10244_v10 = vrot.slane %v9757_v0, 2  ;;  %v19673_v30 = vadd.f32 %v19300_v42, %v10367_v11 }
 0x98b   : > { %v11103_v32 = vsel %vm10858_vm11, %v13094_v57, %v11054_v55  ;;  %v11055_v12 = vmul.f32 %v13098_v21, %v19588_v16  ;;  %13111 = vpow2.f32 %v10785_v36  ;;  %v13100_v26 = vpop.eup %13099  ;;  %v9762_v16 = vpop.f32.mrb[247].mxu0  ;;  %v10246_v17 = vrot.slane %v19660_v59, 2 }
 0x98c   : > { %11154 = vst.msk [vmem:[%s19306_s12 + $0x61] sm:$0xff] %vm11141_vm12, %v11103_v32  ;;  %13113 = vrcp.f32 %v10911_v20  ;;  %v10719_v1 = vsub.f32 0.0, %v10670_v61  ;;  %v10245_v14 = vsel %vm2094_vm5, %v10242_v63, %v10244_v10  ;;  %10472 = vst [vmem:[%s19306_s12 + $0xa9] sm:$0xff] %v19673_v30  ;;  %v10543_v38 = vmul.f32 1.442695, %v19673_v30 }
 0x98d   : > { %v11104_v2 = vsel %vm10859_vm13, %v13098_v21, %v11055_v12  ;;  %10617 = vst.msk [vmem:[%s19306_s12 + $0x89] sm:$0xff] %vm10599_vm9, %v13100_v26  ;;  %13115 = vpow2.f32 %v10787_v52  ;;  %v10247_v54 = vsel %vm2094_vm5, %v10244_v10, %v10246_v17  ;;  %v10671_v41 = vand.u32 2147483647, %v19673_v30 }
 0x98e   : > { %11155 = vst.msk [vmem:[%s19306_s12 + $0x69] sm:$0xff] %vm11141_vm12, %v11104_v2  ;;  %13117 = vpow2.f32 %v10541_v9  ;;  %v10789_v47 = vmul.f32 1.442695, %v10719_v1  ;;  %v10368_v13 = vadd.f32 %v10245_v14, %v19161_v8  ;;  %v10369_v18 = vadd.f32 %v10247_v54, %v19165_v6 }
 0x98f   : > { %v10720_v55 = vsub.f32 0.0, %v10671_v41  ;;  %v19728_v41 = vld [vmem:[#allocation8] ss:$0 sm:$0xff]  ;;  %vm10865_vm3 = vcmp.ge.f32.partialorder %v19616_v25, 0.0  ;;  %vm10866_vm4 = vcmp.ge.f32.partialorder %v19650_v15, 0.0  ;;  %vm10867_vm6 = vcmp.ge.f32.partialorder %v19673_v30, 0.0 }
 0x990   : > { %v13102_v60 = vpop.eup %13101  ;;  %v9765_v57 = vpop.f32.mrb[248].mxu0  ;;  %13119 = vpow2.f32 %v10789_v47  ;;  %v19689_v36 = vadd.f32 %v19300_v42, %v10368_v13  ;;  %v19694_v6 = vadd.f32 %v19300_v42, %v10369_v18 }
 0x991   : > { %v19682_v33 = vpop.eup %13103  ;;  %v11056_v62 = vmul.f32 %v13102_v60, %v19608_v35  ;;  %v9767_v8 = vpop.f32.mrb[249].mxu0  ;;  %13121 = vpow2.f32 %v10543_v38  ;;  %v10248_v43 = vrot.slane %v9765_v57, 2  ;;  %v10791_v19 = vmul.f32 1.442695, %v10720_v55 }
 0x992   : > { %v13106_v3 = vpop.eup %13105  ;;  %v10912_v63 = vadd.f32 1.0, %v19682_v33  ;;  %v9768_v35 = vpop.f32.mrb[250].mxu0  ;;  %10473 = vst [vmem:[%s19306_s12 + $0xb1] sm:$0xff] %v19689_v36  ;;  %v10545_v45 = vmul.f32 1.442695, %v19689_v36  ;;  %10474 = vst [vmem:[%s19306_s12 + $0xb9] sm:$0xff] %v19694_v6 }
 0x993   : > { %v13108_v0 = vpop.eup %13107  ;;  %v11105_v21 = vsel %vm10860_vm14, %v13102_v60, %v11056_v62  ;;  %10618 = vst.msk [vmem:[%s19306_s12 + $0x91] sm:$0xff] %vm10599_vm9, %v13106_v3  ;;  %v9770_v32 = vpop.f32.mrb[251].mxu0  ;;  %v10672_v42 = vand.u32 2147483647, %v19689_v36  ;;  %v10673_v61 = vand.u32 2147483647, %v19694_v6  ;;  %v10249_v2 = vsel %vm2094_vm5, %v10246_v17, %v10248_v43 }
 0x994   : > { %v13110_v20 = vpop.eup %13109  ;;  %11156 = vst.msk [vmem:[%s19306_s12 + $0x71] sm:$0xff] %vm11141_vm12, %v11105_v21  ;;  %v11057_v52 = vmul.f32 %v13108_v0, %v19634_v50  ;;  %13123 = vrcp.f32 %v10912_v63  ;;  %v10547_v50 = vmul.f32 1.442695, %v19694_v6  ;;  %v10370_v54 = vadd.f32 %v10249_v2, %v19172_v24 }
 0x995   : > { %v19702_v12 = vpop.eup %13111  ;;  %10619 = vst.msk [vmem:[%s19306_s12 + $0x99] sm:$0xff] %vm10599_vm9, %v13110_v20  ;;  %13125 = vpow2.f32 %v10791_v19  ;;  %v10721_v16 = vsub.f32 0.0, %v10672_v42  ;;  %v10722_v14 = vsub.f32 0.0, %v10673_v61  ;;  %vm10868_vm7 = vcmp.ge.f32.partialorder %v19689_v36, 0.0 }
 0x996   : > { %v13114_v9 = vpop.eup %13113  ;;  %v11106_v59 = vsel %vm10861_vm15, %v13108_v0, %v11057_v52  ;;  %v10913_v26 = vadd.f32 1.0, %v19702_v12  ;;  %13127 = vpow2.f32 %v10545_v45  ;;  %v19731_v13 = vadd.f32 %v19728_v41, %v10370_v54 }
 0x997   : > { %v19714_v11 = vpop.eup %13115  ;;  %11157 = vst.msk [vmem:[%s19306_s12 + $0x79] sm:$0xff] %vm11141_vm12, %v11106_v59  ;;  %v11058_v58 = vmul.f32 %v13114_v9, %v19646_v28  ;;  %v10793_v47 = vmul.f32 1.442695, %v10721_v16  ;;  %v10250_v28 = vrot.slane %v9768_v35, 2  ;;  %v10795_v17 = vmul.f32 1.442695, %v10722_v14 }
 0x998   : > { %v13118_v10 = vpop.eup %13117  ;;  %13129 = vrcp.f32 %v10913_v26  ;;  %v10914_v1 = vadd.f32 1.0, %v19714_v11  ;;  %v9773_v38 = vpop.f32.mrb[252].mxu0  ;;  %10475 = vst [vmem:[%s19306_s12 + $0xc1] sm:$0xff] %v19731_v13  ;;  %v10549_v3 = vmul.f32 1.442695, %v19731_v13  ;;  %vm10869_vm8 = vcmp.ge.f32.partialorder %v19694_v6, 0.0 }
 0x999   : > { %v11107_v60 = vsel %vm10862_vm0, %v13114_v9, %v11058_v58  ;;  %10620 = vst.msk [vmem:[%s19306_s12 + $0xa1] sm:$0xff] %vm10599_vm9, %v13118_v10  ;;  %13131 = vpow2.f32 %v10547_v50  ;;  %v10252_v24 = vrot.slane %v9773_v38, 2  ;;  %v9775_v62 = vpop.f32.mrb[253].mxu0  ;;  %v10251_v37 = vsel %vm2094_vm5, %v10248_v43, %v10250_v28 }
 0x99a   : > { %11158 = vst.msk [vmem:[%s19306_s12 + $0x81] sm:$0xff] %vm11141_vm12, %v11107_v60  ;;  %13133 = vrcp.f32 %v10914_v1  ;;  %v19734_v18 = vpop.f32.mrb[254].mxu0  ;;  %v19736_v57 = vpop.eup %13119  ;;  %v10674_v63 = vand.u32 2147483647, %v19731_v13  ;;  %v10371_v21 = vadd.f32 %v10251_v37, %v19176_v49  ;;  %vm10870_vm10 = vcmp.ge.f32.partialorder %v19731_v13, 0.0 }
 0x99b   : > { %13135 = vpow2.f32 %v10793_v47  ;;  %v9778_v55 = vpop.f32.mrb[255].mxu0  ;;  %v13122_v8 = vpop.eup %13121  ;;  %v10915_v0 = vadd.f32 1.0, %v19736_v57  ;;  %v10253_v35 = vsel %vm2094_vm5, %v10250_v28, %v10252_v24  ;;  %v10254_v43 = vrot.slane %v19734_v18, 2 }
 0x99c   : > { %13137 = vpow2.f32 %v10795_v17  ;;  %10621 = vst.msk [vmem:[%s19306_s12 + $0xa9] sm:$0xff] %vm10599_vm9, %v13122_v8  ;;  %v10723_v52 = vsub.f32 0.0, %v10674_v63  ;;  %v10372_v19 = vadd.f32 %v10253_v35, %v19183_v4  ;;  %v19751_v32 = vadd.f32 %v19728_v41, %v10371_v21 }
 0x99d   : > { %13139 = vpow2.f32 %v10549_v3  ;;  %v10255_v49 = vsel %vm2094_vm5, %v10252_v24, %v10254_v43 }
 0x99e   : > { %v13124_v20 = vpop.eup %13123  ;;  %13141 = vrcp.f32 %v10915_v0  ;;  %v10797_v50 = vmul.f32 1.442695, %v10723_v52  ;;  %v19760_v4 = vadd.f32 %v19728_v41, %v10372_v19  ;;  %10476 = vst [vmem:[%s19306_s12 + $0xc9] sm:$0xff] %v19751_v32  ;;  %v10551_v61 = vmul.f32 1.442695, %v19751_v32 }
 0x99f   : > { %v11059_v45 = vmul.f32 %v13124_v20, %v19682_v33  ;;  %v19756_v42 = vpop.eup %13125  ;;  %v10373_v33 = vadd.f32 %v10255_v49, %v19187_v23  ;;  %v10675_v58 = vand.u32 2147483647, %v19751_v32  ;;  %vm10871_vm11 = vcmp.ge.f32.partialorder %v19751_v32, 0.0 }
 0x9a0   : > { %v13128_v9 = vpop.eup %13127  ;;  %v10916_v26 = vadd.f32 1.0, %v19756_v42  ;;  %v9781_v16 = vpop.f32.mrb[0].mxu0  ;;  %13143 = vpow2.f32 %v10797_v50  ;;  %10477 = vst [vmem:[%s19306_s12 + $0xd1] sm:$0xff] %v19760_v4  ;;  %v10553_v23 = vmul.f32 1.442695, %v19760_v4  ;;  %vm10872_vm13 = vcmp.ge.f32.partialorder %v19760_v4, 0.0 }
 0x9a1   : > { %v11108_v59 = vsel %vm10863_vm1, %v13124_v20, %v11059_v45  ;;  %10622 = vst.msk [vmem:[%s19306_s12 + $0xb1] sm:$0xff] %vm10599_vm9, %v13128_v9  ;;  %v10676_v48 = vand.u32 2147483647, %v19760_v4  ;;  %v9783_v10 = vpop.f32.mrb[1].mxu0  ;;  %v10724_v54 = vsub.f32 0.0, %v10675_v58  ;;  %v19781_v38 = vadd.f32 %v19728_v41, %v10373_v33 }
 0x9a2   : > { %v13130_v2 = vpop.eup %13129  ;;  %11159 = vst.msk [vmem:[%s19306_s12 + $0x89] sm:$0xff] %vm11141_vm12, %v11108_v59  ;;  %13145 = vrcp.f32 %v10916_v26  ;;  %v9784_v60 = vpop.f32.mrb[2].mxu0  ;;  %v10256_v17 = vrot.slane %v9781_v16, 2 }
 0x9a3   : > { %v13132_v1 = vpop.eup %13131  ;;  %v11060_v14 = vmul.f32 %v13130_v2, %v19702_v12  ;;  %13147 = vpow2.f32 %v10551_v61  ;;  %v10725_v28 = vsub.f32 0.0, %v10676_v48  ;;  %v9786_v24 = vpop.f32.mrb[3].mxu0  ;;  %v10799_v37 = vmul.f32 1.442695, %v10724_v54  ;;  %10478 = vst [vmem:[%s19306_s12 + $0xd9] sm:$0xff] %v19781_v38 }
 0x9a4   : > { %v13134_v47 = vpop.eup %13133  ;;  %10623 = vst.msk [vmem:[%s19306_s12 + $0xb9] sm:$0xff] %vm10599_vm9, %v13132_v1  ;;  %13149 = vpow2.f32 %v10553_v23  ;;  %v10555_v8 = vmul.f32 1.442695, %v19781_v38  ;;  %v10257_v25 = vsel %vm2094_vm5, %v10254_v43, %v10256_v17  ;;  %v10258_v20 = vrot.slane %v9784_v60, 2 }
 0x9a5   : > { %v19783_v62 = vpop.eup %13135  ;;  %v11109_v46 = vsel %vm10864_vm2, %v13130_v2, %v11060_v14  ;;  %v11061_v12 = vmul.f32 %v13134_v47, %v19714_v11  ;;  %v10801_v55 = vmul.f32 1.442695, %v10725_v28  ;;  %13151 = vpow2.f32 %v10799_v37 }
 0x9a6   : > { %v19786_v3 = vpop.eup %13137  ;;  %11160 = vst.msk [vmem:[%s19306_s12 + $0x91] sm:$0xff] %vm11141_vm12, %v11109_v46  ;;  %v10917_v63 = vadd.f32 1.0, %v19783_v62  ;;  %v10677_v11 = vand.u32 2147483647, %v19781_v38  ;;  %v10374_v45 = vadd.f32 %v10257_v25, %v19194_v34  ;;  %v10259_v33 = vsel %vm2094_vm5, %v10256_v17, %v10258_v20 }
 0x9a7   : > { %v11110_v0 = vsel %vm10865_vm3, %v13134_v47, %v11061_v12  ;;  %v10918_v21 = vadd.f32 1.0, %v19786_v3  ;;  %v13140_v35 = vpop.eup %13139  ;;  %v10375_v26 = vadd.f32 %v10259_v33, %v19198_v31  ;;  %vm10873_vm14 = vcmp.ge.f32.partialorder %v19781_v38, 0.0 }
 0x9a8   : > { %11161 = vst.msk [vmem:[%s19306_s12 + $0x99] sm:$0xff] %vm11141_vm12, %v11110_v0  ;;  %13153 = vrcp.f32 %v10917_v63  ;;  %v13142_v52 = vpop.eup %13141  ;;  %v10726_v19 = vsub.f32 0.0, %v10677_v11  ;;  %v9789_v49 = vpop.f32.mrb[4].mxu0  ;;  %v19809_v59 = vadd.f32 %v19728_v41, %v10374_v45 }
 0x9a9   : > { %13155 = vrcp.f32 %v10918_v21  ;;  %10624 = vst.msk [vmem:[%s19306_s12 + $0xc1] sm:$0xff] %vm10599_vm9, %v13140_v35  ;;  %v11062_v50 = vmul.f32 %v13142_v52, %v19736_v57  ;;  %v10260_v18 = vrot.slane %v9789_v49, 2  ;;  %v9791_v43 = vpop.f32.mrb[5].mxu0  ;;  %v19829_v14 = vadd.f32 %v19728_v41, %v10375_v26 }
 0x9aa   : > { %13157 = vpow2.f32 %v10801_v55  ;;  %v10803_v9 = vmul.f32 1.442695, %v10726_v19  ;;  %v19812_v61 = vpop.f32.mrb[6].mxu0  ;;  %v19814_v34 = vpop.eup %13143  ;;  %10479 = vst [vmem:[%s19306_s12 + $0xe1] sm:$0xff] %v19809_v59  ;;  %v10557_v31 = vmul.f32 1.442695, %v19809_v59 }
 0x9ab   : > { %13159 = vpow2.f32 %v10555_v8  ;;  %v11111_v57 = vsel %vm10866_vm4, %v13142_v52, %v11062_v50  ;;  %v10261_v58 = vsel %vm2094_vm5, %v10258_v20, %v10260_v18  ;;  %v10262_v16 = vrot.slane %v19812_v61, 2  ;;  %v9794_v2 = vpop.f32.mrb[7].mxu0  ;;  %10480 = vst [vmem:[%s19306_s12 + $0xe9] sm:$0xff] %v19829_v14 }
 0x9ac   : > { %v13146_v23 = vpop.eup %13145  ;;  %11162 = vst.msk [vmem:[%s19306_s12 + $0xa1] sm:$0xff] %vm11141_vm12, %v11111_v57  ;;  %v10919_v48 = vadd.f32 1.0, %v19814_v34  ;;  %13161 = vpow2.f32 %v10803_v9  ;;  %v10678_v15 = vand.u32 2147483647, %v19809_v59  ;;  %v10376_v54 = vadd.f32 %v10261_v58, %v19205_v5 }
 0x9ad   : > { %v13148_v10 = vpop.eup %13147  ;;  %v11063_v1 = vmul.f32 %v13146_v23, %v19756_v42  ;;  %v10263_v28 = vsel %vm2094_vm5, %v10260_v18, %v10262_v16  ;;  %v10559_v42 = vmul.f32 1.442695, %v19829_v14  ;;  %v10679_v24 = vand.u32 2147483647, %v19829_v14 }
 0x9ae   : > { %v13150_v60 = vpop.eup %13149  ;;  %13163 = vrcp.f32 %v10919_v48  ;;  %10625 = vst.msk [vmem:[%s19306_s12 + $0xc9] sm:$0xff] %vm10599_vm9, %v13148_v10  ;;  %v10727_v47 = vsub.f32 0.0, %v10678_v15  ;;  %v19848_v46 = vadd.f32 %v19728_v41, %v10376_v54  ;;  %v10377_v12 = vadd.f32 %v10263_v28, %v19209_v27 }
 0x9af   : > { %v11112_v17 = vsel %vm10867_vm6, %v13146_v23, %v11063_v1  ;;  %10626 = vst.msk [vmem:[%s19306_s12 + $0xd1] sm:$0xff] %vm10599_vm9, %v13150_v60  ;;  %13165 = vpow2.f32 %v10557_v31  ;;  %v19842_v5 = vpop.eup %13151  ;;  %v10728_v8 = vsub.f32 0.0, %v10679_v24  ;;  %vm10874_vm15 = vcmp.ge.f32.partialorder %v19809_v59, 0.0 }
 0x9b0   : > { %11163 = vst.msk [vmem:[%s19306_s12 + $0xa9] sm:$0xff] %vm11141_vm12, %v11112_v17  ;;  %v10805_v30 = vmul.f32 1.442695, %v10727_v47  ;;  %v9797_v37 = vpop.f32.mrb[8].mxu0  ;;  %v10920_v55 = vadd.f32 1.0, %v19842_v5  ;;  %13167 = vpow2.f32 %v10559_v42  ;;  %10481 = vst [vmem:[%s19306_s12 + $0xf1] sm:$0xff] %v19848_v46  ;;  %v19871_v6 = vadd.f32 %v19728_v41, %v10377_v12 }
 0x9b1   : > { %v10264_v0 = vrot.slane %v9797_v37, 2  ;;  %v9799_v21 = vpop.f32.mrb[9].mxu0  ;;  %v10561_v25 = vmul.f32 1.442695, %v19848_v46  ;;  %v10680_v27 = vand.u32 2147483647, %v19848_v46 }
 0x9b2   : > { %v13154_v63 = vpop.eup %13153  ;;  %13169 = vpow2.f32 %v10805_v30  ;;  %v19857_v20 = vpop.f32.mrb[10].mxu0  ;;  %10482 = vst [vmem:[%s19306_s12 + $0xf9] sm:$0xff] %v19871_v6  ;;  %v10563_v58 = vmul.f32 1.442695, %v19871_v6  ;;  %vm10875_vm0 = vcmp.ge.f32.partialorder %v19829_v14, 0.0  ;;  %vm10876_vm1 = vcmp.ge.f32.partialorder %v19848_v46, 0.0 }
 0x9b3   : > { %v13156_v11 = vpop.eup %13155  ;;  %v11064_v35 = vmul.f32 %v13154_v63, %v19783_v62  ;;  %13171 = vrcp.f32 %v10920_v55  ;;  %v10807_v62 = vmul.f32 1.442695, %v10728_v8  ;;  %v9802_v45 = vpop.f32.mrb[11].mxu0  ;;  %v10729_v18 = vsub.f32 0.0, %v10680_v27 }
 0x9b4   : > { %v19859_v52 = vpop.eup %13157  ;;  %v11065_v19 = vmul.f32 %v13156_v11, %v19786_v3  ;;  %13173 = vpow2.f32 %v10561_v25  ;;  %v10265_v3 = vsel %vm2094_vm5, %v10262_v16, %v10264_v0  ;;  %v10266_v61 = vrot.slane %v19857_v20, 2 }
 0x9b5   : > { %v13160_v49 = vpop.eup %13159  ;;  %v11113_v50 = vsel %vm10868_vm7, %v13154_v63, %v11064_v35  ;;  %v10921_v33 = vadd.f32 1.0, %v19859_v52  ;;  %13175 = vpow2.f32 %v10807_v62  ;;  %v10809_v36 = vmul.f32 1.442695, %v10729_v18 }
 0x9b6   : > { %11164 = vst.msk [vmem:[%s19306_s12 + $0xb1] sm:$0xff] %vm11141_vm12, %v11113_v50  ;;  %v11114_v43 = vsel %vm10869_vm8, %v13156_v11, %v11065_v19  ;;  %v19874_v9 = vpop.eup %13161  ;;  %v10378_v26 = vadd.f32 %v10265_v3, %v19216_v51  ;;  %v10681_v16 = vand.u32 2147483647, %v19871_v6  ;;  %v10267_v48 = vsel %vm2094_vm5, %v10264_v0, %v10266_v61 }
 0x9b7   : > { %10627 = vst.msk [vmem:[%s19306_s12 + $0xd9] sm:$0xff] %vm10599_vm9, %v13160_v49  ;;  %13177 = vrcp.f32 %v10921_v33  ;;  %v10922_v57 = vadd.f32 1.0, %v19874_v9  ;;  %v10379_v1 = vadd.f32 %v10267_v48, %v19220_v39  ;;  %vm10877_vm2 = vcmp.ge.f32.partialorder %v19871_v6, 0.0 }
 0x9b8   : > { %11165 = vst.msk [vmem:[%s19306_s12 + $0xb9] sm:$0xff] %vm11141_vm12, %v11114_v43  ;;  %v13164_v2 = vpop.eup %13163  ;;  %13179 = vpow2.f32 %v10809_v36  ;;  %v19886_v23 = vadd.f32 %v19728_v41, %v10378_v26  ;;  %v9805_v51 = vpop.f32.mrb[12].mxu0  ;;  %v10730_v10 = vsub.f32 0.0, %v10681_v16 }
 0x9b9   : > { %v13166_v31 = vpop.eup %13165  ;;  %v11066_v15 = vmul.f32 %v13164_v2, %v19814_v34  ;;  %13181 = vrcp.f32 %v10922_v57  ;;  %v9807_v54 = vpop.f32.mrb[13].mxu0  ;;  %v19901_v42 = vadd.f32 %v19728_v41, %v10379_v1  ;;  %v10268_v24 = vrot.slane %v9805_v51, 2 }
 0x9ba   : > { %10628 = vst.msk [vmem:[%s19306_s12 + $0xe1] sm:$0xff] %vm10599_vm9, %v13166_v31  ;;  %13183 = vpow2.f32 %v10563_v58  ;;  %10483 = vst [vmem:[%s19306_s12 + $0x101] sm:$0xff] %v19886_v23  ;;  %v10565_v60 = vmul.f32 1.442695, %v19886_v23  ;;  %v10682_v47 = vand.u32 2147483647, %v19886_v23  ;;  %v13168_v34 = vpop.eup %13167 }
 0x9bb   : > { %v19898_v28 = vpop.f32.mrb[14].mxu0  ;;  %v11115_v17 = vsel %vm10870_vm10, %v13164_v2, %v11066_v15  ;;  %v10811_v39 = vmul.f32 1.442695, %v10730_v10  ;;  %10629 = vst.msk [vmem:[%s19306_s12 + $0xe9] sm:$0xff] %vm10599_vm9, %v13168_v34  ;;  %10484 = vst [vmem:[%s19306_s12 + $0x109] sm:$0xff] %v19901_v42  ;;  %v10269_v25 = vsel %vm2094_vm5, %v10266_v61, %v10268_v24  ;;  %vm10878_vm3 = vcmp.ge.f32.partialorder %v19886_v23, 0.0 }
 0x9bc   : > { %v9810_v13 = vpop.f32.mrb[15].mxu0  ;;  %v19903_v30 = vpop.eup %13169  ;;  %11166 = vst.msk [vmem:[%s19306_s12 + $0xc1] sm:$0xff] %vm11141_vm12, %v11115_v17  ;;  %13185 = vpow2.f32 %v10565_v60  ;;  %v10731_v12 = vsub.f32 0.0, %v10682_v47  ;;  %v10270_v37 = vrot.slane %v19898_v28, 2  ;;  %v10567_v8 = vmul.f32 1.442695, %v19901_v42 }
 0x9bd   : > { %v13172_v63 = vpop.eup %13171  ;;  %v10923_v55 = vadd.f32 1.0, %v19903_v30  ;;  %13187 = vpow2.f32 %v10811_v39  ;;  %v10683_v0 = vand.u32 2147483647, %v19901_v42  ;;  %v10380_v19 = vadd.f32 %v10269_v25, %v19227_v53 }
 0x9be   : > { %v13174_v21 = vpop.eup %13173  ;;  %v11067_v11 = vmul.f32 %v13172_v63, %v19842_v5  ;;  %v10813_v35 = vmul.f32 1.442695, %v10731_v12  ;;  %v10271_v62 = vsel %vm2094_vm5, %v10268_v24, %v10270_v37  ;;  %vm10879_vm4 = vcmp.ge.f32.partialorder %v19901_v42, 0.0 }
 0x9bf   : > { %v19918_v27 = vpop.eup %13175  ;;  %13189 = vrcp.f32 %v10923_v55  ;;  %10630 = vst.msk [vmem:[%s19306_s12 + $0xf1] sm:$0xff] %vm10599_vm9, %v13174_v21  ;;  %v10732_v20 = vsub.f32 0.0, %v10683_v0  ;;  %v10381_v5 = vadd.f32 %v10271_v62, %v19231_v29  ;;  %v19930_v43 = vadd.f32 %v19728_v41, %v10380_v19 }
 0x9c0   : > { %v11116_v49 = vsel %vm10871_vm11, %v13172_v63, %v11067_v11  ;;  %v10924_v32 = vadd.f32 1.0, %v19918_v27  ;;  %13191 = vpow2.f32 %v10813_v35  ;;  %v9813_v50 = vpop.f32.mrb[16].mxu0 }
 0x9c1   : > { %v13178_v45 = vpop.eup %13177  ;;  %11167 = vst.msk [vmem:[%s19306_s12 + $0xc9] sm:$0xff] %vm11141_vm12, %v11116_v49  ;;  %13193 = vpow2.f32 %v10567_v8  ;;  %v10815_v18 = vmul.f32 1.442695, %v10732_v20  ;;  %v9815_v53 = vpop.f32.mrb[17].mxu0  ;;  %v19936_v29 = vadd.f32 %v19728_v41, %v10381_v5  ;;  %v10272_v36 = vrot.slane %v9813_v50, 2  ;;  %10485 = vst [vmem:[%s19306_s12 + $0x111] sm:$0xff] %v19930_v43 }
 0x9c2   : > { %v11068_v33 = vmul.f32 %v13178_v45, %v19859_v52  ;;  %v19932_v3 = vpop.eup %13179  ;;  %13195 = vrcp.f32 %v10924_v32  ;;  %v9816_v26 = vpop.f32.mrb[18].mxu0  ;;  %v10569_v58 = vmul.f32 1.442695, %v19930_v43  ;;  %v10684_v48 = vand.u32 2147483647, %v19930_v43 }
 0x9c3   : > { %v13182_v52 = vpop.eup %13181  ;;  %v10925_v57 = vadd.f32 1.0, %v19932_v3  ;;  %13197 = vpow2.f32 %v10815_v18  ;;  %v9818_v16 = vpop.f32.mrb[19].mxu0  ;;  %10486 = vst [vmem:[%s19306_s12 + $0x119] sm:$0xff] %v19936_v29  ;;  %v10571_v51 = vmul.f32 1.442695, %v19936_v29  ;;  %v10273_v15 = vsel %vm2094_vm5, %v10270_v37, %v10272_v36 }
 0x9c4   : > { %v11117_v61 = vsel %vm10872_vm13, %v13178_v45, %v11068_v33  ;;  %v13184_v2 = vpop.eup %13183  ;;  %v11069_v4 = vmul.f32 %v13182_v52, %v19874_v9  ;;  %v10685_v31 = vand.u32 2147483647, %v19936_v29  ;;  %v10733_v9 = vsub.f32 0.0, %v10684_v48 }
 0x9c5   : > { %11168 = vst.msk [vmem:[%s19306_s12 + $0xd1] sm:$0xff] %vm11141_vm12, %v11117_v61  ;;  %13199 = vrcp.f32 %v10925_v57  ;;  %v10382_v54 = vadd.f32 %v10273_v15, %v19238_v56  ;;  %v10274_v47 = vrot.slane %v9816_v26, 2  ;;  %vm10880_vm6 = vcmp.ge.f32.partialorder %v19930_v43, 0.0 }
 0x9c6   : > { %10631 = vst.msk [vmem:[%s19306_s12 + $0xf9] sm:$0xff] %vm10599_vm9, %v13184_v2  ;;  %v13186_v10 = vpop.eup %13185  ;;  %v11118_v1 = vsel %vm10873_vm14, %v13182_v52, %v11069_v4  ;;  %13201 = vpow2.f32 %v10569_v58  ;;  %v10734_v38 = vsub.f32 0.0, %v10685_v31  ;;  %v10817_v34 = vmul.f32 1.442695, %v10733_v9 }
 0x9c7   : > { %v19955_v60 = vpop.eup %13187  ;;  %11169 = vst.msk [vmem:[%s19306_s12 + $0xd9] sm:$0xff] %vm11141_vm12, %v11118_v1  ;;  %13203 = vpow2.f32 %v10571_v51  ;;  %v19963_v17 = vadd.f32 %v19728_v41, %v10382_v54  ;;  %v10275_v13 = vsel %vm2094_vm5, %v10272_v36, %v10274_v47  ;;  %vm10881_vm7 = vcmp.ge.f32.partialorder %v19936_v29, 0.0 }
 0x9c8   : > { %10632 = vst.msk [vmem:[%s19306_s12 + $0x101] sm:$0xff] %vm10599_vm9, %v13186_v10  ;;  %v10926_v28 = vadd.f32 1.0, %v19955_v60  ;;  %v9821_v39 = vpop.f32.mrb[20].mxu0  ;;  %v10819_v56 = vmul.f32 1.442695, %v10734_v38  ;;  %v10383_v25 = vadd.f32 %v10275_v13, %v19242_v44 }
 0x9c9   : > { %v13190_v24 = vpop.eup %13189  ;;  %v10276_v12 = vrot.slane %v9821_v39, 2  ;;  %v9823_v37 = vpop.f32.mrb[21].mxu0  ;;  %10487 = vst [vmem:[%s19306_s12 + $0x121] sm:$0xff] %v19963_v17  ;;  %v10573_v8 = vmul.f32 1.442695, %v19963_v17  ;;  %vm10882_vm8 = vcmp.ge.f32.partialorder %v19963_v17, 0.0 }
 0x9ca   : > { %v19967_v63 = vpop.eup %13191  ;;  %v11070_v55 = vmul.f32 %v13190_v24, %v19903_v30  ;;  %13205 = vrcp.f32 %v10926_v28  ;;  %v10686_v0 = vand.u32 2147483647, %v19963_v17  ;;  %v9824_v21 = vpop.f32.mrb[22].mxu0  ;;  %v19988_v44 = vadd.f32 %v19728_v41, %v10383_v25  ;;  %v21101_v17 = vld [vmem:[#allocation62_spill] sm:$0xff] }
 0x9cb   : > { %v13194_v11 = vpop.eup %13193  ;;  %v10927_v35 = vadd.f32 1.0, %v19967_v63  ;;  %13207 = vpow2.f32 %v10817_v34  ;;  %v9826_v20 = vpop.f32.mrb[23].mxu0  ;;  %v10277_v45 = vsel %vm2094_vm5, %v10274_v47, %v10276_v12  ;;  %v10278_v33 = vrot.slane %v9824_v21, 2 }
 0x9cc   : > { %v13196_v19 = vpop.eup %13195  ;;  %v11119_v30 = vsel %vm10874_vm15, %v13190_v24, %v11070_v55  ;;  %10633 = vst.msk [vmem:[%s19306_s12 + $0x109] sm:$0xff] %vm10599_vm9, %v13194_v11  ;;  %13209 = vpow2.f32 %v10819_v56  ;;  %v10735_v62 = vsub.f32 0.0, %v10686_v0  ;;  %v10384_v59 = vadd.f32 %v10277_v45, %v19248_v40  ;;  %10488 = vst [vmem:[%s19306_s12 + $0x129] sm:$0xff] %v19988_v44 }
 0x9cd   : > { %v19982_v49 = vpop.eup %13197  ;;  %11170 = vst.msk [vmem:[%s19306_s12 + $0xe1] sm:$0xff] %vm11141_vm12, %v11119_v30  ;;  %v11071_v32 = vmul.f32 %v13196_v19, %v19918_v27  ;;  %13211 = vrcp.f32 %v10927_v35  ;;  %v10575_v27 = vmul.f32 1.442695, %v19988_v44  ;;  %v10687_v36 = vand.u32 2147483647, %v19988_v44 }
 0x9ce   : > { %v10928_v5 = vadd.f32 1.0, %v19982_v49  ;;  %13213 = vpow2.f32 %v10573_v8  ;;  %v10821_v50 = vmul.f32 1.442695, %v10735_v62  ;;  %v20003_v52 = vadd.f32 %v19728_v41, %v10384_v59  ;;  %v21097_v62 = vld [vmem:[#allocation94_spill] sm:$0xff] }
 0x9cf   : > { %v13200_v18 = vpop.eup %13199  ;;  %v11120_v53 = vsel %vm10875_vm0, %v13196_v19, %v11071_v32  ;;  %v10279_v14 = vsel %vm2094_vm5, %v10276_v12, %v10278_v33  ;;  %v10736_v58 = vsub.f32 0.0, %v10687_v36  ;;  %vm10883_vm10 = vcmp.ge.f32.partialorder %v19988_v44, 0.0 }
 0x9d0   : > { %v13202_v40 = vpop.eup %13201  ;;  %11171 = vst.msk [vmem:[%s19306_s12 + $0xe9] sm:$0xff] %vm11141_vm12, %v11120_v53  ;;  %v11072_v26 = vmul.f32 %v13200_v18, %v19932_v3  ;;  %13215 = vrcp.f32 %v10928_v5  ;;  %v9829_v61 = vpop.f32.mrb[24].mxu0  ;;  %v10385_v16 = vadd.f32 %v10279_v14, %v19252_v22  ;;  %10489 = vst [vmem:[%s19306_s12 + $0x131] sm:$0xff] %v20003_v52  ;;  %v10577_v48 = vmul.f32 1.442695, %v20003_v52 }
 0x9d1   : > { %v13204_v57 = vpop.eup %13203  ;;  %10634 = vst.msk [vmem:[%s19306_s12 + $0x111] sm:$0xff] %vm10599_vm9, %v13202_v40  ;;  %13217 = vpow2.f32 %v10821_v50  ;;  %v10280_v2 = vrot.slane %v9829_v61, 2  ;;  %v9831_v4 = vpop.f32.mrb[25].mxu0  ;;  %v10688_v51 = vand.u32 2147483647, %v20003_v52  ;;  %vm10647_vm15 = vcmask 112728  }
 0x9d2   : > { %v11121_v3 = vsel %vm10876_vm1, %v13200_v18, %v11072_v26  ;;  %10635 = vst.msk [vmem:[%s19306_s12 + $0x119] sm:$0xff] %vm10599_vm9, %v13204_v57  ;;  %13219 = vpow2.f32 %v10575_v27  ;;  %v20017_v31 = vpop.f32.mrb[26].mxu0  ;;  %v10823_v22 = vmul.f32 1.442695, %v10736_v58  ;;  %v20023_v46 = vadd.f32 %v19728_v41, %v10385_v16  ;;  %v21098_v58 = vld [vmem:[#allocation85_spill] sm:$0xff] }
 0x9d3   : > { %11172 = vst.msk [vmem:[%s19306_s12 + $0xf1] sm:$0xff] %vm11141_vm12, %v11121_v3  ;;  %v10281_v15 = vsel %vm2094_vm5, %v10278_v33, %v10280_v2  ;;  %v9834_v10 = vpop.f32.mrb[27].mxu0  ;;  %13221 = vpow2.f32 %v10577_v48  ;;  %v10737_v9 = vsub.f32 0.0, %v10688_v51  ;;  %v10282_v38 = vrot.slane %v20017_v31, 2 }
 0x9d4   : > { %v13206_v1 = vpop.eup %13205  ;;  %v10386_v54 = vadd.f32 %v10281_v15, %v19259_v7  ;;  %13223 = vpow2.f32 %v10823_v22  ;;  %10490 = vst [vmem:[%s19306_s12 + $0x139] sm:$0xff] %v20023_v46  ;;  %v10579_v34 = vmul.f32 1.442695, %v20023_v46  ;;  %v10689_v39 = vand.u32 2147483647, %v20023_v46 }
 0x9d5   : > { %v20028_v47 = vpop.eup %13207  ;;  %v11073_v28 = vmul.f32 %v13206_v1, %v19955_v60  ;;  %v10825_v56 = vmul.f32 1.442695, %v10737_v9  ;;  %v10283_v25 = vsel %vm2094_vm5, %v10280_v2, %v10282_v38  ;;  %v21099_v2 = vld [vmem:[#allocation95_spill] sm:$0xff]  ;;  %vm10885_vm11 = vcmp.ge.f32.partialorder %v20023_v46, 0.0 }
 0x9d6   : > { %v20035_v24 = vpop.eup %13209  ;;  %v10929_v7 = vadd.f32 1.0, %v20028_v47  ;;  %v20040_v13 = vadd.f32 %v19728_v41, %v10386_v54  ;;  %13225 = vpow2.f32 %v10579_v34  ;;  %v10738_v55 = vsub.f32 0.0, %v10689_v39 }
 0x9d7   : > { %v13212_v60 = vpop.eup %13211  ;;  %v11122_v12 = vsel %vm10877_vm2, %v13206_v1, %v11073_v28  ;;  %v10930_v37 = vadd.f32 1.0, %v20035_v24  ;;  %v10387_v45 = vadd.f32 %v10283_v25, %v21097_v62 }
 0x9d8   : > { %v13214_v8 = vpop.eup %13213  ;;  %11173 = vst.msk [vmem:[%s19306_s12 + $0xf9] sm:$0xff] %vm11141_vm12, %v11122_v12  ;;  %v11074_v0 = vmul.f32 %v13212_v60, %v19967_v63  ;;  %13227 = vrcp.f32 %v10929_v7  ;;  %10491 = vst [vmem:[%s19306_s12 + $0x141] sm:$0xff] %v20040_v13  ;;  %v10581_v21 = vmul.f32 1.442695, %v20040_v13  ;;  %v10690_v11 = vand.u32 2147483647, %v20040_v13 }
 0x9d9   : > { %v9837_v35 = vpop.f32.mrb[28].mxu0  ;;  %13229 = vrcp.f32 %v10930_v37  ;;  %10636 = vst.msk [vmem:[%s19306_s12 + $0x121] sm:$0xff] %vm10599_vm9, %v13214_v8  ;;  %v10827_v6 = vmul.f32 1.442695, %v10738_v55  ;;  %v20069_v36 = vadd.f32 %v19728_v41, %v10387_v45  ;;  %vm10886_vm13 = vcmp.ge.f32.partialorder %v20040_v13, 0.0 }
 0x9da   : > { %v9839_v20 = vpop.f32.mrb[29].mxu0  ;;  %v13216_v19 = vpop.eup %13215  ;;  %v11123_v63 = vsel %vm10878_vm3, %v13212_v60, %v11074_v0  ;;  %13231 = vpow2.f32 %v10825_v56  ;;  %v10739_v30 = vsub.f32 0.0, %v10690_v11  ;;  %v10284_v50 = vrot.slane %v9837_v35, 2 }
 0x9db   : > { %v20059_v32 = vpop.f32.mrb[30].mxu0  ;;  %v20061_v59 = vpop.eup %13217  ;;  %11174 = vst.msk [vmem:[%s19306_s12 + $0x101] sm:$0xff] %vm11141_vm12, %v11123_v63  ;;  %v11075_v5 = vmul.f32 %v13216_v19, %v19982_v49  ;;  %13233 = vpow2.f32 %v10827_v6  ;;  %10492 = vst [vmem:[%s19306_s12 + $0x149] sm:$0xff] %v20069_v36  ;;  %v10583_v61 = vmul.f32 1.442695, %v20069_v36  ;;  %v21100_v63 = vld [vmem:[#allocation33_spill] sm:$0xff] }
 0x9dc   : > { %v10286_v23 = vrot.slane %v20059_v32, 2  ;;  %v9842_v33 = vpop.f32.mrb[31].mxu0  ;;  %v13220_v18 = vpop.eup %13219  ;;  %v10931_v53 = vadd.f32 1.0, %v20061_v59  ;;  %13235 = vpow2.f32 %v10581_v21  ;;  %v10829_v27 = vmul.f32 1.442695, %v10739_v30 }
 0x9dd   : > { %v11124_v40 = vsel %vm10879_vm4, %v13216_v19, %v11075_v5  ;;  %10637 = vst.msk [vmem:[%s19306_s12 + $0x129] sm:$0xff] %vm10599_vm9, %v13220_v18  ;;  %v10285_v49 = vsel %vm2094_vm5, %v10282_v38, %v10284_v50  ;;  %v13222_v14 = vpop.eup %13221  ;;  %v10691_v57 = vand.u32 2147483647, %v20069_v36  ;;  %vm10887_vm14 = vcmp.ge.f32.partialorder %v20069_v36, 0.0 }
 0x9de   : > { %v10287_v26 = vsel %vm2094_vm5, %v10284_v50, %v10286_v23  ;;  %11175 = vst.msk [vmem:[%s19306_s12 + $0x109] sm:$0xff] %vm11141_vm12, %v11124_v40  ;;  %13237 = vrcp.f32 %v10931_v53  ;;  %v20085_v42 = vpop.eup %13223  ;;  %v10388_v16 = vadd.f32 %v10285_v49, %v21098_v58  ;;  %vm11189_vm4 = vcmask 137328  }
 0x9df   : > { %10638 = vst.msk [vmem:[%s19306_s12 + $0x131] sm:$0xff] %vm10599_vm9, %v13222_v14  ;;  %13239 = vpow2.f32 %v10829_v27  ;;  %v10389_v4 = vadd.f32 %v10287_v26, %v21099_v2  ;;  %v10932_v3 = vadd.f32 1.0, %v20085_v42  ;;  %v10740_v48 = vsub.f32 0.0, %v10691_v57 }
 0x9e0   : > { %13241 = vpow2.f32 %v10583_v61  ;;  %v9845_v51 = vpop.f32.mrb[32].mxu0  ;;  %v13226_v31 = vpop.eup %13225  ;;  %v20093_v22 = vadd.f32 %v19728_v41, %v10388_v16 }
 0x9e1   : > { %v20096_v15 = vadd.f32 %v19728_v41, %v10389_v4  ;;  %v9847_v10 = vpop.f32.mrb[33].mxu0  ;;  %13243 = vrcp.f32 %v10932_v3  ;;  %10639 = vst.msk [vmem:[%s19306_s12 + $0x139] sm:$0xff] %vm10599_vm9, %v13226_v31  ;;  %v10831_v9 = vmul.f32 1.442695, %v10740_v48  ;;  %v10288_v7 = vrot.slane %v9845_v51, 2  ;;  %v21102_v4 = vld [vmem:[#allocation96_spill] sm:$0xff] }
 0x9e2   : > { %v13228_v1 = vpop.eup %13227  ;;  %v9848_v54 = vpop.f32.mrb[34].mxu0  ;;  %10493 = vst [vmem:[%s19306_s12 + $0x151] sm:$0xff] %v20093_v22  ;;  %v10585_v34 = vmul.f32 1.442695, %v20093_v22  ;;  %v10692_v39 = vand.u32 2147483647, %v20093_v22 }
 0x9e3   : > { %v13230_v38 = vpop.eup %13229  ;;  %v11076_v28 = vmul.f32 %v13228_v1, %v20028_v47  ;;  %10494 = vst [vmem:[%s19306_s12 + $0x159] sm:$0xff] %v20096_v15  ;;  %v9850_v56 = vpop.f32.mrb[35].mxu0  ;;  %13245 = vpow2.f32 %v10831_v9  ;;  %v10587_v47 = vmul.f32 1.442695, %v20096_v15  ;;  %v10693_v37 = vand.u32 2147483647, %v20096_v15 }
 0x9e4   : > { %v20109_v60 = vpop.eup %13231  ;;  %v11077_v12 = vmul.f32 %v13230_v38, %v20035_v24  ;;  %13247 = vpow2.f32 %v10585_v34  ;;  %v10741_v21 = vsub.f32 0.0, %v10692_v39  ;;  %v10289_v25 = vsel %vm2094_vm5, %v10286_v23, %v10288_v7  ;;  %v21103_v10 = vld [vmem:[#allocation86_spill] sm:$0xff] }
 0x9e5   : > { %v20114_v55 = vpop.eup %13233  ;;  %v11125_v8 = vsel %vm10880_vm6, %v13228_v1, %v11076_v28  ;;  %v10933_v0 = vadd.f32 1.0, %v20109_v60  ;;  %13249 = vpow2.f32 %v10587_v47  ;;  %v10742_v6 = vsub.f32 0.0, %v10693_v37 }
 0x9e6   : > { %v13236_v11 = vpop.eup %13235  ;;  %11176 = vst.msk [vmem:[%s19306_s12 + $0x111] sm:$0xff] %vm11141_vm12, %v11125_v8  ;;  %v11126_v24 = vsel %vm10881_vm7, %v13230_v38, %v11077_v12  ;;  %v10934_v35 = vadd.f32 1.0, %v20114_v55  ;;  %v10833_v43 = vmul.f32 1.442695, %v10741_v21  ;;  %v10390_v29 = vadd.f32 %v10289_v25, %v21100_v63 }
 0x9e7   : > { %11177 = vst.msk [vmem:[%s19306_s12 + $0x119] sm:$0xff] %vm11141_vm12, %v11126_v24  ;;  %13251 = vrcp.f32 %v10933_v0  ;;  %v10835_v19 = vmul.f32 1.442695, %v10742_v6  ;;  %v10290_v30 = vrot.slane %v9848_v54, 2  ;;  %vm10888_vm0 = vcmp.ge.f32.partialorder %v20093_v22, 0.0 }
 0x9e8   : > { %10640 = vst.msk [vmem:[%s19306_s12 + $0x141] sm:$0xff] %vm10599_vm9, %v13236_v11  ;;  %v13238_v20 = vpop.eup %13237  ;;  %13253 = vrcp.f32 %v10934_v35  ;;  %v9853_v62 = vpop.f32.mrb[36].mxu0  ;;  %v20138_v18 = vadd.f32 %v19728_v41, %v10390_v29  ;;  %vm10889_vm1 = vcmp.ge.f32.partialorder %v20096_v15, 0.0 }
 0x9e9   : > { %v20132_v45 = vpop.eup %13239  ;;  %v11078_v5 = vmul.f32 %v13238_v20, %v20061_v59  ;;  %13255 = vpow2.f32 %v10833_v43  ;;  %v10292_v50 = vrot.slane %v9853_v62, 2  ;;  %v9855_v32 = vpop.f32.mrb[37].mxu0  ;;  %v10291_v53 = vsel %vm2094_vm5, %v10288_v7, %v10290_v30 }
 0x9ea   : > { %v13242_v23 = vpop.eup %13241  ;;  %v10935_v33 = vadd.f32 1.0, %v20132_v45  ;;  %13257 = vpow2.f32 %v10835_v19  ;;  %v9856_v27 = vpop.f32.mrb[38].mxu0  ;;  %v10391_v59 = vadd.f32 %v10291_v53, %v21101_v17  ;;  %10495 = vst [vmem:[%s19306_s12 + $0x161] sm:$0xff] %v20138_v18  ;;  %v10589_v57 = vmul.f32 1.442695, %v20138_v18 }
 0x9eb   : > { %v11127_v40 = vsel %vm10882_vm8, %v13238_v20, %v11078_v5  ;;  %10641 = vst.msk [vmem:[%s19306_s12 + $0x149] sm:$0xff] %vm10599_vm9, %v13242_v23  ;;  %v10293_v49 = vsel %vm2094_vm5, %v10290_v30, %v10292_v50  ;;  %v10294_v26 = vrot.slane %v9856_v27, 2  ;;  %v9858_v14 = vpop.f32.mrb[39].mxu0  ;;  %v13244_v61 = vpop.eup %13243  ;;  %v10694_v58 = vand.u32 2147483647, %v20138_v18 }
 0x9ec   : > { %11178 = vst.msk [vmem:[%s19306_s12 + $0x121] sm:$0xff] %vm11141_vm12, %v11127_v40  ;;  %13259 = vrcp.f32 %v10935_v33  ;;  %v11079_v16 = vmul.f32 %v13244_v61, %v20085_v42  ;;  %v20153_v2 = vadd.f32 %v19728_v41, %v10391_v59  ;;  %v10392_v3 = vadd.f32 %v10293_v49, %v21102_v4 }
 0x9ed   : > { %v10295_v48 = vsel %vm2094_vm5, %v10292_v50, %v10294_v26  ;;  %v13246_v51 = vpop.eup %13245  ;;  %13261 = vpow2.f32 %v10589_v57  ;;  %v10743_v31 = vsub.f32 0.0, %v10694_v58  ;;  %vm10884_vm5 = vcmp.ge.f32.partialorder %v20003_v52, 0.0 }
 0x9ee   : > { %v10393_v1 = vadd.f32 %v10295_v48, %v21103_v10  ;;  %v13248_v9 = vpop.eup %13247  ;;  %v11128_v54 = vsel %vm10883_vm10, %v13244_v61, %v11079_v16  ;;  %v10936_v42 = vadd.f32 1.0, %v13246_v51  ;;  %10496 = vst [vmem:[%s19306_s12 + $0x169] sm:$0xff] %v20153_v2  ;;  %v10591_v38 = vmul.f32 1.442695, %v20153_v2 }
 0x9ef   : > { %v10695_v28 = vand.u32 2147483647, %v20153_v2  ;;  %v13250_v34 = vpop.eup %13249  ;;  %11179 = vst.msk [vmem:[%s19306_s12 + $0x129] sm:$0xff] %vm11141_vm12, %v11128_v54  ;;  %v10837_v44 = vmul.f32 1.442695, %v10743_v31  ;;  %v20168_v39 = vadd.f32 %v19728_v41, %v10392_v3  ;;  %vm10891_vm2 = vcmp.ge.f32.partialorder %v20153_v2, 0.0 }
 0x9f0   : > { %10642 = vst.msk [vmem:[%s19306_s12 + $0x151] sm:$0xff] %vm10599_vm9, %v13248_v9  ;;  %v20171_v7 = vadd.f32 %v19728_v41, %v10393_v1  ;;  %13263 = vrcp.f32 %v10936_v42  ;;  %10643 = vst.msk [vmem:[%s19306_s12 + $0x159] sm:$0xff] %vm10599_vm9, %v13250_v34 }
 0x9f1   : > { %v13252_v56 = vpop.eup %13251  ;;  %v10744_v12 = vsub.f32 0.0, %v10695_v28  ;;  %13265 = vpow2.f32 %v10837_v44  ;;  %10497 = vst [vmem:[%s19306_s12 + $0x171] sm:$0xff] %v20168_v39  ;;  %v10593_v8 = vmul.f32 1.442695, %v20168_v39  ;;  %v10696_v0 = vand.u32 2147483647, %v20168_v39 }
 0x9f2   : > { %v13254_v47 = vpop.eup %13253  ;;  %v11080_v37 = vmul.f32 %v13252_v56, %v20109_v60  ;;  %10498 = vst [vmem:[%s19306_s12 + $0x179] sm:$0x7f] %v20171_v7  ;;  %13267 = vpow2.f32 %v10591_v38  ;;  %v10595_v46 = vmul.f32 1.442695, %v20171_v7  ;;  %v10697_v52 = vand.u32 2147483647, %v20171_v7 }
 0x9f3   : > { %v13256_v41 = vpop.eup %13255  ;;  %v11081_v21 = vmul.f32 %v13254_v47, %v20114_v55  ;;  %v10839_v11 = vmul.f32 1.442695, %v10744_v12  ;;  %13269 = vpow2.f32 %v10593_v8  ;;  %v10745_v6 = vsub.f32 0.0, %v10696_v0 }
 0x9f4   : > { %v13258_v24 = vpop.eup %13257  ;;  %v11129_v60 = vsel %vm10884_vm5, %v13252_v56, %v11080_v37  ;;  %v10937_v35 = vadd.f32 1.0, %v13256_v41  ;;  %v10746_v29 = vsub.f32 0.0, %v10697_v52  ;;  %vm10892_vm3 = vcmp.ge.f32.partialorder %v20168_v39, 0.0 }
 0x9f5   : > { %11180 = vst.msk [vmem:[%s19306_s12 + $0x131] sm:$0xff] %vm11141_vm12, %v11129_v60  ;;  %v11130_v43 = vsel %vm10885_vm11, %v13254_v47, %v11081_v21  ;;  %v10938_v25 = vadd.f32 1.0, %v13258_v24  ;;  %13271 = vpow2.f32 %v10839_v11  ;;  %v10841_v55 = vmul.f32 1.442695, %v10745_v6 }
 0x9f6   : > { %v13260_v20 = vpop.eup %13259  ;;  %11181 = vst.msk [vmem:[%s19306_s12 + $0x139] sm:$0xff] %vm11141_vm12, %v11130_v43  ;;  %13273 = vrcp.f32 %v10937_v35  ;;  %v10843_v62 = vmul.f32 1.442695, %v10746_v29  ;;  %vm10893_vm6 = vcmp.ge.f32.partialorder %v20171_v7, 0.0 }
 0x9f7   : > { %v11082_v19 = vmul.f32 %v13260_v20, %v20132_v45  ;;  %13275 = vrcp.f32 %v10938_v25  ;;  %v13262_v63 = vpop.eup %13261 }
 0x9f8   : > { %13277 = vpow2.f32 %v10841_v55  ;;  %10644 = vst.msk [vmem:[%s19306_s12 + $0x161] sm:$0xff] %vm10599_vm9, %v13262_v63 }
 0x9f9   : > { %v11131_v30 = vsel %vm10886_vm13, %v13260_v20, %v11082_v19  ;;  %13279 = vpow2.f32 %v10595_v46 }
 0x9fa   : > { %11182 = vst.msk [vmem:[%s19306_s12 + $0x141] sm:$0xff] %vm11141_vm12, %v11131_v30  ;;  %v13264_v5 = vpop.eup %13263  ;;  %13281 = vpow2.f32 %v10843_v62 }
 0x9fb   : > { %v13266_v50 = vpop.eup %13265  ;;  %v11083_v32 = vmul.f32 %v13264_v5, %v13246_v51 }
 0x9fc   : > { %v13268_v45 = vpop.eup %13267  ;;  %v10939_v13 = vadd.f32 1.0, %v13266_v50 }
 0x9fd   : > { %v13270_v23 = vpop.eup %13269  ;;  %v11132_v33 = vsel %vm10887_vm14, %v13264_v5, %v11083_v32  ;;  %10645 = vst.msk [vmem:[%s19306_s12 + $0x169] sm:$0xff] %vm10599_vm9, %v13268_v45 }
 0x9fe   : > { %11183 = vst.msk [vmem:[%s19306_s12 + $0x149] sm:$0xff] %vm11141_vm12, %v11132_v33  ;;  %13283 = vrcp.f32 %v10939_v13 }
 0x9ff   : > { %v13272_v53 = vpop.eup %13271  ;;  %10646 = vst.msk [vmem:[%s19306_s12 + $0x171] sm:$0xff] %vm10599_vm9, %v13270_v23  ;;  %vm10890_vm9 = vcmp.ge.f32.partialorder %v20138_v18, 0.0 }
 0xa00   : > { %v13274_v27 = vpop.eup %13273  ;;  %v10940_v40 = vadd.f32 1.0, %v13272_v53 }
 0xa01   : > { %v13276_v17 = vpop.eup %13275  ;;  %v11084_v59 = vmul.f32 %v13274_v27, %v13256_v41 }
 0xa02   : > { %v13278_v36 = vpop.eup %13277  ;;  %v11085_v49 = vmul.f32 %v13276_v17, %v13258_v24  ;;  %13285 = vrcp.f32 %v10940_v40 }
 0xa03   : > { %v13280_v26 = vpop.eup %13279  ;;  %v11133_v14 = vsel %vm10888_vm0, %v13274_v27, %v11084_v59  ;;  %v10941_v61 = vadd.f32 1.0, %v13278_v36 }
 0xa04   : > { %11184 = vst.msk [vmem:[%s19306_s12 + $0x151] sm:$0xff] %vm11141_vm12, %v11133_v14  ;;  %v11134_v57 = vsel %vm10889_vm1, %v13276_v17, %v11085_v49  ;;  %v13282_v58 = vpop.eup %13281 }
 0xa05   : > { %10648 = vst.msk [vmem:[%s19306_s12 + $0x179] sm:$0x7f] %vm10647_vm15, %v13280_v26  ;;  %13287 = vrcp.f32 %v10941_v61  ;;  %v10942_v16 = vadd.f32 1.0, %v13282_v58 }
 0xa06   : > { %11185 = vst.msk [vmem:[%s19306_s12 + $0x159] sm:$0xff] %vm11141_vm12, %v11134_v57 }
 0xa07   : > { %13289 = vrcp.f32 %v10942_v16 }
 0xa08   : > { %v13284_v4 = vpop.eup %13283 }
 0xa09   : > { %v11086_v22 = vmul.f32 %v13284_v4, %v13266_v50 }
 0xa0b   : > { %v11135_v48 = vsel %vm10890_vm9, %v13284_v4, %v11086_v22 }
 0xa0c   : > { %v13286_v3 = vpop.eup %13285  ;;  %11186 = vst.msk [vmem:[%s19306_s12 + $0x161] sm:$0xff] %vm11141_vm12, %v11135_v48 }
 0xa0d   : > { %v11087_v15 = vmul.f32 %v13286_v3, %v13272_v53 }
 0xa0f   : > { %v13288_v51 = vpop.eup %13287  ;;  %v11136_v31 = vsel %vm10891_vm2, %v13286_v3, %v11087_v15 }
 0xa10   : > { %11187 = vst.msk [vmem:[%s19306_s12 + $0x169] sm:$0xff] %vm11141_vm12, %v11136_v31  ;;  %v11088_v10 = vmul.f32 %v13288_v51, %v13278_v36 }
 0xa11   : > { %v13290_v9 = vpop.eup %13289 }
 0xa12   : > { %v11137_v1 = vsel %vm10892_vm3, %v13288_v51, %v11088_v10  ;;  %v11089_v18 = vmul.f32 %v13290_v9, %v13282_v58 }
 0xa13   : > { %11188 = vst.msk [vmem:[%s19306_s12 + $0x171] sm:$0xff] %vm11141_vm12, %v11137_v1 }
 0xa14   : > { %v11138_v54 = vsel %vm10893_vm6, %v13290_v9, %v11089_v18 }
 0xa15   : > { %11190 = vst.msk [vmem:[%s19306_s12 + $0x179] sm:$0x7f] %vm11189_vm4, %v11138_v54 }
 0xa16 PF: > { %s22_s13 = sadd.s32 1, %s13502_s13  }
 0xa17   : > { %p19_p5 = scmp.ge.s32.totalorder %s22_s13, 4  }
 0xa19   :  { %21 = sbr.rel (!%p19_p5) target bundleno = 2 (0x2), region = 109 }
 0xa20   :  { %11212 = vsyncpa [#allocation5], 1 }
 0xa21   :  { %11214 = vsyncpa [#allocation5 + $0x1], 1 }
 0xa22   :  { %11215 = vsyncpa [#allocation7], 1 }

</bundles_post_ra>
